<compile_context>
chip_gen: v7x
topology: tpu7x:2x2x1
jax: 0.10.0
libtpu: 0.0.40
codegen_flags: <defaults>
</compile_context>

<pallas_src>
import math
import jax
import jax.numpy as jnp
from jax import lax
from jax.experimental import pallas as pl
from jax.experimental.pallas import tpu as pltpu

HIDDEN_DIM = 64
INPUT_DIM = 1
NUM_LAYERS = 2
OUTPUT_DIM = 1

HP = 128          # padded per-gate OUTPUT lane width (vreg-aligned gate blocks)
SUBLANE = 8       # f32 sublane count; batch padded to a multiple of this


# ---------------------------------------------------------------------------
# Fused Pallas kernel: whole network, single invocation, no grid.
# ---------------------------------------------------------------------------
def _net_kernel(x_ref,                                   # (T, Bp, 1)
                l0_wih_ref, l0_whh_ref, l0_b_ref,        # LSTM layer 0
                l1_w_ref, l1_b_ref,                      # LSTM layer 1 (fused [Wih;Whh])
                g0_wih_ref, g0_whh_ref, g0_bx_ref, g0_bhn_ref,   # GRU layer 0
                g1_wih_ref, g1_whh_ref, g1_bx_ref, g1_bhn_ref,   # GRU layer 1
                fc_w_ref, fc_b_ref,                      # Linear
                o_ref):                                  # (Bp, OUTPUT_DIM)
    T, Bp, _ = x_ref.shape
    H = HIDDEN_DIM

    # ---- Hoist loop-invariant loads & broadcasts out of the unrolled loop.
    # (JAX does not CSE broadcast_in_dim: left inside the body, every one of
    #  the T unrolled iterations would re-emit the vld + broadcast.)
    l0_wih = jnp.broadcast_to(l0_wih_ref[...], (Bp, 4 * HP))
    l0_b   = jnp.broadcast_to(l0_b_ref[...],   (Bp, 4 * HP))
    l1_b   = jnp.broadcast_to(l1_b_ref[...],   (Bp, 4 * HP))
    g0_bx  = jnp.broadcast_to(g0_bx_ref[...],  (Bp, 3 * HP))
    g0_bhn = jnp.broadcast_to(g0_bhn_ref[...], (Bp, HP))
    g1_bx  = jnp.broadcast_to(g1_bx_ref[...],  (Bp, 3 * HP))
    g1_bhn = jnp.broadcast_to(g1_bhn_ref[...], (Bp, HP))

    def lstm_gates_to_state(gates, c):
        # gates: (Bp, 4*HP), pad lanes are exactly 0 -> pad state stays 0.
        i_g = jax.nn.sigmoid(gates[:, 0 * HP:1 * HP])
        f_g = jax.nn.sigmoid(gates[:, 1 * HP:2 * HP])
        g_g = jnp.tanh(gates[:, 2 * HP:3 * HP])
        o_g = jax.nn.sigmoid(gates[:, 3 * HP:4 * HP])
        c_new = f_g * c + i_g * g_g
        h_new = o_g * jnp.tanh(c_new)
        return h_new, c_new

    def gru_step(x_in, h, wih_ref, whh_ref, bx, bhn):
        # Real data lives in lanes [0, H); [:, :H] is a free lower-half lane
        # slice, keeping the MXU contraction dim at K=H (no K-row padding).
        gx = (jnp.dot(x_in[:, :H], wih_ref[...],
                      preferred_element_type=jnp.float32) + bx)    # (Bp, 3*HP)
        gh = jnp.dot(h[:, :H], whh_ref[...],
                     preferred_element_type=jnp.float32)           # (Bp, 3*HP)
        r = jax.nn.sigmoid(gx[:, 0 * HP:1 * HP] + gh[:, 0 * HP:1 * HP])
        z = jax.nn.sigmoid(gx[:, 1 * HP:2 * HP] + gh[:, 1 * HP:2 * HP])
        n = jnp.tanh(gx[:, 2 * HP:3 * HP]
                     + r * (gh[:, 2 * HP:3 * HP] + bhn))
        return (1.0 - z) * n + z * h

    def body(t, carry):
        h0, c0, h1, c1, hg0, hg1 = carry
        x_t = x_ref[t]                                   # (Bp, 1)

        # LSTM layer 0 (In = 1): x @ W_ih is a rank-1 outer product -> VPU
        # broadcast multiply instead of a K=1 MXU matmul.
        g0 = (x_t * l0_wih
              + jnp.dot(h0[:, :H], l0_whh_ref[...],
                        preferred_element_type=jnp.float32)
              + l0_b)
        h0, c0 = lstm_gates_to_state(g0, c0)

        # LSTM layer 1: single fused K=2H matmul over [h0 | h1].  Pad lanes
        # of both states are exactly 0, so roll+add forms the concatenation
        # with one cheap XLU rotate (shift 64 of a 128-lane axis).
        hx = h0 + pltpu.roll(h1, shift=H, axis=1)
        g1 = (jnp.dot(hx, l1_w_ref[...], preferred_element_type=jnp.float32)
              + l1_b)
        h1, c1 = lstm_gates_to_state(g1, c1)

        # GRU stack.
        hg0 = gru_step(h1, hg0, g0_wih_ref, g0_whh_ref, g0_bx, g0_bhn)
        hg1 = gru_step(hg0, hg1, g1_wih_ref, g1_whh_ref, g1_bx, g1_bhn)
        return (h0, c0, h1, c1, hg0, hg1)

    zeros = jnp.zeros((Bp, HP), jnp.float32)
    carry = lax.fori_loop(0, T, body,
                          (zeros, zeros, zeros, zeros, zeros, zeros),
                          unroll=True if T <= 16 else 4)
    hg1 = carry[5]

    # Final Linear on the last GRU hidden state only (K = H, no row padding).
    o_ref[...] = (jnp.dot(hg1[:, :H], fc_w_ref[...],
                          preferred_element_type=jnp.float32)
                  + fc_b_ref[...])


# ---------------------------------------------------------------------------
# Weight padding helpers (per-gate 128-lane OUTPUT blocks, K rows unpadded)
# ---------------------------------------------------------------------------
def _pad_gate_cols(w, num_gates):
    """(rows, num_gates*H) -> (rows, num_gates*HP), each gate zero-padded."""
    rows = w.shape[0]
    w3 = w.reshape(rows, num_gates, HIDDEN_DIM)
    w3 = jnp.pad(w3, ((0, 0), (0, 0), (0, HP - HIDDEN_DIM)))
    return w3.reshape(rows, num_gates * HP)


def prepare_params(params):
    """Pad/pre-combine parameters into the flat tuple the kernel expects."""
    H = HIDDEN_DIM
    flat = []

    # LSTM layer 0 (In = 1): W_ih is a single row; W_hh keeps K=H rows.
    p = params["lstm"][0]
    flat += [_pad_gate_cols(p["wih_t"], 4),                 # (1, 4*HP)
             _pad_gate_cols(p["whh_t"], 4),                 # (H, 4*HP)
             _pad_gate_cols(p["b"], 4)]                     # (1, 4*HP)

    # LSTM layer 1: fuse [W_ih; W_hh] row-wise -> one K=2H matmul per step.
    p = params["lstm"][1]
    w_fused = jnp.concatenate([p["wih_t"], p["whh_t"]], axis=0)   # (2H, 4H)
    flat += [_pad_gate_cols(w_fused, 4),                    # (2H, 4*HP)
             _pad_gate_cols(p["b"], 4)]                     # (1, 4*HP)

    # GRU layers: fold b_hh's r/z parts into the input-side bias; keep the
    # n-gate recurrent bias separate (it must sit inside r * (.)).
    for p in params["gru"]:
        bx = p["b_ih"] + jnp.concatenate(
            [p["b_hh"][:, :2 * H], jnp.zeros((1, H), jnp.float32)], axis=1)
        bhn = p["b_hh"][:, 2 * H:3 * H]
        flat += [_pad_gate_cols(p["wih_t"], 3),             # (H, 3*HP)
                 _pad_gate_cols(p["whh_t"], 3),             # (H, 3*HP)
                 _pad_gate_cols(bx, 3),                     # (1, 3*HP)
                 jnp.pad(bhn, ((0, 0), (0, HP - H)))]       # (1, HP)

    # FC: K = H rows, no padding.
    flat += [params["fc_w_t"], params["fc_b"]]
    return tuple(flat)


# ---------------------------------------------------------------------------
# Parameter init (matches PyTorch uniform(-1/sqrt(H), 1/sqrt(H)))
# ---------------------------------------------------------------------------
def init_params(key, input_dim, hidden_dim, output_dim, num_layers):
    k = 1.0 / math.sqrt(hidden_dim)

    def unif(key, shape):
        return jax.random.uniform(key, shape, jnp.float32, minval=-k, maxval=k)

    params = {"lstm": [], "gru": []}
    for layer in range(num_layers):
        in_dim = input_dim if layer == 0 else hidden_dim
        key, k1, k2, k3, k4 = jax.random.split(key, 5)
        wih_t = unif(k1, (in_dim, 4 * hidden_dim))            # (W_ih)^T
        whh_t = unif(k2, (hidden_dim, 4 * hidden_dim))        # (W_hh)^T
        b = unif(k3, (1, 4 * hidden_dim)) + unif(k4, (1, 4 * hidden_dim))
        params["lstm"].append({"wih_t": wih_t, "whh_t": whh_t, "b": b})

    for layer in range(num_layers):
        key, k1, k2, k3, k4 = jax.random.split(key, 5)
        params["gru"].append({
            "wih_t": unif(k1, (hidden_dim, 3 * hidden_dim)),
            "whh_t": unif(k2, (hidden_dim, 3 * hidden_dim)),
            "b_ih": unif(k3, (1, 3 * hidden_dim)),
            "b_hh": unif(k4, (1, 3 * hidden_dim)),
        })

    key, k1, k2 = jax.random.split(key, 3)
    params["fc_w_t"] = unif(k1, (hidden_dim, output_dim))
    params["fc_b"] = unif(k2, (1, output_dim))
    return params


# ---------------------------------------------------------------------------
# Forward pass (single fused pallas_call)
# ---------------------------------------------------------------------------
def net_forward(x, padded_params):
    """x: (B, T, input_dim) batch-first, as in PyTorch."""
    B, T, _ = x.shape
    Bp = ((B + SUBLANE - 1) // SUBLANE) * SUBLANE
    x_tm = jnp.transpose(x, (1, 0, 2))                     # time-major (T,B,1)
    x_tm = jnp.pad(x_tm, ((0, 0), (0, Bp - B), (0, 0)))    # pad batch sublanes

    vmem_spec = pl.BlockSpec(memory_space=pltpu.MemorySpace.VMEM)
    n_inputs = 1 + len(padded_params)

    # Advisory cost hint: per step -> lstm0 (K=H), lstm1 fused (K=2H),
    # 2 GRU layers x 2 matmuls (K=H); 16*HP transcendental lanes per (t, row).
    flops = 2 * T * Bp * HIDDEN_DIM * HP * (4 + 8 + 12)
    transcendentals = T * Bp * 16 * HP
    bytes_accessed = 4 * (int(x_tm.size)
                          + sum(int(p.size) for p in padded_params)
                          + Bp * OUTPUT_DIM)

    out_p = pl.pallas_call(
        _net_kernel,
        out_shape=jax.ShapeDtypeStruct((Bp, OUTPUT_DIM), jnp.float32),
        in_specs=[vmem_spec] * n_inputs,
        out_specs=vmem_spec,
        cost_estimate=pl.CostEstimate(flops=flops,
                                      transcendentals=transcendentals,
                                      bytes_accessed=bytes_accessed),
    )(x_tm, *padded_params)
    return out_p[:B]                                       # (B, OUTPUT_DIM)


if __name__ == "__main__":
    B, T = 2, 8
    key = jax.random.PRNGKey(0)
    k_x, k_p = jax.random.split(key)

    x = jax.random.normal(k_x, (B, T, INPUT_DIM), dtype=jnp.float32)
    params = init_params(k_p, INPUT_DIM, HIDDEN_DIM, OUTPUT_DIM, NUM_LAYERS)
    padded_params = prepare_params(params)

    fwd = jax.jit(net_forward)
    out = fwd(x, padded_params)
    jax.block_until_ready(out)
    assert out.shape == (B, OUTPUT_DIM)
    print("KERNEL_OK")
</pallas_src>

<mosaic_0001>
module attributes {stable_mosaic.version = 11 : i64} {
  func.func @_net_kernel(%arg0: memref<8x8x1xf32, #tpu.memory_space<vmem>>, %arg1: memref<1x512xf32, #tpu.memory_space<vmem>>, %arg2: memref<64x512xf32, #tpu.memory_space<vmem>>, %arg3: memref<1x512xf32, #tpu.memory_space<vmem>>, %arg4: memref<128x512xf32, #tpu.memory_space<vmem>>, %arg5: memref<1x512xf32, #tpu.memory_space<vmem>>, %arg6: memref<64x384xf32, #tpu.memory_space<vmem>>, %arg7: memref<64x384xf32, #tpu.memory_space<vmem>>, %arg8: memref<1x384xf32, #tpu.memory_space<vmem>>, %arg9: memref<1x128xf32, #tpu.memory_space<vmem>>, %arg10: memref<64x384xf32, #tpu.memory_space<vmem>>, %arg11: memref<64x384xf32, #tpu.memory_space<vmem>>, %arg12: memref<1x384xf32, #tpu.memory_space<vmem>>, %arg13: memref<1x128xf32, #tpu.memory_space<vmem>>, %arg14: memref<64x1xf32, #tpu.memory_space<vmem>>, %arg15: memref<1x1xf32, #tpu.memory_space<vmem>>, %arg16: memref<8x1xf32, #tpu.memory_space<vmem>>) attributes {dimension_semantics = [], scalar_prefetch = 0 : i64, scratch_operands = 0 : i64, tpu.core_type = #tpu.core_type<tc>} {
    %c0 = arith.constant 0 : index
    %c0_0 = arith.constant 0 : index
    %0 = vector.load %arg1[%c0, %c0_0] : memref<1x512xf32, #tpu.memory_space<vmem>>, vector<1x512xf32>
    %1 = vector.shape_cast %0 : vector<1x512xf32> to vector<1x512xf32>
    %2 = vector.broadcast %1 : vector<1x512xf32> to vector<8x512xf32>
    %c0_1 = arith.constant 0 : index
    %c0_2 = arith.constant 0 : index
    %3 = vector.load %arg3[%c0_1, %c0_2] : memref<1x512xf32, #tpu.memory_space<vmem>>, vector<1x512xf32>
    %4 = vector.shape_cast %3 : vector<1x512xf32> to vector<1x512xf32>
    %5 = vector.broadcast %4 : vector<1x512xf32> to vector<8x512xf32>
    %c0_3 = arith.constant 0 : index
    %c0_4 = arith.constant 0 : index
    %6 = vector.load %arg5[%c0_3, %c0_4] : memref<1x512xf32, #tpu.memory_space<vmem>>, vector<1x512xf32>
    %7 = vector.shape_cast %6 : vector<1x512xf32> to vector<1x512xf32>
    %8 = vector.broadcast %7 : vector<1x512xf32> to vector<8x512xf32>
    %c0_5 = arith.constant 0 : index
    %c0_6 = arith.constant 0 : index
    %9 = vector.load %arg8[%c0_5, %c0_6] : memref<1x384xf32, #tpu.memory_space<vmem>>, vector<1x384xf32>
    %10 = vector.shape_cast %9 : vector<1x384xf32> to vector<1x384xf32>
    %11 = vector.broadcast %10 : vector<1x384xf32> to vector<8x384xf32>
    %c0_7 = arith.constant 0 : index
    %c0_8 = arith.constant 0 : index
    %12 = vector.load %arg9[%c0_7, %c0_8] : memref<1x128xf32, #tpu.memory_space<vmem>>, vector<1x128xf32>
    %13 = vector.shape_cast %12 : vector<1x128xf32> to vector<1x128xf32>
    %14 = vector.broadcast %13 : vector<1x128xf32> to vector<8x128xf32>
    %c0_9 = arith.constant 0 : index
    %c0_10 = arith.constant 0 : index
    %15 = vector.load %arg12[%c0_9, %c0_10] : memref<1x384xf32, #tpu.memory_space<vmem>>, vector<1x384xf32>
    %16 = vector.shape_cast %15 : vector<1x384xf32> to vector<1x384xf32>
    %17 = vector.broadcast %16 : vector<1x384xf32> to vector<8x384xf32>
    %c0_11 = arith.constant 0 : index
    %c0_12 = arith.constant 0 : index
    %18 = vector.load %arg13[%c0_11, %c0_12] : memref<1x128xf32, #tpu.memory_space<vmem>>, vector<1x128xf32>
    %19 = vector.shape_cast %18 : vector<1x128xf32> to vector<1x128xf32>
    %20 = vector.broadcast %19 : vector<1x128xf32> to vector<8x128xf32>
    %cst = arith.constant 0.000000e+00 : f32
    %21 = vector.broadcast %cst : f32 to vector<8x128xf32>
    %c0_i32 = arith.constant 0 : i32
    %22 = arith.index_cast %c0_i32 : i32 to index
    %c0_13 = arith.constant 0 : index
    %c0_14 = arith.constant 0 : index
    %23 = vector.load %arg0[%22, %c0_13, %c0_14] : memref<8x8x1xf32, #tpu.memory_space<vmem>>, vector<1x8x1xf32>
    %24 = vector.shape_cast %23 : vector<1x8x1xf32> to vector<8x1xf32>
    %25 = vector.broadcast %24 : vector<8x1xf32> to vector<8x512xf32>
    %26 = arith.mulf %25, %2 : vector<8x512xf32>
    %27 = vector.extract_strided_slice %21 {offsets = [0, 0], sizes = [8, 64], strides = [1, 1]} : vector<8x128xf32> to vector<8x64xf32>
    %c0_15 = arith.constant 0 : index
    %c0_16 = arith.constant 0 : index
    %28 = vector.load %arg2[%c0_15, %c0_16] : memref<64x512xf32, #tpu.memory_space<vmem>>, vector<64x512xf32>
    %cst_17 = arith.constant dense<0.000000e+00> : vector<8x512xf32>
    %29 = tpu.matmul %27, %28, %cst_17 {dimension_numbers = #tpu.dot_dimension_numbers<[1], [0], [0], [1], [0, 0, 1, 1], [], []>} : vector<8x64xf32>, vector<64x512xf32>, vector<8x512xf32> -> vector<8x512xf32>
    %30 = arith.addf %26, %29 : vector<8x512xf32>
    %31 = arith.addf %30, %5 : vector<8x512xf32>
    %32 = vector.extract_strided_slice %31 {offsets = [0, 0], sizes = [8, 128], strides = [1, 1]} : vector<8x512xf32> to vector<8x128xf32>
    %33 = arith.negf %32 : vector<8x128xf32>
    %34 = math.exp %33 : vector<8x128xf32>
    %cst_18 = arith.constant 1.000000e+00 : f32
    %35 = vector.broadcast %cst_18 : f32 to vector<8x128xf32>
    %36 = arith.addf %35, %34 : vector<8x128xf32>
    %37 = arith.divf %35, %36 : vector<8x128xf32>
    %38 = vector.extract_strided_slice %31 {offsets = [0, 128], sizes = [8, 128], strides = [1, 1]} : vector<8x512xf32> to vector<8x128xf32>
    %39 = arith.negf %38 : vector<8x128xf32>
    %40 = math.exp %39 : vector<8x128xf32>
    %cst_19 = arith.constant 1.000000e+00 : f32
    %41 = vector.broadcast %cst_19 : f32 to vector<8x128xf32>
    %42 = arith.addf %41, %40 : vector<8x128xf32>
    %43 = arith.divf %41, %42 : vector<8x128xf32>
    %44 = vector.extract_strided_slice %31 {offsets = [0, 256], sizes = [8, 128], strides = [1, 1]} : vector<8x512xf32> to vector<8x128xf32>
    %45 = math.tanh %44 : vector<8x128xf32>
    %46 = vector.extract_strided_slice %31 {offsets = [0, 384], sizes = [8, 128], strides = [1, 1]} : vector<8x512xf32> to vector<8x128xf32>
    %47 = arith.negf %46 : vector<8x128xf32>
    %48 = math.exp %47 : vector<8x128xf32>
    %cst_20 = arith.constant 1.000000e+00 : f32
    %49 = vector.broadcast %cst_20 : f32 to vector<8x128xf32>
    %50 = arith.addf %49, %48 : vector<8x128xf32>
    %51 = arith.divf %49, %50 : vector<8x128xf32>
    %52 = arith.mulf %43, %21 : vector<8x128xf32>
    %53 = arith.mulf %37, %45 : vector<8x128xf32>
    %54 = arith.addf %52, %53 : vector<8x128xf32>
    %55 = math.tanh %54 : vector<8x128xf32>
    %56 = arith.mulf %51, %55 : vector<8x128xf32>
    %c64_i32 = arith.constant 64 : i32
    %57 = tpu.dynamic_rotate %21 by %c64_i32 dim 1 : vector<8x128xf32>, i32 -> vector<8x128xf32>
    %58 = arith.addf %56, %57 : vector<8x128xf32>
    %c0_21 = arith.constant 0 : index
    %c0_22 = arith.constant 0 : index
    %59 = vector.load %arg4[%c0_21, %c0_22] : memref<128x512xf32, #tpu.memory_space<vmem>>, vector<128x512xf32>
    %cst_23 = arith.constant dense<0.000000e+00> : vector<8x512xf32>
    %60 = tpu.matmul %58, %59, %cst_23 {dimension_numbers = #tpu.dot_dimension_numbers<[1], [0], [0], [1], [0, 0, 1, 1], [], []>} : vector<8x128xf32>, vector<128x512xf32>, vector<8x512xf32> -> vector<8x512xf32>
    %61 = arith.addf %60, %8 : vector<8x512xf32>
    %62 = vector.extract_strided_slice %61 {offsets = [0, 0], sizes = [8, 128], strides = [1, 1]} : vector<8x512xf32> to vector<8x128xf32>
    %63 = arith.negf %62 : vector<8x128xf32>
    %64 = math.exp %63 : vector<8x128xf32>
    %cst_24 = arith.constant 1.000000e+00 : f32
    %65 = vector.broadcast %cst_24 : f32 to vector<8x128xf32>
    %66 = arith.addf %65, %64 : vector<8x128xf32>
    %67 = arith.divf %65, %66 : vector<8x128xf32>
    %68 = vector.extract_strided_slice %61 {offsets = [0, 128], sizes = [8, 128], strides = [1, 1]} : vector<8x512xf32> to vector<8x128xf32>
    %69 = arith.negf %68 : vector<8x128xf32>
    %70 = math.exp %69 : vector<8x128xf32>
    %cst_25 = arith.constant 1.000000e+00 : f32
    %71 = vector.broadcast %cst_25 : f32 to vector<8x128xf32>
    %72 = arith.addf %71, %70 : vector<8x128xf32>
    %73 = arith.divf %71, %72 : vector<8x128xf32>
    %74 = vector.extract_strided_slice %61 {offsets = [0, 256], sizes = [8, 128], strides = [1, 1]} : vector<8x512xf32> to vector<8x128xf32>
    %75 = math.tanh %74 : vector<8x128xf32>
    %76 = vector.extract_strided_slice %61 {offsets = [0, 384], sizes = [8, 128], strides = [1, 1]} : vector<8x512xf32> to vector<8x128xf32>
    %77 = arith.negf %76 : vector<8x128xf32>
    %78 = math.exp %77 : vector<8x128xf32>
    %cst_26 = arith.constant 1.000000e+00 : f32
    %79 = vector.broadcast %cst_26 : f32 to vector<8x128xf32>
    %80 = arith.addf %79, %78 : vector<8x128xf32>
    %81 = arith.divf %79, %80 : vector<8x128xf32>
    %82 = arith.mulf %73, %21 : vector<8x128xf32>
    %83 = arith.mulf %67, %75 : vector<8x128xf32>
    %84 = arith.addf %82, %83 : vector<8x128xf32>
    %85 = math.tanh %84 : vector<8x128xf32>
    %86 = arith.mulf %81, %85 : vector<8x128xf32>
    %87 = vector.extract_strided_slice %86 {offsets = [0, 0], sizes = [8, 64], strides = [1, 1]} : vector<8x128xf32> to vector<8x64xf32>
    %c0_27 = arith.constant 0 : index
    %c0_28 = arith.constant 0 : index
    %88 = vector.load %arg6[%c0_27, %c0_28] : memref<64x384xf32, #tpu.memory_space<vmem>>, vector<64x384xf32>
    %cst_29 = arith.constant dense<0.000000e+00> : vector<8x384xf32>
    %89 = tpu.matmul %87, %88, %cst_29 {dimension_numbers = #tpu.dot_dimension_numbers<[1], [0], [0], [1], [0, 0, 1, 1], [], []>} : vector<8x64xf32>, vector<64x384xf32>, vector<8x384xf32> -> vector<8x384xf32>
    %90 = arith.addf %89, %11 : vector<8x384xf32>
    %91 = vector.extract_strided_slice %21 {offsets = [0, 0], sizes = [8, 64], strides = [1, 1]} : vector<8x128xf32> to vector<8x64xf32>
    %c0_30 = arith.constant 0 : index
    %c0_31 = arith.constant 0 : index
    %92 = vector.load %arg7[%c0_30, %c0_31] : memref<64x384xf32, #tpu.memory_space<vmem>>, vector<64x384xf32>
    %cst_32 = arith.constant dense<0.000000e+00> : vector<8x384xf32>
    %93 = tpu.matmul %91, %92, %cst_32 {dimension_numbers = #tpu.dot_dimension_numbers<[1], [0], [0], [1], [0, 0, 1, 1], [], []>} : vector<8x64xf32>, vector<64x384xf32>, vector<8x384xf32> -> vector<8x384xf32>
    %94 = vector.extract_strided_slice %90 {offsets = [0, 0], sizes = [8, 128], strides = [1, 1]} : vector<8x384xf32> to vector<8x128xf32>
    %95 = vector.extract_strided_slice %93 {offsets = [0, 0], sizes = [8, 128], strides = [1, 1]} : vector<8x384xf32> to vector<8x128xf32>
    %96 = arith.addf %94, %95 : vector<8x128xf32>
    %97 = arith.negf %96 : vector<8x128xf32>
    %98 = math.exp %97 : vector<8x128xf32>
    %cst_33 = arith.constant 1.000000e+00 : f32
    %99 = vector.broadcast %cst_33 : f32 to vector<8x128xf32>
    %100 = arith.addf %99, %98 : vector<8x128xf32>
    %101 = arith.divf %99, %100 : vector<8x128xf32>
    %102 = vector.extract_strided_slice %90 {offsets = [0, 128], sizes = [8, 128], strides = [1, 1]} : vector<8x384xf32> to vector<8x128xf32>
    %103 = vector.extract_strided_slice %93 {offsets = [0, 128], sizes = [8, 128], strides = [1, 1]} : vector<8x384xf32> to vector<8x128xf32>
    %104 = arith.addf %102, %103 : vector<8x128xf32>
    %105 = arith.negf %104 : vector<8x128xf32>
    %106 = math.exp %105 : vector<8x128xf32>
    %cst_34 = arith.constant 1.000000e+00 : f32
    %107 = vector.broadcast %cst_34 : f32 to vector<8x128xf32>
    %108 = arith.addf %107, %106 : vector<8x128xf32>
    %109 = arith.divf %107, %108 : vector<8x128xf32>
    %110 = vector.extract_strided_slice %90 {offsets = [0, 256], sizes = [8, 128], strides = [1, 1]} : vector<8x384xf32> to vector<8x128xf32>
    %111 = vector.extract_strided_slice %93 {offsets = [0, 256], sizes = [8, 128], strides = [1, 1]} : vector<8x384xf32> to vector<8x128xf32>
    %112 = arith.addf %111, %14 : vector<8x128xf32>
    %113 = arith.mulf %101, %112 : vector<8x128xf32>
    %114 = arith.addf %110, %113 : vector<8x128xf32>
    %115 = math.tanh %114 : vector<8x128xf32>
    %cst_35 = arith.constant 1.000000e+00 : f32
    %116 = vector.broadcast %cst_35 : f32 to vector<8x128xf32>
    %117 = arith.subf %116, %109 : vector<8x128xf32>
    %118 = arith.mulf %117, %115 : vector<8x128xf32>
    %119 = arith.mulf %109, %21 : vector<8x128xf32>
    %120 = arith.addf %118, %119 : vector<8x128xf32>
    %121 = vector.extract_strided_slice %120 {offsets = [0, 0], sizes = [8, 64], strides = [1, 1]} : vector<8x128xf32> to vector<8x64xf32>
    %c0_36 = arith.constant 0 : index
    %c0_37 = arith.constant 0 : index
    %122 = vector.load %arg10[%c0_36, %c0_37] : memref<64x384xf32, #tpu.memory_space<vmem>>, vector<64x384xf32>
    %cst_38 = arith.constant dense<0.000000e+00> : vector<8x384xf32>
    %123 = tpu.matmul %121, %122, %cst_38 {dimension_numbers = #tpu.dot_dimension_numbers<[1], [0], [0], [1], [0, 0, 1, 1], [], []>} : vector<8x64xf32>, vector<64x384xf32>, vector<8x384xf32> -> vector<8x384xf32>
    %124 = arith.addf %123, %17 : vector<8x384xf32>
    %125 = vector.extract_strided_slice %21 {offsets = [0, 0], sizes = [8, 64], strides = [1, 1]} : vector<8x128xf32> to vector<8x64xf32>
    %c0_39 = arith.constant 0 : index
    %c0_40 = arith.constant 0 : index
    %126 = vector.load %arg11[%c0_39, %c0_40] : memref<64x384xf32, #tpu.memory_space<vmem>>, vector<64x384xf32>
    %cst_41 = arith.constant dense<0.000000e+00> : vector<8x384xf32>
    %127 = tpu.matmul %125, %126, %cst_41 {dimension_numbers = #tpu.dot_dimension_numbers<[1], [0], [0], [1], [0, 0, 1, 1], [], []>} : vector<8x64xf32>, vector<64x384xf32>, vector<8x384xf32> -> vector<8x384xf32>
    %128 = vector.extract_strided_slice %124 {offsets = [0, 0], sizes = [8, 128], strides = [1, 1]} : vector<8x384xf32> to vector<8x128xf32>
    %129 = vector.extract_strided_slice %127 {offsets = [0, 0], sizes = [8, 128], strides = [1, 1]} : vector<8x384xf32> to vector<8x128xf32>
    %130 = arith.addf %128, %129 : vector<8x128xf32>
    %131 = arith.negf %130 : vector<8x128xf32>
    %132 = math.exp %131 : vector<8x128xf32>
    %cst_42 = arith.constant 1.000000e+00 : f32
    %133 = vector.broadcast %cst_42 : f32 to vector<8x128xf32>
    %134 = arith.addf %133, %132 : vector<8x128xf32>
    %135 = arith.divf %133, %134 : vector<8x128xf32>
    %136 = vector.extract_strided_slice %124 {offsets = [0, 128], sizes = [8, 128], strides = [1, 1]} : vector<8x384xf32> to vector<8x128xf32>
    %137 = vector.extract_strided_slice %127 {offsets = [0, 128], sizes = [8, 128], strides = [1, 1]} : vector<8x384xf32> to vector<8x128xf32>
    %138 = arith.addf %136, %137 : vector<8x128xf32>
    %139 = arith.negf %138 : vector<8x128xf32>
    %140 = math.exp %139 : vector<8x128xf32>
    %cst_43 = arith.constant 1.000000e+00 : f32
    %141 = vector.broadcast %cst_43 : f32 to vector<8x128xf32>
    %142 = arith.addf %141, %140 : vector<8x128xf32>
    %143 = arith.divf %141, %142 : vector<8x128xf32>
    %144 = vector.extract_strided_slice %124 {offsets = [0, 256], sizes = [8, 128], strides = [1, 1]} : vector<8x384xf32> to vector<8x128xf32>
    %145 = vector.extract_strided_slice %127 {offsets = [0, 256], sizes = [8, 128], strides = [1, 1]} : vector<8x384xf32> to vector<8x128xf32>
    %146 = arith.addf %145, %20 : vector<8x128xf32>
    %147 = arith.mulf %135, %146 : vector<8x128xf32>
    %148 = arith.addf %144, %147 : vector<8x128xf32>
    %149 = math.tanh %148 : vector<8x128xf32>
    %cst_44 = arith.constant 1.000000e+00 : f32
    %150 = vector.broadcast %cst_44 : f32 to vector<8x128xf32>
    %151 = arith.subf %150, %143 : vector<8x128xf32>
    %152 = arith.mulf %151, %149 : vector<8x128xf32>
    %153 = arith.mulf %143, %21 : vector<8x128xf32>
    %154 = arith.addf %152, %153 : vector<8x128xf32>
    %c1_i32 = arith.constant 1 : i32
    %155 = arith.index_cast %c1_i32 : i32 to index
    %c0_45 = arith.constant 0 : index
    %c0_46 = arith.constant 0 : index
    %156 = vector.load %arg0[%155, %c0_45, %c0_46] : memref<8x8x1xf32, #tpu.memory_space<vmem>>, vector<1x8x1xf32>
    %157 = vector.shape_cast %156 : vector<1x8x1xf32> to vector<8x1xf32>
    %158 = vector.broadcast %157 : vector<8x1xf32> to vector<8x512xf32>
    %159 = arith.mulf %158, %2 : vector<8x512xf32>
    %160 = vector.extract_strided_slice %56 {offsets = [0, 0], sizes = [8, 64], strides = [1, 1]} : vector<8x128xf32> to vector<8x64xf32>
    %c0_47 = arith.constant 0 : index
    %c0_48 = arith.constant 0 : index
    %161 = vector.load %arg2[%c0_47, %c0_48] : memref<64x512xf32, #tpu.memory_space<vmem>>, vector<64x512xf32>
    %cst_49 = arith.constant dense<0.000000e+00> : vector<8x512xf32>
    %162 = tpu.matmul %160, %161, %cst_49 {dimension_numbers = #tpu.dot_dimension_numbers<[1], [0], [0], [1], [0, 0, 1, 1], [], []>} : vector<8x64xf32>, vector<64x512xf32>, vector<8x512xf32> -> vector<8x512xf32>
    %163 = arith.addf %159, %162 : vector<8x512xf32>
    %164 = arith.addf %163, %5 : vector<8x512xf32>
    %165 = vector.extract_strided_slice %164 {offsets = [0, 0], sizes = [8, 128], strides = [1, 1]} : vector<8x512xf32> to vector<8x128xf32>
    %166 = arith.negf %165 : vector<8x128xf32>
    %167 = math.exp %166 : vector<8x128xf32>
    %cst_50 = arith.constant 1.000000e+00 : f32
    %168 = vector.broadcast %cst_50 : f32 to vector<8x128xf32>
    %169 = arith.addf %168, %167 : vector<8x128xf32>
    %170 = arith.divf %168, %169 : vector<8x128xf32>
    %171 = vector.extract_strided_slice %164 {offsets = [0, 128], sizes = [8, 128], strides = [1, 1]} : vector<8x512xf32> to vector<8x128xf32>
    %172 = arith.negf %171 : vector<8x128xf32>
    %173 = math.exp %172 : vector<8x128xf32>
    %cst_51 = arith.constant 1.000000e+00 : f32
    %174 = vector.broadcast %cst_51 : f32 to vector<8x128xf32>
    %175 = arith.addf %174, %173 : vector<8x128xf32>
    %176 = arith.divf %174, %175 : vector<8x128xf32>
    %177 = vector.extract_strided_slice %164 {offsets = [0, 256], sizes = [8, 128], strides = [1, 1]} : vector<8x512xf32> to vector<8x128xf32>
    %178 = math.tanh %177 : vector<8x128xf32>
    %179 = vector.extract_strided_slice %164 {offsets = [0, 384], sizes = [8, 128], strides = [1, 1]} : vector<8x512xf32> to vector<8x128xf32>
    %180 = arith.negf %179 : vector<8x128xf32>
    %181 = math.exp %180 : vector<8x128xf32>
    %cst_52 = arith.constant 1.000000e+00 : f32
    %182 = vector.broadcast %cst_52 : f32 to vector<8x128xf32>
    %183 = arith.addf %182, %181 : vector<8x128xf32>
    %184 = arith.divf %182, %183 : vector<8x128xf32>
    %185 = arith.mulf %176, %54 : vector<8x128xf32>
    %186 = arith.mulf %170, %178 : vector<8x128xf32>
    %187 = arith.addf %185, %186 : vector<8x128xf32>
    %188 = math.tanh %187 : vector<8x128xf32>
    %189 = arith.mulf %184, %188 : vector<8x128xf32>
    %c64_i32_53 = arith.constant 64 : i32
    %190 = tpu.dynamic_rotate %86 by %c64_i32_53 dim 1 : vector<8x128xf32>, i32 -> vector<8x128xf32>
    %191 = arith.addf %189, %190 : vector<8x128xf32>
    %c0_54 = arith.constant 0 : index
    %c0_55 = arith.constant 0 : index
    %192 = vector.load %arg4[%c0_54, %c0_55] : memref<128x512xf32, #tpu.memory_space<vmem>>, vector<128x512xf32>
    %cst_56 = arith.constant dense<0.000000e+00> : vector<8x512xf32>
    %193 = tpu.matmul %191, %192, %cst_56 {dimension_numbers = #tpu.dot_dimension_numbers<[1], [0], [0], [1], [0, 0, 1, 1], [], []>} : vector<8x128xf32>, vector<128x512xf32>, vector<8x512xf32> -> vector<8x512xf32>
    %194 = arith.addf %193, %8 : vector<8x512xf32>
    %195 = vector.extract_strided_slice %194 {offsets = [0, 0], sizes = [8, 128], strides = [1, 1]} : vector<8x512xf32> to vector<8x128xf32>
    %196 = arith.negf %195 : vector<8x128xf32>
    %197 = math.exp %196 : vector<8x128xf32>
    %cst_57 = arith.constant 1.000000e+00 : f32
    %198 = vector.broadcast %cst_57 : f32 to vector<8x128xf32>
    %199 = arith.addf %198, %197 : vector<8x128xf32>
    %200 = arith.divf %198, %199 : vector<8x128xf32>
    %201 = vector.extract_strided_slice %194 {offsets = [0, 128], sizes = [8, 128], strides = [1, 1]} : vector<8x512xf32> to vector<8x128xf32>
    %202 = arith.negf %201 : vector<8x128xf32>
    %203 = math.exp %202 : vector<8x128xf32>
    %cst_58 = arith.constant 1.000000e+00 : f32
    %204 = vector.broadcast %cst_58 : f32 to vector<8x128xf32>
    %205 = arith.addf %204, %203 : vector<8x128xf32>
    %206 = arith.divf %204, %205 : vector<8x128xf32>
    %207 = vector.extract_strided_slice %194 {offsets = [0, 256], sizes = [8, 128], strides = [1, 1]} : vector<8x512xf32> to vector<8x128xf32>
    %208 = math.tanh %207 : vector<8x128xf32>
    %209 = vector.extract_strided_slice %194 {offsets = [0, 384], sizes = [8, 128], strides = [1, 1]} : vector<8x512xf32> to vector<8x128xf32>
    %210 = arith.negf %209 : vector<8x128xf32>
    %211 = math.exp %210 : vector<8x128xf32>
    %cst_59 = arith.constant 1.000000e+00 : f32
    %212 = vector.broadcast %cst_59 : f32 to vector<8x128xf32>
    %213 = arith.addf %212, %211 : vector<8x128xf32>
    %214 = arith.divf %212, %213 : vector<8x128xf32>
    %215 = arith.mulf %206, %84 : vector<8x128xf32>
    %216 = arith.mulf %200, %208 : vector<8x128xf32>
    %217 = arith.addf %215, %216 : vector<8x128xf32>
    %218 = math.tanh %217 : vector<8x128xf32>
    %219 = arith.mulf %214, %218 : vector<8x128xf32>
    %220 = vector.extract_strided_slice %219 {offsets = [0, 0], sizes = [8, 64], strides = [1, 1]} : vector<8x128xf32> to vector<8x64xf32>
    %c0_60 = arith.constant 0 : index
    %c0_61 = arith.constant 0 : index
    %221 = vector.load %arg6[%c0_60, %c0_61] : memref<64x384xf32, #tpu.memory_space<vmem>>, vector<64x384xf32>
    %cst_62 = arith.constant dense<0.000000e+00> : vector<8x384xf32>
    %222 = tpu.matmul %220, %221, %cst_62 {dimension_numbers = #tpu.dot_dimension_numbers<[1], [0], [0], [1], [0, 0, 1, 1], [], []>} : vector<8x64xf32>, vector<64x384xf32>, vector<8x384xf32> -> vector<8x384xf32>
    %223 = arith.addf %222, %11 : vector<8x384xf32>
    %224 = vector.extract_strided_slice %120 {offsets = [0, 0], sizes = [8, 64], strides = [1, 1]} : vector<8x128xf32> to vector<8x64xf32>
    %c0_63 = arith.constant 0 : index
    %c0_64 = arith.constant 0 : index
    %225 = vector.load %arg7[%c0_63, %c0_64] : memref<64x384xf32, #tpu.memory_space<vmem>>, vector<64x384xf32>
    %cst_65 = arith.constant dense<0.000000e+00> : vector<8x384xf32>
    %226 = tpu.matmul %224, %225, %cst_65 {dimension_numbers = #tpu.dot_dimension_numbers<[1], [0], [0], [1], [0, 0, 1, 1], [], []>} : vector<8x64xf32>, vector<64x384xf32>, vector<8x384xf32> -> vector<8x384xf32>
    %227 = vector.extract_strided_slice %223 {offsets = [0, 0], sizes = [8, 128], strides = [1, 1]} : vector<8x384xf32> to vector<8x128xf32>
    %228 = vector.extract_strided_slice %226 {offsets = [0, 0], sizes = [8, 128], strides = [1, 1]} : vector<8x384xf32> to vector<8x128xf32>
    %229 = arith.addf %227, %228 : vector<8x128xf32>
    %230 = arith.negf %229 : vector<8x128xf32>
    %231 = math.exp %230 : vector<8x128xf32>
    %cst_66 = arith.constant 1.000000e+00 : f32
    %232 = vector.broadcast %cst_66 : f32 to vector<8x128xf32>
    %233 = arith.addf %232, %231 : vector<8x128xf32>
    %234 = arith.divf %232, %233 : vector<8x128xf32>
    %235 = vector.extract_strided_slice %223 {offsets = [0, 128], sizes = [8, 128], strides = [1, 1]} : vector<8x384xf32> to vector<8x128xf32>
    %236 = vector.extract_strided_slice %226 {offsets = [0, 128], sizes = [8, 128], strides = [1, 1]} : vector<8x384xf32> to vector<8x128xf32>
    %237 = arith.addf %235, %236 : vector<8x128xf32>
    %238 = arith.negf %237 : vector<8x128xf32>
    %239 = math.exp %238 : vector<8x128xf32>
    %cst_67 = arith.constant 1.000000e+00 : f32
    %240 = vector.broadcast %cst_67 : f32 to vector<8x128xf32>
    %241 = arith.addf %240, %239 : vector<8x128xf32>
    %242 = arith.divf %240, %241 : vector<8x128xf32>
    %243 = vector.extract_strided_slice %223 {offsets = [0, 256], sizes = [8, 128], strides = [1, 1]} : vector<8x384xf32> to vector<8x128xf32>
    %244 = vector.extract_strided_slice %226 {offsets = [0, 256], sizes = [8, 128], strides = [1, 1]} : vector<8x384xf32> to vector<8x128xf32>
    %245 = arith.addf %244, %14 : vector<8x128xf32>
    %246 = arith.mulf %234, %245 : vector<8x128xf32>
    %247 = arith.addf %243, %246 : vector<8x128xf32>
    %248 = math.tanh %247 : vector<8x128xf32>
    %cst_68 = arith.constant 1.000000e+00 : f32
    %249 = vector.broadcast %cst_68 : f32 to vector<8x128xf32>
    %250 = arith.subf %249, %242 : vector<8x128xf32>
    %251 = arith.mulf %250, %248 : vector<8x128xf32>
    %252 = arith.mulf %242, %120 : vector<8x128xf32>
    %253 = arith.addf %251, %252 : vector<8x128xf32>
    %254 = vector.extract_strided_slice %253 {offsets = [0, 0], sizes = [8, 64], strides = [1, 1]} : vector<8x128xf32> to vector<8x64xf32>
    %c0_69 = arith.constant 0 : index
    %c0_70 = arith.constant 0 : index
    %255 = vector.load %arg10[%c0_69, %c0_70] : memref<64x384xf32, #tpu.memory_space<vmem>>, vector<64x384xf32>
    %cst_71 = arith.constant dense<0.000000e+00> : vector<8x384xf32>
    %256 = tpu.matmul %254, %255, %cst_71 {dimension_numbers = #tpu.dot_dimension_numbers<[1], [0], [0], [1], [0, 0, 1, 1], [], []>} : vector<8x64xf32>, vector<64x384xf32>, vector<8x384xf32> -> vector<8x384xf32>
    %257 = arith.addf %256, %17 : vector<8x384xf32>
    %258 = vector.extract_strided_slice %154 {offsets = [0, 0], sizes = [8, 64], strides = [1, 1]} : vector<8x128xf32> to vector<8x64xf32>
    %c0_72 = arith.constant 0 : index
    %c0_73 = arith.constant 0 : index
    %259 = vector.load %arg11[%c0_72, %c0_73] : memref<64x384xf32, #tpu.memory_space<vmem>>, vector<64x384xf32>
    %cst_74 = arith.constant dense<0.000000e+00> : vector<8x384xf32>
    %260 = tpu.matmul %258, %259, %cst_74 {dimension_numbers = #tpu.dot_dimension_numbers<[1], [0], [0], [1], [0, 0, 1, 1], [], []>} : vector<8x64xf32>, vector<64x384xf32>, vector<8x384xf32> -> vector<8x384xf32>
    %261 = vector.extract_strided_slice %257 {offsets = [0, 0], sizes = [8, 128], strides = [1, 1]} : vector<8x384xf32> to vector<8x128xf32>
    %262 = vector.extract_strided_slice %260 {offsets = [0, 0], sizes = [8, 128], strides = [1, 1]} : vector<8x384xf32> to vector<8x128xf32>
    %263 = arith.addf %261, %262 : vector<8x128xf32>
    %264 = arith.negf %263 : vector<8x128xf32>
    %265 = math.exp %264 : vector<8x128xf32>
    %cst_75 = arith.constant 1.000000e+00 : f32
    %266 = vector.broadcast %cst_75 : f32 to vector<8x128xf32>
    %267 = arith.addf %266, %265 : vector<8x128xf32>
    %268 = arith.divf %266, %267 : vector<8x128xf32>
    %269 = vector.extract_strided_slice %257 {offsets = [0, 128], sizes = [8, 128], strides = [1, 1]} : vector<8x384xf32> to vector<8x128xf32>
    %270 = vector.extract_strided_slice %260 {offsets = [0, 128], sizes = [8, 128], strides = [1, 1]} : vector<8x384xf32> to vector<8x128xf32>
    %271 = arith.addf %269, %270 : vector<8x128xf32>
    %272 = arith.negf %271 : vector<8x128xf32>
    %273 = math.exp %272 : vector<8x128xf32>
    %cst_76 = arith.constant 1.000000e+00 : f32
    %274 = vector.broadcast %cst_76 : f32 to vector<8x128xf32>
    %275 = arith.addf %274, %273 : vector<8x128xf32>
    %276 = arith.divf %274, %275 : vector<8x128xf32>
    %277 = vector.extract_strided_slice %257 {offsets = [0, 256], sizes = [8, 128], strides = [1, 1]} : vector<8x384xf32> to vector<8x128xf32>
    %278 = vector.extract_strided_slice %260 {offsets = [0, 256], sizes = [8, 128], strides = [1, 1]} : vector<8x384xf32> to vector<8x128xf32>
    %279 = arith.addf %278, %20 : vector<8x128xf32>
    %280 = arith.mulf %268, %279 : vector<8x128xf32>
    %281 = arith.addf %277, %280 : vector<8x128xf32>
    %282 = math.tanh %281 : vector<8x128xf32>
    %cst_77 = arith.constant 1.000000e+00 : f32
    %283 = vector.broadcast %cst_77 : f32 to vector<8x128xf32>
    %284 = arith.subf %283, %276 : vector<8x128xf32>
    %285 = arith.mulf %284, %282 : vector<8x128xf32>
    %286 = arith.mulf %276, %154 : vector<8x128xf32>
    %287 = arith.addf %285, %286 : vector<8x128xf32>
    %c2_i32 = arith.constant 2 : i32
    %288 = arith.index_cast %c2_i32 : i32 to index
    %c0_78 = arith.constant 0 : index
    %c0_79 = arith.constant 0 : index
    %289 = vector.load %arg0[%288, %c0_78, %c0_79] : memref<8x8x1xf32, #tpu.memory_space<vmem>>, vector<1x8x1xf32>
    %290 = vector.shape_cast %289 : vector<1x8x1xf32> to vector<8x1xf32>
    %291 = vector.broadcast %290 : vector<8x1xf32> to vector<8x512xf32>
    %292 = arith.mulf %291, %2 : vector<8x512xf32>
    %293 = vector.extract_strided_slice %189 {offsets = [0, 0], sizes = [8, 64], strides = [1, 1]} : vector<8x128xf32> to vector<8x64xf32>
    %c0_80 = arith.constant 0 : index
    %c0_81 = arith.constant 0 : index
    %294 = vector.load %arg2[%c0_80, %c0_81] : memref<64x512xf32, #tpu.memory_space<vmem>>, vector<64x512xf32>
    %cst_82 = arith.constant dense<0.000000e+00> : vector<8x512xf32>
    %295 = tpu.matmul %293, %294, %cst_82 {dimension_numbers = #tpu.dot_dimension_numbers<[1], [0], [0], [1], [0, 0, 1, 1], [], []>} : vector<8x64xf32>, vector<64x512xf32>, vector<8x512xf32> -> vector<8x512xf32>
    %296 = arith.addf %292, %295 : vector<8x512xf32>
    %297 = arith.addf %296, %5 : vector<8x512xf32>
    %298 = vector.extract_strided_slice %297 {offsets = [0, 0], sizes = [8, 128], strides = [1, 1]} : vector<8x512xf32> to vector<8x128xf32>
    %299 = arith.negf %298 : vector<8x128xf32>
    %300 = math.exp %299 : vector<8x128xf32>
    %cst_83 = arith.constant 1.000000e+00 : f32
    %301 = vector.broadcast %cst_83 : f32 to vector<8x128xf32>
    %302 = arith.addf %301, %300 : vector<8x128xf32>
    %303 = arith.divf %301, %302 : vector<8x128xf32>
    %304 = vector.extract_strided_slice %297 {offsets = [0, 128], sizes = [8, 128], strides = [1, 1]} : vector<8x512xf32> to vector<8x128xf32>
    %305 = arith.negf %304 : vector<8x128xf32>
    %306 = math.exp %305 : vector<8x128xf32>
    %cst_84 = arith.constant 1.000000e+00 : f32
    %307 = vector.broadcast %cst_84 : f32 to vector<8x128xf32>
    %308 = arith.addf %307, %306 : vector<8x128xf32>
    %309 = arith.divf %307, %308 : vector<8x128xf32>
    %310 = vector.extract_strided_slice %297 {offsets = [0, 256], sizes = [8, 128], strides = [1, 1]} : vector<8x512xf32> to vector<8x128xf32>
    %311 = math.tanh %310 : vector<8x128xf32>
    %312 = vector.extract_strided_slice %297 {offsets = [0, 384], sizes = [8, 128], strides = [1, 1]} : vector<8x512xf32> to vector<8x128xf32>
    %313 = arith.negf %312 : vector<8x128xf32>
    %314 = math.exp %313 : vector<8x128xf32>
    %cst_85 = arith.constant 1.000000e+00 : f32
    %315 = vector.broadcast %cst_85 : f32 to vector<8x128xf32>
    %316 = arith.addf %315, %314 : vector<8x128xf32>
    %317 = arith.divf %315, %316 : vector<8x128xf32>
    %318 = arith.mulf %309, %187 : vector<8x128xf32>
    %319 = arith.mulf %303, %311 : vector<8x128xf32>
    %320 = arith.addf %318, %319 : vector<8x128xf32>
    %321 = math.tanh %320 : vector<8x128xf32>
    %322 = arith.mulf %317, %321 : vector<8x128xf32>
    %c64_i32_86 = arith.constant 64 : i32
    %323 = tpu.dynamic_rotate %219 by %c64_i32_86 dim 1 : vector<8x128xf32>, i32 -> vector<8x128xf32>
    %324 = arith.addf %322, %323 : vector<8x128xf32>
    %c0_87 = arith.constant 0 : index
    %c0_88 = arith.constant 0 : index
    %325 = vector.load %arg4[%c0_87, %c0_88] : memref<128x512xf32, #tpu.memory_space<vmem>>, vector<128x512xf32>
    %cst_89 = arith.constant dense<0.000000e+00> : vector<8x512xf32>
    %326 = tpu.matmul %324, %325, %cst_89 {dimension_numbers = #tpu.dot_dimension_numbers<[1], [0], [0], [1], [0, 0, 1, 1], [], []>} : vector<8x128xf32>, vector<128x512xf32>, vector<8x512xf32> -> vector<8x512xf32>
    %327 = arith.addf %326, %8 : vector<8x512xf32>
    %328 = vector.extract_strided_slice %327 {offsets = [0, 0], sizes = [8, 128], strides = [1, 1]} : vector<8x512xf32> to vector<8x128xf32>
    %329 = arith.negf %328 : vector<8x128xf32>
    %330 = math.exp %329 : vector<8x128xf32>
    %cst_90 = arith.constant 1.000000e+00 : f32
    %331 = vector.broadcast %cst_90 : f32 to vector<8x128xf32>
    %332 = arith.addf %331, %330 : vector<8x128xf32>
    %333 = arith.divf %331, %332 : vector<8x128xf32>
    %334 = vector.extract_strided_slice %327 {offsets = [0, 128], sizes = [8, 128], strides = [1, 1]} : vector<8x512xf32> to vector<8x128xf32>
    %335 = arith.negf %334 : vector<8x128xf32>
    %336 = math.exp %335 : vector<8x128xf32>
    %cst_91 = arith.constant 1.000000e+00 : f32
    %337 = vector.broadcast %cst_91 : f32 to vector<8x128xf32>
    %338 = arith.addf %337, %336 : vector<8x128xf32>
    %339 = arith.divf %337, %338 : vector<8x128xf32>
    %340 = vector.extract_strided_slice %327 {offsets = [0, 256], sizes = [8, 128], strides = [1, 1]} : vector<8x512xf32> to vector<8x128xf32>
    %341 = math.tanh %340 : vector<8x128xf32>
    %342 = vector.extract_strided_slice %327 {offsets = [0, 384], sizes = [8, 128], strides = [1, 1]} : vector<8x512xf32> to vector<8x128xf32>
    %343 = arith.negf %342 : vector<8x128xf32>
    %344 = math.exp %343 : vector<8x128xf32>
    %cst_92 = arith.constant 1.000000e+00 : f32
    %345 = vector.broadcast %cst_92 : f32 to vector<8x128xf32>
    %346 = arith.addf %345, %344 : vector<8x128xf32>
    %347 = arith.divf %345, %346 : vector<8x128xf32>
    %348 = arith.mulf %339, %217 : vector<8x128xf32>
    %349 = arith.mulf %333, %341 : vector<8x128xf32>
    %350 = arith.addf %348, %349 : vector<8x128xf32>
    %351 = math.tanh %350 : vector<8x128xf32>
    %352 = arith.mulf %347, %351 : vector<8x128xf32>
    %353 = vector.extract_strided_slice %352 {offsets = [0, 0], sizes = [8, 64], strides = [1, 1]} : vector<8x128xf32> to vector<8x64xf32>
    %c0_93 = arith.constant 0 : index
    %c0_94 = arith.constant 0 : index
    %354 = vector.load %arg6[%c0_93, %c0_94] : memref<64x384xf32, #tpu.memory_space<vmem>>, vector<64x384xf32>
    %cst_95 = arith.constant dense<0.000000e+00> : vector<8x384xf32>
    %355 = tpu.matmul %353, %354, %cst_95 {dimension_numbers = #tpu.dot_dimension_numbers<[1], [0], [0], [1], [0, 0, 1, 1], [], []>} : vector<8x64xf32>, vector<64x384xf32>, vector<8x384xf32> -> vector<8x384xf32>
    %356 = arith.addf %355, %11 : vector<8x384xf32>
    %357 = vector.extract_strided_slice %253 {offsets = [0, 0], sizes = [8, 64], strides = [1, 1]} : vector<8x128xf32> to vector<8x64xf32>
    %c0_96 = arith.constant 0 : index
    %c0_97 = arith.constant 0 : index
    %358 = vector.load %arg7[%c0_96, %c0_97] : memref<64x384xf32, #tpu.memory_space<vmem>>, vector<64x384xf32>
    %cst_98 = arith.constant dense<0.000000e+00> : vector<8x384xf32>
    %359 = tpu.matmul %357, %358, %cst_98 {dimension_numbers = #tpu.dot_dimension_numbers<[1], [0], [0], [1], [0, 0, 1, 1], [], []>} : vector<8x64xf32>, vector<64x384xf32>, vector<8x384xf32> -> vector<8x384xf32>
    %360 = vector.extract_strided_slice %356 {offsets = [0, 0], sizes = [8, 128], strides = [1, 1]} : vector<8x384xf32> to vector<8x128xf32>
    %361 = vector.extract_strided_slice %359 {offsets = [0, 0], sizes = [8, 128], strides = [1, 1]} : vector<8x384xf32> to vector<8x128xf32>
    %362 = arith.addf %360, %361 : vector<8x128xf32>
    %363 = arith.negf %362 : vector<8x128xf32>
    %364 = math.exp %363 : vector<8x128xf32>
    %cst_99 = arith.constant 1.000000e+00 : f32
    %365 = vector.broadcast %cst_99 : f32 to vector<8x128xf32>
    %366 = arith.addf %365, %364 : vector<8x128xf32>
    %367 = arith.divf %365, %366 : vector<8x128xf32>
    %368 = vector.extract_strided_slice %356 {offsets = [0, 128], sizes = [8, 128], strides = [1, 1]} : vector<8x384xf32> to vector<8x128xf32>
    %369 = vector.extract_strided_slice %359 {offsets = [0, 128], sizes = [8, 128], strides = [1, 1]} : vector<8x384xf32> to vector<8x128xf32>
    %370 = arith.addf %368, %369 : vector<8x128xf32>
    %371 = arith.negf %370 : vector<8x128xf32>
    %372 = math.exp %371 : vector<8x128xf32>
    %cst_100 = arith.constant 1.000000e+00 : f32
    %373 = vector.broadcast %cst_100 : f32 to vector<8x128xf32>
    %374 = arith.addf %373, %372 : vector<8x128xf32>
    %375 = arith.divf %373, %374 : vector<8x128xf32>
    %376 = vector.extract_strided_slice %356 {offsets = [0, 256], sizes = [8, 128], strides = [1, 1]} : vector<8x384xf32> to vector<8x128xf32>
    %377 = vector.extract_strided_slice %359 {offsets = [0, 256], sizes = [8, 128], strides = [1, 1]} : vector<8x384xf32> to vector<8x128xf32>
    %378 = arith.addf %377, %14 : vector<8x128xf32>
    %379 = arith.mulf %367, %378 : vector<8x128xf32>
    %380 = arith.addf %376, %379 : vector<8x128xf32>
    %381 = math.tanh %380 : vector<8x128xf32>
    %cst_101 = arith.constant 1.000000e+00 : f32
    %382 = vector.broadcast %cst_101 : f32 to vector<8x128xf32>
    %383 = arith.subf %382, %375 : vector<8x128xf32>
    %384 = arith.mulf %383, %381 : vector<8x128xf32>
    %385 = arith.mulf %375, %253 : vector<8x128xf32>
    %386 = arith.addf %384, %385 : vector<8x128xf32>
    %387 = vector.extract_strided_slice %386 {offsets = [0, 0], sizes = [8, 64], strides = [1, 1]} : vector<8x128xf32> to vector<8x64xf32>
    %c0_102 = arith.constant 0 : index
    %c0_103 = arith.constant 0 : index
    %388 = vector.load %arg10[%c0_102, %c0_103] : memref<64x384xf32, #tpu.memory_space<vmem>>, vector<64x384xf32>
    %cst_104 = arith.constant dense<0.000000e+00> : vector<8x384xf32>
    %389 = tpu.matmul %387, %388, %cst_104 {dimension_numbers = #tpu.dot_dimension_numbers<[1], [0], [0], [1], [0, 0, 1, 1], [], []>} : vector<8x64xf32>, vector<64x384xf32>, vector<8x384xf32> -> vector<8x384xf32>
    %390 = arith.addf %389, %17 : vector<8x384xf32>
    %391 = vector.extract_strided_slice %287 {offsets = [0, 0], sizes = [8, 64], strides = [1, 1]} : vector<8x128xf32> to vector<8x64xf32>
    %c0_105 = arith.constant 0 : index
    %c0_106 = arith.constant 0 : index
    %392 = vector.load %arg11[%c0_105, %c0_106] : memref<64x384xf32, #tpu.memory_space<vmem>>, vector<64x384xf32>
    %cst_107 = arith.constant dense<0.000000e+00> : vector<8x384xf32>
    %393 = tpu.matmul %391, %392, %cst_107 {dimension_numbers = #tpu.dot_dimension_numbers<[1], [0], [0], [1], [0, 0, 1, 1], [], []>} : vector<8x64xf32>, vector<64x384xf32>, vector<8x384xf32> -> vector<8x384xf32>
    %394 = vector.extract_strided_slice %390 {offsets = [0, 0], sizes = [8, 128], strides = [1, 1]} : vector<8x384xf32> to vector<8x128xf32>
    %395 = vector.extract_strided_slice %393 {offsets = [0, 0], sizes = [8, 128], strides = [1, 1]} : vector<8x384xf32> to vector<8x128xf32>
    %396 = arith.addf %394, %395 : vector<8x128xf32>
    %397 = arith.negf %396 : vector<8x128xf32>
    %398 = math.exp %397 : vector<8x128xf32>
    %cst_108 = arith.constant 1.000000e+00 : f32
    %399 = vector.broadcast %cst_108 : f32 to vector<8x128xf32>
    %400 = arith.addf %399, %398 : vector<8x128xf32>
    %401 = arith.divf %399, %400 : vector<8x128xf32>
    %402 = vector.extract_strided_slice %390 {offsets = [0, 128], sizes = [8, 128], strides = [1, 1]} : vector<8x384xf32> to vector<8x128xf32>
    %403 = vector.extract_strided_slice %393 {offsets = [0, 128], sizes = [8, 128], strides = [1, 1]} : vector<8x384xf32> to vector<8x128xf32>
    %404 = arith.addf %402, %403 : vector<8x128xf32>
    %405 = arith.negf %404 : vector<8x128xf32>
    %406 = math.exp %405 : vector<8x128xf32>
    %cst_109 = arith.constant 1.000000e+00 : f32
    %407 = vector.broadcast %cst_109 : f32 to vector<8x128xf32>
    %408 = arith.addf %407, %406 : vector<8x128xf32>
    %409 = arith.divf %407, %408 : vector<8x128xf32>
    %410 = vector.extract_strided_slice %390 {offsets = [0, 256], sizes = [8, 128], strides = [1, 1]} : vector<8x384xf32> to vector<8x128xf32>
    %411 = vector.extract_strided_slice %393 {offsets = [0, 256], sizes = [8, 128], strides = [1, 1]} : vector<8x384xf32> to vector<8x128xf32>
    %412 = arith.addf %411, %20 : vector<8x128xf32>
    %413 = arith.mulf %401, %412 : vector<8x128xf32>
    %414 = arith.addf %410, %413 : vector<8x128xf32>
    %415 = math.tanh %414 : vector<8x128xf32>
    %cst_110 = arith.constant 1.000000e+00 : f32
    %416 = vector.broadcast %cst_110 : f32 to vector<8x128xf32>
    %417 = arith.subf %416, %409 : vector<8x128xf32>
    %418 = arith.mulf %417, %415 : vector<8x128xf32>
    %419 = arith.mulf %409, %287 : vector<8x128xf32>
    %420 = arith.addf %418, %419 : vector<8x128xf32>
    %c3_i32 = arith.constant 3 : i32
    %421 = arith.index_cast %c3_i32 : i32 to index
    %c0_111 = arith.constant 0 : index
    %c0_112 = arith.constant 0 : index
    %422 = vector.load %arg0[%421, %c0_111, %c0_112] : memref<8x8x1xf32, #tpu.memory_space<vmem>>, vector<1x8x1xf32>
    %423 = vector.shape_cast %422 : vector<1x8x1xf32> to vector<8x1xf32>
    %424 = vector.broadcast %423 : vector<8x1xf32> to vector<8x512xf32>
    %425 = arith.mulf %424, %2 : vector<8x512xf32>
    %426 = vector.extract_strided_slice %322 {offsets = [0, 0], sizes = [8, 64], strides = [1, 1]} : vector<8x128xf32> to vector<8x64xf32>
    %c0_113 = arith.constant 0 : index
    %c0_114 = arith.constant 0 : index
    %427 = vector.load %arg2[%c0_113, %c0_114] : memref<64x512xf32, #tpu.memory_space<vmem>>, vector<64x512xf32>
    %cst_115 = arith.constant dense<0.000000e+00> : vector<8x512xf32>
    %428 = tpu.matmul %426, %427, %cst_115 {dimension_numbers = #tpu.dot_dimension_numbers<[1], [0], [0], [1], [0, 0, 1, 1], [], []>} : vector<8x64xf32>, vector<64x512xf32>, vector<8x512xf32> -> vector<8x512xf32>
    %429 = arith.addf %425, %428 : vector<8x512xf32>
    %430 = arith.addf %429, %5 : vector<8x512xf32>
    %431 = vector.extract_strided_slice %430 {offsets = [0, 0], sizes = [8, 128], strides = [1, 1]} : vector<8x512xf32> to vector<8x128xf32>
    %432 = arith.negf %431 : vector<8x128xf32>
    %433 = math.exp %432 : vector<8x128xf32>
    %cst_116 = arith.constant 1.000000e+00 : f32
    %434 = vector.broadcast %cst_116 : f32 to vector<8x128xf32>
    %435 = arith.addf %434, %433 : vector<8x128xf32>
    %436 = arith.divf %434, %435 : vector<8x128xf32>
    %437 = vector.extract_strided_slice %430 {offsets = [0, 128], sizes = [8, 128], strides = [1, 1]} : vector<8x512xf32> to vector<8x128xf32>
    %438 = arith.negf %437 : vector<8x128xf32>
    %439 = math.exp %438 : vector<8x128xf32>
    %cst_117 = arith.constant 1.000000e+00 : f32
    %440 = vector.broadcast %cst_117 : f32 to vector<8x128xf32>
    %441 = arith.addf %440, %439 : vector<8x128xf32>
    %442 = arith.divf %440, %441 : vector<8x128xf32>
    %443 = vector.extract_strided_slice %430 {offsets = [0, 256], sizes = [8, 128], strides = [1, 1]} : vector<8x512xf32> to vector<8x128xf32>
    %444 = math.tanh %443 : vector<8x128xf32>
    %445 = vector.extract_strided_slice %430 {offsets = [0, 384], sizes = [8, 128], strides = [1, 1]} : vector<8x512xf32> to vector<8x128xf32>
    %446 = arith.negf %445 : vector<8x128xf32>
    %447 = math.exp %446 : vector<8x128xf32>
    %cst_118 = arith.constant 1.000000e+00 : f32
    %448 = vector.broadcast %cst_118 : f32 to vector<8x128xf32>
    %449 = arith.addf %448, %447 : vector<8x128xf32>
    %450 = arith.divf %448, %449 : vector<8x128xf32>
    %451 = arith.mulf %442, %320 : vector<8x128xf32>
    %452 = arith.mulf %436, %444 : vector<8x128xf32>
    %453 = arith.addf %451, %452 : vector<8x128xf32>
    %454 = math.tanh %453 : vector<8x128xf32>
    %455 = arith.mulf %450, %454 : vector<8x128xf32>
    %c64_i32_119 = arith.constant 64 : i32
    %456 = tpu.dynamic_rotate %352 by %c64_i32_119 dim 1 : vector<8x128xf32>, i32 -> vector<8x128xf32>
    %457 = arith.addf %455, %456 : vector<8x128xf32>
    %c0_120 = arith.constant 0 : index
    %c0_121 = arith.constant 0 : index
    %458 = vector.load %arg4[%c0_120, %c0_121] : memref<128x512xf32, #tpu.memory_space<vmem>>, vector<128x512xf32>
    %cst_122 = arith.constant dense<0.000000e+00> : vector<8x512xf32>
    %459 = tpu.matmul %457, %458, %cst_122 {dimension_numbers = #tpu.dot_dimension_numbers<[1], [0], [0], [1], [0, 0, 1, 1], [], []>} : vector<8x128xf32>, vector<128x512xf32>, vector<8x512xf32> -> vector<8x512xf32>
    %460 = arith.addf %459, %8 : vector<8x512xf32>
    %461 = vector.extract_strided_slice %460 {offsets = [0, 0], sizes = [8, 128], strides = [1, 1]} : vector<8x512xf32> to vector<8x128xf32>
    %462 = arith.negf %461 : vector<8x128xf32>
    %463 = math.exp %462 : vector<8x128xf32>
    %cst_123 = arith.constant 1.000000e+00 : f32
    %464 = vector.broadcast %cst_123 : f32 to vector<8x128xf32>
    %465 = arith.addf %464, %463 : vector<8x128xf32>
    %466 = arith.divf %464, %465 : vector<8x128xf32>
    %467 = vector.extract_strided_slice %460 {offsets = [0, 128], sizes = [8, 128], strides = [1, 1]} : vector<8x512xf32> to vector<8x128xf32>
    %468 = arith.negf %467 : vector<8x128xf32>
    %469 = math.exp %468 : vector<8x128xf32>
    %cst_124 = arith.constant 1.000000e+00 : f32
    %470 = vector.broadcast %cst_124 : f32 to vector<8x128xf32>
    %471 = arith.addf %470, %469 : vector<8x128xf32>
    %472 = arith.divf %470, %471 : vector<8x128xf32>
    %473 = vector.extract_strided_slice %460 {offsets = [0, 256], sizes = [8, 128], strides = [1, 1]} : vector<8x512xf32> to vector<8x128xf32>
    %474 = math.tanh %473 : vector<8x128xf32>
    %475 = vector.extract_strided_slice %460 {offsets = [0, 384], sizes = [8, 128], strides = [1, 1]} : vector<8x512xf32> to vector<8x128xf32>
    %476 = arith.negf %475 : vector<8x128xf32>
    %477 = math.exp %476 : vector<8x128xf32>
    %cst_125 = arith.constant 1.000000e+00 : f32
    %478 = vector.broadcast %cst_125 : f32 to vector<8x128xf32>
    %479 = arith.addf %478, %477 : vector<8x128xf32>
    %480 = arith.divf %478, %479 : vector<8x128xf32>
    %481 = arith.mulf %472, %350 : vector<8x128xf32>
    %482 = arith.mulf %466, %474 : vector<8x128xf32>
    %483 = arith.addf %481, %482 : vector<8x128xf32>
    %484 = math.tanh %483 : vector<8x128xf32>
    %485 = arith.mulf %480, %484 : vector<8x128xf32>
    %486 = vector.extract_strided_slice %485 {offsets = [0, 0], sizes = [8, 64], strides = [1, 1]} : vector<8x128xf32> to vector<8x64xf32>
    %c0_126 = arith.constant 0 : index
    %c0_127 = arith.constant 0 : index
    %487 = vector.load %arg6[%c0_126, %c0_127] : memref<64x384xf32, #tpu.memory_space<vmem>>, vector<64x384xf32>
    %cst_128 = arith.constant dense<0.000000e+00> : vector<8x384xf32>
    %488 = tpu.matmul %486, %487, %cst_128 {dimension_numbers = #tpu.dot_dimension_numbers<[1], [0], [0], [1], [0, 0, 1, 1], [], []>} : vector<8x64xf32>, vector<64x384xf32>, vector<8x384xf32> -> vector<8x384xf32>
    %489 = arith.addf %488, %11 : vector<8x384xf32>
    %490 = vector.extract_strided_slice %386 {offsets = [0, 0], sizes = [8, 64], strides = [1, 1]} : vector<8x128xf32> to vector<8x64xf32>
    %c0_129 = arith.constant 0 : index
    %c0_130 = arith.constant 0 : index
    %491 = vector.load %arg7[%c0_129, %c0_130] : memref<64x384xf32, #tpu.memory_space<vmem>>, vector<64x384xf32>
    %cst_131 = arith.constant dense<0.000000e+00> : vector<8x384xf32>
    %492 = tpu.matmul %490, %491, %cst_131 {dimension_numbers = #tpu.dot_dimension_numbers<[1], [0], [0], [1], [0, 0, 1, 1], [], []>} : vector<8x64xf32>, vector<64x384xf32>, vector<8x384xf32> -> vector<8x384xf32>
    %493 = vector.extract_strided_slice %489 {offsets = [0, 0], sizes = [8, 128], strides = [1, 1]} : vector<8x384xf32> to vector<8x128xf32>
    %494 = vector.extract_strided_slice %492 {offsets = [0, 0], sizes = [8, 128], strides = [1, 1]} : vector<8x384xf32> to vector<8x128xf32>
    %495 = arith.addf %493, %494 : vector<8x128xf32>
    %496 = arith.negf %495 : vector<8x128xf32>
    %497 = math.exp %496 : vector<8x128xf32>
    %cst_132 = arith.constant 1.000000e+00 : f32
    %498 = vector.broadcast %cst_132 : f32 to vector<8x128xf32>
    %499 = arith.addf %498, %497 : vector<8x128xf32>
    %500 = arith.divf %498, %499 : vector<8x128xf32>
    %501 = vector.extract_strided_slice %489 {offsets = [0, 128], sizes = [8, 128], strides = [1, 1]} : vector<8x384xf32> to vector<8x128xf32>
    %502 = vector.extract_strided_slice %492 {offsets = [0, 128], sizes = [8, 128], strides = [1, 1]} : vector<8x384xf32> to vector<8x128xf32>
    %503 = arith.addf %501, %502 : vector<8x128xf32>
    %504 = arith.negf %503 : vector<8x128xf32>
    %505 = math.exp %504 : vector<8x128xf32>
    %cst_133 = arith.constant 1.000000e+00 : f32
    %506 = vector.broadcast %cst_133 : f32 to vector<8x128xf32>
    %507 = arith.addf %506, %505 : vector<8x128xf32>
    %508 = arith.divf %506, %507 : vector<8x128xf32>
    %509 = vector.extract_strided_slice %489 {offsets = [0, 256], sizes = [8, 128], strides = [1, 1]} : vector<8x384xf32> to vector<8x128xf32>
    %510 = vector.extract_strided_slice %492 {offsets = [0, 256], sizes = [8, 128], strides = [1, 1]} : vector<8x384xf32> to vector<8x128xf32>
    %511 = arith.addf %510, %14 : vector<8x128xf32>
    %512 = arith.mulf %500, %511 : vector<8x128xf32>
    %513 = arith.addf %509, %512 : vector<8x128xf32>
    %514 = math.tanh %513 : vector<8x128xf32>
    %cst_134 = arith.constant 1.000000e+00 : f32
    %515 = vector.broadcast %cst_134 : f32 to vector<8x128xf32>
    %516 = arith.subf %515, %508 : vector<8x128xf32>
    %517 = arith.mulf %516, %514 : vector<8x128xf32>
    %518 = arith.mulf %508, %386 : vector<8x128xf32>
    %519 = arith.addf %517, %518 : vector<8x128xf32>
    %520 = vector.extract_strided_slice %519 {offsets = [0, 0], sizes = [8, 64], strides = [1, 1]} : vector<8x128xf32> to vector<8x64xf32>
    %c0_135 = arith.constant 0 : index
    %c0_136 = arith.constant 0 : index
    %521 = vector.load %arg10[%c0_135, %c0_136] : memref<64x384xf32, #tpu.memory_space<vmem>>, vector<64x384xf32>
    %cst_137 = arith.constant dense<0.000000e+00> : vector<8x384xf32>
    %522 = tpu.matmul %520, %521, %cst_137 {dimension_numbers = #tpu.dot_dimension_numbers<[1], [0], [0], [1], [0, 0, 1, 1], [], []>} : vector<8x64xf32>, vector<64x384xf32>, vector<8x384xf32> -> vector<8x384xf32>
    %523 = arith.addf %522, %17 : vector<8x384xf32>
    %524 = vector.extract_strided_slice %420 {offsets = [0, 0], sizes = [8, 64], strides = [1, 1]} : vector<8x128xf32> to vector<8x64xf32>
    %c0_138 = arith.constant 0 : index
    %c0_139 = arith.constant 0 : index
    %525 = vector.load %arg11[%c0_138, %c0_139] : memref<64x384xf32, #tpu.memory_space<vmem>>, vector<64x384xf32>
    %cst_140 = arith.constant dense<0.000000e+00> : vector<8x384xf32>
    %526 = tpu.matmul %524, %525, %cst_140 {dimension_numbers = #tpu.dot_dimension_numbers<[1], [0], [0], [1], [0, 0, 1, 1], [], []>} : vector<8x64xf32>, vector<64x384xf32>, vector<8x384xf32> -> vector<8x384xf32>
    %527 = vector.extract_strided_slice %523 {offsets = [0, 0], sizes = [8, 128], strides = [1, 1]} : vector<8x384xf32> to vector<8x128xf32>
    %528 = vector.extract_strided_slice %526 {offsets = [0, 0], sizes = [8, 128], strides = [1, 1]} : vector<8x384xf32> to vector<8x128xf32>
    %529 = arith.addf %527, %528 : vector<8x128xf32>
    %530 = arith.negf %529 : vector<8x128xf32>
    %531 = math.exp %530 : vector<8x128xf32>
    %cst_141 = arith.constant 1.000000e+00 : f32
    %532 = vector.broadcast %cst_141 : f32 to vector<8x128xf32>
    %533 = arith.addf %532, %531 : vector<8x128xf32>
    %534 = arith.divf %532, %533 : vector<8x128xf32>
    %535 = vector.extract_strided_slice %523 {offsets = [0, 128], sizes = [8, 128], strides = [1, 1]} : vector<8x384xf32> to vector<8x128xf32>
    %536 = vector.extract_strided_slice %526 {offsets = [0, 128], sizes = [8, 128], strides = [1, 1]} : vector<8x384xf32> to vector<8x128xf32>
    %537 = arith.addf %535, %536 : vector<8x128xf32>
    %538 = arith.negf %537 : vector<8x128xf32>
    %539 = math.exp %538 : vector<8x128xf32>
    %cst_142 = arith.constant 1.000000e+00 : f32
    %540 = vector.broadcast %cst_142 : f32 to vector<8x128xf32>
    %541 = arith.addf %540, %539 : vector<8x128xf32>
    %542 = arith.divf %540, %541 : vector<8x128xf32>
    %543 = vector.extract_strided_slice %523 {offsets = [0, 256], sizes = [8, 128], strides = [1, 1]} : vector<8x384xf32> to vector<8x128xf32>
    %544 = vector.extract_strided_slice %526 {offsets = [0, 256], sizes = [8, 128], strides = [1, 1]} : vector<8x384xf32> to vector<8x128xf32>
    %545 = arith.addf %544, %20 : vector<8x128xf32>
    %546 = arith.mulf %534, %545 : vector<8x128xf32>
    %547 = arith.addf %543, %546 : vector<8x128xf32>
    %548 = math.tanh %547 : vector<8x128xf32>
    %cst_143 = arith.constant 1.000000e+00 : f32
    %549 = vector.broadcast %cst_143 : f32 to vector<8x128xf32>
    %550 = arith.subf %549, %542 : vector<8x128xf32>
    %551 = arith.mulf %550, %548 : vector<8x128xf32>
    %552 = arith.mulf %542, %420 : vector<8x128xf32>
    %553 = arith.addf %551, %552 : vector<8x128xf32>
    %c4_i32 = arith.constant 4 : i32
    %554 = arith.index_cast %c4_i32 : i32 to index
    %c0_144 = arith.constant 0 : index
    %c0_145 = arith.constant 0 : index
    %555 = vector.load %arg0[%554, %c0_144, %c0_145] : memref<8x8x1xf32, #tpu.memory_space<vmem>>, vector<1x8x1xf32>
    %556 = vector.shape_cast %555 : vector<1x8x1xf32> to vector<8x1xf32>
    %557 = vector.broadcast %556 : vector<8x1xf32> to vector<8x512xf32>
    %558 = arith.mulf %557, %2 : vector<8x512xf32>
    %559 = vector.extract_strided_slice %455 {offsets = [0, 0], sizes = [8, 64], strides = [1, 1]} : vector<8x128xf32> to vector<8x64xf32>
    %c0_146 = arith.constant 0 : index
    %c0_147 = arith.constant 0 : index
    %560 = vector.load %arg2[%c0_146, %c0_147] : memref<64x512xf32, #tpu.memory_space<vmem>>, vector<64x512xf32>
    %cst_148 = arith.constant dense<0.000000e+00> : vector<8x512xf32>
    %561 = tpu.matmul %559, %560, %cst_148 {dimension_numbers = #tpu.dot_dimension_numbers<[1], [0], [0], [1], [0, 0, 1, 1], [], []>} : vector<8x64xf32>, vector<64x512xf32>, vector<8x512xf32> -> vector<8x512xf32>
    %562 = arith.addf %558, %561 : vector<8x512xf32>
    %563 = arith.addf %562, %5 : vector<8x512xf32>
    %564 = vector.extract_strided_slice %563 {offsets = [0, 0], sizes = [8, 128], strides = [1, 1]} : vector<8x512xf32> to vector<8x128xf32>
    %565 = arith.negf %564 : vector<8x128xf32>
    %566 = math.exp %565 : vector<8x128xf32>
    %cst_149 = arith.constant 1.000000e+00 : f32
    %567 = vector.broadcast %cst_149 : f32 to vector<8x128xf32>
    %568 = arith.addf %567, %566 : vector<8x128xf32>
    %569 = arith.divf %567, %568 : vector<8x128xf32>
    %570 = vector.extract_strided_slice %563 {offsets = [0, 128], sizes = [8, 128], strides = [1, 1]} : vector<8x512xf32> to vector<8x128xf32>
    %571 = arith.negf %570 : vector<8x128xf32>
    %572 = math.exp %571 : vector<8x128xf32>
    %cst_150 = arith.constant 1.000000e+00 : f32
    %573 = vector.broadcast %cst_150 : f32 to vector<8x128xf32>
    %574 = arith.addf %573, %572 : vector<8x128xf32>
    %575 = arith.divf %573, %574 : vector<8x128xf32>
    %576 = vector.extract_strided_slice %563 {offsets = [0, 256], sizes = [8, 128], strides = [1, 1]} : vector<8x512xf32> to vector<8x128xf32>
    %577 = math.tanh %576 : vector<8x128xf32>
    %578 = vector.extract_strided_slice %563 {offsets = [0, 384], sizes = [8, 128], strides = [1, 1]} : vector<8x512xf32> to vector<8x128xf32>
    %579 = arith.negf %578 : vector<8x128xf32>
    %580 = math.exp %579 : vector<8x128xf32>
    %cst_151 = arith.constant 1.000000e+00 : f32
    %581 = vector.broadcast %cst_151 : f32 to vector<8x128xf32>
    %582 = arith.addf %581, %580 : vector<8x128xf32>
    %583 = arith.divf %581, %582 : vector<8x128xf32>
    %584 = arith.mulf %575, %453 : vector<8x128xf32>
    %585 = arith.mulf %569, %577 : vector<8x128xf32>
    %586 = arith.addf %584, %585 : vector<8x128xf32>
    %587 = math.tanh %586 : vector<8x128xf32>
    %588 = arith.mulf %583, %587 : vector<8x128xf32>
    %c64_i32_152 = arith.constant 64 : i32
    %589 = tpu.dynamic_rotate %485 by %c64_i32_152 dim 1 : vector<8x128xf32>, i32 -> vector<8x128xf32>
    %590 = arith.addf %588, %589 : vector<8x128xf32>
    %c0_153 = arith.constant 0 : index
    %c0_154 = arith.constant 0 : index
    %591 = vector.load %arg4[%c0_153, %c0_154] : memref<128x512xf32, #tpu.memory_space<vmem>>, vector<128x512xf32>
    %cst_155 = arith.constant dense<0.000000e+00> : vector<8x512xf32>
    %592 = tpu.matmul %590, %591, %cst_155 {dimension_numbers = #tpu.dot_dimension_numbers<[1], [0], [0], [1], [0, 0, 1, 1], [], []>} : vector<8x128xf32>, vector<128x512xf32>, vector<8x512xf32> -> vector<8x512xf32>
    %593 = arith.addf %592, %8 : vector<8x512xf32>
    %594 = vector.extract_strided_slice %593 {offsets = [0, 0], sizes = [8, 128], strides = [1, 1]} : vector<8x512xf32> to vector<8x128xf32>
    %595 = arith.negf %594 : vector<8x128xf32>
    %596 = math.exp %595 : vector<8x128xf32>
    %cst_156 = arith.constant 1.000000e+00 : f32
    %597 = vector.broadcast %cst_156 : f32 to vector<8x128xf32>
    %598 = arith.addf %597, %596 : vector<8x128xf32>
    %599 = arith.divf %597, %598 : vector<8x128xf32>
    %600 = vector.extract_strided_slice %593 {offsets = [0, 128], sizes = [8, 128], strides = [1, 1]} : vector<8x512xf32> to vector<8x128xf32>
    %601 = arith.negf %600 : vector<8x128xf32>
    %602 = math.exp %601 : vector<8x128xf32>
    %cst_157 = arith.constant 1.000000e+00 : f32
    %603 = vector.broadcast %cst_157 : f32 to vector<8x128xf32>
    %604 = arith.addf %603, %602 : vector<8x128xf32>
    %605 = arith.divf %603, %604 : vector<8x128xf32>
    %606 = vector.extract_strided_slice %593 {offsets = [0, 256], sizes = [8, 128], strides = [1, 1]} : vector<8x512xf32> to vector<8x128xf32>
    %607 = math.tanh %606 : vector<8x128xf32>
    %608 = vector.extract_strided_slice %593 {offsets = [0, 384], sizes = [8, 128], strides = [1, 1]} : vector<8x512xf32> to vector<8x128xf32>
    %609 = arith.negf %608 : vector<8x128xf32>
    %610 = math.exp %609 : vector<8x128xf32>
    %cst_158 = arith.constant 1.000000e+00 : f32
    %611 = vector.broadcast %cst_158 : f32 to vector<8x128xf32>
    %612 = arith.addf %611, %610 : vector<8x128xf32>
    %613 = arith.divf %611, %612 : vector<8x128xf32>
    %614 = arith.mulf %605, %483 : vector<8x128xf32>
    %615 = arith.mulf %599, %607 : vector<8x128xf32>
    %616 = arith.addf %614, %615 : vector<8x128xf32>
    %617 = math.tanh %616 : vector<8x128xf32>
    %618 = arith.mulf %613, %617 : vector<8x128xf32>
    %619 = vector.extract_strided_slice %618 {offsets = [0, 0], sizes = [8, 64], strides = [1, 1]} : vector<8x128xf32> to vector<8x64xf32>
    %c0_159 = arith.constant 0 : index
    %c0_160 = arith.constant 0 : index
    %620 = vector.load %arg6[%c0_159, %c0_160] : memref<64x384xf32, #tpu.memory_space<vmem>>, vector<64x384xf32>
    %cst_161 = arith.constant dense<0.000000e+00> : vector<8x384xf32>
    %621 = tpu.matmul %619, %620, %cst_161 {dimension_numbers = #tpu.dot_dimension_numbers<[1], [0], [0], [1], [0, 0, 1, 1], [], []>} : vector<8x64xf32>, vector<64x384xf32>, vector<8x384xf32> -> vector<8x384xf32>
    %622 = arith.addf %621, %11 : vector<8x384xf32>
    %623 = vector.extract_strided_slice %519 {offsets = [0, 0], sizes = [8, 64], strides = [1, 1]} : vector<8x128xf32> to vector<8x64xf32>
    %c0_162 = arith.constant 0 : index
    %c0_163 = arith.constant 0 : index
    %624 = vector.load %arg7[%c0_162, %c0_163] : memref<64x384xf32, #tpu.memory_space<vmem>>, vector<64x384xf32>
    %cst_164 = arith.constant dense<0.000000e+00> : vector<8x384xf32>
    %625 = tpu.matmul %623, %624, %cst_164 {dimension_numbers = #tpu.dot_dimension_numbers<[1], [0], [0], [1], [0, 0, 1, 1], [], []>} : vector<8x64xf32>, vector<64x384xf32>, vector<8x384xf32> -> vector<8x384xf32>
    %626 = vector.extract_strided_slice %622 {offsets = [0, 0], sizes = [8, 128], strides = [1, 1]} : vector<8x384xf32> to vector<8x128xf32>
    %627 = vector.extract_strided_slice %625 {offsets = [0, 0], sizes = [8, 128], strides = [1, 1]} : vector<8x384xf32> to vector<8x128xf32>
    %628 = arith.addf %626, %627 : vector<8x128xf32>
    %629 = arith.negf %628 : vector<8x128xf32>
    %630 = math.exp %629 : vector<8x128xf32>
    %cst_165 = arith.constant 1.000000e+00 : f32
    %631 = vector.broadcast %cst_165 : f32 to vector<8x128xf32>
    %632 = arith.addf %631, %630 : vector<8x128xf32>
    %633 = arith.divf %631, %632 : vector<8x128xf32>
    %634 = vector.extract_strided_slice %622 {offsets = [0, 128], sizes = [8, 128], strides = [1, 1]} : vector<8x384xf32> to vector<8x128xf32>
    %635 = vector.extract_strided_slice %625 {offsets = [0, 128], sizes = [8, 128], strides = [1, 1]} : vector<8x384xf32> to vector<8x128xf32>
    %636 = arith.addf %634, %635 : vector<8x128xf32>
    %637 = arith.negf %636 : vector<8x128xf32>
    %638 = math.exp %637 : vector<8x128xf32>
    %cst_166 = arith.constant 1.000000e+00 : f32
    %639 = vector.broadcast %cst_166 : f32 to vector<8x128xf32>
    %640 = arith.addf %639, %638 : vector<8x128xf32>
    %641 = arith.divf %639, %640 : vector<8x128xf32>
    %642 = vector.extract_strided_slice %622 {offsets = [0, 256], sizes = [8, 128], strides = [1, 1]} : vector<8x384xf32> to vector<8x128xf32>
    %643 = vector.extract_strided_slice %625 {offsets = [0, 256], sizes = [8, 128], strides = [1, 1]} : vector<8x384xf32> to vector<8x128xf32>
    %644 = arith.addf %643, %14 : vector<8x128xf32>
    %645 = arith.mulf %633, %644 : vector<8x128xf32>
    %646 = arith.addf %642, %645 : vector<8x128xf32>
    %647 = math.tanh %646 : vector<8x128xf32>
    %cst_167 = arith.constant 1.000000e+00 : f32
    %648 = vector.broadcast %cst_167 : f32 to vector<8x128xf32>
    %649 = arith.subf %648, %641 : vector<8x128xf32>
    %650 = arith.mulf %649, %647 : vector<8x128xf32>
    %651 = arith.mulf %641, %519 : vector<8x128xf32>
    %652 = arith.addf %650, %651 : vector<8x128xf32>
    %653 = vector.extract_strided_slice %652 {offsets = [0, 0], sizes = [8, 64], strides = [1, 1]} : vector<8x128xf32> to vector<8x64xf32>
    %c0_168 = arith.constant 0 : index
    %c0_169 = arith.constant 0 : index
    %654 = vector.load %arg10[%c0_168, %c0_169] : memref<64x384xf32, #tpu.memory_space<vmem>>, vector<64x384xf32>
    %cst_170 = arith.constant dense<0.000000e+00> : vector<8x384xf32>
    %655 = tpu.matmul %653, %654, %cst_170 {dimension_numbers = #tpu.dot_dimension_numbers<[1], [0], [0], [1], [0, 0, 1, 1], [], []>} : vector<8x64xf32>, vector<64x384xf32>, vector<8x384xf32> -> vector<8x384xf32>
    %656 = arith.addf %655, %17 : vector<8x384xf32>
    %657 = vector.extract_strided_slice %553 {offsets = [0, 0], sizes = [8, 64], strides = [1, 1]} : vector<8x128xf32> to vector<8x64xf32>
    %c0_171 = arith.constant 0 : index
    %c0_172 = arith.constant 0 : index
    %658 = vector.load %arg11[%c0_171, %c0_172] : memref<64x384xf32, #tpu.memory_space<vmem>>, vector<64x384xf32>
    %cst_173 = arith.constant dense<0.000000e+00> : vector<8x384xf32>
    %659 = tpu.matmul %657, %658, %cst_173 {dimension_numbers = #tpu.dot_dimension_numbers<[1], [0], [0], [1], [0, 0, 1, 1], [], []>} : vector<8x64xf32>, vector<64x384xf32>, vector<8x384xf32> -> vector<8x384xf32>
    %660 = vector.extract_strided_slice %656 {offsets = [0, 0], sizes = [8, 128], strides = [1, 1]} : vector<8x384xf32> to vector<8x128xf32>
    %661 = vector.extract_strided_slice %659 {offsets = [0, 0], sizes = [8, 128], strides = [1, 1]} : vector<8x384xf32> to vector<8x128xf32>
    %662 = arith.addf %660, %661 : vector<8x128xf32>
    %663 = arith.negf %662 : vector<8x128xf32>
    %664 = math.exp %663 : vector<8x128xf32>
    %cst_174 = arith.constant 1.000000e+00 : f32
    %665 = vector.broadcast %cst_174 : f32 to vector<8x128xf32>
    %666 = arith.addf %665, %664 : vector<8x128xf32>
    %667 = arith.divf %665, %666 : vector<8x128xf32>
    %668 = vector.extract_strided_slice %656 {offsets = [0, 128], sizes = [8, 128], strides = [1, 1]} : vector<8x384xf32> to vector<8x128xf32>
    %669 = vector.extract_strided_slice %659 {offsets = [0, 128], sizes = [8, 128], strides = [1, 1]} : vector<8x384xf32> to vector<8x128xf32>
    %670 = arith.addf %668, %669 : vector<8x128xf32>
    %671 = arith.negf %670 : vector<8x128xf32>
    %672 = math.exp %671 : vector<8x128xf32>
    %cst_175 = arith.constant 1.000000e+00 : f32
    %673 = vector.broadcast %cst_175 : f32 to vector<8x128xf32>
    %674 = arith.addf %673, %672 : vector<8x128xf32>
    %675 = arith.divf %673, %674 : vector<8x128xf32>
    %676 = vector.extract_strided_slice %656 {offsets = [0, 256], sizes = [8, 128], strides = [1, 1]} : vector<8x384xf32> to vector<8x128xf32>
    %677 = vector.extract_strided_slice %659 {offsets = [0, 256], sizes = [8, 128], strides = [1, 1]} : vector<8x384xf32> to vector<8x128xf32>
    %678 = arith.addf %677, %20 : vector<8x128xf32>
    %679 = arith.mulf %667, %678 : vector<8x128xf32>
    %680 = arith.addf %676, %679 : vector<8x128xf32>
    %681 = math.tanh %680 : vector<8x128xf32>
    %cst_176 = arith.constant 1.000000e+00 : f32
    %682 = vector.broadcast %cst_176 : f32 to vector<8x128xf32>
    %683 = arith.subf %682, %675 : vector<8x128xf32>
    %684 = arith.mulf %683, %681 : vector<8x128xf32>
    %685 = arith.mulf %675, %553 : vector<8x128xf32>
    %686 = arith.addf %684, %685 : vector<8x128xf32>
    %c5_i32 = arith.constant 5 : i32
    %687 = arith.index_cast %c5_i32 : i32 to index
    %c0_177 = arith.constant 0 : index
    %c0_178 = arith.constant 0 : index
    %688 = vector.load %arg0[%687, %c0_177, %c0_178] : memref<8x8x1xf32, #tpu.memory_space<vmem>>, vector<1x8x1xf32>
    %689 = vector.shape_cast %688 : vector<1x8x1xf32> to vector<8x1xf32>
    %690 = vector.broadcast %689 : vector<8x1xf32> to vector<8x512xf32>
    %691 = arith.mulf %690, %2 : vector<8x512xf32>
    %692 = vector.extract_strided_slice %588 {offsets = [0, 0], sizes = [8, 64], strides = [1, 1]} : vector<8x128xf32> to vector<8x64xf32>
    %c0_179 = arith.constant 0 : index
    %c0_180 = arith.constant 0 : index
    %693 = vector.load %arg2[%c0_179, %c0_180] : memref<64x512xf32, #tpu.memory_space<vmem>>, vector<64x512xf32>
    %cst_181 = arith.constant dense<0.000000e+00> : vector<8x512xf32>
    %694 = tpu.matmul %692, %693, %cst_181 {dimension_numbers = #tpu.dot_dimension_numbers<[1], [0], [0], [1], [0, 0, 1, 1], [], []>} : vector<8x64xf32>, vector<64x512xf32>, vector<8x512xf32> -> vector<8x512xf32>
    %695 = arith.addf %691, %694 : vector<8x512xf32>
    %696 = arith.addf %695, %5 : vector<8x512xf32>
    %697 = vector.extract_strided_slice %696 {offsets = [0, 0], sizes = [8, 128], strides = [1, 1]} : vector<8x512xf32> to vector<8x128xf32>
    %698 = arith.negf %697 : vector<8x128xf32>
    %699 = math.exp %698 : vector<8x128xf32>
    %cst_182 = arith.constant 1.000000e+00 : f32
    %700 = vector.broadcast %cst_182 : f32 to vector<8x128xf32>
    %701 = arith.addf %700, %699 : vector<8x128xf32>
    %702 = arith.divf %700, %701 : vector<8x128xf32>
    %703 = vector.extract_strided_slice %696 {offsets = [0, 128], sizes = [8, 128], strides = [1, 1]} : vector<8x512xf32> to vector<8x128xf32>
    %704 = arith.negf %703 : vector<8x128xf32>
    %705 = math.exp %704 : vector<8x128xf32>
    %cst_183 = arith.constant 1.000000e+00 : f32
    %706 = vector.broadcast %cst_183 : f32 to vector<8x128xf32>
    %707 = arith.addf %706, %705 : vector<8x128xf32>
    %708 = arith.divf %706, %707 : vector<8x128xf32>
    %709 = vector.extract_strided_slice %696 {offsets = [0, 256], sizes = [8, 128], strides = [1, 1]} : vector<8x512xf32> to vector<8x128xf32>
    %710 = math.tanh %709 : vector<8x128xf32>
    %711 = vector.extract_strided_slice %696 {offsets = [0, 384], sizes = [8, 128], strides = [1, 1]} : vector<8x512xf32> to vector<8x128xf32>
    %712 = arith.negf %711 : vector<8x128xf32>
    %713 = math.exp %712 : vector<8x128xf32>
    %cst_184 = arith.constant 1.000000e+00 : f32
    %714 = vector.broadcast %cst_184 : f32 to vector<8x128xf32>
    %715 = arith.addf %714, %713 : vector<8x128xf32>
    %716 = arith.divf %714, %715 : vector<8x128xf32>
    %717 = arith.mulf %708, %586 : vector<8x128xf32>
    %718 = arith.mulf %702, %710 : vector<8x128xf32>
    %719 = arith.addf %717, %718 : vector<8x128xf32>
    %720 = math.tanh %719 : vector<8x128xf32>
    %721 = arith.mulf %716, %720 : vector<8x128xf32>
    %c64_i32_185 = arith.constant 64 : i32
    %722 = tpu.dynamic_rotate %618 by %c64_i32_185 dim 1 : vector<8x128xf32>, i32 -> vector<8x128xf32>
    %723 = arith.addf %721, %722 : vector<8x128xf32>
    %c0_186 = arith.constant 0 : index
    %c0_187 = arith.constant 0 : index
    %724 = vector.load %arg4[%c0_186, %c0_187] : memref<128x512xf32, #tpu.memory_space<vmem>>, vector<128x512xf32>
    %cst_188 = arith.constant dense<0.000000e+00> : vector<8x512xf32>
    %725 = tpu.matmul %723, %724, %cst_188 {dimension_numbers = #tpu.dot_dimension_numbers<[1], [0], [0], [1], [0, 0, 1, 1], [], []>} : vector<8x128xf32>, vector<128x512xf32>, vector<8x512xf32> -> vector<8x512xf32>
    %726 = arith.addf %725, %8 : vector<8x512xf32>
    %727 = vector.extract_strided_slice %726 {offsets = [0, 0], sizes = [8, 128], strides = [1, 1]} : vector<8x512xf32> to vector<8x128xf32>
    %728 = arith.negf %727 : vector<8x128xf32>
    %729 = math.exp %728 : vector<8x128xf32>
    %cst_189 = arith.constant 1.000000e+00 : f32
    %730 = vector.broadcast %cst_189 : f32 to vector<8x128xf32>
    %731 = arith.addf %730, %729 : vector<8x128xf32>
    %732 = arith.divf %730, %731 : vector<8x128xf32>
    %733 = vector.extract_strided_slice %726 {offsets = [0, 128], sizes = [8, 128], strides = [1, 1]} : vector<8x512xf32> to vector<8x128xf32>
    %734 = arith.negf %733 : vector<8x128xf32>
    %735 = math.exp %734 : vector<8x128xf32>
    %cst_190 = arith.constant 1.000000e+00 : f32
    %736 = vector.broadcast %cst_190 : f32 to vector<8x128xf32>
    %737 = arith.addf %736, %735 : vector<8x128xf32>
    %738 = arith.divf %736, %737 : vector<8x128xf32>
    %739 = vector.extract_strided_slice %726 {offsets = [0, 256], sizes = [8, 128], strides = [1, 1]} : vector<8x512xf32> to vector<8x128xf32>
    %740 = math.tanh %739 : vector<8x128xf32>
    %741 = vector.extract_strided_slice %726 {offsets = [0, 384], sizes = [8, 128], strides = [1, 1]} : vector<8x512xf32> to vector<8x128xf32>
    %742 = arith.negf %741 : vector<8x128xf32>
    %743 = math.exp %742 : vector<8x128xf32>
    %cst_191 = arith.constant 1.000000e+00 : f32
    %744 = vector.broadcast %cst_191 : f32 to vector<8x128xf32>
    %745 = arith.addf %744, %743 : vector<8x128xf32>
    %746 = arith.divf %744, %745 : vector<8x128xf32>
    %747 = arith.mulf %738, %616 : vector<8x128xf32>
    %748 = arith.mulf %732, %740 : vector<8x128xf32>
    %749 = arith.addf %747, %748 : vector<8x128xf32>
    %750 = math.tanh %749 : vector<8x128xf32>
    %751 = arith.mulf %746, %750 : vector<8x128xf32>
    %752 = vector.extract_strided_slice %751 {offsets = [0, 0], sizes = [8, 64], strides = [1, 1]} : vector<8x128xf32> to vector<8x64xf32>
    %c0_192 = arith.constant 0 : index
    %c0_193 = arith.constant 0 : index
    %753 = vector.load %arg6[%c0_192, %c0_193] : memref<64x384xf32, #tpu.memory_space<vmem>>, vector<64x384xf32>
    %cst_194 = arith.constant dense<0.000000e+00> : vector<8x384xf32>
    %754 = tpu.matmul %752, %753, %cst_194 {dimension_numbers = #tpu.dot_dimension_numbers<[1], [0], [0], [1], [0, 0, 1, 1], [], []>} : vector<8x64xf32>, vector<64x384xf32>, vector<8x384xf32> -> vector<8x384xf32>
    %755 = arith.addf %754, %11 : vector<8x384xf32>
    %756 = vector.extract_strided_slice %652 {offsets = [0, 0], sizes = [8, 64], strides = [1, 1]} : vector<8x128xf32> to vector<8x64xf32>
    %c0_195 = arith.constant 0 : index
    %c0_196 = arith.constant 0 : index
    %757 = vector.load %arg7[%c0_195, %c0_196] : memref<64x384xf32, #tpu.memory_space<vmem>>, vector<64x384xf32>
    %cst_197 = arith.constant dense<0.000000e+00> : vector<8x384xf32>
    %758 = tpu.matmul %756, %757, %cst_197 {dimension_numbers = #tpu.dot_dimension_numbers<[1], [0], [0], [1], [0, 0, 1, 1], [], []>} : vector<8x64xf32>, vector<64x384xf32>, vector<8x384xf32> -> vector<8x384xf32>
    %759 = vector.extract_strided_slice %755 {offsets = [0, 0], sizes = [8, 128], strides = [1, 1]} : vector<8x384xf32> to vector<8x128xf32>
    %760 = vector.extract_strided_slice %758 {offsets = [0, 0], sizes = [8, 128], strides = [1, 1]} : vector<8x384xf32> to vector<8x128xf32>
    %761 = arith.addf %759, %760 : vector<8x128xf32>
    %762 = arith.negf %761 : vector<8x128xf32>
    %763 = math.exp %762 : vector<8x128xf32>
    %cst_198 = arith.constant 1.000000e+00 : f32
    %764 = vector.broadcast %cst_198 : f32 to vector<8x128xf32>
    %765 = arith.addf %764, %763 : vector<8x128xf32>
    %766 = arith.divf %764, %765 : vector<8x128xf32>
    %767 = vector.extract_strided_slice %755 {offsets = [0, 128], sizes = [8, 128], strides = [1, 1]} : vector<8x384xf32> to vector<8x128xf32>
    %768 = vector.extract_strided_slice %758 {offsets = [0, 128], sizes = [8, 128], strides = [1, 1]} : vector<8x384xf32> to vector<8x128xf32>
    %769 = arith.addf %767, %768 : vector<8x128xf32>
    %770 = arith.negf %769 : vector<8x128xf32>
    %771 = math.exp %770 : vector<8x128xf32>
    %cst_199 = arith.constant 1.000000e+00 : f32
    %772 = vector.broadcast %cst_199 : f32 to vector<8x128xf32>
    %773 = arith.addf %772, %771 : vector<8x128xf32>
    %774 = arith.divf %772, %773 : vector<8x128xf32>
    %775 = vector.extract_strided_slice %755 {offsets = [0, 256], sizes = [8, 128], strides = [1, 1]} : vector<8x384xf32> to vector<8x128xf32>
    %776 = vector.extract_strided_slice %758 {offsets = [0, 256], sizes = [8, 128], strides = [1, 1]} : vector<8x384xf32> to vector<8x128xf32>
    %777 = arith.addf %776, %14 : vector<8x128xf32>
    %778 = arith.mulf %766, %777 : vector<8x128xf32>
    %779 = arith.addf %775, %778 : vector<8x128xf32>
    %780 = math.tanh %779 : vector<8x128xf32>
    %cst_200 = arith.constant 1.000000e+00 : f32
    %781 = vector.broadcast %cst_200 : f32 to vector<8x128xf32>
    %782 = arith.subf %781, %774 : vector<8x128xf32>
    %783 = arith.mulf %782, %780 : vector<8x128xf32>
    %784 = arith.mulf %774, %652 : vector<8x128xf32>
    %785 = arith.addf %783, %784 : vector<8x128xf32>
    %786 = vector.extract_strided_slice %785 {offsets = [0, 0], sizes = [8, 64], strides = [1, 1]} : vector<8x128xf32> to vector<8x64xf32>
    %c0_201 = arith.constant 0 : index
    %c0_202 = arith.constant 0 : index
    %787 = vector.load %arg10[%c0_201, %c0_202] : memref<64x384xf32, #tpu.memory_space<vmem>>, vector<64x384xf32>
    %cst_203 = arith.constant dense<0.000000e+00> : vector<8x384xf32>
    %788 = tpu.matmul %786, %787, %cst_203 {dimension_numbers = #tpu.dot_dimension_numbers<[1], [0], [0], [1], [0, 0, 1, 1], [], []>} : vector<8x64xf32>, vector<64x384xf32>, vector<8x384xf32> -> vector<8x384xf32>
    %789 = arith.addf %788, %17 : vector<8x384xf32>
    %790 = vector.extract_strided_slice %686 {offsets = [0, 0], sizes = [8, 64], strides = [1, 1]} : vector<8x128xf32> to vector<8x64xf32>
    %c0_204 = arith.constant 0 : index
    %c0_205 = arith.constant 0 : index
    %791 = vector.load %arg11[%c0_204, %c0_205] : memref<64x384xf32, #tpu.memory_space<vmem>>, vector<64x384xf32>
    %cst_206 = arith.constant dense<0.000000e+00> : vector<8x384xf32>
    %792 = tpu.matmul %790, %791, %cst_206 {dimension_numbers = #tpu.dot_dimension_numbers<[1], [0], [0], [1], [0, 0, 1, 1], [], []>} : vector<8x64xf32>, vector<64x384xf32>, vector<8x384xf32> -> vector<8x384xf32>
    %793 = vector.extract_strided_slice %789 {offsets = [0, 0], sizes = [8, 128], strides = [1, 1]} : vector<8x384xf32> to vector<8x128xf32>
    %794 = vector.extract_strided_slice %792 {offsets = [0, 0], sizes = [8, 128], strides = [1, 1]} : vector<8x384xf32> to vector<8x128xf32>
    %795 = arith.addf %793, %794 : vector<8x128xf32>
    %796 = arith.negf %795 : vector<8x128xf32>
    %797 = math.exp %796 : vector<8x128xf32>
    %cst_207 = arith.constant 1.000000e+00 : f32
    %798 = vector.broadcast %cst_207 : f32 to vector<8x128xf32>
    %799 = arith.addf %798, %797 : vector<8x128xf32>
    %800 = arith.divf %798, %799 : vector<8x128xf32>
    %801 = vector.extract_strided_slice %789 {offsets = [0, 128], sizes = [8, 128], strides = [1, 1]} : vector<8x384xf32> to vector<8x128xf32>
    %802 = vector.extract_strided_slice %792 {offsets = [0, 128], sizes = [8, 128], strides = [1, 1]} : vector<8x384xf32> to vector<8x128xf32>
    %803 = arith.addf %801, %802 : vector<8x128xf32>
    %804 = arith.negf %803 : vector<8x128xf32>
    %805 = math.exp %804 : vector<8x128xf32>
    %cst_208 = arith.constant 1.000000e+00 : f32
    %806 = vector.broadcast %cst_208 : f32 to vector<8x128xf32>
    %807 = arith.addf %806, %805 : vector<8x128xf32>
    %808 = arith.divf %806, %807 : vector<8x128xf32>
    %809 = vector.extract_strided_slice %789 {offsets = [0, 256], sizes = [8, 128], strides = [1, 1]} : vector<8x384xf32> to vector<8x128xf32>
    %810 = vector.extract_strided_slice %792 {offsets = [0, 256], sizes = [8, 128], strides = [1, 1]} : vector<8x384xf32> to vector<8x128xf32>
    %811 = arith.addf %810, %20 : vector<8x128xf32>
    %812 = arith.mulf %800, %811 : vector<8x128xf32>
    %813 = arith.addf %809, %812 : vector<8x128xf32>
    %814 = math.tanh %813 : vector<8x128xf32>
    %cst_209 = arith.constant 1.000000e+00 : f32
    %815 = vector.broadcast %cst_209 : f32 to vector<8x128xf32>
    %816 = arith.subf %815, %808 : vector<8x128xf32>
    %817 = arith.mulf %816, %814 : vector<8x128xf32>
    %818 = arith.mulf %808, %686 : vector<8x128xf32>
    %819 = arith.addf %817, %818 : vector<8x128xf32>
    %c6_i32 = arith.constant 6 : i32
    %820 = arith.index_cast %c6_i32 : i32 to index
    %c0_210 = arith.constant 0 : index
    %c0_211 = arith.constant 0 : index
    %821 = vector.load %arg0[%820, %c0_210, %c0_211] : memref<8x8x1xf32, #tpu.memory_space<vmem>>, vector<1x8x1xf32>
    %822 = vector.shape_cast %821 : vector<1x8x1xf32> to vector<8x1xf32>
    %823 = vector.broadcast %822 : vector<8x1xf32> to vector<8x512xf32>
    %824 = arith.mulf %823, %2 : vector<8x512xf32>
    %825 = vector.extract_strided_slice %721 {offsets = [0, 0], sizes = [8, 64], strides = [1, 1]} : vector<8x128xf32> to vector<8x64xf32>
    %c0_212 = arith.constant 0 : index
    %c0_213 = arith.constant 0 : index
    %826 = vector.load %arg2[%c0_212, %c0_213] : memref<64x512xf32, #tpu.memory_space<vmem>>, vector<64x512xf32>
    %cst_214 = arith.constant dense<0.000000e+00> : vector<8x512xf32>
    %827 = tpu.matmul %825, %826, %cst_214 {dimension_numbers = #tpu.dot_dimension_numbers<[1], [0], [0], [1], [0, 0, 1, 1], [], []>} : vector<8x64xf32>, vector<64x512xf32>, vector<8x512xf32> -> vector<8x512xf32>
    %828 = arith.addf %824, %827 : vector<8x512xf32>
    %829 = arith.addf %828, %5 : vector<8x512xf32>
    %830 = vector.extract_strided_slice %829 {offsets = [0, 0], sizes = [8, 128], strides = [1, 1]} : vector<8x512xf32> to vector<8x128xf32>
    %831 = arith.negf %830 : vector<8x128xf32>
    %832 = math.exp %831 : vector<8x128xf32>
    %cst_215 = arith.constant 1.000000e+00 : f32
    %833 = vector.broadcast %cst_215 : f32 to vector<8x128xf32>
    %834 = arith.addf %833, %832 : vector<8x128xf32>
    %835 = arith.divf %833, %834 : vector<8x128xf32>
    %836 = vector.extract_strided_slice %829 {offsets = [0, 128], sizes = [8, 128], strides = [1, 1]} : vector<8x512xf32> to vector<8x128xf32>
    %837 = arith.negf %836 : vector<8x128xf32>
    %838 = math.exp %837 : vector<8x128xf32>
    %cst_216 = arith.constant 1.000000e+00 : f32
    %839 = vector.broadcast %cst_216 : f32 to vector<8x128xf32>
    %840 = arith.addf %839, %838 : vector<8x128xf32>
    %841 = arith.divf %839, %840 : vector<8x128xf32>
    %842 = vector.extract_strided_slice %829 {offsets = [0, 256], sizes = [8, 128], strides = [1, 1]} : vector<8x512xf32> to vector<8x128xf32>
    %843 = math.tanh %842 : vector<8x128xf32>
    %844 = vector.extract_strided_slice %829 {offsets = [0, 384], sizes = [8, 128], strides = [1, 1]} : vector<8x512xf32> to vector<8x128xf32>
    %845 = arith.negf %844 : vector<8x128xf32>
    %846 = math.exp %845 : vector<8x128xf32>
    %cst_217 = arith.constant 1.000000e+00 : f32
    %847 = vector.broadcast %cst_217 : f32 to vector<8x128xf32>
    %848 = arith.addf %847, %846 : vector<8x128xf32>
    %849 = arith.divf %847, %848 : vector<8x128xf32>
    %850 = arith.mulf %841, %719 : vector<8x128xf32>
    %851 = arith.mulf %835, %843 : vector<8x128xf32>
    %852 = arith.addf %850, %851 : vector<8x128xf32>
    %853 = math.tanh %852 : vector<8x128xf32>
    %854 = arith.mulf %849, %853 : vector<8x128xf32>
    %c64_i32_218 = arith.constant 64 : i32
    %855 = tpu.dynamic_rotate %751 by %c64_i32_218 dim 1 : vector<8x128xf32>, i32 -> vector<8x128xf32>
    %856 = arith.addf %854, %855 : vector<8x128xf32>
    %c0_219 = arith.constant 0 : index
    %c0_220 = arith.constant 0 : index
    %857 = vector.load %arg4[%c0_219, %c0_220] : memref<128x512xf32, #tpu.memory_space<vmem>>, vector<128x512xf32>
    %cst_221 = arith.constant dense<0.000000e+00> : vector<8x512xf32>
    %858 = tpu.matmul %856, %857, %cst_221 {dimension_numbers = #tpu.dot_dimension_numbers<[1], [0], [0], [1], [0, 0, 1, 1], [], []>} : vector<8x128xf32>, vector<128x512xf32>, vector<8x512xf32> -> vector<8x512xf32>
    %859 = arith.addf %858, %8 : vector<8x512xf32>
    %860 = vector.extract_strided_slice %859 {offsets = [0, 0], sizes = [8, 128], strides = [1, 1]} : vector<8x512xf32> to vector<8x128xf32>
    %861 = arith.negf %860 : vector<8x128xf32>
    %862 = math.exp %861 : vector<8x128xf32>
    %cst_222 = arith.constant 1.000000e+00 : f32
    %863 = vector.broadcast %cst_222 : f32 to vector<8x128xf32>
    %864 = arith.addf %863, %862 : vector<8x128xf32>
    %865 = arith.divf %863, %864 : vector<8x128xf32>
    %866 = vector.extract_strided_slice %859 {offsets = [0, 128], sizes = [8, 128], strides = [1, 1]} : vector<8x512xf32> to vector<8x128xf32>
    %867 = arith.negf %866 : vector<8x128xf32>
    %868 = math.exp %867 : vector<8x128xf32>
    %cst_223 = arith.constant 1.000000e+00 : f32
    %869 = vector.broadcast %cst_223 : f32 to vector<8x128xf32>
    %870 = arith.addf %869, %868 : vector<8x128xf32>
    %871 = arith.divf %869, %870 : vector<8x128xf32>
    %872 = vector.extract_strided_slice %859 {offsets = [0, 256], sizes = [8, 128], strides = [1, 1]} : vector<8x512xf32> to vector<8x128xf32>
    %873 = math.tanh %872 : vector<8x128xf32>
    %874 = vector.extract_strided_slice %859 {offsets = [0, 384], sizes = [8, 128], strides = [1, 1]} : vector<8x512xf32> to vector<8x128xf32>
    %875 = arith.negf %874 : vector<8x128xf32>
    %876 = math.exp %875 : vector<8x128xf32>
    %cst_224 = arith.constant 1.000000e+00 : f32
    %877 = vector.broadcast %cst_224 : f32 to vector<8x128xf32>
    %878 = arith.addf %877, %876 : vector<8x128xf32>
    %879 = arith.divf %877, %878 : vector<8x128xf32>
    %880 = arith.mulf %871, %749 : vector<8x128xf32>
    %881 = arith.mulf %865, %873 : vector<8x128xf32>
    %882 = arith.addf %880, %881 : vector<8x128xf32>
    %883 = math.tanh %882 : vector<8x128xf32>
    %884 = arith.mulf %879, %883 : vector<8x128xf32>
    %885 = vector.extract_strided_slice %884 {offsets = [0, 0], sizes = [8, 64], strides = [1, 1]} : vector<8x128xf32> to vector<8x64xf32>
    %c0_225 = arith.constant 0 : index
    %c0_226 = arith.constant 0 : index
    %886 = vector.load %arg6[%c0_225, %c0_226] : memref<64x384xf32, #tpu.memory_space<vmem>>, vector<64x384xf32>
    %cst_227 = arith.constant dense<0.000000e+00> : vector<8x384xf32>
    %887 = tpu.matmul %885, %886, %cst_227 {dimension_numbers = #tpu.dot_dimension_numbers<[1], [0], [0], [1], [0, 0, 1, 1], [], []>} : vector<8x64xf32>, vector<64x384xf32>, vector<8x384xf32> -> vector<8x384xf32>
    %888 = arith.addf %887, %11 : vector<8x384xf32>
    %889 = vector.extract_strided_slice %785 {offsets = [0, 0], sizes = [8, 64], strides = [1, 1]} : vector<8x128xf32> to vector<8x64xf32>
    %c0_228 = arith.constant 0 : index
    %c0_229 = arith.constant 0 : index
    %890 = vector.load %arg7[%c0_228, %c0_229] : memref<64x384xf32, #tpu.memory_space<vmem>>, vector<64x384xf32>
    %cst_230 = arith.constant dense<0.000000e+00> : vector<8x384xf32>
    %891 = tpu.matmul %889, %890, %cst_230 {dimension_numbers = #tpu.dot_dimension_numbers<[1], [0], [0], [1], [0, 0, 1, 1], [], []>} : vector<8x64xf32>, vector<64x384xf32>, vector<8x384xf32> -> vector<8x384xf32>
    %892 = vector.extract_strided_slice %888 {offsets = [0, 0], sizes = [8, 128], strides = [1, 1]} : vector<8x384xf32> to vector<8x128xf32>
    %893 = vector.extract_strided_slice %891 {offsets = [0, 0], sizes = [8, 128], strides = [1, 1]} : vector<8x384xf32> to vector<8x128xf32>
    %894 = arith.addf %892, %893 : vector<8x128xf32>
    %895 = arith.negf %894 : vector<8x128xf32>
    %896 = math.exp %895 : vector<8x128xf32>
    %cst_231 = arith.constant 1.000000e+00 : f32
    %897 = vector.broadcast %cst_231 : f32 to vector<8x128xf32>
    %898 = arith.addf %897, %896 : vector<8x128xf32>
    %899 = arith.divf %897, %898 : vector<8x128xf32>
    %900 = vector.extract_strided_slice %888 {offsets = [0, 128], sizes = [8, 128], strides = [1, 1]} : vector<8x384xf32> to vector<8x128xf32>
    %901 = vector.extract_strided_slice %891 {offsets = [0, 128], sizes = [8, 128], strides = [1, 1]} : vector<8x384xf32> to vector<8x128xf32>
    %902 = arith.addf %900, %901 : vector<8x128xf32>
    %903 = arith.negf %902 : vector<8x128xf32>
    %904 = math.exp %903 : vector<8x128xf32>
    %cst_232 = arith.constant 1.000000e+00 : f32
    %905 = vector.broadcast %cst_232 : f32 to vector<8x128xf32>
    %906 = arith.addf %905, %904 : vector<8x128xf32>
    %907 = arith.divf %905, %906 : vector<8x128xf32>
    %908 = vector.extract_strided_slice %888 {offsets = [0, 256], sizes = [8, 128], strides = [1, 1]} : vector<8x384xf32> to vector<8x128xf32>
    %909 = vector.extract_strided_slice %891 {offsets = [0, 256], sizes = [8, 128], strides = [1, 1]} : vector<8x384xf32> to vector<8x128xf32>
    %910 = arith.addf %909, %14 : vector<8x128xf32>
    %911 = arith.mulf %899, %910 : vector<8x128xf32>
    %912 = arith.addf %908, %911 : vector<8x128xf32>
    %913 = math.tanh %912 : vector<8x128xf32>
    %cst_233 = arith.constant 1.000000e+00 : f32
    %914 = vector.broadcast %cst_233 : f32 to vector<8x128xf32>
    %915 = arith.subf %914, %907 : vector<8x128xf32>
    %916 = arith.mulf %915, %913 : vector<8x128xf32>
    %917 = arith.mulf %907, %785 : vector<8x128xf32>
    %918 = arith.addf %916, %917 : vector<8x128xf32>
    %919 = vector.extract_strided_slice %918 {offsets = [0, 0], sizes = [8, 64], strides = [1, 1]} : vector<8x128xf32> to vector<8x64xf32>
    %c0_234 = arith.constant 0 : index
    %c0_235 = arith.constant 0 : index
    %920 = vector.load %arg10[%c0_234, %c0_235] : memref<64x384xf32, #tpu.memory_space<vmem>>, vector<64x384xf32>
    %cst_236 = arith.constant dense<0.000000e+00> : vector<8x384xf32>
    %921 = tpu.matmul %919, %920, %cst_236 {dimension_numbers = #tpu.dot_dimension_numbers<[1], [0], [0], [1], [0, 0, 1, 1], [], []>} : vector<8x64xf32>, vector<64x384xf32>, vector<8x384xf32> -> vector<8x384xf32>
    %922 = arith.addf %921, %17 : vector<8x384xf32>
    %923 = vector.extract_strided_slice %819 {offsets = [0, 0], sizes = [8, 64], strides = [1, 1]} : vector<8x128xf32> to vector<8x64xf32>
    %c0_237 = arith.constant 0 : index
    %c0_238 = arith.constant 0 : index
    %924 = vector.load %arg11[%c0_237, %c0_238] : memref<64x384xf32, #tpu.memory_space<vmem>>, vector<64x384xf32>
    %cst_239 = arith.constant dense<0.000000e+00> : vector<8x384xf32>
    %925 = tpu.matmul %923, %924, %cst_239 {dimension_numbers = #tpu.dot_dimension_numbers<[1], [0], [0], [1], [0, 0, 1, 1], [], []>} : vector<8x64xf32>, vector<64x384xf32>, vector<8x384xf32> -> vector<8x384xf32>
    %926 = vector.extract_strided_slice %922 {offsets = [0, 0], sizes = [8, 128], strides = [1, 1]} : vector<8x384xf32> to vector<8x128xf32>
    %927 = vector.extract_strided_slice %925 {offsets = [0, 0], sizes = [8, 128], strides = [1, 1]} : vector<8x384xf32> to vector<8x128xf32>
    %928 = arith.addf %926, %927 : vector<8x128xf32>
    %929 = arith.negf %928 : vector<8x128xf32>
    %930 = math.exp %929 : vector<8x128xf32>
    %cst_240 = arith.constant 1.000000e+00 : f32
    %931 = vector.broadcast %cst_240 : f32 to vector<8x128xf32>
    %932 = arith.addf %931, %930 : vector<8x128xf32>
    %933 = arith.divf %931, %932 : vector<8x128xf32>
    %934 = vector.extract_strided_slice %922 {offsets = [0, 128], sizes = [8, 128], strides = [1, 1]} : vector<8x384xf32> to vector<8x128xf32>
    %935 = vector.extract_strided_slice %925 {offsets = [0, 128], sizes = [8, 128], strides = [1, 1]} : vector<8x384xf32> to vector<8x128xf32>
    %936 = arith.addf %934, %935 : vector<8x128xf32>
    %937 = arith.negf %936 : vector<8x128xf32>
    %938 = math.exp %937 : vector<8x128xf32>
    %cst_241 = arith.constant 1.000000e+00 : f32
    %939 = vector.broadcast %cst_241 : f32 to vector<8x128xf32>
    %940 = arith.addf %939, %938 : vector<8x128xf32>
    %941 = arith.divf %939, %940 : vector<8x128xf32>
    %942 = vector.extract_strided_slice %922 {offsets = [0, 256], sizes = [8, 128], strides = [1, 1]} : vector<8x384xf32> to vector<8x128xf32>
    %943 = vector.extract_strided_slice %925 {offsets = [0, 256], sizes = [8, 128], strides = [1, 1]} : vector<8x384xf32> to vector<8x128xf32>
    %944 = arith.addf %943, %20 : vector<8x128xf32>
    %945 = arith.mulf %933, %944 : vector<8x128xf32>
    %946 = arith.addf %942, %945 : vector<8x128xf32>
    %947 = math.tanh %946 : vector<8x128xf32>
    %cst_242 = arith.constant 1.000000e+00 : f32
    %948 = vector.broadcast %cst_242 : f32 to vector<8x128xf32>
    %949 = arith.subf %948, %941 : vector<8x128xf32>
    %950 = arith.mulf %949, %947 : vector<8x128xf32>
    %951 = arith.mulf %941, %819 : vector<8x128xf32>
    %952 = arith.addf %950, %951 : vector<8x128xf32>
    %c7_i32 = arith.constant 7 : i32
    %953 = arith.index_cast %c7_i32 : i32 to index
    %c0_243 = arith.constant 0 : index
    %c0_244 = arith.constant 0 : index
    %954 = vector.load %arg0[%953, %c0_243, %c0_244] : memref<8x8x1xf32, #tpu.memory_space<vmem>>, vector<1x8x1xf32>
    %955 = vector.shape_cast %954 : vector<1x8x1xf32> to vector<8x1xf32>
    %956 = vector.broadcast %955 : vector<8x1xf32> to vector<8x512xf32>
    %957 = arith.mulf %956, %2 : vector<8x512xf32>
    %958 = vector.extract_strided_slice %854 {offsets = [0, 0], sizes = [8, 64], strides = [1, 1]} : vector<8x128xf32> to vector<8x64xf32>
    %c0_245 = arith.constant 0 : index
    %c0_246 = arith.constant 0 : index
    %959 = vector.load %arg2[%c0_245, %c0_246] : memref<64x512xf32, #tpu.memory_space<vmem>>, vector<64x512xf32>
    %cst_247 = arith.constant dense<0.000000e+00> : vector<8x512xf32>
    %960 = tpu.matmul %958, %959, %cst_247 {dimension_numbers = #tpu.dot_dimension_numbers<[1], [0], [0], [1], [0, 0, 1, 1], [], []>} : vector<8x64xf32>, vector<64x512xf32>, vector<8x512xf32> -> vector<8x512xf32>
    %961 = arith.addf %957, %960 : vector<8x512xf32>
    %962 = arith.addf %961, %5 : vector<8x512xf32>
    %963 = vector.extract_strided_slice %962 {offsets = [0, 0], sizes = [8, 128], strides = [1, 1]} : vector<8x512xf32> to vector<8x128xf32>
    %964 = arith.negf %963 : vector<8x128xf32>
    %965 = math.exp %964 : vector<8x128xf32>
    %cst_248 = arith.constant 1.000000e+00 : f32
    %966 = vector.broadcast %cst_248 : f32 to vector<8x128xf32>
    %967 = arith.addf %966, %965 : vector<8x128xf32>
    %968 = arith.divf %966, %967 : vector<8x128xf32>
    %969 = vector.extract_strided_slice %962 {offsets = [0, 128], sizes = [8, 128], strides = [1, 1]} : vector<8x512xf32> to vector<8x128xf32>
    %970 = arith.negf %969 : vector<8x128xf32>
    %971 = math.exp %970 : vector<8x128xf32>
    %cst_249 = arith.constant 1.000000e+00 : f32
    %972 = vector.broadcast %cst_249 : f32 to vector<8x128xf32>
    %973 = arith.addf %972, %971 : vector<8x128xf32>
    %974 = arith.divf %972, %973 : vector<8x128xf32>
    %975 = vector.extract_strided_slice %962 {offsets = [0, 256], sizes = [8, 128], strides = [1, 1]} : vector<8x512xf32> to vector<8x128xf32>
    %976 = math.tanh %975 : vector<8x128xf32>
    %977 = vector.extract_strided_slice %962 {offsets = [0, 384], sizes = [8, 128], strides = [1, 1]} : vector<8x512xf32> to vector<8x128xf32>
    %978 = arith.negf %977 : vector<8x128xf32>
    %979 = math.exp %978 : vector<8x128xf32>
    %cst_250 = arith.constant 1.000000e+00 : f32
    %980 = vector.broadcast %cst_250 : f32 to vector<8x128xf32>
    %981 = arith.addf %980, %979 : vector<8x128xf32>
    %982 = arith.divf %980, %981 : vector<8x128xf32>
    %983 = arith.mulf %974, %852 : vector<8x128xf32>
    %984 = arith.mulf %968, %976 : vector<8x128xf32>
    %985 = arith.addf %983, %984 : vector<8x128xf32>
    %986 = math.tanh %985 : vector<8x128xf32>
    %987 = arith.mulf %982, %986 : vector<8x128xf32>
    %c64_i32_251 = arith.constant 64 : i32
    %988 = tpu.dynamic_rotate %884 by %c64_i32_251 dim 1 : vector<8x128xf32>, i32 -> vector<8x128xf32>
    %989 = arith.addf %987, %988 : vector<8x128xf32>
    %c0_252 = arith.constant 0 : index
    %c0_253 = arith.constant 0 : index
    %990 = vector.load %arg4[%c0_252, %c0_253] : memref<128x512xf32, #tpu.memory_space<vmem>>, vector<128x512xf32>
    %cst_254 = arith.constant dense<0.000000e+00> : vector<8x512xf32>
    %991 = tpu.matmul %989, %990, %cst_254 {dimension_numbers = #tpu.dot_dimension_numbers<[1], [0], [0], [1], [0, 0, 1, 1], [], []>} : vector<8x128xf32>, vector<128x512xf32>, vector<8x512xf32> -> vector<8x512xf32>
    %992 = arith.addf %991, %8 : vector<8x512xf32>
    %993 = vector.extract_strided_slice %992 {offsets = [0, 0], sizes = [8, 128], strides = [1, 1]} : vector<8x512xf32> to vector<8x128xf32>
    %994 = arith.negf %993 : vector<8x128xf32>
    %995 = math.exp %994 : vector<8x128xf32>
    %cst_255 = arith.constant 1.000000e+00 : f32
    %996 = vector.broadcast %cst_255 : f32 to vector<8x128xf32>
    %997 = arith.addf %996, %995 : vector<8x128xf32>
    %998 = arith.divf %996, %997 : vector<8x128xf32>
    %999 = vector.extract_strided_slice %992 {offsets = [0, 128], sizes = [8, 128], strides = [1, 1]} : vector<8x512xf32> to vector<8x128xf32>
    %1000 = arith.negf %999 : vector<8x128xf32>
    %1001 = math.exp %1000 : vector<8x128xf32>
    %cst_256 = arith.constant 1.000000e+00 : f32
    %1002 = vector.broadcast %cst_256 : f32 to vector<8x128xf32>
    %1003 = arith.addf %1002, %1001 : vector<8x128xf32>
    %1004 = arith.divf %1002, %1003 : vector<8x128xf32>
    %1005 = vector.extract_strided_slice %992 {offsets = [0, 256], sizes = [8, 128], strides = [1, 1]} : vector<8x512xf32> to vector<8x128xf32>
    %1006 = math.tanh %1005 : vector<8x128xf32>
    %1007 = vector.extract_strided_slice %992 {offsets = [0, 384], sizes = [8, 128], strides = [1, 1]} : vector<8x512xf32> to vector<8x128xf32>
    %1008 = arith.negf %1007 : vector<8x128xf32>
    %1009 = math.exp %1008 : vector<8x128xf32>
    %cst_257 = arith.constant 1.000000e+00 : f32
    %1010 = vector.broadcast %cst_257 : f32 to vector<8x128xf32>
    %1011 = arith.addf %1010, %1009 : vector<8x128xf32>
    %1012 = arith.divf %1010, %1011 : vector<8x128xf32>
    %1013 = arith.mulf %1004, %882 : vector<8x128xf32>
    %1014 = arith.mulf %998, %1006 : vector<8x128xf32>
    %1015 = arith.addf %1013, %1014 : vector<8x128xf32>
    %1016 = math.tanh %1015 : vector<8x128xf32>
    %1017 = arith.mulf %1012, %1016 : vector<8x128xf32>
    %1018 = vector.extract_strided_slice %1017 {offsets = [0, 0], sizes = [8, 64], strides = [1, 1]} : vector<8x128xf32> to vector<8x64xf32>
    %c0_258 = arith.constant 0 : index
    %c0_259 = arith.constant 0 : index
    %1019 = vector.load %arg6[%c0_258, %c0_259] : memref<64x384xf32, #tpu.memory_space<vmem>>, vector<64x384xf32>
    %cst_260 = arith.constant dense<0.000000e+00> : vector<8x384xf32>
    %1020 = tpu.matmul %1018, %1019, %cst_260 {dimension_numbers = #tpu.dot_dimension_numbers<[1], [0], [0], [1], [0, 0, 1, 1], [], []>} : vector<8x64xf32>, vector<64x384xf32>, vector<8x384xf32> -> vector<8x384xf32>
    %1021 = arith.addf %1020, %11 : vector<8x384xf32>
    %1022 = vector.extract_strided_slice %918 {offsets = [0, 0], sizes = [8, 64], strides = [1, 1]} : vector<8x128xf32> to vector<8x64xf32>
    %c0_261 = arith.constant 0 : index
    %c0_262 = arith.constant 0 : index
    %1023 = vector.load %arg7[%c0_261, %c0_262] : memref<64x384xf32, #tpu.memory_space<vmem>>, vector<64x384xf32>
    %cst_263 = arith.constant dense<0.000000e+00> : vector<8x384xf32>
    %1024 = tpu.matmul %1022, %1023, %cst_263 {dimension_numbers = #tpu.dot_dimension_numbers<[1], [0], [0], [1], [0, 0, 1, 1], [], []>} : vector<8x64xf32>, vector<64x384xf32>, vector<8x384xf32> -> vector<8x384xf32>
    %1025 = vector.extract_strided_slice %1021 {offsets = [0, 0], sizes = [8, 128], strides = [1, 1]} : vector<8x384xf32> to vector<8x128xf32>
    %1026 = vector.extract_strided_slice %1024 {offsets = [0, 0], sizes = [8, 128], strides = [1, 1]} : vector<8x384xf32> to vector<8x128xf32>
    %1027 = arith.addf %1025, %1026 : vector<8x128xf32>
    %1028 = arith.negf %1027 : vector<8x128xf32>
    %1029 = math.exp %1028 : vector<8x128xf32>
    %cst_264 = arith.constant 1.000000e+00 : f32
    %1030 = vector.broadcast %cst_264 : f32 to vector<8x128xf32>
    %1031 = arith.addf %1030, %1029 : vector<8x128xf32>
    %1032 = arith.divf %1030, %1031 : vector<8x128xf32>
    %1033 = vector.extract_strided_slice %1021 {offsets = [0, 128], sizes = [8, 128], strides = [1, 1]} : vector<8x384xf32> to vector<8x128xf32>
    %1034 = vector.extract_strided_slice %1024 {offsets = [0, 128], sizes = [8, 128], strides = [1, 1]} : vector<8x384xf32> to vector<8x128xf32>
    %1035 = arith.addf %1033, %1034 : vector<8x128xf32>
    %1036 = arith.negf %1035 : vector<8x128xf32>
    %1037 = math.exp %1036 : vector<8x128xf32>
    %cst_265 = arith.constant 1.000000e+00 : f32
    %1038 = vector.broadcast %cst_265 : f32 to vector<8x128xf32>
    %1039 = arith.addf %1038, %1037 : vector<8x128xf32>
    %1040 = arith.divf %1038, %1039 : vector<8x128xf32>
    %1041 = vector.extract_strided_slice %1021 {offsets = [0, 256], sizes = [8, 128], strides = [1, 1]} : vector<8x384xf32> to vector<8x128xf32>
    %1042 = vector.extract_strided_slice %1024 {offsets = [0, 256], sizes = [8, 128], strides = [1, 1]} : vector<8x384xf32> to vector<8x128xf32>
    %1043 = arith.addf %1042, %14 : vector<8x128xf32>
    %1044 = arith.mulf %1032, %1043 : vector<8x128xf32>
    %1045 = arith.addf %1041, %1044 : vector<8x128xf32>
    %1046 = math.tanh %1045 : vector<8x128xf32>
    %cst_266 = arith.constant 1.000000e+00 : f32
    %1047 = vector.broadcast %cst_266 : f32 to vector<8x128xf32>
    %1048 = arith.subf %1047, %1040 : vector<8x128xf32>
    %1049 = arith.mulf %1048, %1046 : vector<8x128xf32>
    %1050 = arith.mulf %1040, %918 : vector<8x128xf32>
    %1051 = arith.addf %1049, %1050 : vector<8x128xf32>
    %1052 = vector.extract_strided_slice %1051 {offsets = [0, 0], sizes = [8, 64], strides = [1, 1]} : vector<8x128xf32> to vector<8x64xf32>
    %c0_267 = arith.constant 0 : index
    %c0_268 = arith.constant 0 : index
    %1053 = vector.load %arg10[%c0_267, %c0_268] : memref<64x384xf32, #tpu.memory_space<vmem>>, vector<64x384xf32>
    %cst_269 = arith.constant dense<0.000000e+00> : vector<8x384xf32>
    %1054 = tpu.matmul %1052, %1053, %cst_269 {dimension_numbers = #tpu.dot_dimension_numbers<[1], [0], [0], [1], [0, 0, 1, 1], [], []>} : vector<8x64xf32>, vector<64x384xf32>, vector<8x384xf32> -> vector<8x384xf32>
    %1055 = arith.addf %1054, %17 : vector<8x384xf32>
    %1056 = vector.extract_strided_slice %952 {offsets = [0, 0], sizes = [8, 64], strides = [1, 1]} : vector<8x128xf32> to vector<8x64xf32>
    %c0_270 = arith.constant 0 : index
    %c0_271 = arith.constant 0 : index
    %1057 = vector.load %arg11[%c0_270, %c0_271] : memref<64x384xf32, #tpu.memory_space<vmem>>, vector<64x384xf32>
    %cst_272 = arith.constant dense<0.000000e+00> : vector<8x384xf32>
    %1058 = tpu.matmul %1056, %1057, %cst_272 {dimension_numbers = #tpu.dot_dimension_numbers<[1], [0], [0], [1], [0, 0, 1, 1], [], []>} : vector<8x64xf32>, vector<64x384xf32>, vector<8x384xf32> -> vector<8x384xf32>
    %1059 = vector.extract_strided_slice %1055 {offsets = [0, 0], sizes = [8, 128], strides = [1, 1]} : vector<8x384xf32> to vector<8x128xf32>
    %1060 = vector.extract_strided_slice %1058 {offsets = [0, 0], sizes = [8, 128], strides = [1, 1]} : vector<8x384xf32> to vector<8x128xf32>
    %1061 = arith.addf %1059, %1060 : vector<8x128xf32>
    %1062 = arith.negf %1061 : vector<8x128xf32>
    %1063 = math.exp %1062 : vector<8x128xf32>
    %cst_273 = arith.constant 1.000000e+00 : f32
    %1064 = vector.broadcast %cst_273 : f32 to vector<8x128xf32>
    %1065 = arith.addf %1064, %1063 : vector<8x128xf32>
    %1066 = arith.divf %1064, %1065 : vector<8x128xf32>
    %1067 = vector.extract_strided_slice %1055 {offsets = [0, 128], sizes = [8, 128], strides = [1, 1]} : vector<8x384xf32> to vector<8x128xf32>
    %1068 = vector.extract_strided_slice %1058 {offsets = [0, 128], sizes = [8, 128], strides = [1, 1]} : vector<8x384xf32> to vector<8x128xf32>
    %1069 = arith.addf %1067, %1068 : vector<8x128xf32>
    %1070 = arith.negf %1069 : vector<8x128xf32>
    %1071 = math.exp %1070 : vector<8x128xf32>
    %cst_274 = arith.constant 1.000000e+00 : f32
    %1072 = vector.broadcast %cst_274 : f32 to vector<8x128xf32>
    %1073 = arith.addf %1072, %1071 : vector<8x128xf32>
    %1074 = arith.divf %1072, %1073 : vector<8x128xf32>
    %1075 = vector.extract_strided_slice %1055 {offsets = [0, 256], sizes = [8, 128], strides = [1, 1]} : vector<8x384xf32> to vector<8x128xf32>
    %1076 = vector.extract_strided_slice %1058 {offsets = [0, 256], sizes = [8, 128], strides = [1, 1]} : vector<8x384xf32> to vector<8x128xf32>
    %1077 = arith.addf %1076, %20 : vector<8x128xf32>
    %1078 = arith.mulf %1066, %1077 : vector<8x128xf32>
    %1079 = arith.addf %1075, %1078 : vector<8x128xf32>
    %1080 = math.tanh %1079 : vector<8x128xf32>
    %cst_275 = arith.constant 1.000000e+00 : f32
    %1081 = vector.broadcast %cst_275 : f32 to vector<8x128xf32>
    %1082 = arith.subf %1081, %1074 : vector<8x128xf32>
    %1083 = arith.mulf %1082, %1080 : vector<8x128xf32>
    %1084 = arith.mulf %1074, %952 : vector<8x128xf32>
    %1085 = arith.addf %1083, %1084 : vector<8x128xf32>
    %c8_i32 = arith.constant 8 : i32
    %1086 = vector.extract_strided_slice %1085 {offsets = [0, 0], sizes = [8, 64], strides = [1, 1]} : vector<8x128xf32> to vector<8x64xf32>
    %c0_276 = arith.constant 0 : index
    %c0_277 = arith.constant 0 : index
    %1087 = vector.load %arg14[%c0_276, %c0_277] : memref<64x1xf32, #tpu.memory_space<vmem>>, vector<64x1xf32>
    %cst_278 = arith.constant dense<0.000000e+00> : vector<8x1xf32>
    %1088 = tpu.matmul %1086, %1087, %cst_278 {dimension_numbers = #tpu.dot_dimension_numbers<[1], [0], [0], [1], [0, 0, 1, 1], [], []>} : vector<8x64xf32>, vector<64x1xf32>, vector<8x1xf32> -> vector<8x1xf32>
    %c0_279 = arith.constant 0 : index
    %c0_280 = arith.constant 0 : index
    %1089 = vector.load %arg15[%c0_279, %c0_280] : memref<1x1xf32, #tpu.memory_space<vmem>>, vector<1x1xf32>
    %1090 = vector.broadcast %1089 : vector<1x1xf32> to vector<8x1xf32>
    %1091 = arith.addf %1088, %1090 : vector<8x1xf32>
    %c0_281 = arith.constant 0 : index
    %c0_282 = arith.constant 0 : index
    %1092 = vector.load %arg16[%c0_281, %c0_282] : memref<8x1xf32, #tpu.memory_space<vmem>>, vector<8x1xf32>
    tpu.vector_store %arg16[%c0_281, %c0_282], %1091 {strides = array<i32>} : memref<8x1xf32, #tpu.memory_space<vmem>>, vector<8x1xf32>,
    return
  }
}

</mosaic_0001>

<bundles_post_ra>
// kernel: net_forward.1
= control target key start
LH: loop header
LB: loop body
LE: loop exit
PB: predicated region body
PF: predicated region fallthrough
CT: control target
= control target key end

     0   :  { %s13896_s0 = inlined_call_operand.vmem [shape: f32[8,8,1], index: 0, kind: input, shape index: {}]   ;;  %s13897_s1 = inlined_call_operand.hbm [shape: f32[1,512], index: 1, kind: input, shape index: {}]   ;;  %s13898_s2 = inlined_call_operand.hbm [shape: f32[64,512], index: 2, kind: input, shape index: {}]   ;;  %s13899_s3 = inlined_call_operand.hbm [shape: f32[1,512], index: 3, kind: input, shape index: {}]   ;;  %s13900_s4 = inlined_call_operand.hbm [shape: f32[128,512], index: 4, kind: input, shape index: {}]   ;;  %s13901_s5 = inlined_call_operand.hbm [shape: f32[1,512], index: 5, kind: input, shape index: {}]   ;;  %s13902_s6 = inlined_call_operand.vmem [shape: f32[64,384], index: 6, kind: input, shape index: {}]   ;;  %s13903_s7 = inlined_call_operand.hbm [shape: f32[64,384], index: 7, kind: input, shape index: {}]   ;;  %s13904_s8 = inlined_call_operand.vmem [shape: f32[1,384], index: 8, kind: input, shape index: {}]   ;;  %s13905_s9 = inlined_call_operand.vmem [shape: f32[1,128], index: 9, kind: input, shape index: {}]   ;;  %s13906_s10 = inlined_call_operand.hbm [shape: f32[64,384], index: 10, kind: input, shape index: {}]   ;;  %s13907_s11 = inlined_call_operand.hbm [shape: f32[64,384], index: 11, kind: input, shape index: {}]   ;;  %s13908_s12 = inlined_call_operand.vmem [shape: f32[1,384], index: 12, kind: input, shape index: {}]   ;;  %s13909_s13 = inlined_call_operand.vmem [shape: f32[1,128], index: 13, kind: input, shape index: {}]   ;;  %s13910_s14 = inlined_call_operand.vmem [shape: f32[64,1], index: 14, kind: input, shape index: {}]   ;;  %s13911_s15 = inlined_call_operand.<no memory space> [shape: f32[1,1], index: 15, kind: input, shape index: {}]   ;;  %s13912_s16 = inlined_call_operand.vmem [shape: f32[8,1], index: 16, kind: output, shape index: {}]  }
   0x1   :  { %14132 = sst [smem:[#allocation130_spill]] %s13896_s0  ;;  %v21_v0 = vstv %s13911_s15 }
   0x2   :  { %22 = vst [vmem:[#allocation2] sm:$0x1] %v21_v0 }
   0x3   :  { %23 = vsyncpa [#allocation4], 0 }
   0x4   :  { %24 = vsyncpa [#allocation6], 0 }
   0x5   :  { %25 = vsyncpa [#allocation9], 0 }
   0x6   :  { %26 = vsyncpa [#allocation12], 0 }
   0x7   :  { %27 = vsyncpa [#allocation15], 0  ;;  %s11808_s23 = smov [#allocation5]   ;;  %s11622_s27 = scalar_lea.hbm %s13898_s2, 4096 }
   0x8   :  { %s45_s24 = sshll.u32 %s11808_s23, 4  ;;  %p11623_p0 = scmp.ne.s32.totalorder %s13898_s2, %s11622_s27  ;;  %s46_s24 = int_to_ptr.vmem [resolvable:$true] %s45_s24 }
   0x9   :  { %p11626_p1 = scmp.lt.u32.totalorder %s11622_s27, %s13898_s2 }
   0xb   :  { %p11628_p2 = pnand %p11626_p1, %p11623_p0 }
   0xd   :  { %11631 = shalt.err (!%p11628_p2)
}
   0xe   :  { %s11632_s15 = scalar_lea.vmem %s46_s24, 4096  ;;  %p11637_p4 = scmp.lt.s32.totalorder %s46_s24, %s46_s24 }
   0xf   :  { %p11633_p3 = scmp.ne.s32.totalorder %s46_s24, %s11632_s15  ;;  %p11638_p5 = scmp.lt.s32.totalorder %s11632_s15, %s11632_s15 }
  0x11   :  { %p11639_p6 = por %p11638_p5, %p11637_p4 }
  0x13   :  { %p11640_p7 = pnand %p11639_p6, %p11633_p3 }
  0x15   :  { %11643 = shalt.err (!%p11640_p7)
}
  0x16   :  { %s11809_s17 = smov 512   ;;  %s11810_s18 = smov 32  }
  0x17   :  { %51 = dma.hbm_to_vmem [thread:$0]  %s13898_s2, 4096, %s46_s24, [#allocation6], %s11809_s17, %s11809_s17, %s11810_s18  }
  0x18   :  { %s11811_s21 = smov [#allocation8]   ;;  %s11812_s23 = smov [#allocation11]  }
  0x19   :  { %s67_s22 = sshll.u32 %s11811_s21, 4  ;;  %s91_s25 = sshll.u32 %s11812_s23, 4  ;;  %s68_s22 = int_to_ptr.vmem [resolvable:$true] %s67_s22  ;;  %s92_s25 = int_to_ptr.vmem [resolvable:$true] %s91_s25 }
  0x1a   :  { %s11644_s28 = scalar_lea.hbm %s13900_s4, 8192 }
  0x1b   :  { %p11645_p8 = scmp.ne.s32.totalorder %s13900_s4, %s11644_s28  ;;  %p11648_p9 = scmp.lt.u32.totalorder %s11644_s28, %s13900_s4 }
  0x1d   :  { %p11650_p10 = pnand %p11648_p9, %p11645_p8 }
  0x1f   :  { %11653 = shalt.err (!%p11650_p10)
}
  0x20   :  { %s11654_s2 = scalar_lea.vmem %s68_s22, 8192  ;;  %p11659_p12 = scmp.lt.s32.totalorder %s68_s22, %s68_s22 }
  0x21   :  { %p11655_p11 = scmp.ne.s32.totalorder %s68_s22, %s11654_s2  ;;  %p11660_p13 = scmp.lt.s32.totalorder %s11654_s2, %s11654_s2 }
  0x23   :  { %p11661_p0 = por %p11660_p13, %p11659_p12 }
  0x25   :  { %p11662_p1 = pnand %p11661_p0, %p11655_p11 }
  0x27   :  { %11665 = shalt.err (!%p11662_p1)
}
  0x28   :  { %73 = dma.hbm_to_vmem [thread:$0]  %s13900_s4, 8192, %s68_s22, [#allocation9], %s11809_s17, %s11809_s17, %s11810_s18  }
  0x29   :  { %s11666_s23 = scalar_lea.hbm %s13903_s7, 3072 }
  0x2a   :  { %p11667_p2 = scmp.ne.s32.totalorder %s13903_s7, %s11666_s23  ;;  %p11670_p3 = scmp.lt.u32.totalorder %s11666_s23, %s13903_s7 }
  0x2c   :  { %p11672_p4 = pnand %p11670_p3, %p11667_p2 }
  0x2e   :  { %11675 = shalt.err (!%p11672_p4)
}
  0x2f   :  { %s11676_s30 = scalar_lea.vmem %s92_s25, 3072  ;;  %p11681_p6 = scmp.lt.s32.totalorder %s92_s25, %s92_s25 }
  0x30   :  { %p11677_p5 = scmp.ne.s32.totalorder %s92_s25, %s11676_s30  ;;  %p11682_p7 = scmp.lt.s32.totalorder %s11676_s30, %s11676_s30 }
  0x32   :  { %p11683_p8 = por %p11682_p7, %p11681_p6 }
  0x34   :  { %p11684_p9 = pnand %p11683_p8, %p11677_p5 }
  0x36   :  { %11687 = shalt.err (!%p11684_p9)
}
  0x37   :  { %s11813_s4 = smov 384   ;;  %s11814_s17 = smov 24  }
  0x38   :  { %97 = dma.hbm_to_vmem [thread:$0]  %s13903_s7, 3072, %s92_s25, [#allocation12], %s11813_s4, %s11813_s4, %s11814_s17  }
  0x39   :  { %s11815_s0 = smov [#allocation3]   ;;  %s11816_s2 = smov [#allocation7]  }
  0x3a   :  { %s36_s15 = sshll.u32 %s11815_s0, 4  ;;  %s58_s24 = sshll.u32 %s11816_s2, 4  ;;  %s37_s15 = int_to_ptr.vmem [resolvable:$true] %s36_s15  ;;  %s59_s24 = int_to_ptr.vmem [resolvable:$true] %s58_s24 }
  0x3b   :  { %s11688_s21 = scalar_lea.hbm %s13897_s1, 64 }
  0x3c   :  { %p11689_p10 = scmp.ne.s32.totalorder %s13897_s1, %s11688_s21  ;;  %p11692_p11 = scmp.lt.u32.totalorder %s11688_s21, %s13897_s1 }
  0x3e   :  { %p11694_p12 = pnand %p11692_p11, %p11689_p10 }
  0x40   :  { %11697 = shalt.err (!%p11694_p12)
}
  0x41   :  { %s11698_s7 = scalar_lea.vmem %s37_s15, 64  ;;  %p11703_p0 = scmp.lt.s32.totalorder %s37_s15, %s37_s15 }
  0x42   :  { %p11699_p13 = scmp.ne.s32.totalorder %s37_s15, %s11698_s7  ;;  %p11704_p1 = scmp.lt.s32.totalorder %s11698_s7, %s11698_s7 }
  0x44   :  { %p11705_p2 = por %p11704_p1, %p11703_p0 }
  0x46   :  { %p11706_p3 = pnand %p11705_p2, %p11699_p13 }
  0x48   :  { %11709 = shalt.err (!%p11706_p3)
}
  0x49   :  { %39 = dma.hbm_to_vmem [thread:$0]  %s13897_s1, 64, %s37_s15, [#allocation4]  }
  0x4a   :  { %s11710_s22 = scalar_lea.hbm %s13899_s3, 64 }
  0x4b   :  { %p11711_p4 = scmp.ne.s32.totalorder %s13899_s3, %s11710_s22  ;;  %p11714_p5 = scmp.lt.u32.totalorder %s11710_s22, %s13899_s3 }
  0x4d   :  { %p11716_p6 = pnand %p11714_p5, %p11711_p4 }
  0x4f   :  { %11719 = shalt.err (!%p11716_p6)
}
  0x50   :  { %s11720_s21 = scalar_lea.vmem %s59_s24, 64  ;;  %p11725_p8 = scmp.lt.s32.totalorder %s59_s24, %s59_s24 }
  0x51   :  { %p11721_p7 = scmp.ne.s32.totalorder %s59_s24, %s11720_s21  ;;  %p11726_p9 = scmp.lt.s32.totalorder %s11720_s21, %s11720_s21 }
  0x53   :  { %p11727_p10 = por %p11726_p9, %p11725_p8 }
  0x55   :  { %p11728_p11 = pnand %p11727_p10, %p11721_p7 }
  0x57   :  { %11731 = shalt.err (!%p11728_p11)
}
  0x58   :  { %61 = dma.hbm_to_vmem [thread:$0]  %s13899_s3, 64, %s59_s24, [#allocation6]  }
  0x59   :  { %s11817_s23 = smov [#allocation10]   ;;  %s11818_s27 = smov [#allocation13]  }
  0x5a   :  { %s80_s26 = sshll.u32 %s11817_s23, 4  ;;  %s107_s28 = sshll.u32 %s11818_s27, 4  ;;  %s81_s26 = int_to_ptr.vmem [resolvable:$true] %s80_s26  ;;  %s108_s28 = int_to_ptr.vmem [resolvable:$true] %s107_s28 }
  0x5b   :  { %s11732_s29 = scalar_lea.hbm %s13901_s5, 64 }
  0x5c   :  { %p11733_p12 = scmp.ne.s32.totalorder %s13901_s5, %s11732_s29  ;;  %p11736_p13 = scmp.lt.u32.totalorder %s11732_s29, %s13901_s5 }
  0x5e   :  { %p11738_p0 = pnand %p11736_p13, %p11733_p12 }
  0x60   :  { %11741 = shalt.err (!%p11738_p0)
}
  0x61   :  { %s11742_s3 = scalar_lea.vmem %s81_s26, 64  ;;  %p11747_p2 = scmp.lt.s32.totalorder %s81_s26, %s81_s26 }
  0x62   :  { %p11743_p1 = scmp.ne.s32.totalorder %s81_s26, %s11742_s3  ;;  %p11748_p3 = scmp.lt.s32.totalorder %s11742_s3, %s11742_s3 }
  0x64   :  { %p11749_p4 = por %p11748_p3, %p11747_p2 }
  0x66   :  { %p11750_p5 = pnand %p11749_p4, %p11743_p1 }
  0x68   :  { %11753 = shalt.err (!%p11750_p5)
}
  0x69   :  { %83 = dma.hbm_to_vmem [thread:$0]  %s13901_s5, 64, %s81_s26, [#allocation9]  }
  0x6a   :  { %s11754_s21 = scalar_lea.hbm %s13906_s10, 3072 }
  0x6b   :  { %p11755_p6 = scmp.ne.s32.totalorder %s13906_s10, %s11754_s21  ;;  %p11758_p7 = scmp.lt.u32.totalorder %s11754_s21, %s13906_s10 }
  0x6d   :  { %p11760_p8 = pnand %p11758_p7, %p11755_p6 }
  0x6f   :  { %11763 = shalt.err (!%p11760_p8)
}
  0x70   :  { %s11764_s7 = scalar_lea.vmem %s108_s28, 3072  ;;  %p11769_p10 = scmp.lt.s32.totalorder %s108_s28, %s108_s28 }
  0x71   :  { %p11765_p9 = scmp.ne.s32.totalorder %s108_s28, %s11764_s7  ;;  %p11770_p11 = scmp.lt.s32.totalorder %s11764_s7, %s11764_s7 }
  0x73   :  { %p11771_p12 = por %p11770_p11, %p11769_p10 }
  0x75   :  { %p11772_p13 = pnand %p11771_p12, %p11765_p9 }
  0x77   :  { %11775 = shalt.err (!%p11772_p13)
}
  0x78   :  { %113 = dma.hbm_to_vmem [thread:$0]  %s13906_s10, 3072, %s108_s28, [#allocation12], %s11813_s4, %s11813_s4, %s11814_s17  }
  0x79   :  { %s11819_s25 = smov [#allocation14]   ;;  %s11776_s22 = scalar_lea.hbm %s13907_s11, 3072 }
  0x7a   :  { %s119_s29 = sshll.u32 %s11819_s25, 4  ;;  %p11777_p0 = scmp.ne.s32.totalorder %s13907_s11, %s11776_s22  ;;  %s120_s29 = int_to_ptr.vmem [resolvable:$true] %s119_s29 }
  0x7b   :  { %p11780_p1 = scmp.lt.u32.totalorder %s11776_s22, %s13907_s11 }
  0x7d   :  { %p11782_p2 = pnand %p11780_p1, %p11777_p0 }
  0x7f   :  { %11785 = shalt.err (!%p11782_p2)
}
  0x80   :  { %s11786_s19 = scalar_lea.vmem %s120_s29, 3072  ;;  %p11791_p4 = scmp.lt.s32.totalorder %s120_s29, %s120_s29 }
  0x81   :  { %p11787_p3 = scmp.ne.s32.totalorder %s120_s29, %s11786_s19  ;;  %p11792_p5 = scmp.lt.s32.totalorder %s11786_s19, %s11786_s19 }
  0x83   :  { %p11793_p6 = por %p11792_p5, %p11791_p4 }
  0x85   :  { %p11794_p7 = pnand %p11793_p6, %p11787_p3 }
  0x87   :  { %11797 = shalt.err (!%p11794_p7)
}
  0x88   :  { %125 = dma.hbm_to_vmem [thread:$0]  %s13907_s11, 3072, %s120_s29, [#allocation15], %s11813_s4, %s11813_s4, %s11814_s17  }
  0x89   :  { %11798 = dma.done.wait [#allocation4], 64  }
  0x8a   :  { %11799 = vsyncadd [#allocation4], 4294967232 }
  0x8b   :  { %11800 = dma.done.wait [#allocation6], 4160  }
  0x8c   :  { %11801 = vsyncadd [#allocation6], 4294963136 }
  0x8d   :  { %11802 = dma.done.wait [#allocation9], 8256  }
  0x8e   :  { %11803 = vsyncadd [#allocation9], 4294959040 }
  0x8f   :  { %11804 = dma.done.wait [#allocation12], 6144  }
  0x90   :  { %11805 = vsyncadd [#allocation12], 4294961152 }
  0x91   :  { %11806 = dma.done.wait [#allocation15], 3072  }
  0x92   :  { %11807 = vsyncadd [#allocation15], 4294964224  ;;  %v13914_v1 = vmov 0.0   ;;  %v11821_v2 = vmov 0   ;;  %v283_v3 = vld [vmem:[#allocation5 + $0x8] sm:$0xff]  ;;  %v285_v5 = vld [vmem:[#allocation5 + $0x18] sm:$0xff] }
  0x93   :  { %382 = vmatprep.mubr.f32.mxu0 %v13914_v1  ;;  %453 = vmatprep.mubr.f32.mxu1 %v13914_v1  ;;  %v287_v4 = vld [vmem:[#allocation5 + $0x28] sm:$0xff]  ;;  %v289_v7 = vld [vmem:[#allocation5 + $0x38] sm:$0xff]  ;;  %v282_v8 = vld [vmem:[#allocation5] sm:$0xff]  ;;  %s14146_s17 = sld [smem:[#allocation130_spill]]  ;;  %s11822_s20 = smov 64   ;;  %vm11824_vm0 = vmmov 0  }
  0x94   :  { %11198 = vset.pattern.permute.xlu0 %v11821_v2  ;;  %11199 = vset.pattern.permute.xlu1 %v11821_v2  ;;  %v12020_v6 = vpack.c.bf16 %v287_v4, %v283_v3  ;;  %v286_v9 = vld [vmem:[#allocation5 + $0x20] sm:$0xff]  ;;  %v12022_v10 = vpack.c.bf16 %v289_v7, %v285_v5  ;;  %v284_v12 = vld [vmem:[#allocation5 + $0x10] sm:$0xff]  ;;  %v291_v14 = vld [vmem:[#allocation5 + $0x48] sm:$0xff]  ;;  %vm314_vm1 = vcmask 523264   ;;  %vm8341_vm2 = vcmask 7168  }
  0x95   :  { %v12024_v11 = vpack.c.bf16 %v286_v9, %v282_v8  ;;  %v288_v13 = vld [vmem:[#allocation5 + $0x30] sm:$0xff]  ;;  %v295_v16 = vld [vmem:[#allocation5 + $0x68] sm:$0xff]  ;;  %v293_v17 = vld [vmem:[#allocation5 + $0x58] sm:$0xff] }
  0x96   :  { %14133 = vst [vmem:[#allocation21_spill] sm:$0xff] %v12022_v10  ;;  %9442 = vmatprep.subr.bf16.mxu0 %v12020_v6  ;;  %v12027_v15 = vpack.c.bf16 %v288_v13, %v284_v12  ;;  %v297_v18 = vld [vmem:[#allocation5 + $0x78] sm:$0xff]  ;;  %9458 = vmatprep.subr.bf16.mxu1 %v12022_v10  ;;  %v12031_v19 = vpack.c.bf16 %v295_v16, %v291_v14  ;;  %v290_v21 = vld [vmem:[#allocation5 + $0x40] sm:$0xff]  ;;  %v292_v23 = vld [vmem:[#allocation5 + $0x50] sm:$0xff] }
  0x97   :  { %14134 = vst [vmem:[#allocation22_spill] sm:$0xff] %v12024_v11  ;;  %9444 = vmatpush1.bf16.msra.mxu0 %v12024_v11  ;;  %v12033_v20 = vpack.c.bf16 %v297_v18, %v293_v17  ;;  %v294_v22 = vld [vmem:[#allocation5 + $0x60] sm:$0xff]  ;;  %v296_v25 = vld [vmem:[#allocation5 + $0x70] sm:$0xff]  ;;  %v299_v26 = vld [vmem:[#allocation5 + $0x88] sm:$0xff] }
  0x98   :  { %14135 = vst [vmem:[#allocation23_spill] sm:$0xff] %v12027_v15  ;;  %14136 = vst [vmem:[#allocation24_spill] sm:$0xff] %v12031_v19  ;;  %9460 = vmatpush1.bf16.msra.mxu1 %v12027_v15  ;;  %v12036_v24 = vpack.c.bf16 %v294_v22, %v290_v21  ;;  %v303_v27 = vld [vmem:[#allocation5 + $0xa8] sm:$0xff]  ;;  %9446 = vmatprep.subr.bf16.mxu0 %v12031_v19  ;;  %v12040_v28 = vpack.c.bf16 %v296_v25, %v292_v23  ;;  %v301_v30 = vld [vmem:[#allocation5 + $0x98] sm:$0xff] }
  0x99   :  { %14137 = vst [vmem:[#allocation25_spill] sm:$0xff] %v12033_v20  ;;  %9462 = vmatprep.subr.bf16.mxu1 %v12033_v20  ;;  %v12042_v29 = vpack.c.bf16 %v303_v27, %v299_v26  ;;  %v305_v31 = vld [vmem:[#allocation5 + $0xb8] sm:$0xff]  ;;  %v298_v32 = vld [vmem:[#allocation5 + $0x80] sm:$0xff]  ;;  %v300_v35 = vld [vmem:[#allocation5 + $0x90] sm:$0xff] }
  0x9a   :  { %14138 = vst [vmem:[#allocation26_spill] sm:$0xff] %v12036_v24  ;;  %14139 = vst [vmem:[#allocation27_spill] sm:$0xff] %v12040_v28  ;;  %v12044_v33 = vpack.c.bf16 %v305_v31, %v301_v30  ;;  %v302_v34 = vld [vmem:[#allocation5 + $0xa0] sm:$0xff]  ;;  %v304_v36 = vld [vmem:[#allocation5 + $0xb0] sm:$0xff] }
  0x9b   :  { %14140 = vst [vmem:[#allocation28_spill] sm:$0xff] %v12042_v29  ;;  %9448 = vmatpush1.bf16.msra.mxu0 %v12036_v24  ;;  %v12047_v37 = vpack.c.bf16 %v302_v34, %v298_v32  ;;  %v307_v38 = vld [vmem:[#allocation5 + $0xc8] sm:$0xff]  ;;  %v309_v40 = vld [vmem:[#allocation5 + $0xd8] sm:$0xff]  ;;  %v12051_v41 = vpack.c.bf16 %v304_v36, %v300_v35  ;;  %v306_v44 = vld [vmem:[#allocation5 + $0xc0] sm:$0xff] }
  0x9c   :  { %14141 = vst [vmem:[#allocation29_spill] sm:$0xff] %v12044_v33  ;;  %v311_v39 = vld [vmem:[#allocation5 + $0xe8] sm:$0xff]  ;;  %9464 = vmatpush1.bf16.msra.mxu1 %v12040_v28  ;;  %9450 = vmatprep.subr.bf16.mxu0 %v12042_v29  ;;  %v313_v43 = vld [vmem:[#allocation5 + $0xf8] sm:$0xff]  ;;  %v310_v45 = vld [vmem:[#allocation5 + $0xe0] sm:$0xff] }
  0x9d   :  { %14142 = vst [vmem:[#allocation30_spill] sm:$0xff] %v12047_v37  ;;  %14143 = vst [vmem:[#allocation31_spill] sm:$0xff] %v12051_v41  ;;  %v12053_v42 = vpack.c.bf16 %v311_v39, %v307_v38  ;;  %9466 = vmatprep.subr.bf16.mxu1 %v12044_v33  ;;  %v12056_v46 = vpack.c.bf16 %v313_v43, %v309_v40  ;;  %v308_v47 = vld [vmem:[#allocation5 + $0xd0] sm:$0xff]  ;;  %v272_v49 = vld [vmem:[%s14146_s17] sm:$0xff]  ;;  %v12062_v50 = vpack.c.bf16 %v310_v45, %v306_v44 }
  0x9e   :  { %v312_v48 = vld [vmem:[#allocation5 + $0xf0] sm:$0xff]  ;;  %275 = vperm.xlu0 %11198, %v272_v49   ;;  %v8431_v54 = vld [vmem:[%s14146_s17 + $0x20] sm:$0xff]  ;;  %v8452_v55 = vld [vmem:[%s14146_s17 + $0x28] sm:$0xff] }
  0x9f   :  { %14144 = vst [vmem:[#allocation32_spill] sm:$0xff] %v12053_v42  ;;  %14145 = vst [vmem:[#allocation33_spill] sm:$0xff] %v12056_v46  ;;  %9452 = vmatpush1.bf16.msra.mxu0 %v12047_v37  ;;  %v12066_v51 = vpack.c.bf16 %v312_v48, %v308_v47  ;;  %v8389_v52 = vld [vmem:[%s14146_s17 + $0x10] sm:$0xff]  ;;  %v8410_v53 = vld [vmem:[%s14146_s17 + $0x18] sm:$0xff] }
  0xa0   :  { %14147 = vst [vmem:[#allocation34_spill] sm:$0xff] %v12062_v50  ;;  %9468 = vmatpush1.bf16.msra.mxu1 %v12051_v41  ;;  %9454 = vmatprep.subr.bf16.mxu0 %v12053_v42  ;;  %v8473_v56 = vld [vmem:[%s14146_s17 + $0x30] sm:$0xff]  ;;  %v8494_v57 = vld [vmem:[%s14146_s17 + $0x38] sm:$0xff]  ;;  %v498_v60 = vld [vmem:[#allocation8 + $0x18] sm:$0xff] }
  0xa1   :  { %14148 = vst [vmem:[#allocation35_spill] sm:$0xff] %v12066_v51  ;;  %9470 = vmatprep.subr.bf16.mxu1 %v12056_v46  ;;  %v496_v58 = vld [vmem:[#allocation8 + $0x8] sm:$0xff]  ;;  %v502_v62 = vld [vmem:[#allocation8 + $0x38] sm:$0xff]  ;;  %v495_v63 = vld [vmem:[#allocation8] sm:$0xff] }
  0xa2   :  { %492 = vrot.lane.b32.xlu0 %v13914_v1, %s11822_s20  ;;  %v500_v59 = vld [vmem:[#allocation8 + $0x28] sm:$0xff]  ;;  %v499_v0 = vld [vmem:[#allocation8 + $0x20] sm:$0xff]  ;;  %v12097_v2 = vpack.c.bf16 %v502_v62, %v498_v60  ;;  %v497_v4 = vld [vmem:[#allocation8 + $0x10] sm:$0xff] }
  0xa3   :  { %9456 = vmatpush1.bf16.msra.mxu0 %v12062_v50  ;;  %v12095_v61 = vpack.c.bf16 %v500_v59, %v496_v58  ;;  %v12099_v3 = vpack.c.bf16 %v499_v0, %v495_v63  ;;  %v501_v5 = vld [vmem:[#allocation8 + $0x30] sm:$0xff]  ;;  %v504_v8 = vld [vmem:[#allocation8 + $0x48] sm:$0xff]  ;;  %v506_v12 = vld [vmem:[#allocation8 + $0x58] sm:$0xff] }
  0xa4   :  { %9472 = vmatpush1.bf16.msra.mxu1 %v12066_v51  ;;  %14150 = vst [vmem:[#allocation37_spill] sm:$0xff] %v12097_v2  ;;  %v12102_v7 = vpack.c.bf16 %v501_v5, %v497_v4  ;;  %v508_v9 = vld [vmem:[#allocation8 + $0x68] sm:$0xff]  ;;  %v510_v14 = vld [vmem:[#allocation8 + $0x78] sm:$0xff]  ;;  %v503_v16 = vld [vmem:[#allocation8 + $0x40] sm:$0xff] }
  0xa5   :  { %14149 = vst [vmem:[#allocation36_spill] sm:$0xff] %v12095_v61  ;;  %14151 = vst [vmem:[#allocation38_spill] sm:$0xff] %v12099_v3  ;;  %9474 = vmatprep.subr.bf16.mxu0 %v12095_v61  ;;  %9506 = vmatprep.subr.bf16.mxu1 %v12097_v2  ;;  %v12107_v13 = vpack.c.bf16 %v508_v9, %v504_v8  ;;  %v507_v17 = vld [vmem:[#allocation8 + $0x60] sm:$0xff]  ;;  %v12109_v18 = vpack.c.bf16 %v510_v14, %v506_v12  ;;  %v505_v22 = vld [vmem:[#allocation8 + $0x50] sm:$0xff] }
  0xa6   :  { %383 = vmatmul.mubr.f32.vlgmr.msra.gmra.mrb[0].mxu0 %v13914_v1  ;;  %2413 = vperm.xlu0 %11198, %v8389_v52   ;;  %14152 = vst [vmem:[#allocation39_spill] sm:$0xff] %v12102_v7  ;;  %v12111_v21 = vpack.c.bf16 %v507_v17, %v503_v16  ;;  %v509_v23 = vld [vmem:[#allocation8 + $0x70] sm:$0xff]  ;;  %v512_v26 = vld [vmem:[#allocation8 + $0x88] sm:$0xff]  ;;  %v514_v30 = vld [vmem:[#allocation8 + $0x98] sm:$0xff] }
  0xa7   :  { %454 = vmatmul.mubr.f32.vlgmr.msra.gmra.mrb[0].mxu1 %v13914_v1  ;;  %623 = vmatprep.mubr.f32.mxu0 %v13914_v1  ;;  %14153 = vst [vmem:[#allocation40_spill] sm:$0xff] %v12107_v13  ;;  %14154 = vst [vmem:[#allocation41_spill] sm:$0xff] %v12109_v18  ;;  %v12114_v25 = vpack.c.bf16 %v509_v23, %v505_v22  ;;  %v516_v27 = vld [vmem:[#allocation8 + $0xa8] sm:$0xff]  ;;  %v518_v32 = vld [vmem:[#allocation8 + $0xb8] sm:$0xff] }
  0xa8   :  { %694 = vmatprep.mubr.f32.mxu1 %v13914_v1  ;;  %9476 = vmatpush1.bf16.msra.mxu0 %v12099_v3  ;;  %14155 = vst [vmem:[#allocation42_spill] sm:$0xff] %v12111_v21  ;;  %v12119_v31 = vpack.c.bf16 %v516_v27, %v512_v26  ;;  %v511_v34 = vld [vmem:[#allocation8 + $0x80] sm:$0xff]  ;;  %v12121_v36 = vpack.c.bf16 %v518_v32, %v514_v30  ;;  %v513_v39 = vld [vmem:[#allocation8 + $0x90] sm:$0xff]  ;;  %v520_v44 = vld [vmem:[#allocation8 + $0xc8] sm:$0xff] }
  0xa9   :  { %9508 = vmatpush1.bf16.msra.mxu1 %v12102_v7  ;;  %9478 = vmatprep.subr.bf16.mxu0 %v12107_v13  ;;  %14156 = vst [vmem:[#allocation43_spill] sm:$0xff] %v12114_v25  ;;  %v515_v35 = vld [vmem:[#allocation8 + $0xa0] sm:$0xff]  ;;  %v517_v40 = vld [vmem:[#allocation8 + $0xb0] sm:$0xff]  ;;  %v524_v45 = vld [vmem:[#allocation8 + $0xe8] sm:$0xff] }
  0xaa   :  { %3387 = vperm.xlu0 %11198, %v8410_v53   ;;  %9510 = vmatprep.subr.bf16.mxu1 %v12109_v18  ;;  %14157 = vst [vmem:[#allocation44_spill] sm:$0xff] %v12119_v31  ;;  %14158 = vst [vmem:[#allocation45_spill] sm:$0xff] %v12121_v36  ;;  %v12123_v38 = vpack.c.bf16 %v515_v35, %v511_v34  ;;  %v12126_v43 = vpack.c.bf16 %v517_v40, %v513_v39  ;;  %v522_v47 = vld [vmem:[#allocation8 + $0xd8] sm:$0xff]  ;;  %v519_v52 = vld [vmem:[#allocation8 + $0xc0] sm:$0xff] }
  0xab   :  { %v12131_v48 = vpack.c.bf16 %v524_v45, %v520_v44  ;;  %v526_v49 = vld [vmem:[#allocation8 + $0xf8] sm:$0xff]  ;;  %v523_v53 = vld [vmem:[#allocation8 + $0xe0] sm:$0xff]  ;;  %v528_v59 = vld [vmem:[#allocation8 + $0x108] sm:$0xff] }
  0xac   :  { %9480 = vmatpush1.bf16.msra.mxu0 %v12111_v21  ;;  %14159 = vst [vmem:[#allocation46_spill] sm:$0xff] %v12123_v38  ;;  %14160 = vst [vmem:[#allocation47_spill] sm:$0xff] %v12126_v43  ;;  %v532_v60 = vld [vmem:[#allocation8 + $0x128] sm:$0xff]  ;;  %v530_v62 = vld [vmem:[#allocation8 + $0x118] sm:$0xff] }
  0xad   :  { %9512 = vmatpush1.bf16.msra.mxu1 %v12114_v25  ;;  %9482 = vmatprep.subr.bf16.mxu0 %v12119_v31  ;;  %14161 = vst [vmem:[#allocation48_spill] sm:$0xff] %v12131_v48  ;;  %v12143_v63 = vpack.c.bf16 %v532_v60, %v528_v59  ;;  %v534_v0 = vld [vmem:[#allocation8 + $0x138] sm:$0xff]  ;;  %v527_v4 = vld [vmem:[#allocation8 + $0x100] sm:$0xff]  ;;  %v529_v12 = vld [vmem:[#allocation8 + $0x110] sm:$0xff] }
  0xae   :  { %4361 = vperm.xlu0 %11198, %v8431_v54   ;;  %9514 = vmatprep.subr.bf16.mxu1 %v12121_v36  ;;  %v12133_v54 = vpack.c.bf16 %v526_v49, %v522_v47  ;;  %v531_v5 = vld [vmem:[#allocation8 + $0x120] sm:$0xff]  ;;  %v12145_v8 = vpack.c.bf16 %v534_v0, %v530_v62  ;;  %v533_v14 = vld [vmem:[#allocation8 + $0x130] sm:$0xff]  ;;  %v536_v17 = vld [vmem:[#allocation8 + $0x148] sm:$0xff] }
  0xaf   :  { %14165 = vst [vmem:[#allocation52_spill] sm:$0xff] %v12143_v63  ;;  %v12147_v9 = vpack.c.bf16 %v531_v5, %v527_v4  ;;  %v12150_v16 = vpack.c.bf16 %v533_v14, %v529_v12  ;;  %v540_v22 = vld [vmem:[#allocation8 + $0x168] sm:$0xff]  ;;  %v538_v23 = vld [vmem:[#allocation8 + $0x158] sm:$0xff]  ;;  %v535_v27 = vld [vmem:[#allocation8 + $0x140] sm:$0xff] }
  0xb0   :  { %9484 = vmatpush1.bf16.msra.mxu0 %v12123_v38  ;;  %14162 = vst [vmem:[#allocation49_spill] sm:$0xff] %v12133_v54  ;;  %14166 = vst [vmem:[#allocation53_spill] sm:$0xff] %v12145_v8  ;;  %v542_v26 = vld [vmem:[#allocation8 + $0x178] sm:$0xff]  ;;  %v539_v30 = vld [vmem:[#allocation8 + $0x160] sm:$0xff]  ;;  %v12155_v32 = vpack.c.bf16 %v540_v22, %v536_v17 }
  0xb1   :  { %9516 = vmatpush1.bf16.msra.mxu1 %v12126_v43  ;;  %9486 = vmatprep.subr.bf16.mxu0 %v12131_v48  ;;  %14167 = vst [vmem:[#allocation54_spill] sm:$0xff] %v12147_v9  ;;  %14168 = vst [vmem:[#allocation55_spill] sm:$0xff] %v12150_v16  ;;  %v12157_v34 = vpack.c.bf16 %v542_v26, %v538_v23  ;;  %v12159_v35 = vpack.c.bf16 %v539_v30, %v535_v27  ;;  %v537_v39 = vld [vmem:[#allocation8 + $0x150] sm:$0xff]  ;;  %v544_v44 = vld [vmem:[#allocation8 + $0x188] sm:$0xff] }
  0xb2   :  { %5335 = vperm.xlu0 %11198, %v8452_v55   ;;  %v12135_v55 = vpack.c.bf16 %v523_v53, %v519_v52  ;;  %9518 = vmatprep.subr.bf16.mxu1 %v12133_v54  ;;  %14169 = vst [vmem:[#allocation56_spill] sm:$0xff] %v12155_v32  ;;  %v541_v40 = vld [vmem:[#allocation8 + $0x170] sm:$0xff]  ;;  %v548_v47 = vld [vmem:[#allocation8 + $0x1a8] sm:$0xff]  ;;  %v546_v49 = vld [vmem:[#allocation8 + $0x198] sm:$0xff] }
  0xb3   :  { %14170 = vst [vmem:[#allocation57_spill] sm:$0xff] %v12157_v34  ;;  %14171 = vst [vmem:[#allocation58_spill] sm:$0xff] %v12159_v35  ;;  %v12161_v45 = vpack.c.bf16 %v541_v40, %v537_v39  ;;  %v550_v52 = vld [vmem:[#allocation8 + $0x1b8] sm:$0xff]  ;;  %v12165_v53 = vpack.c.bf16 %v548_v47, %v544_v44  ;;  %v547_v59 = vld [vmem:[#allocation8 + $0x1a0] sm:$0xff]  ;;  %v160_v47 = vlaneseq }
  0xb4   :  { %14163 = vst [vmem:[#allocation50_spill] sm:$0xff] %v12135_v55  ;;  %9488 = vmatpush1.bf16.msra.mxu0 %v12135_v55  ;;  %v545_v60 = vld [vmem:[#allocation8 + $0x190] sm:$0xff]  ;;  %v552_v0 = vld [vmem:[#allocation8 + $0x1c8] sm:$0xff]  ;;  %v554_v14 = vld [vmem:[#allocation8 + $0x1d8] sm:$0xff] }
  0xb5   :  { %9490 = vmatprep.subr.bf16.mxu0 %v12143_v63  ;;  %14172 = vst [vmem:[#allocation59_spill] sm:$0xff] %v12161_v45  ;;  %14173 = vst [vmem:[#allocation60_spill] sm:$0xff] %v12165_v53  ;;  %v549_v62 = vld [vmem:[#allocation8 + $0x1b0] sm:$0xff]  ;;  %v556_v4 = vld [vmem:[#allocation8 + $0x1e8] sm:$0xff] }
  0xb6   :  { %6309 = vperm.xlu0 %11198, %v8473_v56   ;;  %v521_v56 = vld [vmem:[#allocation8 + $0xd0] sm:$0xff]  ;;  %v12173_v12 = vpack.c.bf16 %v549_v62, %v545_v60  ;;  %v558_v17 = vld [vmem:[#allocation8 + $0x1f8] sm:$0xff]  ;;  %v551_v22 = vld [vmem:[#allocation8 + $0x1c0] sm:$0xff]  ;;  %v12177_v23 = vpack.c.bf16 %v556_v4, %v552_v0 }
  0xb7   :  { %v12179_v26 = vpack.c.bf16 %v558_v17, %v554_v14  ;;  %v555_v27 = vld [vmem:[#allocation8 + $0x1e0] sm:$0xff]  ;;  %v553_v30 = vld [vmem:[#allocation8 + $0x1d0] sm:$0xff]  ;;  %v180_v14 = vld [vmem:[#allocation7] sm:$0xf] }
  0xb8   :  { %9492 = vmatpush1.bf16.msra.mxu0 %v12147_v9  ;;  %14176 = vst [vmem:[#allocation63_spill] sm:$0xff] %v12173_v12  ;;  %14177 = vst [vmem:[#allocation64_spill] sm:$0xff] %v12177_v23  ;;  %v557_v39 = vld [vmem:[#allocation8 + $0x1f0] sm:$0xff]  ;;  %v12183_v40 = vpack.c.bf16 %v555_v27, %v551_v22 }
  0xb9   :  { %9494 = vmatprep.subr.bf16.mxu0 %v12155_v32  ;;  %14178 = vst [vmem:[#allocation65_spill] sm:$0xff] %v12179_v26  ;;  %v12185_v44 = vpack.c.bf16 %v557_v39, %v553_v30 }
  0xba   :  { %7283 = vperm.xlu0 %11198, %v8494_v57   ;;  %v525_v57 = vld [vmem:[#allocation8 + $0xf0] sm:$0xff]  ;;  %14179 = vst [vmem:[#allocation66_spill] sm:$0xff] %v12183_v40 }
  0xbb   :  { %v12138_v58 = vpack.c.bf16 %v525_v57, %v521_v56  ;;  %v12167_v56 = vpack.c.bf16 %v550_v52, %v546_v49  ;;  %v543_v57 = vld [vmem:[#allocation8 + $0x180] sm:$0xff]  ;;  %14180 = vst [vmem:[#allocation67_spill] sm:$0xff] %v12185_v44  ;;  %v161_v49 = vshrl.u32 %v160_v47, 7 }
  0xbc   :  { %9496 = vmatpush1.bf16.msra.mxu0 %v12159_v35  ;;  %v12171_v5 = vpack.c.bf16 %v547_v59, %v543_v57  ;;  %v158_v57 = vld [vmem:[#allocation3] sm:$0xf] }
  0xbd   :  { %14164 = vst [vmem:[#allocation51_spill] sm:$0xff] %v12138_v58  ;;  %9520 = vmatpush1.bf16.msra.mxu1 %v12138_v58  ;;  %14174 = vst [vmem:[#allocation61_spill] sm:$0xff] %v12167_v56  ;;  %9498 = vmatprep.subr.bf16.mxu0 %v12165_v53  ;;  %v12191_v52 = vsub.s32 0, %v161_v49  ;;  %v12193_v59 = vsub.s32 1, %v161_v49  ;;  %v12201_v0 = vsub.s32 3, %v161_v49  ;;  %v12211_v39 = vsub.s32 2, %v161_v49 }
  0xbe   :  { %9522 = vmatprep.subr.bf16.mxu1 %v12145_v8  ;;  %14175 = vst [vmem:[#allocation62_spill] sm:$0xff] %v12171_v5 }
  0xbf   :  { %14181 = vst [vmem:[#allocation68_spill] sm:$0xff] %v12191_v52  ;;  %14182 = vst [vmem:[#allocation69_spill] sm:$0xff] %v12193_v59  ;;  %v12196_v60 = vrot.slane %v158_v57, %v12191_v52  ;;  %v12199_v62 = vrot.slane %v158_v57, %v12193_v59  ;;  %v12206_v27 = vrot.slane %v158_v57, %v12201_v0 }
  0xc0   :  { %9500 = vmatpush1.bf16.msra.mxu0 %v12171_v5  ;;  %v12209_v30 = vrot.slane %v180_v14, %v12191_v52  ;;  %14187 = vst [vmem:[#allocation74_spill] sm:$0xff] %v12211_v39  ;;  %v12214_v1 = vrot.slane %v180_v14, %v12193_v59  ;;  %v12219_v5 = vrot.slane %v158_v57, %v12211_v39 }
  0xc1   :  { %9524 = vmatpush1.bf16.msra.mxu1 %v12150_v16  ;;  %9502 = vmatprep.subr.bf16.mxu0 %v12177_v23  ;;  %14183 = vst [vmem:[#allocation70_spill] sm:$0xff] %v12196_v60  ;;  %14184 = vst [vmem:[#allocation71_spill] sm:$0xff] %v12199_v62 }
  0xc2   :  { %9526 = vmatprep.subr.bf16.mxu1 %v12157_v34  ;;  %14185 = vst [vmem:[#allocation72_spill] sm:$0xff] %v12206_v27  ;;  %14186 = vst [vmem:[#allocation73_spill] sm:$0xff] %v12209_v30 }
  0xc3   :  { %14188 = vst [vmem:[#allocation75_spill] sm:$0xff] %v12214_v1  ;;  %14189 = vst [vmem:[#allocation76_spill] sm:$0xff] %v12219_v5 }
  0xc4   :  { %9504 = vmatpush1.bf16.msra.mxu0 %v12183_v40 }
  0xc5   :  { %9528 = vmatpush1.bf16.msra.mxu1 %v12161_v45  ;;  %v12223_v45 = vrot.slane %v180_v14, %v12201_v0 }
  0xc6   :  { %9530 = vmatprep.subr.bf16.mxu1 %v12167_v56 }
  0xc7   :  { %14190 = vst [vmem:[#allocation77_spill] sm:$0xff] %v12223_v45 }
  0xc9   :  { %9532 = vmatpush1.bf16.msra.mxu1 %v12173_v12 }
  0xca   :  { %9534 = vmatprep.subr.bf16.mxu1 %v12179_v26 }
  0xcd   :  { %9536 = vmatpush1.bf16.msra.mxu1 %v12185_v44 }
 0x11d   :  { %v276_v4 = vpop.permute.xlu0 %275 }
 0x11e   :  { %v278_v17 = vmul.f32 %v276_v4, %v12196_v60  ;;  %v279_v22 = vmul.f32 %v276_v4, %v12199_v62  ;;  %v281_v60 = vmul.f32 %v276_v4, %v12206_v27 }
 0x179   :  { %v384_v47 = vpop.f32.mrb[0].mxu0 }
 0x17a   :  { %v460_v44 = vadd.f32 %v384_v47, %v278_v17  ;;  %v455_v40 = vpop.f32.mrb[0].mxu1  ;;  %v386_v26 = vpop.f32.mrb[1].mxu0  ;;  %v280_v17 = vmul.f32 %v276_v4, %v12219_v5 }
 0x17b   :  { %v461_v23 = vadd.f32 %v386_v26, %v279_v22  ;;  %v457_v12 = vpop.f32.mrb[1].mxu1  ;;  %v12228_v22 = vrot.slane %v180_v14, %v12211_v39 }
 0x17c   :  { %v464_v62 = vadd.f32 %v460_v44, %v12209_v30  ;;  %v463_v35 = vadd.f32 %v457_v12, %v281_v60  ;;  %v462_v44 = vadd.f32 %v455_v40, %v280_v17 }
 0x17d   :  { %v465_v56 = vadd.f32 %v461_v23, %v12214_v1  ;;  %14191 = vst [vmem:[#allocation78_spill] sm:$0xff] %v12228_v22 }
 0x17e   :  { %v8354_v49 = vmul.f32 -1.442695, %v464_v62  ;;  %v467_v26 = vadd.f32 %v463_v35, %v12223_v45  ;;  %v466_v47 = vadd.f32 %v462_v44, %v12228_v22  ;;  %v493_v44 = vpop.permute.xlu0 %492 }
 0x17f   :  { %v8355_v53 = vmul.f32 -1.442695, %v465_v56 }
 0x180   :  { %11200 = vpow2.f32 %v8354_v49  ;;  %v8356_v57 = vmul.f32 -1.442695, %v467_v26 }
 0x181   :  { %11202 = vpow2.f32 %v8355_v53 }
 0x182   :  { %11204 = vpow2.f32 %v8356_v57 }
 0x183   :  { %11206 = vtanh.f32 %v466_v47  ;;  %v726_v47 = vld [vmem:[%s13902_s6 + $0x8] sm:$0xff] }
 0x18a   :  { %v11201_v23 = vpop.eup %11200 }
 0x18b   :  { %v11203_v62 = vpop.eup %11202  ;;  %v471_v56 = vadd.f32 1.0, %v11201_v23  ;;  %v729_v23 = vld [vmem:[%s13902_s6 + $0x20] sm:$0xff] }
 0x18c   :  { %v477_v1 = vadd.f32 1.0, %v11203_v62  ;;  %v11205_v12 = vpop.eup %11204  ;;  %v12244_v62 = vpack.c.bf16 %v729_v23, %v726_v47  ;;  %v734_v47 = vld [vmem:[%s13902_s6 + $0x48] sm:$0xff] }
 0x18d   :  { %11208 = vrcp.f32 %v471_v56  ;;  %v11207_v60 = vpop.eup %11206  ;;  %v484_v49 = vadd.f32 1.0, %v11205_v12  ;;  %v725_v56 = vld [vmem:[%s13902_s6] sm:$0xff]  ;;  %v728_v12 = vld [vmem:[%s13902_s6 + $0x18] sm:$0xff] }
 0x18e   :  { %11210 = vrcp.f32 %v477_v1  ;;  %v14193_v1 = vmov 0.0   ;;  %14194 = vst [vmem:[#allocation80_spill] sm:$0xff] %v12244_v62  ;;  %9538 = vmatprep.subr.bf16.mxu0 %v12244_v62 }
 0x18f   :  { %11212 = vrcp.f32 %v484_v49 }
 0x197   :  { %v11209_v53 = vpop.eup %11208 }
 0x198   :  { %v11211_v4 = vpop.eup %11210  ;;  %v488_v35 = vmul.f32 %v11209_v53, %v11207_v60  ;;  %v8368_v60 = vld [vmem:[%s14146_s17 + $0x8] sm:$0xff]  ;;  %v12255_v53 = vpack.c.bf16 %v728_v12, %v725_v56  ;;  %v733_v56 = vld [vmem:[%s13902_s6 + $0x40] sm:$0xff]  ;;  %v736_v12 = vld [vmem:[%s13902_s6 + $0x58] sm:$0xff] }
 0x199   :  { %v487_v14 = vmul.f32 0.0, %v11211_v4  ;;  %v11213_v40 = vpop.eup %11212  ;;  %v727_v4 = vld [vmem:[%s13902_s6 + $0x10] sm:$0xff]  ;;  %1439 = vperm.xlu1 %11199, %v8368_v60   ;;  %v738_v60 = vld [vmem:[%s13902_s6 + $0x68] sm:$0xff] }
 0x19a   :  { %14195 = vst [vmem:[#allocation81_spill] sm:$0xff] %v12255_v53 }
 0x19b   :  { %v12231_v45 = vadd.f32 %v488_v35, %v487_v14  ;;  %v730_v35 = vld [vmem:[%s13902_s6 + $0x28] sm:$0xff]  ;;  %v13944_v14 = vmov 0.0|0.0  }
 0x19c   :  { %v12264_v49 = vpack.c.bf16 %v730_v35, %v727_v4  ;;  %9553 = vmatprep.subr.bf16.mxu1 %v13944_v14  ;;  %v12296_v4 = vpack.c.bf16 %v736_v12, %v733_v56  ;;  %v741_v35 = vld [vmem:[%s13902_s6 + $0x80] sm:$0xff]  ;;  %v739_v56 = vld [vmem:[%s13902_s6 + $0x70] sm:$0xff]  ;;  %v742_v12 = vld [vmem:[%s13902_s6 + $0x88] sm:$0xff] }
 0x19d   :  { %14192 = vst [vmem:[#allocation79_spill] sm:$0xff] %v12231_v45  ;;  %11214 = vtanh.f32 %v12231_v45 }
 0x19e   :  { %14196 = vst [vmem:[#allocation82_spill] sm:$0xff] %v12264_v49  ;;  %14199 = vst [vmem:[#allocation85_spill] sm:$0xff] %v12296_v4 }
 0x1a7   :  { %v11215_v17 = vpop.eup %11214 }
 0x1a8   :  { %v12234_v26 = vmul.f32 %v11215_v17, %v11213_v40  ;;  %v732_v40 = vld [vmem:[%s13902_s6 + $0x38] sm:$0xff]  ;;  %v735_v17 = vld [vmem:[%s13902_s6 + $0x50] sm:$0xff] }
 0x1aa   :  { %v494_v57 = vadd.f32 %v493_v44, %v12234_v26  ;;  %v12275_v44 = vpack.c.bf16 %v735_v17, %v732_v40  ;;  %v737_v40 = vld [vmem:[%s13902_s6 + $0x60] sm:$0xff]  ;;  %v740_v17 = vld [vmem:[%s13902_s6 + $0x78] sm:$0xff] }
 0x1ac   :  { %624 = vmatmul.mubr.f32.vlgmr.msra.gmra.mrb[2].mxu0 %v494_v57  ;;  %695 = vmatmul.mubr.f32.vlgmr.msra.gmra.mrb[2].mxu1 %v494_v57  ;;  %14197 = vst [vmem:[#allocation83_spill] sm:$0xff] %v12275_v44  ;;  %v731_v57 = vld [vmem:[%s13902_s6 + $0x30] sm:$0xff] }
 0x1ad   :  { %816 = vmatprep.mubr.f32.mxu0 %v14193_v1  ;;  %9540 = vmatpush1.bf16.msra.mxu0 %v12255_v53  ;;  %v12283_v23 = vpack.c.bf16 %v734_v47, %v731_v57  ;;  %v12310_v57 = vpack.c.bf16 %v741_v35, %v738_v60  ;;  %v12312_v47 = vpack.c.bf16 %v740_v17, %v737_v40  ;;  %v747_v60 = vld [vmem:[%s13902_s6 + $0xb0] sm:$0xff]  ;;  %v746_v40 = vld [vmem:[%s13902_s6 + $0xa8] sm:$0xff]  ;;  %v14203_v17 = vmov 0.0|0.0  }
 0x1ae   :  { %9555 = vmatpush3.bf16.msra.mxu1 %v12264_v49  ;;  %9542 = vmatprep.subr.bf16.mxu0 %v12275_v44  ;;  %v12324_v44 = vpack.c.bf16 %v742_v12, %v739_v56  ;;  %v743_v35 = vld [vmem:[%s13902_s6 + $0x90] sm:$0xff]  ;;  %v745_v56 = vld [vmem:[%s13902_s6 + $0xa0] sm:$0xff]  ;;  %v748_v12 = vld [vmem:[%s13902_s6 + $0xb8] sm:$0xff] }
 0x1af   :  { %14198 = vst [vmem:[#allocation84_spill] sm:$0xff] %v12283_v23  ;;  %9556 = vmatprep.subr.bf16.mxu1 %v13944_v14  ;;  %8830 = vmatprep.mubr.msk.f32.mxu1 %vm11824_vm0, %v14193_v1  ;;  %14200 = vst [vmem:[#allocation86_spill] sm:$0xff] %v12310_v57  ;;  %v744_v14 = vld [vmem:[%s13902_s6 + $0x98] sm:$0xff]  ;;  %v897_v49 = vld [vmem:[#allocation11 + $0x20] sm:$0xff]  ;;  %v12346_v53 = vpack.c.bf16 %v746_v40, %v743_v35 }
 0x1b0   :  { %14201 = vst [vmem:[#allocation87_spill] sm:$0xff] %v12312_v47  ;;  %14202 = vst [vmem:[#allocation88_spill] sm:$0xff] %v12324_v44  ;;  %v202_v35 = vld [vmem:[#allocation10] sm:$0xf] }
 0x1b1   :  { %9544 = vmatpush1.bf16.msra.mxu0 %v12283_v23  ;;  %v12337_v23 = vpack.c.bf16 %v747_v60, %v744_v14  ;;  %14205 = vst [vmem:[#allocation90_spill] sm:$0xff] %v12346_v53  ;;  %v12350_v14 = vpack.c.bf16 %v748_v12, %v745_v56  ;;  %v12360_v40 = vrot.slane %v202_v35, %v12191_v52 }
 0x1b2   :  { %9558 = vmatpush3.bf16.msra.mxu1 %v12296_v4  ;;  %9546 = vmatprep.subr.bf16.mxu0 %v12310_v57  ;;  %v894_v4 = vld [vmem:[#allocation11 + $0x8] sm:$0xff]  ;;  %v12372_v45 = vrot.slane %v202_v35, %v12211_v39 }
 0x1b3   :  { %9559 = vmatprep.subr.bf16.mxu1 %v14203_v17  ;;  %14204 = vst [vmem:[#allocation89_spill] sm:$0xff] %v12337_v23  ;;  %14206 = vst [vmem:[#allocation91_spill] sm:$0xff] %v12350_v14  ;;  %v12352_v60 = vpack.c.bf16 %v897_v49, %v894_v4 }
 0x1b4   :  { %14208 = vst [vmem:[#allocation93_spill] sm:$0xff] %v12360_v40  ;;  %14211 = vst [vmem:[#allocation96_spill] sm:$0xff] %v12372_v45 }
 0x1b5   :  { %9548 = vmatpush1.bf16.msra.mxu0 %v12312_v47  ;;  %14207 = vst [vmem:[#allocation92_spill] sm:$0xff] %v12352_v60 }
 0x1b6   :  { %9561 = vmatpush3.bf16.msra.mxu1 %v12324_v44  ;;  %9550 = vmatprep.subr.bf16.mxu0 %v12337_v23  ;;  %v12363_v23 = vrot.slane %v202_v35, %v12193_v59 }
 0x1b7   :  { %9562 = vmatprep.subr.bf16.mxu1 %v14203_v17 }
 0x1b8   :  { %14209 = vst [vmem:[#allocation94_spill] sm:$0xff] %v12363_v23 }
 0x1b9   :  { %9552 = vmatpush1.bf16.msra.mxu0 %v12346_v53 }
 0x1ba   :  { %9564 = vmatpush3.bf16.msra.mxu1 %v12350_v14  ;;  %9566 = vmatprep.subr.bf16.mxu0 %v12352_v60  ;;  %v12368_v60 = vrot.slane %v202_v35, %v12201_v0 }
 0x1bb   :  { %9581 = vmatprep.subr.bf16.mxu1 %v14203_v17 }
 0x1bc   :  { %14210 = vst [vmem:[#allocation95_spill] sm:$0xff] %v12368_v60 }
 0x27f   :  { %v625_v56 = vpop.f32.mrb[2].mxu0  ;;  %v696_v49 = vpop.f32.mrb[2].mxu1 }
 0x280   :  { %v626_v4 = vadd.f32 %v625_v56, %v12360_v40  ;;  %v627_v12 = vpop.f32.mrb[3].mxu0  ;;  %v698_v44 = vpop.f32.mrb[3].mxu1  ;;  %v697_v5 = vadd.f32 %v696_v49, %v12372_v45  ;;  %v896_v49 = vld [vmem:[#allocation11 + $0x18] sm:$0xff] }
 0x281   :  { %v628_v53 = vadd.f32 %v627_v12, %v12363_v23  ;;  %v699_v57 = vadd.f32 %v698_v44, %v12368_v60 }
 0x282   :  { %v8357_v14 = vmul.f32 -1.442695, %v626_v4 }
 0x283   :  { %v8358_v47 = vmul.f32 -1.442695, %v628_v53  ;;  %v8359_v22 = vmul.f32 -1.442695, %v699_v57  ;;  %v893_v57 = vld [vmem:[#allocation11] sm:$0xff] }
 0x284   :  { %11216 = vpow2.f32 %v8357_v14  ;;  %v12378_v45 = vpack.c.bf16 %v896_v49, %v893_v57 }
 0x285   :  { %11218 = vpow2.f32 %v8358_v47 }
 0x286   :  { %11220 = vpow2.f32 %v8359_v22  ;;  %v903_v22 = vld [vmem:[#allocation11 + $0x50] sm:$0xff]  ;;  %14213 = vst [vmem:[#allocation98_spill] sm:$0xff] %v12378_v45 }
 0x287   :  { %11222 = vtanh.f32 %v697_v5 }
 0x28e   :  { %v11217_v56 = vpop.eup %11216 }
 0x28f   :  { %v11219_v40 = vpop.eup %11218  ;;  %v704_v30 = vadd.f32 1.0, %v11217_v56  ;;  %v900_v56 = vld [vmem:[#allocation11 + $0x38] sm:$0xff] }
 0x290   :  { %v710_v4 = vadd.f32 1.0, %v11219_v40  ;;  %v11221_v0 = vpop.eup %11220  ;;  %v895_v40 = vld [vmem:[#allocation11 + $0x10] sm:$0xff] }
 0x291   :  { %11224 = vrcp.f32 %v704_v30  ;;  %v11223_v53 = vpop.eup %11222  ;;  %v717_v44 = vadd.f32 1.0, %v11221_v0  ;;  %v898_v30 = vld [vmem:[#allocation11 + $0x28] sm:$0xff]  ;;  %v899_v0 = vld [vmem:[#allocation11 + $0x30] sm:$0xff] }
 0x292   :  { %11226 = vrcp.f32 %v710_v4 }
 0x293   :  { %11228 = vrcp.f32 %v717_v44  ;;  %v901_v44 = vld [vmem:[#allocation11 + $0x40] sm:$0xff] }
 0x29b   :  { %v11225_v14 = vpop.eup %11224 }
 0x29c   :  { %v11227_v47 = vpop.eup %11226  ;;  %v721_v12 = vmul.f32 %v11225_v14, %v11223_v53  ;;  %v12380_v53 = vpack.c.bf16 %v903_v22, %v900_v56  ;;  %v906_v14 = vld [vmem:[#allocation11 + $0x68] sm:$0xff]  ;;  %v905_v56 = vld [vmem:[#allocation11 + $0x60] sm:$0xff]  ;;  %v908_v22 = vld [vmem:[#allocation11 + $0x78] sm:$0xff] }
 0x29d   :  { %v720_v60 = vmul.f32 0.0, %v11227_v47  ;;  %v11229_v5 = vpop.eup %11228  ;;  %v909_v47 = vld [vmem:[#allocation11 + $0x80] sm:$0xff] }
 0x29e   :  { %14214 = vst [vmem:[#allocation99_spill] sm:$0xff] %v12380_v53  ;;  %v12391_v49 = vpack.c.bf16 %v909_v47, %v906_v14  ;;  %v911_v14 = vld [vmem:[#allocation11 + $0x90] sm:$0xff]  ;;  %v914_v47 = vld [vmem:[#allocation11 + $0xa8] sm:$0xff] }
 0x29f   :  { %v12375_v35 = vadd.f32 %v721_v12, %v720_v60  ;;  %v902_v60 = vld [vmem:[#allocation11 + $0x48] sm:$0xff]  ;;  %v12382_v12 = vpack.c.bf16 %v898_v30, %v895_v40  ;;  %v915_v40 = vld [vmem:[#allocation11 + $0xb0] sm:$0xff] }
 0x2a0   :  { %v12388_v57 = vpack.c.bf16 %v902_v60, %v899_v0  ;;  %14217 = vst [vmem:[#allocation102_spill] sm:$0xff] %v12391_v49  ;;  %v12401_v0 = vpack.c.bf16 %v908_v22, %v905_v56  ;;  %v1081_v22 = vld [vmem:[#allocation13 + $0x8] sm:$0xff] }
 0x2a1   :  { %14212 = vst [vmem:[#allocation97_spill] sm:$0xff] %v12375_v35  ;;  %11230 = vtanh.f32 %v12375_v35  ;;  %14215 = vst [vmem:[#allocation100_spill] sm:$0xff] %v12382_v12  ;;  %v904_v35 = vld [vmem:[#allocation11 + $0x58] sm:$0xff] }
 0x2a2   :  { %14216 = vst [vmem:[#allocation101_spill] sm:$0xff] %v12388_v57  ;;  %v12395_v30 = vpack.c.bf16 %v904_v35, %v901_v44  ;;  %14219 = vst [vmem:[#allocation104_spill] sm:$0xff] %v12401_v0  ;;  %v913_v44 = vld [vmem:[#allocation11 + $0xa0] sm:$0xff] }
 0x2a4   :  { %14218 = vst [vmem:[#allocation103_spill] sm:$0xff] %v12395_v30 }
 0x2ab   :  { %v11231_v4 = vpop.eup %11230 }
 0x2ac   :  { %v724_v23 = vmul.f32 %v11231_v4, %v11229_v5  ;;  %v912_v5 = vld [vmem:[#allocation11 + $0x98] sm:$0xff]  ;;  %v910_v4 = vld [vmem:[#allocation11 + $0x88] sm:$0xff] }
 0x2ad   :  { %v12404_v60 = vpack.c.bf16 %v915_v40, %v912_v5  ;;  %v1080_v40 = vld [vmem:[#allocation13] sm:$0xff] }
 0x2ae   :  { %1623 = vrot.lane.b32.xlu1 %v724_v23, %s11822_s20  ;;  %8360 = vmatmul.mubr.msk.f32.vlgmr.msra.gmra.mrb[4].mxu0 %vm314_vm1, %v724_v23 }
 0x2af   :  { %8831 = vmatmul.mubr.msk.f32.vlgmr.msra.gmra.mrb[4].mxu1 %vm314_vm1, %v724_v23  ;;  %9568 = vmatpush1.bf16.msra.mxu0 %v12378_v45  ;;  %v907_v23 = vld [vmem:[#allocation11 + $0x70] sm:$0xff]  ;;  %14220 = vst [vmem:[#allocation105_spill] sm:$0xff] %v12404_v60  ;;  %v1253_v45 = vld [vmem:[#allocation14 + $0x28] sm:$0xff] }
 0x2b0   :  { %9570 = vmatprep.subr.bf16.mxu0 %v12380_v53  ;;  %981 = vmatprep.mubr.f32.mxu0 %v14193_v1  ;;  %v12407_v35 = vpack.c.bf16 %v910_v4, %v907_v23  ;;  %v916_v53 = vld [vmem:[#allocation11 + $0xb8] sm:$0xff]  ;;  %v1082_v4 = vld [vmem:[#allocation13 + $0x10] sm:$0xff] }
 0x2b1   :  { %9583 = vmatpush3.bf16.msra.mxu1 %v12382_v12  ;;  %8849 = vmatprep.mubr.msk.f32.mxu1 %vm11824_vm0, %v14193_v1  ;;  %v12411_v12 = vpack.c.bf16 %v914_v47, %v911_v14  ;;  %v12415_v56 = vpack.c.bf16 %v916_v53, %v913_v44  ;;  %v1084_v53 = vld [vmem:[#allocation13 + $0x20] sm:$0xff]  ;;  %v1083_v23 = vld [vmem:[#allocation13 + $0x18] sm:$0xff]  ;;  %v1085_v47 = vld [vmem:[#allocation13 + $0x28] sm:$0xff] }
 0x2b2   :  { %9584 = vmatprep.subr.bf16.mxu1 %v14203_v17  ;;  %14221 = vst [vmem:[#allocation106_spill] sm:$0xff] %v12407_v35  ;;  %v12426_v5 = vpack.c.bf16 %v1084_v53, %v1081_v22  ;;  %v12428_v14 = vpack.c.bf16 %v1083_v23, %v1080_v40  ;;  %v12431_v44 = vpack.c.bf16 %v1085_v47, %v1082_v4  ;;  %v1086_v22 = vld [vmem:[#allocation13 + $0x30] sm:$0xff]  ;;  %v1089_v53 = vld [vmem:[#allocation13 + $0x48] sm:$0xff]  ;;  %v1091_v23 = vld [vmem:[#allocation13 + $0x58] sm:$0xff] }
 0x2b3   :  { %9572 = vmatpush1.bf16.msra.mxu0 %v12388_v57  ;;  %14222 = vst [vmem:[#allocation107_spill] sm:$0xff] %v12411_v12  ;;  %14223 = vst [vmem:[#allocation108_spill] sm:$0xff] %v12415_v56  ;;  %v12438_v40 = vpack.c.bf16 %v1089_v53, %v1086_v22  ;;  %v1102_v22 = vld [vmem:[#allocation13 + $0xb0] sm:$0xff] }
 0x2b4   :  { %9574 = vmatprep.subr.bf16.mxu0 %v12391_v49  ;;  %14224 = vst [vmem:[#allocation109_spill] sm:$0xff] %v12426_v5  ;;  %14225 = vst [vmem:[#allocation110_spill] sm:$0xff] %v12428_v14  ;;  %v1097_v49 = vld [vmem:[#allocation13 + $0x88] sm:$0xff]  ;;  %v1250_v57 = vld [vmem:[#allocation14 + $0x10] sm:$0xff] }
 0x2b5   :  { %9586 = vmatpush3.bf16.msra.mxu1 %v12395_v30  ;;  %14226 = vst [vmem:[#allocation111_spill] sm:$0xff] %v12431_v44  ;;  %14228 = vst [vmem:[#allocation113_spill] sm:$0xff] %v12438_v40  ;;  %v1099_v30 = vld [vmem:[#allocation13 + $0x98] sm:$0xff] }
 0x2b6   :  { %9587 = vmatprep.subr.bf16.mxu1 %v14203_v17 }
 0x2b7   :  { %9576 = vmatpush1.bf16.msra.mxu0 %v12401_v0  ;;  %v1093_v0 = vld [vmem:[#allocation13 + $0x68] sm:$0xff] }
 0x2b8   :  { %9578 = vmatprep.subr.bf16.mxu0 %v12404_v60 }
 0x2b9   :  { %9589 = vmatpush3.bf16.msra.mxu1 %v12407_v35  ;;  %v1088_v35 = vld [vmem:[#allocation13 + $0x40] sm:$0xff] }
 0x2ba   :  { %9590 = vmatprep.subr.bf16.mxu1 %v14203_v17  ;;  %v12441_v4 = vpack.c.bf16 %v1091_v23, %v1088_v35  ;;  %v12452_v35 = vpack.c.bf16 %v1102_v22, %v1099_v30  ;;  %v1100_v23 = vld [vmem:[#allocation13 + $0xa0] sm:$0xff] }
 0x2bb   :  { %9580 = vmatpush1.bf16.msra.mxu0 %v12411_v12  ;;  %v1090_v12 = vld [vmem:[#allocation13 + $0x50] sm:$0xff] }
 0x2bc   :  { %9594 = vmatprep.subr.bf16.mxu0 %v12426_v5  ;;  %v1096_v5 = vld [vmem:[#allocation13 + $0x80] sm:$0xff]  ;;  %14229 = vst [vmem:[#allocation114_spill] sm:$0xff] %v12441_v4  ;;  %14233 = vst [vmem:[#allocation118_spill] sm:$0xff] %v12452_v35 }
 0x2bd   :  { %9592 = vmatpush3.bf16.msra.mxu1 %v12415_v56  ;;  %v1087_v56 = vld [vmem:[#allocation13 + $0x38] sm:$0xff]  ;;  %v12443_v47 = vpack.c.bf16 %v1096_v5, %v1093_v0  ;;  %v1098_v0 = vld [vmem:[#allocation13 + $0x90] sm:$0xff]  ;;  %v1101_v5 = vld [vmem:[#allocation13 + $0xa8] sm:$0xff] }
 0x2be   :  { %982 = vmatmul.mubr.f32.vlgmr.msra.gmra.mrb[4].mxu0 %v14193_v1  ;;  %9609 = vmatprep.subr.bf16.mxu1 %v14203_v17  ;;  %v12435_v60 = vpack.c.bf16 %v1090_v12, %v1087_v56  ;;  %v1094_v12 = vld [vmem:[#allocation13 + $0x70] sm:$0xff] }
 0x2bf   :  { %1171 = vmatprep.mubr.f32.mxu0 %v14193_v1  ;;  %9596 = vmatpush1.bf16.msra.mxu0 %v12428_v14  ;;  %14230 = vst [vmem:[#allocation115_spill] sm:$0xff] %v12443_v47  ;;  %v1092_v14 = vld [vmem:[#allocation13 + $0x60] sm:$0xff]  ;;  %v12450_v53 = vpack.c.bf16 %v1097_v49, %v1094_v12 }
 0x2c0   :  { %8850 = vmatmul.mubr.f32.vlgmr.msra.gmra.mrb[6].mxu1 %v14193_v1  ;;  %14227 = vst [vmem:[#allocation112_spill] sm:$0xff] %v12435_v60  ;;  %9598 = vmatprep.subr.bf16.mxu0 %v12435_v60  ;;  %v1103_v60 = vld [vmem:[#allocation13 + $0xb8] sm:$0xff] }
 0x2c1   :  { %8868 = vmatprep.mubr.msk.f32.mxu1 %vm11824_vm0, %v14193_v1  ;;  %9611 = vmatpush3.bf16.msra.mxu1 %v12431_v44  ;;  %v1095_v44 = vld [vmem:[#allocation13 + $0x78] sm:$0xff]  ;;  %14232 = vst [vmem:[#allocation117_spill] sm:$0xff] %v12450_v53  ;;  %v12460_v49 = vpack.c.bf16 %v1103_v60, %v1100_v23 }
 0x2c2   :  { %9612 = vmatprep.subr.bf16.mxu1 %v14203_v17  ;;  %v12446_v56 = vpack.c.bf16 %v1095_v44, %v1092_v14  ;;  %v1252_v14 = vld [vmem:[#allocation14 + $0x20] sm:$0xff]  ;;  %v12456_v44 = vpack.c.bf16 %v1101_v5, %v1098_v0  ;;  %v224_v0 = vld [vmem:[%s13904_s8] sm:$0x7] }
 0x2c3   :  { %9600 = vmatpush1.bf16.msra.mxu0 %v12438_v40  ;;  %v1249_v40 = vld [vmem:[#allocation14 + $0x8] sm:$0xff]  ;;  %14235 = vst [vmem:[#allocation120_spill] sm:$0xff] %v12460_v49  ;;  %v12473_v60 = vrot.slane %v224_v0, %v12191_v52  ;;  %v12476_v5 = vrot.slane %v224_v0, %v12193_v59  ;;  %v1255_v59 = vld [vmem:[#allocation14 + $0x38] sm:$0xff] }
 0x2c4   :  { %14231 = vst [vmem:[#allocation116_spill] sm:$0xff] %v12446_v56  ;;  %9602 = vmatprep.subr.bf16.mxu0 %v12443_v47  ;;  %14234 = vst [vmem:[#allocation119_spill] sm:$0xff] %v12456_v44  ;;  %v12462_v30 = vpack.c.bf16 %v1252_v14, %v1249_v40 }
 0x2c5   :  { %9614 = vmatpush3.bf16.msra.mxu1 %v12441_v4  ;;  %14237 = vst [vmem:[#allocation122_spill] sm:$0xff] %v12473_v60  ;;  %14238 = vst [vmem:[#allocation123_spill] sm:$0xff] %v12476_v5  ;;  %v12483_v4 = vld [vmem:[%s13905_s9] ss:$0 sm:$0xff] }
 0x2c6   :  { %9615 = vmatprep.subr.bf16.mxu1 %v14203_v17  ;;  %14236 = vst [vmem:[#allocation121_spill] sm:$0xff] %v12462_v30 }
 0x2c7   :  { %9604 = vmatpush1.bf16.msra.mxu0 %v12446_v56 }
 0x2c8   :  { %9606 = vmatprep.subr.bf16.mxu0 %v12452_v35 }
 0x2c9   :  { %9617 = vmatpush3.bf16.msra.mxu1 %v12450_v53 }
 0x2ca   :  { %9618 = vmatprep.subr.bf16.mxu1 %v14203_v17 }
 0x2cb   :  { %9608 = vmatpush1.bf16.msra.mxu0 %v12456_v44 }
 0x2cc   :  { %9622 = vmatprep.subr.bf16.mxu0 %v12462_v30 }
 0x2cd   :  { %9620 = vmatpush3.bf16.msra.mxu1 %v12460_v49 }
 0x2ce   :  { %9637 = vmatprep.subr.bf16.mxu1 %v14203_v17 }
 0x382   :  { %v889_v12 = vpop.f32.mrb[4].mxu1 }
 0x383   :  { %v8832_v22 = vpop.f32.mrb[5].mxu1 }
 0x391   :  { %v983_v40 = vpop.f32.mrb[4].mxu0 }
 0x392   :  { %v11117_v23 = vadd.f32 %v983_v40, %v12473_v60  ;;  %v985_v14 = vpop.f32.mrb[5].mxu0  ;;  %v12486_v40 = vrot.slane %v224_v0, %v12211_v39  ;;  %v1258_v0 = vld [vmem:[#allocation14 + $0x50] sm:$0xff] }
 0x393   :  { %v1054_v49 = vpop.f32.mrb[6].mxu1  ;;  %v11118_v35 = vadd.f32 %v985_v14, %v12476_v5  ;;  %v1251_v5 = vld [vmem:[#allocation14 + $0x18] sm:$0xff] }
 0x394   :  { %v8362_v30 = vmul.f32 -1.442695, %v11117_v23  ;;  %v8851_v44 = vpop.f32.mrb[7].mxu1  ;;  %14239 = vst [vmem:[#allocation124_spill] sm:$0xff] %v12486_v40 }
 0x395   :  { %v8363_v22 = vmul.f32 -1.442695, %v11118_v35  ;;  %v1072_v44 = vadd.f32 %v12483_v4, %v1054_v49  ;;  %v12492_v49 = vpack.c.bf16 %v1253_v45, %v1250_v57  ;;  %v1263_v57 = vld [vmem:[#allocation14 + $0x78] sm:$0xff] }
 0x396   :  { %11232 = vpow2.f32 %v8362_v30  ;;  %v890_v30 = vadd.f32 %v889_v12, %v12486_v40  ;;  %v1254_v12 = vld [vmem:[#allocation14 + $0x30] sm:$0xff]  ;;  %v1264_v40 = vld [vmem:[#allocation14 + $0x80] sm:$0xff] }
 0x397   :  { %11234 = vpow2.f32 %v8363_v22 }
 0x3a0   :  { %v11233_v53 = vpop.eup %11232 }
 0x3a1   :  { %v1062_v56 = vadd.f32 1.0, %v11233_v53  ;;  %v11235_v47 = vpop.eup %11234  ;;  %v1248_v53 = vld [vmem:[#allocation14] sm:$0xff] }
 0x3a2   :  { %v1069_v60 = vadd.f32 1.0, %v11235_v47  ;;  %v12490_v52 = vpack.c.bf16 %v1251_v5, %v1248_v53  ;;  %v1262_v5 = vld [vmem:[#allocation14 + $0x70] sm:$0xff]  ;;  %v1267_v53 = vld [vmem:[#allocation14 + $0x98] sm:$0xff] }
 0x3a3   :  { %11236 = vrcp.f32 %v1062_v56 }
 0x3a4   :  { %11238 = vrcp.f32 %v1069_v60 }
 0x3ad   :  { %v11237_v23 = vpop.eup %11236 }
 0x3ae   :  { %v1073_v35 = vmul.f32 %v11237_v23, %v1072_v44  ;;  %v11239_v56 = vpop.eup %11238  ;;  %v12496_v44 = vpack.c.bf16 %v1258_v0, %v1255_v59  ;;  %v1257_v23 = vld [vmem:[#allocation14 + $0x48] sm:$0xff]  ;;  %v1260_v59 = vld [vmem:[#allocation14 + $0x60] sm:$0xff] }
 0x3af   :  { %v1076_v22 = vsub.f32 1.0, %v11239_v56  ;;  %v1078_v47 = vmul.f32 0.0, %v11239_v56  ;;  %v12504_v45 = vpack.c.bf16 %v1257_v23, %v1254_v12  ;;  %v1265_v56 = vld [vmem:[#allocation14 + $0x88] sm:$0xff]  ;;  %v12517_v0 = vpack.c.bf16 %v1263_v57, %v1260_v59  ;;  %v14246_v57 = vld [vmem:[#allocation59_spill] sm:$0xff] }
 0x3b0   :  { %v1074_v14 = vadd.f32 %v1073_v35, %v890_v30  ;;  %v1256_v30 = vld [vmem:[#allocation14 + $0x40] sm:$0xff]  ;;  %v1259_v35 = vld [vmem:[#allocation14 + $0x58] sm:$0xff]  ;;  %v1269_v23 = vld [vmem:[#allocation14 + $0xa8] sm:$0xff] }
 0x3b1   :  { %14240 = vst [vmem:[#allocation125_spill] sm:$0xff] %v12517_v0 }
 0x3b2   :  { %11240 = vtanh.f32 %v1074_v14  ;;  %v1261_v14 = vld [vmem:[#allocation14 + $0x68] sm:$0xff] }
 0x3bc   :  { %v11241_v27 = vpop.eup %11240 }
 0x3bd   :  { %v1077_v39 = vmul.f32 %v11241_v27, %v1076_v22  ;;  %v12506_v27 = vpack.c.bf16 %v1259_v35, %v1256_v30  ;;  %v1270_v22 = vld [vmem:[#allocation14 + $0xb0] sm:$0xff]  ;;  %v1268_v30 = vld [vmem:[#allocation14 + $0xa0] sm:$0xff]  ;;  %v1271_v35 = vld [vmem:[#allocation14 + $0xb8] sm:$0xff] }
 0x3be   :  { %v12523_v12 = vpack.c.bf16 %v1270_v22, %v1267_v53  ;;  %v12529_v59 = vpack.c.bf16 %v1271_v35, %v1268_v30  ;;  %v14249_v53 = vld [vmem:[#allocation62_spill] sm:$0xff]  ;;  %v14250_v22 = vld [vmem:[#allocation63_spill] sm:$0xff] }
 0x3bf   :  { %v12494_v60 = vadd.f32 %v1078_v47, %v1077_v39  ;;  %v12510_v39 = vpack.c.bf16 %v1264_v40, %v1261_v14  ;;  %v12519_v47 = vpack.c.bf16 %v1265_v56, %v1262_v5  ;;  %v1266_v40 = vld [vmem:[#allocation14 + $0x90] sm:$0xff]  ;;  %v14247_v5 = vld [vmem:[#allocation60_spill] sm:$0xff]  ;;  %v14248_v56 = vld [vmem:[#allocation61_spill] sm:$0xff] }
 0x3c0   :  { %14242 = vst [vmem:[#allocation127_spill] sm:$0xff] %v12523_v12  ;;  %v12527_v14 = vpack.c.bf16 %v1269_v23, %v1266_v40  ;;  %14244 = vst [vmem:[#allocation129_spill] sm:$0xff] %v12529_v59  ;;  %v14251_v40 = vld [vmem:[#allocation64_spill] sm:$0xff]  ;;  %v14252_v23 = vld [vmem:[#allocation65_spill] sm:$0xff] }
 0x3c1   :  { %8364 = vmatmul.mubr.msk.f32.vlgmr.msra.gmra.mrb[6].mxu0 %vm314_vm1, %v12494_v60  ;;  %8869 = vmatmul.mubr.msk.f32.vlgmr.msra.gmra.mrb[8].mxu1 %vm314_vm1, %v12494_v60  ;;  %14241 = vst [vmem:[#allocation126_spill] sm:$0xff] %v12519_v47  ;;  %v14253_v30 = vld [vmem:[#allocation66_spill] sm:$0xff]  ;;  %v14254_v35 = vld [vmem:[#allocation67_spill] sm:$0xff] }
 0x3c2   :  { %9624 = vmatpush1.bf16.msra.mxu0 %v12490_v52  ;;  %9639 = vmatpush3.bf16.msra.mxu1 %v12492_v49  ;;  %14243 = vst [vmem:[#allocation128_spill] sm:$0xff] %v12527_v14 }
 0x3c3   :  { %9626 = vmatprep.subr.bf16.mxu0 %v12496_v44  ;;  %9640 = vmatprep.subr.bf16.mxu1 %v14203_v17 }
 0x3c4   :  { %1336 = vmatprep.mubr.f32.mxu0 %v14193_v1  ;;  %8887 = vmatprep.mubr.msk.f32.mxu1 %vm11824_vm0, %v14193_v1 }
 0x3c6   :  { %9628 = vmatpush1.bf16.msra.mxu0 %v12504_v45  ;;  %9642 = vmatpush3.bf16.msra.mxu1 %v12506_v27 }
 0x3c7   :  { %9630 = vmatprep.subr.bf16.mxu0 %v12510_v39  ;;  %9643 = vmatprep.subr.bf16.mxu1 %v14203_v17 }
 0x3ca   :  { %9632 = vmatpush1.bf16.msra.mxu0 %v12517_v0  ;;  %9645 = vmatpush3.bf16.msra.mxu1 %v12519_v47 }
 0x3cb   :  { %9634 = vmatprep.subr.bf16.mxu0 %v12523_v12  ;;  %9646 = vmatprep.subr.bf16.mxu1 %v14203_v17 }
 0x3ce   :  { %9636 = vmatpush1.bf16.msra.mxu0 %v12527_v14  ;;  %9648 = vmatpush3.bf16.msra.mxu1 %v12529_v59 }
 0x3cf   :  { %9650 = vmatprep.subr.bf16.mxu0 %v12020_v6  ;;  %9666 = vmatprep.subr.bf16.mxu1 %v12022_v10 }
 0x3d1   :  { %1337 = vmatmul.mubr.f32.vlgmr.msra.gmra.mrb[6].mxu0 %v14193_v1  ;;  %8888 = vmatmul.mubr.f32.vlgmr.msra.gmra.mrb[10].mxu1 %v14193_v1 }
 0x3d2   :  { %9652 = vmatpush1.bf16.msra.mxu0 %v12024_v11  ;;  %9668 = vmatpush1.bf16.msra.mxu1 %v12027_v15 }
 0x3d3   :  { %9654 = vmatprep.subr.bf16.mxu0 %v12031_v19  ;;  %9670 = vmatprep.subr.bf16.mxu1 %v12033_v20 }
 0x3d4   :  { %1513 = vmatprep.mubr.f32.mxu0 %v14193_v1  ;;  %1584 = vmatprep.mubr.f32.mxu1 %v14193_v1 }
 0x3d6   :  { %9656 = vmatpush1.bf16.msra.mxu0 %v12036_v24  ;;  %9672 = vmatpush1.bf16.msra.mxu1 %v12040_v28 }
 0x3d7   :  { %9658 = vmatprep.subr.bf16.mxu0 %v12042_v29  ;;  %9674 = vmatprep.subr.bf16.mxu1 %v12044_v33 }
 0x3da   :  { %9660 = vmatpush1.bf16.msra.mxu0 %v12047_v37  ;;  %9676 = vmatpush1.bf16.msra.mxu1 %v12051_v41 }
 0x3db   :  { %9662 = vmatprep.subr.bf16.mxu0 %v12053_v42  ;;  %9678 = vmatprep.subr.bf16.mxu1 %v12056_v46 }
 0x3de   :  { %9664 = vmatpush1.bf16.msra.mxu0 %v12062_v50  ;;  %9680 = vmatpush1.bf16.msra.mxu1 %v12066_v51 }
 0x3df   :  { %9682 = vmatprep.subr.bf16.mxu0 %v12095_v61  ;;  %9714 = vmatprep.subr.bf16.mxu1 %v12097_v2 }
 0x3e1   :  { %8369 = vmatmul.mubr.msk.f32.vlgmr.msra.gmra.mrb[8].mxu0 %vm314_vm1, %v12234_v26  ;;  %8370 = vmatmul.mubr.msk.f32.vlgmr.msra.gmra.mrb[12].mxu1 %vm314_vm1, %v12234_v26  ;;  %v14245_v26 = vld [vmem:[#allocation58_spill] sm:$0xff] }
 0x3e2   :  { %9684 = vmatpush1.bf16.msra.mxu0 %v12099_v3  ;;  %9716 = vmatpush1.bf16.msra.mxu1 %v12102_v7 }
 0x3e3   :  { %9686 = vmatprep.subr.bf16.mxu0 %v12107_v13  ;;  %9718 = vmatprep.subr.bf16.mxu1 %v12109_v18 }
 0x3e4   :  { %1690 = vmatprep.mubr.f32.mxu0 %v14193_v1  ;;  %1761 = vmatprep.mubr.f32.mxu1 %v14193_v1 }
 0x3e6   :  { %9688 = vmatpush1.bf16.msra.mxu0 %v12111_v21  ;;  %9720 = vmatpush1.bf16.msra.mxu1 %v12114_v25 }
 0x3e7   :  { %9690 = vmatprep.subr.bf16.mxu0 %v12119_v31  ;;  %9722 = vmatprep.subr.bf16.mxu1 %v12121_v36 }
 0x3ea   :  { %9692 = vmatpush1.bf16.msra.mxu0 %v12123_v38  ;;  %9724 = vmatpush1.bf16.msra.mxu1 %v12126_v43 }
 0x3eb   :  { %9694 = vmatprep.subr.bf16.mxu0 %v12131_v48  ;;  %9726 = vmatprep.subr.bf16.mxu1 %v12133_v54 }
 0x3ee   :  { %9696 = vmatpush1.bf16.msra.mxu0 %v12135_v55  ;;  %9728 = vmatpush1.bf16.msra.mxu1 %v12138_v58 }
 0x3ef   :  { %9698 = vmatprep.subr.bf16.mxu0 %v12143_v63  ;;  %9730 = vmatprep.subr.bf16.mxu1 %v12145_v8  ;;  %v14259_v8 = vld [vmem:[#allocation70_spill] sm:$0xff] }
 0x3f2   :  { %9700 = vmatpush1.bf16.msra.mxu0 %v12147_v9  ;;  %9732 = vmatpush1.bf16.msra.mxu1 %v12150_v16  ;;  %v1440_v9 = vpop.permute.xlu1 %1439 }
 0x3f3   :  { %9702 = vmatprep.subr.bf16.mxu0 %v12155_v32  ;;  %9734 = vmatprep.subr.bf16.mxu1 %v12157_v34  ;;  %v1442_v63 = vmul.f32 %v1440_v9, %v14259_v8 }
 0x3f6   :  { %9704 = vmatpush1.bf16.msra.mxu0 %v14245_v26  ;;  %9736 = vmatpush1.bf16.msra.mxu1 %v14246_v57  ;;  %v14257_v26 = vld [vmem:[#allocation69_spill] sm:$0xff] }
 0x3f7   :  { %9706 = vmatprep.subr.bf16.mxu0 %v14247_v5  ;;  %9738 = vmatprep.subr.bf16.mxu1 %v14248_v56  ;;  %v14255_v56 = vld [vmem:[#allocation68_spill] sm:$0xff] }
 0x3fa   :  { %9708 = vmatpush1.bf16.msra.mxu0 %v14249_v53  ;;  %9740 = vmatpush1.bf16.msra.mxu1 %v14250_v22  ;;  %v248_v53 = vld [vmem:[%s13908_s12] sm:$0x7] }
 0x3fb   :  { %9710 = vmatprep.subr.bf16.mxu0 %v14251_v40  ;;  %9742 = vmatprep.subr.bf16.mxu1 %v14252_v23  ;;  %v12599_v22 = vrot.slane %v248_v53, %v14255_v56  ;;  %v12602_v23 = vrot.slane %v248_v53, %v14257_v26  ;;  %v14260_v56 = vld [vmem:[#allocation71_spill] sm:$0xff] }
 0x3fc   :  { %v1443_v58 = vmul.f32 %v1440_v9, %v14260_v56  ;;  %v14264_v56 = vld [vmem:[#allocation76_spill] sm:$0xff] }
 0x3fd   :  { %14256 = vst [vmem:[#allocation68_spill] sm:$0xff] %v12599_v22  ;;  %14258 = vst [vmem:[#allocation69_spill] sm:$0xff] %v12602_v23 }
 0x3fe   :  { %9712 = vmatpush1.bf16.msra.mxu0 %v14253_v30  ;;  %9744 = vmatpush1.bf16.msra.mxu1 %v14254_v35 }
 0x3ff   :  { %9746 = vmatprep.subr.bf16.mxu0 %v12244_v62  ;;  %9761 = vmatprep.subr.bf16.mxu1 %v14203_v17 }
 0x494   :  { %v1244_v57 = vpop.f32.mrb[8].mxu1 }
 0x495   :  { %v8870_v5 = vpop.f32.mrb[9].mxu1 }
 0x4a4   :  { %v1338_v40 = vpop.f32.mrb[6].mxu0  ;;  %v1409_v30 = vpop.f32.mrb[10].mxu1 }
 0x4a5   :  { %v11119_v35 = vadd.f32 %v1338_v40, %v12599_v22  ;;  %v1340_v34 = vpop.f32.mrb[7].mxu0  ;;  %v8889_v62 = vpop.f32.mrb[11].mxu1 }
 0x4a6   :  { %v11120_v16 = vadd.f32 %v1340_v34, %v12602_v23  ;;  %v14262_v34 = vld [vmem:[#allocation73_spill] sm:$0xff] }
 0x4a7   :  { %v8366_v32 = vmul.f32 -1.442695, %v11119_v35  ;;  %v14261_v35 = vld [vmem:[#allocation72_spill] sm:$0xff] }
 0x4a8   :  { %v8367_v5 = vmul.f32 -1.442695, %v11120_v16  ;;  %v1445_v22 = vmul.f32 %v1440_v9, %v14261_v35  ;;  %v14263_v16 = vld [vmem:[#allocation75_spill] sm:$0xff] }
 0x4a9   :  { %11242 = vpow2.f32 %v8366_v32 }
 0x4aa   :  { %11244 = vpow2.f32 %v8367_v5 }
 0x4b3   :  { %v11243_v55 = vpop.eup %11242 }
 0x4b4   :  { %v1417_v54 = vadd.f32 1.0, %v11243_v55  ;;  %v1515_v26 = vpop.f32.mrb[8].mxu0  ;;  %v1586_v48 = vpop.f32.mrb[12].mxu1  ;;  %v1444_v55 = vmul.f32 %v1440_v9, %v14264_v56  ;;  %v14267_v56 = vld [vmem:[#allocation78_spill] sm:$0xff] }
 0x4b5   :  { %v1591_v43 = vadd.f32 %v1515_v26, %v1442_v63  ;;  %v1517_v38 = vpop.f32.mrb[9].mxu0  ;;  %v1588_v40 = vpop.f32.mrb[13].mxu1  ;;  %v12615_v63 = vld [vmem:[%s13909_s13] ss:$0 sm:$0xff] }
 0x4b6   :  { %11246 = vrcp.f32 %v1417_v54  ;;  %v1592_v62 = vadd.f32 %v1517_v38, %v1443_v58  ;;  %v11245_v36 = vpop.eup %11244  ;;  %v1594_v31 = vadd.f32 %v1588_v40, %v1445_v22  ;;  %v14265_v38 = vld [vmem:[#allocation74_spill] sm:$0xff] }
 0x4b7   :  { %v1595_v32 = vadd.f32 %v1591_v43, %v14262_v34  ;;  %v12618_v54 = vrot.slane %v248_v53, %v14265_v38  ;;  %v1424_v58 = vadd.f32 1.0, %v11245_v36  ;;  %v14266_v43 = vld [vmem:[#allocation77_spill] sm:$0xff] }
 0x4b8   :  { %v1596_v23 = vadd.f32 %v1592_v62, %v14263_v16  ;;  %v1598_v26 = vadd.f32 %v1594_v31, %v14266_v43  ;;  %v1427_v62 = vadd.f32 %v12615_v63, %v1409_v30 }
 0x4b9   :  { %v8371_v5 = vmul.f32 -1.442695, %v1595_v32  ;;  %v1593_v32 = vadd.f32 %v1586_v48, %v1444_v55  ;;  %v1245_v22 = vadd.f32 %v1244_v57, %v12618_v54 }
 0x4ba   :  { %v8372_v8 = vmul.f32 -1.442695, %v1596_v23  ;;  %v8373_v40 = vmul.f32 -1.442695, %v1598_v26 }
 0x4bb   :  { %11248 = vpow2.f32 %v8371_v5  ;;  %v1597_v35 = vadd.f32 %v1593_v32, %v14267_v56 }
 0x4bc   :  { %11250 = vpow2.f32 %v8372_v8 }
 0x4bd   :  { %11252 = vrcp.f32 %v1424_v58 }
 0x4c0   :  { %v11247_v23 = vpop.eup %11246 }
 0x4c1   :  { %v1428_v9 = vmul.f32 %v11247_v23, %v1427_v62 }
 0x4c3   :  { %v1429_v5 = vadd.f32 %v1428_v9, %v1245_v22  ;;  %v14268_v9 = vld [vmem:[#allocation79_spill] sm:$0xff] }
 0x4c5   :  { %v11249_v16 = vpop.eup %11248  ;;  %11254 = vtanh.f32 %v1429_v5 }
 0x4c6   :  { %v11251_v8 = vpop.eup %11250  ;;  %v1602_v53 = vadd.f32 1.0, %v11249_v16  ;;  %11256 = vpow2.f32 %v8373_v40 }
 0x4c7   :  { %11258 = vtanh.f32 %v1597_v35  ;;  %v1608_v36 = vadd.f32 1.0, %v11251_v8  ;;  %v11253_v31 = vpop.eup %11252 }
 0x4c8   :  { %11260 = vrcp.f32 %v1602_v53  ;;  %v1431_v48 = vsub.f32 1.0, %v11253_v31  ;;  %v1433_v38 = vmul.f32 0.0, %v11253_v31  ;;  %v1624_v53 = vpop.permute.xlu1 %1623  ;;  %v14270_v31 = vld [vmem:[#allocation81_spill] sm:$0xff] }
 0x4c9   :  { %11262 = vrcp.f32 %v1608_v36 }
 0x4cf   :  { %v11255_v30 = vpop.eup %11254 }
 0x4d0   :  { %v11257_v55 = vpop.eup %11256  ;;  %v1432_v57 = vmul.f32 %v11255_v30, %v1431_v48  ;;  %v14271_v48 = vld [vmem:[#allocation82_spill] sm:$0xff]  ;;  %v14272_v30 = vld [vmem:[#allocation83_spill] sm:$0xff] }
 0x4d1   :  { %v11259_v58 = vpop.eup %11258  ;;  %v1615_v22 = vadd.f32 1.0, %v11257_v55  ;;  %v14273_v55 = vld [vmem:[#allocation84_spill] sm:$0xff] }
 0x4d2   :  { %v11261_v26 = vpop.eup %11260  ;;  %v12624_v62 = vadd.f32 %v1433_v38, %v1432_v57  ;;  %v14274_v57 = vld [vmem:[#allocation85_spill] sm:$0xff]  ;;  %v14275_v38 = vld [vmem:[#allocation86_spill] sm:$0xff] }
 0x4d3   :  { %v11263_v32 = vpop.eup %11262  ;;  %v1619_v23 = vmul.f32 %v11261_v26, %v11259_v58  ;;  %11264 = vrcp.f32 %v1615_v22  ;;  %v14276_v58 = vld [vmem:[#allocation87_spill] sm:$0xff]  ;;  %v14277_v26 = vld [vmem:[#allocation88_spill] sm:$0xff] }
 0x4d4   :  { %v1618_v16 = vmul.f32 %v11263_v32, %v14268_v9  ;;  %v14278_v32 = vld [vmem:[#allocation89_spill] sm:$0xff]  ;;  %v14280_v22 = vld [vmem:[#allocation91_spill] sm:$0xff]  ;;  %v14281_v9 = vld [vmem:[#allocation92_spill] sm:$0xff] }
 0x4d6   :  { %v12627_v40 = vadd.f32 %v1619_v23, %v1618_v16  ;;  %v14279_v23 = vld [vmem:[#allocation90_spill] sm:$0xff] }
 0x4d8   :  { %14269 = vst [vmem:[#allocation73_spill] sm:$0xff] %v12627_v40  ;;  %11266 = vtanh.f32 %v12627_v40 }
 0x4dd   :  { %v11265_v35 = vpop.eup %11264 }
 0x4e2   :  { %v11267_v5 = vpop.eup %11266 }
 0x4e3   :  { %v12630_v8 = vmul.f32 %v11267_v5, %v11265_v35  ;;  %v14282_v5 = vld [vmem:[#allocation93_spill] sm:$0xff] }
 0x4e5   :  { %v1625_v36 = vadd.f32 %v1624_v53, %v12630_v8 }
 0x4e7   :  { %1691 = vmatmul.mubr.f32.vlgmr.msra.gmra.mrb[10].mxu0 %v1625_v36  ;;  %1762 = vmatmul.mubr.f32.vlgmr.msra.gmra.mrb[14].mxu1 %v1625_v36 }
 0x4e8   :  { %9748 = vmatpush1.bf16.msra.mxu0 %v14270_v31  ;;  %9763 = vmatpush3.bf16.msra.mxu1 %v14271_v48 }
 0x4e9   :  { %9750 = vmatprep.subr.bf16.mxu0 %v14272_v30  ;;  %9764 = vmatprep.subr.bf16.mxu1 %v14203_v17 }
 0x4ea   :  { %1859 = vmatprep.mubr.f32.mxu0 %v14193_v1  ;;  %8906 = vmatprep.mubr.msk.f32.mxu1 %vm11824_vm0, %v14193_v1 }
 0x4ec   :  { %9752 = vmatpush1.bf16.msra.mxu0 %v14273_v55  ;;  %9766 = vmatpush3.bf16.msra.mxu1 %v14274_v57  ;;  %v14284_v55 = vld [vmem:[#allocation95_spill] sm:$0xff] }
 0x4ed   :  { %9754 = vmatprep.subr.bf16.mxu0 %v14275_v38  ;;  %9767 = vmatprep.subr.bf16.mxu1 %v14203_v17  ;;  %v14283_v38 = vld [vmem:[#allocation94_spill] sm:$0xff] }
 0x4f0   :  { %9756 = vmatpush1.bf16.msra.mxu0 %v14276_v58  ;;  %9769 = vmatpush3.bf16.msra.mxu1 %v14277_v26 }
 0x4f1   :  { %9758 = vmatprep.subr.bf16.mxu0 %v14278_v32  ;;  %9770 = vmatprep.subr.bf16.mxu1 %v14203_v17 }
 0x4f4   :  { %9760 = vmatpush1.bf16.msra.mxu0 %v14279_v23  ;;  %9772 = vmatpush3.bf16.msra.mxu1 %v14280_v22  ;;  %v14285_v22 = vld [vmem:[#allocation96_spill] sm:$0xff] }
 0x4f5   :  { %9774 = vmatprep.subr.bf16.mxu0 %v14281_v9  ;;  %9789 = vmatprep.subr.bf16.mxu1 %v14203_v17 }
 0x5ba   :  { %v1692_v16 = vpop.f32.mrb[10].mxu0  ;;  %v1763_v35 = vpop.f32.mrb[14].mxu1 }
 0x5bb   :  { %v1693_v53 = vadd.f32 %v1692_v16, %v14282_v5  ;;  %v1694_v36 = vpop.f32.mrb[11].mxu0  ;;  %v1765_v58 = vpop.f32.mrb[15].mxu1  ;;  %v1764_v48 = vadd.f32 %v1763_v35, %v14285_v22  ;;  %v14293_v35 = vld [vmem:[#allocation102_spill] sm:$0xff]  ;;  %v14314_v22 = vld [vmem:[#allocation124_spill] sm:$0xff] }
 0x5bc   :  { %v1695_v26 = vadd.f32 %v1694_v36, %v14283_v38  ;;  %v1766_v23 = vadd.f32 %v1765_v58, %v14284_v55 }
 0x5bd   :  { %v8374_v57 = vmul.f32 -1.442695, %v1693_v53 }
 0x5be   :  { %v8375_v32 = vmul.f32 -1.442695, %v1695_v26  ;;  %v8376_v30 = vmul.f32 -1.442695, %v1766_v23 }
 0x5bf   :  { %11268 = vpow2.f32 %v8374_v57 }
 0x5c0   :  { %11270 = vpow2.f32 %v8375_v32  ;;  %v14286_v32 = vld [vmem:[#allocation97_spill] sm:$0xff] }
 0x5c1   :  { %11272 = vpow2.f32 %v8376_v30 }
 0x5c2   :  { %11274 = vtanh.f32 %v1764_v48  ;;  %v14291_v48 = vld [vmem:[#allocation101_spill] sm:$0xff] }
 0x5c9   :  { %v11269_v9 = vpop.eup %11268 }
 0x5ca   :  { %v11271_v31 = vpop.eup %11270  ;;  %v1771_v40 = vadd.f32 1.0, %v11269_v9 }
 0x5cb   :  { %v1777_v56 = vadd.f32 1.0, %v11271_v31  ;;  %v11273_v16 = vpop.eup %11272  ;;  %v14290_v31 = vld [vmem:[#allocation99_spill] sm:$0xff] }
 0x5cc   :  { %11276 = vrcp.f32 %v1771_v40  ;;  %v11275_v5 = vpop.eup %11274  ;;  %v1784_v57 = vadd.f32 1.0, %v11273_v16  ;;  %v14289_v40 = vld [vmem:[#allocation100_spill] sm:$0xff]  ;;  %v14295_v16 = vld [vmem:[#allocation106_spill] sm:$0xff] }
 0x5cd   :  { %11278 = vrcp.f32 %v1777_v56  ;;  %v14288_v56 = vld [vmem:[#allocation98_spill] sm:$0xff] }
 0x5ce   :  { %11280 = vrcp.f32 %v1784_v57  ;;  %v14299_v57 = vld [vmem:[#allocation109_spill] sm:$0xff] }
 0x5d6   :  { %v11277_v36 = vpop.eup %11276 }
 0x5d7   :  { %v11279_v53 = vpop.eup %11278  ;;  %v1788_v26 = vmul.f32 %v11277_v36, %v11275_v5  ;;  %v14294_v5 = vld [vmem:[#allocation104_spill] sm:$0xff]  ;;  %v14296_v36 = vld [vmem:[#allocation105_spill] sm:$0xff] }
 0x5d8   :  { %v1787_v38 = vmul.f32 %v11279_v53, %v14286_v32  ;;  %v11281_v23 = vpop.eup %11280  ;;  %v14297_v53 = vld [vmem:[#allocation107_spill] sm:$0xff]  ;;  %v14300_v32 = vld [vmem:[#allocation110_spill] sm:$0xff] }
 0x5da   :  { %v12657_v58 = vadd.f32 %v1788_v26, %v1787_v38  ;;  %v14292_v38 = vld [vmem:[#allocation103_spill] sm:$0xff]  ;;  %v14298_v26 = vld [vmem:[#allocation108_spill] sm:$0xff] }
 0x5dc   :  { %14287 = vst [vmem:[#allocation74_spill] sm:$0xff] %v12657_v58  ;;  %11282 = vtanh.f32 %v12657_v58 }
 0x5e6   :  { %v11283_v9 = vpop.eup %11282 }
 0x5e7   :  { %v1791_v30 = vmul.f32 %v11283_v9, %v11281_v23  ;;  %v14301_v23 = vld [vmem:[#allocation111_spill] sm:$0xff]  ;;  %v14302_v9 = vld [vmem:[#allocation112_spill] sm:$0xff] }
 0x5e9   :  { %2597 = vrot.lane.b32.xlu1 %v1791_v30, %s11822_s20  ;;  %8377 = vmatmul.mubr.msk.f32.vlgmr.msra.gmra.mrb[12].mxu0 %vm314_vm1, %v1791_v30 }
 0x5ea   :  { %8907 = vmatmul.mubr.msk.f32.vlgmr.msra.gmra.mrb[16].mxu1 %vm314_vm1, %v1791_v30  ;;  %9776 = vmatpush1.bf16.msra.mxu0 %v14288_v56  ;;  %v14303_v30 = vld [vmem:[#allocation113_spill] sm:$0xff] }
 0x5eb   :  { %9791 = vmatpush3.bf16.msra.mxu1 %v14289_v40  ;;  %9778 = vmatprep.subr.bf16.mxu0 %v14290_v31 }
 0x5ec   :  { %9792 = vmatprep.subr.bf16.mxu1 %v14203_v17  ;;  %2000 = vmatprep.mubr.f32.mxu0 %v14193_v1 }
 0x5ed   :  { %8925 = vmatprep.mubr.msk.f32.mxu1 %vm11824_vm0, %v14193_v1 }
 0x5ee   :  { %9780 = vmatpush1.bf16.msra.mxu0 %v14291_v48 }
 0x5ef   :  { %9794 = vmatpush3.bf16.msra.mxu1 %v14292_v38  ;;  %9782 = vmatprep.subr.bf16.mxu0 %v14293_v35 }
 0x5f0   :  { %9795 = vmatprep.subr.bf16.mxu1 %v14203_v17 }
 0x5f2   :  { %9784 = vmatpush1.bf16.msra.mxu0 %v14294_v5  ;;  %v14312_v5 = vld [vmem:[#allocation122_spill] sm:$0xff] }
 0x5f3   :  { %9797 = vmatpush3.bf16.msra.mxu1 %v14295_v16  ;;  %9786 = vmatprep.subr.bf16.mxu0 %v14296_v36  ;;  %v14310_v36 = vld [vmem:[#allocation120_spill] sm:$0xff]  ;;  %v14311_v16 = vld [vmem:[#allocation121_spill] sm:$0xff] }
 0x5f4   :  { %9798 = vmatprep.subr.bf16.mxu1 %v14203_v17 }
 0x5f6   :  { %9788 = vmatpush1.bf16.msra.mxu0 %v14297_v53  ;;  %v14309_v53 = vld [vmem:[#allocation119_spill] sm:$0xff] }
 0x5f7   :  { %9800 = vmatpush3.bf16.msra.mxu1 %v14298_v26  ;;  %9802 = vmatprep.subr.bf16.mxu0 %v14299_v57  ;;  %v14304_v57 = vld [vmem:[#allocation114_spill] sm:$0xff]  ;;  %v14305_v26 = vld [vmem:[#allocation115_spill] sm:$0xff] }
 0x5f8   :  { %9817 = vmatprep.subr.bf16.mxu1 %v14203_v17 }
 0x5f9   :  { %8379 = vmatmul.mubr.msk.f32.vlgmr.msra.gmra.mrb[12].mxu0 %vm314_vm1, %v12494_v60 }
 0x5fa   :  { %8926 = vmatmul.mubr.msk.f32.vlgmr.msra.gmra.mrb[18].mxu1 %vm314_vm1, %v12494_v60  ;;  %9804 = vmatpush1.bf16.msra.mxu0 %v14300_v32  ;;  %v14306_v32 = vld [vmem:[#allocation116_spill] sm:$0xff] }
 0x5fb   :  { %9819 = vmatpush3.bf16.msra.mxu1 %v14301_v23  ;;  %9806 = vmatprep.subr.bf16.mxu0 %v14302_v9  ;;  %v14307_v23 = vld [vmem:[#allocation117_spill] sm:$0xff]  ;;  %v14308_v9 = vld [vmem:[#allocation118_spill] sm:$0xff] }
 0x5fc   :  { %9820 = vmatprep.subr.bf16.mxu1 %v14203_v17  ;;  %2166 = vmatprep.mubr.f32.mxu0 %v14193_v1 }
 0x5fd   :  { %8944 = vmatprep.mubr.msk.f32.mxu1 %vm11824_vm0, %v14193_v1 }
 0x5fe   :  { %9808 = vmatpush1.bf16.msra.mxu0 %v14303_v30 }
 0x5ff   :  { %9822 = vmatpush3.bf16.msra.mxu1 %v14304_v57  ;;  %9810 = vmatprep.subr.bf16.mxu0 %v14305_v26 }
 0x600   :  { %9823 = vmatprep.subr.bf16.mxu1 %v14203_v17 }
 0x602   :  { %9812 = vmatpush1.bf16.msra.mxu0 %v14306_v32 }
 0x603   :  { %9825 = vmatpush3.bf16.msra.mxu1 %v14307_v23  ;;  %9814 = vmatprep.subr.bf16.mxu0 %v14308_v9  ;;  %v14313_v9 = vld [vmem:[#allocation123_spill] sm:$0xff] }
 0x604   :  { %9826 = vmatprep.subr.bf16.mxu1 %v14203_v17 }
 0x606   :  { %9816 = vmatpush1.bf16.msra.mxu0 %v14309_v53 }
 0x607   :  { %9828 = vmatpush3.bf16.msra.mxu1 %v14310_v36  ;;  %9830 = vmatprep.subr.bf16.mxu0 %v14311_v16 }
 0x608   :  { %9845 = vmatprep.subr.bf16.mxu1 %v14203_v17 }
 0x6bd   :  { %v1932_v57 = vpop.f32.mrb[16].mxu1 }
 0x6be   :  { %v8908_v26 = vpop.f32.mrb[17].mxu1  ;;  %v1933_v55 = vadd.f32 %v1932_v57, %v14314_v22  ;;  %v14325_v57 = vld [vmem:[#allocation54_spill] sm:$0xff] }
 0x6cc   :  { %v2002_v30 = vpop.f32.mrb[12].mxu0 }
 0x6cd   :  { %v11121_v35 = vadd.f32 %v2002_v30, %v14312_v5  ;;  %v2073_v32 = vpop.f32.mrb[18].mxu1  ;;  %v2004_v38 = vpop.f32.mrb[13].mxu0 }
 0x6ce   :  { %v8927_v23 = vpop.f32.mrb[19].mxu1  ;;  %v11122_v31 = vadd.f32 %v2004_v38, %v14313_v9  ;;  %v2091_v58 = vadd.f32 %v12483_v4, %v2073_v32  ;;  %v14315_v4 = vld [vmem:[#allocation44_spill] sm:$0xff]  ;;  %v14326_v32 = vld [vmem:[#allocation55_spill] sm:$0xff] }
 0x6cf   :  { %v8381_v48 = vmul.f32 -1.442695, %v11121_v35 }
 0x6d0   :  { %v8382_v40 = vmul.f32 -1.442695, %v11122_v31 }
 0x6d1   :  { %11284 = vpow2.f32 %v8381_v48 }
 0x6d2   :  { %11286 = vpow2.f32 %v8382_v40 }
 0x6db   :  { %v11285_v53 = vpop.eup %11284 }
 0x6dc   :  { %v2081_v36 = vadd.f32 1.0, %v11285_v53  ;;  %v11287_v16 = vpop.eup %11286  ;;  %v14324_v53 = vld [vmem:[#allocation53_spill] sm:$0xff] }
 0x6dd   :  { %v2088_v56 = vadd.f32 1.0, %v11287_v16  ;;  %v14322_v16 = vld [vmem:[#allocation51_spill] sm:$0xff] }
 0x6de   :  { %11288 = vrcp.f32 %v2081_v36  ;;  %v14323_v36 = vld [vmem:[#allocation52_spill] sm:$0xff] }
 0x6df   :  { %11290 = vrcp.f32 %v2088_v56  ;;  %v14320_v56 = vld [vmem:[#allocation49_spill] sm:$0xff] }
 0x6e8   :  { %v11289_v26 = vpop.eup %11288 }
 0x6e9   :  { %v2092_v30 = vmul.f32 %v11289_v26, %v2091_v58  ;;  %v11291_v35 = vpop.eup %11290  ;;  %v14319_v58 = vld [vmem:[#allocation48_spill] sm:$0xff] }
 0x6ea   :  { %v2095_v23 = vsub.f32 1.0, %v11291_v35  ;;  %v2097_v40 = vmul.f32 %v11291_v35, %v12494_v60  ;;  %v14316_v60 = vld [vmem:[#allocation45_spill] sm:$0xff]  ;;  %v14327_v26 = vld [vmem:[#allocation56_spill] sm:$0xff]  ;;  %v14329_v35 = vld [vmem:[#allocation58_spill] sm:$0xff] }
 0x6eb   :  { %v2093_v5 = vadd.f32 %v2092_v30, %v1933_v55  ;;  %v14318_v55 = vld [vmem:[#allocation47_spill] sm:$0xff]  ;;  %v14328_v30 = vld [vmem:[#allocation57_spill] sm:$0xff] }
 0x6ed   :  { %11292 = vtanh.f32 %v2093_v5  ;;  %v14321_v5 = vld [vmem:[#allocation50_spill] sm:$0xff] }
 0x6f7   :  { %v11293_v38 = vpop.eup %11292 }
 0x6f8   :  { %v2096_v48 = vmul.f32 %v11293_v38, %v2095_v23  ;;  %v14330_v23 = vld [vmem:[#allocation59_spill] sm:$0xff]  ;;  %v14331_v38 = vld [vmem:[#allocation60_spill] sm:$0xff] }
 0x6fa   :  { %v12710_v31 = vadd.f32 %v2097_v40, %v2096_v48  ;;  %v14332_v48 = vld [vmem:[#allocation61_spill] sm:$0xff]  ;;  %v14333_v40 = vld [vmem:[#allocation62_spill] sm:$0xff] }
 0x6fc   :  { %8383 = vmatmul.mubr.msk.f32.vlgmr.msra.gmra.mrb[14].mxu0 %vm314_vm1, %v12710_v31  ;;  %8945 = vmatmul.mubr.msk.f32.vlgmr.msra.gmra.mrb[20].mxu1 %vm314_vm1, %v12710_v31 }
 0x6fd   :  { %9832 = vmatpush1.bf16.msra.mxu0 %v12490_v52  ;;  %9847 = vmatpush3.bf16.msra.mxu1 %v12492_v49 }
 0x6fe   :  { %9834 = vmatprep.subr.bf16.mxu0 %v12496_v44  ;;  %9848 = vmatprep.subr.bf16.mxu1 %v14203_v17 }
 0x6ff   :  { %2310 = vmatprep.mubr.f32.mxu0 %v14193_v1  ;;  %8963 = vmatprep.mubr.msk.f32.mxu1 %vm11824_vm0, %v14193_v1 }
 0x701   :  { %9836 = vmatpush1.bf16.msra.mxu0 %v12504_v45  ;;  %9850 = vmatpush3.bf16.msra.mxu1 %v12506_v27 }
 0x702   :  { %9838 = vmatprep.subr.bf16.mxu0 %v12510_v39  ;;  %9851 = vmatprep.subr.bf16.mxu1 %v14203_v17 }
 0x705   :  { %9840 = vmatpush1.bf16.msra.mxu0 %v12517_v0  ;;  %9853 = vmatpush3.bf16.msra.mxu1 %v12519_v47 }
 0x706   :  { %9842 = vmatprep.subr.bf16.mxu0 %v12523_v12  ;;  %9854 = vmatprep.subr.bf16.mxu1 %v14203_v17 }
 0x709   :  { %9844 = vmatpush1.bf16.msra.mxu0 %v12527_v14  ;;  %9856 = vmatpush3.bf16.msra.mxu1 %v12529_v59 }
 0x70a   :  { %9858 = vmatprep.subr.bf16.mxu0 %v12020_v6  ;;  %9874 = vmatprep.subr.bf16.mxu1 %v12022_v10 }
 0x70c   :  { %8385 = vmatmul.mubr.msk.f32.vlgmr.msra.gmra.mrb[14].mxu0 %vm314_vm1, %v12624_v62  ;;  %8964 = vmatmul.mubr.msk.f32.vlgmr.msra.gmra.mrb[22].mxu1 %vm314_vm1, %v12624_v62 }
 0x70d   :  { %9860 = vmatpush1.bf16.msra.mxu0 %v12024_v11  ;;  %9876 = vmatpush1.bf16.msra.mxu1 %v12027_v15 }
 0x70e   :  { %9862 = vmatprep.subr.bf16.mxu0 %v12031_v19  ;;  %9878 = vmatprep.subr.bf16.mxu1 %v12033_v20 }
 0x70f   :  { %2487 = vmatprep.mubr.f32.mxu0 %v14193_v1  ;;  %2558 = vmatprep.mubr.f32.mxu1 %v14193_v1 }
 0x711   :  { %9864 = vmatpush1.bf16.msra.mxu0 %v12036_v24  ;;  %9880 = vmatpush1.bf16.msra.mxu1 %v12040_v28 }
 0x712   :  { %9866 = vmatprep.subr.bf16.mxu0 %v12042_v29  ;;  %9882 = vmatprep.subr.bf16.mxu1 %v12044_v33 }
 0x715   :  { %9868 = vmatpush1.bf16.msra.mxu0 %v12047_v37  ;;  %9884 = vmatpush1.bf16.msra.mxu1 %v12051_v41 }
 0x716   :  { %9870 = vmatprep.subr.bf16.mxu0 %v12053_v42  ;;  %9886 = vmatprep.subr.bf16.mxu1 %v12056_v46 }
 0x719   :  { %9872 = vmatpush1.bf16.msra.mxu0 %v12062_v50  ;;  %9888 = vmatpush1.bf16.msra.mxu1 %v12066_v51 }
 0x71a   :  { %9890 = vmatprep.subr.bf16.mxu0 %v12095_v61  ;;  %9922 = vmatprep.subr.bf16.mxu1 %v12097_v2 }
 0x71c   :  { %8390 = vmatmul.mubr.msk.f32.vlgmr.msra.gmra.mrb[16].mxu0 %vm314_vm1, %v12630_v8  ;;  %8391 = vmatmul.mubr.msk.f32.vlgmr.msra.gmra.mrb[24].mxu1 %vm314_vm1, %v12630_v8  ;;  %v14317_v8 = vld [vmem:[#allocation46_spill] sm:$0xff] }
 0x71d   :  { %9892 = vmatpush1.bf16.msra.mxu0 %v12099_v3  ;;  %9924 = vmatpush1.bf16.msra.mxu1 %v12102_v7  ;;  %v14346_v7 = vld [vmem:[#allocation76_spill] sm:$0xff] }
 0x71e   :  { %9894 = vmatprep.subr.bf16.mxu0 %v12107_v13  ;;  %9926 = vmatprep.subr.bf16.mxu1 %v12109_v18 }
 0x71f   :  { %2664 = vmatprep.mubr.f32.mxu0 %v14193_v1  ;;  %2735 = vmatprep.mubr.f32.mxu1 %v14193_v1 }
 0x721   :  { %9896 = vmatpush1.bf16.msra.mxu0 %v12111_v21  ;;  %9928 = vmatpush1.bf16.msra.mxu1 %v12114_v25 }
 0x722   :  { %9898 = vmatprep.subr.bf16.mxu0 %v14315_v4  ;;  %9930 = vmatprep.subr.bf16.mxu1 %v14316_v60 }
 0x725   :  { %9900 = vmatpush1.bf16.msra.mxu0 %v14317_v8  ;;  %9932 = vmatpush1.bf16.msra.mxu1 %v14318_v55  ;;  %v14342_v55 = vld [vmem:[#allocation70_spill] sm:$0xff] }
 0x726   :  { %9902 = vmatprep.subr.bf16.mxu0 %v14319_v58  ;;  %9934 = vmatprep.subr.bf16.mxu1 %v14320_v56 }
 0x729   :  { %9904 = vmatpush1.bf16.msra.mxu0 %v14321_v5  ;;  %9936 = vmatpush1.bf16.msra.mxu1 %v14322_v16  ;;  %v14340_v16 = vld [vmem:[#allocation68_spill] sm:$0xff] }
 0x72a   :  { %9906 = vmatprep.subr.bf16.mxu0 %v14323_v36  ;;  %9938 = vmatprep.subr.bf16.mxu1 %v14324_v53  ;;  %v14334_v36 = vld [vmem:[#allocation63_spill] sm:$0xff]  ;;  %v14335_v53 = vld [vmem:[#allocation64_spill] sm:$0xff] }
 0x72d   :  { %9908 = vmatpush1.bf16.msra.mxu0 %v14325_v57  ;;  %9940 = vmatpush1.bf16.msra.mxu1 %v14326_v32  ;;  %v14336_v57 = vld [vmem:[#allocation65_spill] sm:$0xff]  ;;  %v14337_v32 = vld [vmem:[#allocation66_spill] sm:$0xff] }
 0x72e   :  { %9910 = vmatprep.subr.bf16.mxu0 %v14327_v26  ;;  %9942 = vmatprep.subr.bf16.mxu1 %v14328_v30  ;;  %v14338_v26 = vld [vmem:[#allocation67_spill] sm:$0xff]  ;;  %v14339_v30 = vld [vmem:[#allocation80_spill] sm:$0xff] }
 0x731   :  { %9912 = vmatpush1.bf16.msra.mxu0 %v14329_v35  ;;  %9944 = vmatpush1.bf16.msra.mxu1 %v14330_v23 }
 0x732   :  { %9914 = vmatprep.subr.bf16.mxu0 %v14331_v38  ;;  %9946 = vmatprep.subr.bf16.mxu1 %v14332_v48 }
 0x735   :  { %9916 = vmatpush1.bf16.msra.mxu0 %v14333_v40  ;;  %9948 = vmatpush1.bf16.msra.mxu1 %v14334_v36 }
 0x736   :  { %9918 = vmatprep.subr.bf16.mxu0 %v14335_v53  ;;  %9950 = vmatprep.subr.bf16.mxu1 %v14336_v57  ;;  %v14341_v53 = vld [vmem:[#allocation69_spill] sm:$0xff] }
 0x739   :  { %9920 = vmatpush1.bf16.msra.mxu0 %v14337_v32  ;;  %9952 = vmatpush1.bf16.msra.mxu1 %v14338_v26  ;;  %v2414_v32 = vpop.permute.xlu0 %2413 }
 0x73a   :  { %9954 = vmatprep.subr.bf16.mxu0 %v14339_v30  ;;  %9969 = vmatprep.subr.bf16.mxu1 %v14203_v17  ;;  %v2416_v30 = vmul.f32 %v2414_v32, %v14342_v55 }
 0x7cf   :  { %v2239_v23 = vpop.f32.mrb[20].mxu1 }
 0x7d0   :  { %v8946_v38 = vpop.f32.mrb[21].mxu1 }
 0x7d1   :  { %v14343_v38 = vld [vmem:[#allocation71_spill] sm:$0xff] }
 0x7d2   :  { %v2417_v25 = vmul.f32 %v2414_v32, %v14343_v38  ;;  %v2418_v38 = vmul.f32 %v2414_v32, %v14346_v7 }
 0x7df   :  { %v2312_v35 = vpop.f32.mrb[14].mxu0  ;;  %v2383_v48 = vpop.f32.mrb[22].mxu1 }
 0x7e0   :  { %v11123_v40 = vadd.f32 %v2312_v35, %v14340_v16  ;;  %v2314_v5 = vpop.f32.mrb[15].mxu0  ;;  %v8965_v36 = vpop.f32.mrb[23].mxu1 }
 0x7e1   :  { %v11124_v58 = vadd.f32 %v2314_v5, %v14341_v53  ;;  %v14344_v5 = vld [vmem:[#allocation75_spill] sm:$0xff] }
 0x7e2   :  { %v8387_v56 = vmul.f32 -1.442695, %v11123_v40 }
 0x7e3   :  { %v8388_v57 = vmul.f32 -1.442695, %v11124_v58  ;;  %v14345_v58 = vld [vmem:[#allocation72_spill] sm:$0xff] }
 0x7e4   :  { %11294 = vpow2.f32 %v8387_v56 }
 0x7e5   :  { %11296 = vpow2.f32 %v8388_v57  ;;  %v2419_v57 = vmul.f32 %v2414_v32, %v14345_v58  ;;  %v14347_v58 = vld [vmem:[#allocation78_spill] sm:$0xff] }
 0x7ee   :  { %v11295_v26 = vpop.eup %11294 }
 0x7ef   :  { %v2391_v8 = vadd.f32 1.0, %v11295_v26  ;;  %v2489_v60 = vpop.f32.mrb[16].mxu0  ;;  %v2560_v4 = vpop.f32.mrb[24].mxu1 }
 0x7f0   :  { %v2565_v21 = vadd.f32 %v2489_v60, %v2416_v30  ;;  %v2491_v18 = vpop.f32.mrb[17].mxu0  ;;  %v2562_v35 = vpop.f32.mrb[25].mxu1 }
 0x7f1   :  { %11298 = vrcp.f32 %v2391_v8  ;;  %v2566_v36 = vadd.f32 %v2491_v18, %v2417_v25  ;;  %v11297_v16 = vpop.eup %11296  ;;  %v2568_v55 = vadd.f32 %v2562_v35, %v2419_v57  ;;  %v2401_v8 = vadd.f32 %v12615_v63, %v2383_v48 }
 0x7f2   :  { %v2569_v40 = vadd.f32 %v2565_v21, %v14262_v34  ;;  %v2398_v26 = vadd.f32 1.0, %v11297_v16  ;;  %v2567_v18 = vadd.f32 %v2560_v4, %v2418_v38  ;;  %v2240_v21 = vadd.f32 %v2239_v23, %v12618_v54 }
 0x7f3   :  { %v2570_v56 = vadd.f32 %v2566_v36, %v14344_v5  ;;  %v2572_v60 = vadd.f32 %v2568_v55, %v14266_v43 }
 0x7f4   :  { %v8392_v53 = vmul.f32 -1.442695, %v2569_v40 }
 0x7f5   :  { %v8393_v13 = vmul.f32 -1.442695, %v2570_v56  ;;  %v8394_v36 = vmul.f32 -1.442695, %v2572_v60  ;;  %v2571_v56 = vadd.f32 %v2567_v18, %v14347_v58 }
 0x7f6   :  { %11300 = vpow2.f32 %v8392_v53 }
 0x7f7   :  { %11302 = vpow2.f32 %v8393_v13 }
 0x7f8   :  { %11304 = vrcp.f32 %v2398_v26 }
 0x7fb   :  { %v11299_v25 = vpop.eup %11298 }
 0x7fc   :  { %v2402_v30 = vmul.f32 %v11299_v25, %v2401_v8  ;;  %v14348_v25 = vld [vmem:[#allocation73_spill] sm:$0xff] }
 0x7fe   :  { %v2403_v40 = vadd.f32 %v2402_v30, %v2240_v21 }
 0x800   :  { %v11301_v35 = vpop.eup %11300  ;;  %11306 = vtanh.f32 %v2403_v40 }
 0x801   :  { %v11303_v13 = vpop.eup %11302  ;;  %v2576_v16 = vadd.f32 1.0, %v11301_v35  ;;  %11308 = vpow2.f32 %v8394_v36  ;;  %v2598_v35 = vpop.permute.xlu1 %2597 }
 0x802   :  { %11310 = vtanh.f32 %v2571_v56  ;;  %v2582_v53 = vadd.f32 1.0, %v11303_v13  ;;  %v11305_v63 = vpop.eup %11304  ;;  %v14349_v13 = vld [vmem:[#allocation81_spill] sm:$0xff] }
 0x803   :  { %11312 = vrcp.f32 %v2576_v16  ;;  %v2405_v4 = vsub.f32 1.0, %v11305_v63  ;;  %v2407_v48 = vmul.f32 %v11305_v63, %v12624_v62  ;;  %v14350_v16 = vld [vmem:[#allocation82_spill] sm:$0xff]  ;;  %v14352_v63 = vld [vmem:[#allocation84_spill] sm:$0xff] }
 0x804   :  { %11314 = vrcp.f32 %v2582_v53  ;;  %v14351_v53 = vld [vmem:[#allocation83_spill] sm:$0xff] }
 0x80a   :  { %v11307_v55 = vpop.eup %11306 }
 0x80b   :  { %v11309_v32 = vpop.eup %11308  ;;  %v2406_v23 = vmul.f32 %v11307_v55, %v2405_v4  ;;  %v14353_v4 = vld [vmem:[#allocation85_spill] sm:$0xff]  ;;  %v14354_v55 = vld [vmem:[#allocation86_spill] sm:$0xff] }
 0x80c   :  { %v11311_v38 = vpop.eup %11310  ;;  %v2589_v18 = vadd.f32 1.0, %v11309_v32  ;;  %v14355_v32 = vld [vmem:[#allocation87_spill] sm:$0xff] }
 0x80d   :  { %v11313_v57 = vpop.eup %11312  ;;  %v12808_v26 = vadd.f32 %v2407_v48, %v2406_v23  ;;  %v14356_v23 = vld [vmem:[#allocation88_spill] sm:$0xff]  ;;  %v14357_v48 = vld [vmem:[#allocation89_spill] sm:$0xff] }
 0x80e   :  { %v11315_v60 = vpop.eup %11314  ;;  %v2593_v8 = vmul.f32 %v11313_v57, %v11311_v38  ;;  %11316 = vrcp.f32 %v2589_v18  ;;  %v14358_v38 = vld [vmem:[#allocation90_spill] sm:$0xff]  ;;  %v14359_v57 = vld [vmem:[#allocation91_spill] sm:$0xff] }
 0x80f   :  { %v2592_v21 = vmul.f32 %v11315_v60, %v14348_v25  ;;  %v14360_v60 = vld [vmem:[#allocation92_spill] sm:$0xff]  ;;  %v14361_v25 = vld [vmem:[#allocation93_spill] sm:$0xff] }
 0x811   :  { %v12811_v30 = vadd.f32 %v2593_v8, %v2592_v21 }
 0x813   :  { %11318 = vtanh.f32 %v12811_v30 }
 0x818   :  { %v11317_v36 = vpop.eup %11316 }
 0x81d   :  { %v11319_v40 = vpop.eup %11318 }
 0x81e   :  { %v12814_v56 = vmul.f32 %v11319_v40, %v11317_v36 }
 0x820   :  { %v2599_v62 = vadd.f32 %v2598_v35, %v12814_v56  ;;  %v14362_v35 = vld [vmem:[#allocation94_spill] sm:$0xff] }
 0x822   :  { %2665 = vmatmul.mubr.f32.vlgmr.msra.gmra.mrb[18].mxu0 %v2599_v62  ;;  %2736 = vmatmul.mubr.f32.vlgmr.msra.gmra.mrb[26].mxu1 %v2599_v62 }
 0x823   :  { %9956 = vmatpush1.bf16.msra.mxu0 %v14349_v13  ;;  %9971 = vmatpush3.bf16.msra.mxu1 %v14350_v16 }
 0x824   :  { %9958 = vmatprep.subr.bf16.mxu0 %v14351_v53  ;;  %9972 = vmatprep.subr.bf16.mxu1 %v14203_v17 }
 0x825   :  { %2833 = vmatprep.mubr.f32.mxu0 %v14193_v1  ;;  %8982 = vmatprep.mubr.msk.f32.mxu1 %vm11824_vm0, %v14193_v1 }
 0x827   :  { %9960 = vmatpush1.bf16.msra.mxu0 %v14352_v63  ;;  %9974 = vmatpush3.bf16.msra.mxu1 %v14353_v4 }
 0x828   :  { %9962 = vmatprep.subr.bf16.mxu0 %v14354_v55  ;;  %9975 = vmatprep.subr.bf16.mxu1 %v14203_v17 }
 0x82b   :  { %9964 = vmatpush1.bf16.msra.mxu0 %v14355_v32  ;;  %9977 = vmatpush3.bf16.msra.mxu1 %v14356_v23  ;;  %v14363_v32 = vld [vmem:[#allocation95_spill] sm:$0xff] }
 0x82c   :  { %9966 = vmatprep.subr.bf16.mxu0 %v14357_v48  ;;  %9978 = vmatprep.subr.bf16.mxu1 %v14203_v17 }
 0x82f   :  { %9968 = vmatpush1.bf16.msra.mxu0 %v14358_v38  ;;  %9980 = vmatpush3.bf16.msra.mxu1 %v14359_v57  ;;  %v14364_v57 = vld [vmem:[#allocation96_spill] sm:$0xff] }
 0x830   :  { %9982 = vmatprep.subr.bf16.mxu0 %v14360_v60  ;;  %9997 = vmatprep.subr.bf16.mxu1 %v14203_v17 }
 0x8f5   :  { %v2666_v8 = vpop.f32.mrb[18].mxu0  ;;  %v2737_v18 = vpop.f32.mrb[26].mxu1 }
 0x8f6   :  { %v2667_v21 = vadd.f32 %v2666_v8, %v14361_v25  ;;  %v2668_v36 = vpop.f32.mrb[19].mxu0  ;;  %v2739_v40 = vpop.f32.mrb[27].mxu1  ;;  %v2738_v4 = vadd.f32 %v2737_v18, %v14364_v57  ;;  %v14370_v18 = vld [vmem:[#allocation103_spill] sm:$0xff] }
 0x8f7   :  { %v2669_v62 = vadd.f32 %v2668_v36, %v14362_v35  ;;  %v2740_v38 = vadd.f32 %v2739_v40, %v14363_v32 }
 0x8f8   :  { %v8395_v23 = vmul.f32 -1.442695, %v2667_v21 }
 0x8f9   :  { %v8396_v48 = vmul.f32 -1.442695, %v2669_v62  ;;  %v8397_v55 = vmul.f32 -1.442695, %v2740_v38 }
 0x8fa   :  { %11320 = vpow2.f32 %v8395_v23 }
 0x8fb   :  { %11322 = vpow2.f32 %v8396_v48  ;;  %v14365_v48 = vld [vmem:[#allocation74_spill] sm:$0xff] }
 0x8fc   :  { %11324 = vpow2.f32 %v8397_v55 }
 0x8fd   :  { %11326 = vtanh.f32 %v2738_v4  ;;  %v14369_v4 = vld [vmem:[#allocation101_spill] sm:$0xff] }
 0x904   :  { %v11321_v60 = vpop.eup %11320 }
 0x905   :  { %v11323_v63 = vpop.eup %11322  ;;  %v2745_v53 = vadd.f32 1.0, %v11321_v60 }
 0x906   :  { %v2751_v16 = vadd.f32 1.0, %v11323_v63  ;;  %v11325_v8 = vpop.eup %11324  ;;  %v14368_v63 = vld [vmem:[#allocation99_spill] sm:$0xff] }
 0x907   :  { %11328 = vrcp.f32 %v2745_v53  ;;  %v11327_v25 = vpop.eup %11326  ;;  %v2758_v23 = vadd.f32 1.0, %v11325_v8  ;;  %v14367_v53 = vld [vmem:[#allocation100_spill] sm:$0xff]  ;;  %v14373_v8 = vld [vmem:[#allocation106_spill] sm:$0xff] }
 0x908   :  { %11330 = vrcp.f32 %v2751_v16  ;;  %v14366_v16 = vld [vmem:[#allocation98_spill] sm:$0xff] }
 0x909   :  { %11332 = vrcp.f32 %v2758_v23  ;;  %v14377_v23 = vld [vmem:[#allocation109_spill] sm:$0xff] }
 0x911   :  { %v11329_v36 = vpop.eup %11328 }
 0x912   :  { %v11331_v21 = vpop.eup %11330  ;;  %v2762_v62 = vmul.f32 %v11329_v36, %v11327_v25  ;;  %v14371_v25 = vld [vmem:[#allocation102_spill] sm:$0xff]  ;;  %v14374_v36 = vld [vmem:[#allocation105_spill] sm:$0xff] }
 0x913   :  { %v2761_v35 = vmul.f32 %v11331_v21, %v14365_v48  ;;  %v11333_v38 = vpop.eup %11332  ;;  %v14375_v21 = vld [vmem:[#allocation107_spill] sm:$0xff]  ;;  %v14378_v48 = vld [vmem:[#allocation110_spill] sm:$0xff] }
 0x915   :  { %v12841_v40 = vadd.f32 %v2762_v62, %v2761_v35  ;;  %v14372_v35 = vld [vmem:[#allocation104_spill] sm:$0xff] }
 0x916   :  { %v14376_v62 = vld [vmem:[#allocation108_spill] sm:$0xff] }
 0x917   :  { %11334 = vtanh.f32 %v12841_v40 }
 0x921   :  { %v11335_v60 = vpop.eup %11334 }
 0x922   :  { %v2765_v55 = vmul.f32 %v11335_v60, %v11333_v38  ;;  %v14379_v38 = vld [vmem:[#allocation111_spill] sm:$0xff]  ;;  %v14380_v60 = vld [vmem:[#allocation112_spill] sm:$0xff] }
 0x924   :  { %3571 = vrot.lane.b32.xlu1 %v2765_v55, %s11822_s20  ;;  %8398 = vmatmul.mubr.msk.f32.vlgmr.msra.gmra.mrb[20].mxu0 %vm314_vm1, %v2765_v55 }
 0x925   :  { %8983 = vmatmul.mubr.msk.f32.vlgmr.msra.gmra.mrb[28].mxu1 %vm314_vm1, %v2765_v55  ;;  %9984 = vmatpush1.bf16.msra.mxu0 %v14366_v16  ;;  %v14381_v55 = vld [vmem:[#allocation113_spill] sm:$0xff] }
 0x926   :  { %9999 = vmatpush3.bf16.msra.mxu1 %v14367_v53  ;;  %9986 = vmatprep.subr.bf16.mxu0 %v14368_v63 }
 0x927   :  { %10000 = vmatprep.subr.bf16.mxu1 %v14203_v17  ;;  %2974 = vmatprep.mubr.f32.mxu0 %v14193_v1 }
 0x928   :  { %9001 = vmatprep.mubr.msk.f32.mxu1 %vm11824_vm0, %v14193_v1 }
 0x929   :  { %9988 = vmatpush1.bf16.msra.mxu0 %v14369_v4 }
 0x92a   :  { %10002 = vmatpush3.bf16.msra.mxu1 %v14370_v18  ;;  %9990 = vmatprep.subr.bf16.mxu0 %v14371_v25 }
 0x92b   :  { %10003 = vmatprep.subr.bf16.mxu1 %v14203_v17 }
 0x92d   :  { %9992 = vmatpush1.bf16.msra.mxu0 %v14372_v35  ;;  %v14390_v35 = vld [vmem:[#allocation122_spill] sm:$0xff] }
 0x92e   :  { %10005 = vmatpush3.bf16.msra.mxu1 %v14373_v8  ;;  %9994 = vmatprep.subr.bf16.mxu0 %v14374_v36  ;;  %v14388_v36 = vld [vmem:[#allocation120_spill] sm:$0xff]  ;;  %v14389_v8 = vld [vmem:[#allocation121_spill] sm:$0xff] }
 0x92f   :  { %10006 = vmatprep.subr.bf16.mxu1 %v14203_v17 }
 0x931   :  { %9996 = vmatpush1.bf16.msra.mxu0 %v14375_v21  ;;  %v14387_v21 = vld [vmem:[#allocation119_spill] sm:$0xff] }
 0x932   :  { %10008 = vmatpush3.bf16.msra.mxu1 %v14376_v62  ;;  %10010 = vmatprep.subr.bf16.mxu0 %v14377_v23  ;;  %v14382_v23 = vld [vmem:[#allocation114_spill] sm:$0xff]  ;;  %v14383_v62 = vld [vmem:[#allocation115_spill] sm:$0xff] }
 0x933   :  { %10025 = vmatprep.subr.bf16.mxu1 %v14203_v17 }
 0x934   :  { %8400 = vmatmul.mubr.msk.f32.vlgmr.msra.gmra.mrb[20].mxu0 %vm314_vm1, %v12710_v31 }
 0x935   :  { %9002 = vmatmul.mubr.msk.f32.vlgmr.msra.gmra.mrb[30].mxu1 %vm314_vm1, %v12710_v31  ;;  %10012 = vmatpush1.bf16.msra.mxu0 %v14378_v48  ;;  %v14384_v48 = vld [vmem:[#allocation116_spill] sm:$0xff] }
 0x936   :  { %10027 = vmatpush3.bf16.msra.mxu1 %v14379_v38  ;;  %10014 = vmatprep.subr.bf16.mxu0 %v14380_v60  ;;  %v14385_v38 = vld [vmem:[#allocation117_spill] sm:$0xff]  ;;  %v14386_v60 = vld [vmem:[#allocation118_spill] sm:$0xff] }
 0x937   :  { %10028 = vmatprep.subr.bf16.mxu1 %v14203_v17  ;;  %3140 = vmatprep.mubr.f32.mxu0 %v14193_v1 }
 0x938   :  { %9020 = vmatprep.mubr.msk.f32.mxu1 %vm11824_vm0, %v14193_v1 }
 0x939   :  { %10016 = vmatpush1.bf16.msra.mxu0 %v14381_v55 }
 0x93a   :  { %10030 = vmatpush3.bf16.msra.mxu1 %v14382_v23  ;;  %10018 = vmatprep.subr.bf16.mxu0 %v14383_v62 }
 0x93b   :  { %10031 = vmatprep.subr.bf16.mxu1 %v14203_v17 }
 0x93d   :  { %10020 = vmatpush1.bf16.msra.mxu0 %v14384_v48 }
 0x93e   :  { %10033 = vmatpush3.bf16.msra.mxu1 %v14385_v38  ;;  %10022 = vmatprep.subr.bf16.mxu0 %v14386_v60 }
 0x93f   :  { %10034 = vmatprep.subr.bf16.mxu1 %v14203_v17 }
 0x941   :  { %10024 = vmatpush1.bf16.msra.mxu0 %v14387_v21 }
 0x942   :  { %10036 = vmatpush3.bf16.msra.mxu1 %v14388_v36  ;;  %10038 = vmatprep.subr.bf16.mxu0 %v14389_v8 }
 0x943   :  { %10053 = vmatprep.subr.bf16.mxu1 %v14203_v17 }
 0x9f8   :  { %v2906_v23 = vpop.f32.mrb[28].mxu1 }
 0x9f9   :  { %v8984_v62 = vpop.f32.mrb[29].mxu1 }
 0x9fa   :  { %v12894_v62 = vld [vmem:[%s13905_s9] ss:$0 sm:$0xff] }
 0xa07   :  { %v2976_v55 = vpop.f32.mrb[20].mxu0 }
 0xa08   :  { %v11125_v25 = vadd.f32 %v2976_v55, %v14390_v35  ;;  %v3047_v48 = vpop.f32.mrb[30].mxu1  ;;  %v2978_v18 = vpop.f32.mrb[21].mxu0 }
 0xa09   :  { %v9003_v38 = vpop.f32.mrb[31].mxu1  ;;  %v11126_v60 = vadd.f32 %v2978_v18, %v14313_v9  ;;  %v3065_v55 = vadd.f32 %v12894_v62, %v3047_v48  ;;  %v14395_v48 = vld [vmem:[#allocation43_spill] sm:$0xff] }
 0xa0a   :  { %v8402_v4 = vmul.f32 -1.442695, %v11125_v25  ;;  %v2907_v25 = vadd.f32 %v2906_v23, %v14314_v22  ;;  %v14394_v23 = vld [vmem:[#allocation42_spill] sm:$0xff] }
 0xa0b   :  { %v8403_v63 = vmul.f32 -1.442695, %v11126_v60 }
 0xa0c   :  { %11336 = vpow2.f32 %v8402_v4 }
 0xa0d   :  { %11338 = vpow2.f32 %v8403_v63 }
 0xa16   :  { %v11337_v21 = vpop.eup %11336 }
 0xa17   :  { %v3055_v36 = vadd.f32 1.0, %v11337_v21  ;;  %v11339_v8 = vpop.eup %11338 }
 0xa18   :  { %v3062_v53 = vadd.f32 1.0, %v11339_v8 }
 0xa19   :  { %11340 = vrcp.f32 %v3055_v36 }
 0xa1a   :  { %11342 = vrcp.f32 %v3062_v53  ;;  %v14392_v53 = vld [vmem:[#allocation40_spill] sm:$0xff] }
 0xa23   :  { %v11341_v35 = vpop.eup %11340 }
 0xa24   :  { %v3066_v38 = vmul.f32 %v11341_v35, %v3065_v55  ;;  %v11343_v63 = vpop.eup %11342  ;;  %v14393_v35 = vld [vmem:[#allocation41_spill] sm:$0xff]  ;;  %v14396_v55 = vld [vmem:[#allocation44_spill] sm:$0xff] }
 0xa25   :  { %v3069_v18 = vsub.f32 1.0, %v11343_v63  ;;  %v3071_v8 = vmul.f32 %v11343_v63, %v12710_v31  ;;  %v14391_v31 = vld [vmem:[#allocation39_spill] sm:$0xff]  ;;  %v14401_v63 = vld [vmem:[#allocation49_spill] sm:$0xff] }
 0xa26   :  { %v3067_v4 = vadd.f32 %v3066_v38, %v2907_v25  ;;  %v14397_v25 = vld [vmem:[#allocation45_spill] sm:$0xff]  ;;  %v14399_v38 = vld [vmem:[#allocation47_spill] sm:$0xff] }
 0xa28   :  { %11344 = vtanh.f32 %v3067_v4  ;;  %v14400_v4 = vld [vmem:[#allocation48_spill] sm:$0xff] }
 0xa32   :  { %v11345_v21 = vpop.eup %11344 }
 0xa33   :  { %v3070_v36 = vmul.f32 %v11345_v21, %v3069_v18  ;;  %v14402_v18 = vld [vmem:[#allocation50_spill] sm:$0xff]  ;;  %v14403_v21 = vld [vmem:[#allocation51_spill] sm:$0xff] }
 0xa35   :  { %v12899_v60 = vadd.f32 %v3071_v8, %v3070_v36  ;;  %v14404_v36 = vld [vmem:[#allocation52_spill] sm:$0xff]  ;;  %v14405_v8 = vld [vmem:[#allocation53_spill] sm:$0xff] }
 0xa37   :  { %8404 = vmatmul.mubr.msk.f32.vlgmr.msra.gmra.mrb[22].mxu0 %vm314_vm1, %v12899_v60  ;;  %9021 = vmatmul.mubr.msk.f32.vlgmr.msra.gmra.mrb[32].mxu1 %vm314_vm1, %v12899_v60 }
 0xa38   :  { %10040 = vmatpush1.bf16.msra.mxu0 %v12490_v52  ;;  %10055 = vmatpush3.bf16.msra.mxu1 %v12492_v49 }
 0xa39   :  { %10042 = vmatprep.subr.bf16.mxu0 %v12496_v44  ;;  %10056 = vmatprep.subr.bf16.mxu1 %v14203_v17 }
 0xa3a   :  { %3284 = vmatprep.mubr.f32.mxu0 %v14193_v1  ;;  %9039 = vmatprep.mubr.msk.f32.mxu1 %vm11824_vm0, %v14193_v1 }
 0xa3c   :  { %10044 = vmatpush1.bf16.msra.mxu0 %v12504_v45  ;;  %10058 = vmatpush3.bf16.msra.mxu1 %v12506_v27 }
 0xa3d   :  { %10046 = vmatprep.subr.bf16.mxu0 %v12510_v39  ;;  %10059 = vmatprep.subr.bf16.mxu1 %v14203_v17 }
 0xa40   :  { %10048 = vmatpush1.bf16.msra.mxu0 %v12517_v0  ;;  %10061 = vmatpush3.bf16.msra.mxu1 %v12519_v47 }
 0xa41   :  { %10050 = vmatprep.subr.bf16.mxu0 %v12523_v12  ;;  %10062 = vmatprep.subr.bf16.mxu1 %v14203_v17 }
 0xa44   :  { %10052 = vmatpush1.bf16.msra.mxu0 %v12527_v14  ;;  %10064 = vmatpush3.bf16.msra.mxu1 %v12529_v59 }
 0xa45   :  { %10066 = vmatprep.subr.bf16.mxu0 %v12020_v6  ;;  %10082 = vmatprep.subr.bf16.mxu1 %v12022_v10 }
 0xa47   :  { %8406 = vmatmul.mubr.msk.f32.vlgmr.msra.gmra.mrb[22].mxu0 %vm314_vm1, %v12808_v26  ;;  %9040 = vmatmul.mubr.msk.f32.vlgmr.msra.gmra.mrb[34].mxu1 %vm314_vm1, %v12808_v26 }
 0xa48   :  { %10068 = vmatpush1.bf16.msra.mxu0 %v12024_v11  ;;  %10084 = vmatpush1.bf16.msra.mxu1 %v12027_v15 }
 0xa49   :  { %10070 = vmatprep.subr.bf16.mxu0 %v12031_v19  ;;  %10086 = vmatprep.subr.bf16.mxu1 %v12033_v20 }
 0xa4a   :  { %3461 = vmatprep.mubr.f32.mxu0 %v14193_v1  ;;  %3532 = vmatprep.mubr.f32.mxu1 %v14193_v1 }
 0xa4c   :  { %10072 = vmatpush1.bf16.msra.mxu0 %v12036_v24  ;;  %10088 = vmatpush1.bf16.msra.mxu1 %v12040_v28 }
 0xa4d   :  { %10074 = vmatprep.subr.bf16.mxu0 %v12042_v29  ;;  %10090 = vmatprep.subr.bf16.mxu1 %v12044_v33 }
 0xa50   :  { %10076 = vmatpush1.bf16.msra.mxu0 %v12047_v37  ;;  %10092 = vmatpush1.bf16.msra.mxu1 %v12051_v41 }
 0xa51   :  { %10078 = vmatprep.subr.bf16.mxu0 %v12053_v42  ;;  %10094 = vmatprep.subr.bf16.mxu1 %v12056_v46 }
 0xa54   :  { %10080 = vmatpush1.bf16.msra.mxu0 %v12062_v50  ;;  %10096 = vmatpush1.bf16.msra.mxu1 %v12066_v51 }
 0xa55   :  { %10098 = vmatprep.subr.bf16.mxu0 %v12095_v61  ;;  %10130 = vmatprep.subr.bf16.mxu1 %v12097_v2 }
 0xa57   :  { %8411 = vmatmul.mubr.msk.f32.vlgmr.msra.gmra.mrb[24].mxu0 %vm314_vm1, %v12814_v56  ;;  %8412 = vmatmul.mubr.msk.f32.vlgmr.msra.gmra.mrb[36].mxu1 %vm314_vm1, %v12814_v56  ;;  %v14398_v56 = vld [vmem:[#allocation46_spill] sm:$0xff] }
 0xa58   :  { %10100 = vmatpush1.bf16.msra.mxu0 %v12099_v3  ;;  %10132 = vmatpush1.bf16.msra.mxu1 %v14391_v31  ;;  %v14423_v3 = vld [vmem:[#allocation70_spill] sm:$0xff] }
 0xa59   :  { %10102 = vmatprep.subr.bf16.mxu0 %v14392_v53  ;;  %10134 = vmatprep.subr.bf16.mxu1 %v14393_v35 }
 0xa5a   :  { %3638 = vmatprep.mubr.f32.mxu0 %v14193_v1  ;;  %3709 = vmatprep.mubr.f32.mxu1 %v14193_v1 }
 0xa5c   :  { %10104 = vmatpush1.bf16.msra.mxu0 %v14394_v23  ;;  %10136 = vmatpush1.bf16.msra.mxu1 %v14395_v48  ;;  %v14406_v48 = vld [vmem:[#allocation54_spill] sm:$0xff]  ;;  %v14421_v23 = vld [vmem:[#allocation68_spill] sm:$0xff] }
 0xa5d   :  { %10106 = vmatprep.subr.bf16.mxu0 %v14396_v55  ;;  %10138 = vmatprep.subr.bf16.mxu1 %v14397_v25  ;;  %v14407_v55 = vld [vmem:[#allocation55_spill] sm:$0xff]  ;;  %v14408_v25 = vld [vmem:[#allocation56_spill] sm:$0xff] }
 0xa60   :  { %10108 = vmatpush1.bf16.msra.mxu0 %v14398_v56  ;;  %10140 = vmatpush1.bf16.msra.mxu1 %v14399_v38  ;;  %v14409_v56 = vld [vmem:[#allocation57_spill] sm:$0xff]  ;;  %v14410_v38 = vld [vmem:[#allocation58_spill] sm:$0xff] }
 0xa61   :  { %10110 = vmatprep.subr.bf16.mxu0 %v14400_v4  ;;  %10142 = vmatprep.subr.bf16.mxu1 %v14401_v63  ;;  %v14411_v4 = vld [vmem:[#allocation59_spill] sm:$0xff]  ;;  %v14412_v63 = vld [vmem:[#allocation60_spill] sm:$0xff] }
 0xa64   :  { %10112 = vmatpush1.bf16.msra.mxu0 %v14402_v18  ;;  %10144 = vmatpush1.bf16.msra.mxu1 %v14403_v21  ;;  %v14413_v18 = vld [vmem:[#allocation61_spill] sm:$0xff]  ;;  %v14414_v21 = vld [vmem:[#allocation62_spill] sm:$0xff] }
 0xa65   :  { %10114 = vmatprep.subr.bf16.mxu0 %v14404_v36  ;;  %10146 = vmatprep.subr.bf16.mxu1 %v14405_v8  ;;  %v14415_v36 = vld [vmem:[#allocation63_spill] sm:$0xff]  ;;  %v14416_v8 = vld [vmem:[#allocation64_spill] sm:$0xff] }
 0xa68   :  { %10116 = vmatpush1.bf16.msra.mxu0 %v14406_v48  ;;  %10148 = vmatpush1.bf16.msra.mxu1 %v14407_v55  ;;  %v14417_v48 = vld [vmem:[#allocation65_spill] sm:$0xff]  ;;  %v14418_v55 = vld [vmem:[#allocation66_spill] sm:$0xff] }
 0xa69   :  { %10118 = vmatprep.subr.bf16.mxu0 %v14408_v25  ;;  %10150 = vmatprep.subr.bf16.mxu1 %v14409_v56  ;;  %v14419_v25 = vld [vmem:[#allocation67_spill] sm:$0xff]  ;;  %v14420_v56 = vld [vmem:[#allocation80_spill] sm:$0xff] }
 0xa6c   :  { %10120 = vmatpush1.bf16.msra.mxu0 %v14410_v38  ;;  %10152 = vmatpush1.bf16.msra.mxu1 %v14411_v4 }
 0xa6d   :  { %10122 = vmatprep.subr.bf16.mxu0 %v14412_v63  ;;  %10154 = vmatprep.subr.bf16.mxu1 %v14413_v18 }
 0xa70   :  { %10124 = vmatpush1.bf16.msra.mxu0 %v14414_v21  ;;  %10156 = vmatpush1.bf16.msra.mxu1 %v14415_v36 }
 0xa71   :  { %10126 = vmatprep.subr.bf16.mxu0 %v14416_v8  ;;  %10158 = vmatprep.subr.bf16.mxu1 %v14417_v48  ;;  %v14422_v8 = vld [vmem:[#allocation69_spill] sm:$0xff] }
 0xa74   :  { %10128 = vmatpush1.bf16.msra.mxu0 %v14418_v55  ;;  %10160 = vmatpush1.bf16.msra.mxu1 %v14419_v25  ;;  %v3388_v55 = vpop.permute.xlu0 %3387 }
 0xa75   :  { %10162 = vmatprep.subr.bf16.mxu0 %v14420_v56  ;;  %10177 = vmatprep.subr.bf16.mxu1 %v14203_v17  ;;  %v3390_v56 = vmul.f32 %v3388_v55, %v14423_v3 }
 0xb0a   :  { %v3213_v4 = vpop.f32.mrb[32].mxu1 }
 0xb0b   :  { %v9022_v63 = vpop.f32.mrb[33].mxu1 }
 0xb0c   :  { %v14424_v63 = vld [vmem:[#allocation71_spill] sm:$0xff] }
 0xb0d   :  { %v3391_v50 = vmul.f32 %v3388_v55, %v14424_v63  ;;  %v3392_v63 = vmul.f32 %v3388_v55, %v14346_v7 }
 0xb1a   :  { %v3286_v38 = vpop.f32.mrb[22].mxu0  ;;  %v3357_v18 = vpop.f32.mrb[34].mxu1 }
 0xb1b   :  { %v11127_v21 = vadd.f32 %v3286_v38, %v14421_v23  ;;  %v3288_v35 = vpop.f32.mrb[23].mxu0  ;;  %v9041_v36 = vpop.f32.mrb[35].mxu1 }
 0xb1c   :  { %v11128_v31 = vadd.f32 %v3288_v35, %v14422_v8 }
 0xb1d   :  { %v8408_v53 = vmul.f32 -1.442695, %v11127_v21 }
 0xb1e   :  { %v8409_v48 = vmul.f32 -1.442695, %v11128_v31  ;;  %v14425_v31 = vld [vmem:[#allocation72_spill] sm:$0xff] }
 0xb1f   :  { %11346 = vpow2.f32 %v8408_v53  ;;  %v3393_v35 = vmul.f32 %v3388_v55, %v14425_v31 }
 0xb20   :  { %11348 = vpow2.f32 %v8409_v48 }
 0xb29   :  { %v11347_v25 = vpop.eup %11346 }
 0xb2a   :  { %v3365_v2 = vadd.f32 1.0, %v11347_v25  ;;  %v3463_v61 = vpop.f32.mrb[24].mxu0  ;;  %v3534_v51 = vpop.f32.mrb[36].mxu1 }
 0xb2b   :  { %v3539_v46 = vadd.f32 %v3463_v61, %v3390_v56  ;;  %v3465_v42 = vpop.f32.mrb[25].mxu0  ;;  %v3536_v38 = vpop.f32.mrb[37].mxu1  ;;  %v3214_v56 = vadd.f32 %v3213_v4, %v12618_v54 }
 0xb2c   :  { %11350 = vrcp.f32 %v3365_v2  ;;  %v3540_v36 = vadd.f32 %v3465_v42, %v3391_v50  ;;  %v11349_v8 = vpop.eup %11348  ;;  %v3542_v3 = vadd.f32 %v3536_v38, %v3393_v35  ;;  %v12996_v42 = vld [vmem:[%s13909_s13] ss:$0 sm:$0xff]  ;;  %v3541_v50 = vadd.f32 %v3534_v51, %v3392_v63 }
 0xb2d   :  { %v3543_v21 = vadd.f32 %v3539_v46, %v14262_v34  ;;  %v3372_v25 = vadd.f32 1.0, %v11349_v8  ;;  %v3375_v46 = vadd.f32 %v12996_v42, %v3357_v18 }
 0xb2e   :  { %v3544_v53 = vadd.f32 %v3540_v36, %v14344_v5  ;;  %v3546_v61 = vadd.f32 %v3542_v3, %v14266_v43  ;;  %v3545_v8 = vadd.f32 %v3541_v50, %v14347_v58 }
 0xb2f   :  { %v8413_v48 = vmul.f32 -1.442695, %v3543_v21 }
 0xb30   :  { %v8414_v23 = vmul.f32 -1.442695, %v3544_v53  ;;  %v8415_v38 = vmul.f32 -1.442695, %v3546_v61 }
 0xb31   :  { %11352 = vpow2.f32 %v8413_v48 }
 0xb32   :  { %11354 = vpow2.f32 %v8414_v23 }
 0xb33   :  { %11356 = vrcp.f32 %v3372_v25 }
 0xb36   :  { %v11351_v2 = vpop.eup %11350 }
 0xb37   :  { %v3376_v36 = vmul.f32 %v11351_v2, %v3375_v46 }
 0xb39   :  { %v3377_v23 = vadd.f32 %v3376_v36, %v3214_v56 }
 0xb3b   :  { %v11353_v55 = vpop.eup %11352  ;;  %11358 = vtanh.f32 %v3377_v23 }
 0xb3c   :  { %v11355_v3 = vpop.eup %11354  ;;  %v3550_v21 = vadd.f32 1.0, %v11353_v55  ;;  %11360 = vpow2.f32 %v8415_v38 }
 0xb3d   :  { %11362 = vtanh.f32 %v3545_v8  ;;  %v3556_v53 = vadd.f32 1.0, %v11355_v3  ;;  %v11357_v18 = vpop.eup %11356  ;;  %v3572_v3 = vpop.permute.xlu1 %3571 }
 0xb3e   :  { %11364 = vrcp.f32 %v3550_v21  ;;  %v3379_v51 = vsub.f32 1.0, %v11357_v18  ;;  %v3381_v48 = vmul.f32 %v11357_v18, %v12808_v26  ;;  %v14426_v21 = vld [vmem:[#allocation82_spill] sm:$0xff]  ;;  %v14429_v18 = vld [vmem:[#allocation85_spill] sm:$0xff] }
 0xb3f   :  { %11366 = vrcp.f32 %v3556_v53  ;;  %v14427_v53 = vld [vmem:[#allocation83_spill] sm:$0xff] }
 0xb45   :  { %v11359_v63 = vpop.eup %11358 }
 0xb46   :  { %v11361_v35 = vpop.eup %11360  ;;  %v3380_v4 = vmul.f32 %v11359_v63, %v3379_v51  ;;  %v14430_v51 = vld [vmem:[#allocation86_spill] sm:$0xff]  ;;  %v14431_v63 = vld [vmem:[#allocation87_spill] sm:$0xff] }
 0xb47   :  { %v11363_v25 = vpop.eup %11362  ;;  %v3563_v56 = vadd.f32 1.0, %v11361_v35  ;;  %v14432_v35 = vld [vmem:[#allocation88_spill] sm:$0xff] }
 0xb48   :  { %v11365_v61 = vpop.eup %11364  ;;  %v13002_v46 = vadd.f32 %v3381_v48, %v3380_v4  ;;  %v14433_v4 = vld [vmem:[#allocation89_spill] sm:$0xff]  ;;  %v14434_v48 = vld [vmem:[#allocation90_spill] sm:$0xff] }
 0xb49   :  { %v11367_v50 = vpop.eup %11366  ;;  %v3567_v2 = vmul.f32 %v11365_v61, %v11363_v25  ;;  %11368 = vrcp.f32 %v3563_v56  ;;  %v14435_v25 = vld [vmem:[#allocation91_spill] sm:$0xff]  ;;  %v14436_v61 = vld [vmem:[#allocation92_spill] sm:$0xff]  ;;  %v14437_v56 = vld [vmem:[#allocation93_spill] sm:$0xff] }
 0xb4a   :  { %v3566_v36 = vmul.f32 %v11367_v50, %v12811_v30  ;;  %v14428_v30 = vld [vmem:[#allocation84_spill] sm:$0xff] }
 0xb4c   :  { %v13005_v38 = vadd.f32 %v3567_v2, %v3566_v36 }
 0xb4e   :  { %11370 = vtanh.f32 %v13005_v38 }
 0xb53   :  { %v11369_v23 = vpop.eup %11368 }
 0xb58   :  { %v11371_v8 = vpop.eup %11370 }
 0xb59   :  { %v13008_v55 = vmul.f32 %v11371_v8, %v11369_v23 }
 0xb5b   :  { %v3573_v26 = vadd.f32 %v3572_v3, %v13008_v55  ;;  %v14438_v3 = vld [vmem:[#allocation94_spill] sm:$0xff] }
 0xb5d   :  { %3639 = vmatmul.mubr.f32.vlgmr.msra.gmra.mrb[26].mxu0 %v3573_v26  ;;  %3710 = vmatmul.mubr.f32.vlgmr.msra.gmra.mrb[38].mxu1 %v3573_v26 }
 0xb5e   :  { %10164 = vmatpush1.bf16.msra.mxu0 %v14349_v13  ;;  %10179 = vmatpush3.bf16.msra.mxu1 %v14426_v21 }
 0xb5f   :  { %10166 = vmatprep.subr.bf16.mxu0 %v14427_v53  ;;  %10180 = vmatprep.subr.bf16.mxu1 %v14203_v17 }
 0xb60   :  { %3807 = vmatprep.mubr.f32.mxu0 %v14193_v1  ;;  %9058 = vmatprep.mubr.msk.f32.mxu1 %vm11824_vm0, %v14193_v1 }
 0xb62   :  { %10168 = vmatpush1.bf16.msra.mxu0 %v14428_v30  ;;  %10182 = vmatpush3.bf16.msra.mxu1 %v14429_v18 }
 0xb63   :  { %10170 = vmatprep.subr.bf16.mxu0 %v14430_v51  ;;  %10183 = vmatprep.subr.bf16.mxu1 %v14203_v17 }
 0xb66   :  { %10172 = vmatpush1.bf16.msra.mxu0 %v14431_v63  ;;  %10185 = vmatpush3.bf16.msra.mxu1 %v14432_v35 }
 0xb67   :  { %10174 = vmatprep.subr.bf16.mxu0 %v14433_v4  ;;  %10186 = vmatprep.subr.bf16.mxu1 %v14203_v17 }
 0xb6a   :  { %10176 = vmatpush1.bf16.msra.mxu0 %v14434_v48  ;;  %10188 = vmatpush3.bf16.msra.mxu1 %v14435_v25 }
 0xb6b   :  { %10190 = vmatprep.subr.bf16.mxu0 %v14436_v61  ;;  %10205 = vmatprep.subr.bf16.mxu1 %v14203_v17 }
 0xc30   :  { %v3640_v50 = vpop.f32.mrb[26].mxu0  ;;  %v3711_v2 = vpop.f32.mrb[38].mxu1 }
 0xc31   :  { %v3641_v36 = vadd.f32 %v3640_v50, %v14437_v56  ;;  %v3642_v23 = vpop.f32.mrb[27].mxu0  ;;  %v3713_v8 = vpop.f32.mrb[39].mxu1  ;;  %v3712_v25 = vadd.f32 %v3711_v2, %v14364_v57  ;;  %v14444_v2 = vld [vmem:[#allocation104_spill] sm:$0xff] }
 0xc32   :  { %v3643_v26 = vadd.f32 %v3642_v23, %v14438_v3  ;;  %v3714_v48 = vadd.f32 %v3713_v8, %v14363_v32 }
 0xc33   :  { %v8416_v35 = vmul.f32 -1.442695, %v3641_v36 }
 0xc34   :  { %v8417_v4 = vmul.f32 -1.442695, %v3643_v26  ;;  %v8418_v63 = vmul.f32 -1.442695, %v3714_v48 }
 0xc35   :  { %11372 = vpow2.f32 %v8416_v35 }
 0xc36   :  { %11374 = vpow2.f32 %v8417_v4 }
 0xc37   :  { %11376 = vpow2.f32 %v8418_v63 }
 0xc38   :  { %11378 = vtanh.f32 %v3712_v25  ;;  %v14443_v25 = vld [vmem:[#allocation102_spill] sm:$0xff] }
 0xc3f   :  { %v11373_v61 = vpop.eup %11372 }
 0xc40   :  { %v11375_v51 = vpop.eup %11374  ;;  %v3719_v18 = vadd.f32 1.0, %v11373_v61 }
 0xc41   :  { %v3725_v30 = vadd.f32 1.0, %v11375_v51  ;;  %v11377_v50 = vpop.eup %11376  ;;  %v14442_v51 = vld [vmem:[#allocation103_spill] sm:$0xff] }
 0xc42   :  { %11380 = vrcp.f32 %v3719_v18  ;;  %v11379_v56 = vpop.eup %11378  ;;  %v3732_v35 = vadd.f32 1.0, %v11377_v50  ;;  %v14440_v18 = vld [vmem:[#allocation99_spill] sm:$0xff]  ;;  %v14446_v50 = vld [vmem:[#allocation105_spill] sm:$0xff] }
 0xc43   :  { %11382 = vrcp.f32 %v3725_v30  ;;  %v14439_v30 = vld [vmem:[#allocation100_spill] sm:$0xff] }
 0xc44   :  { %11384 = vrcp.f32 %v3732_v35  ;;  %v14450_v35 = vld [vmem:[#allocation110_spill] sm:$0xff] }
 0xc4c   :  { %v11381_v23 = vpop.eup %11380 }
 0xc4d   :  { %v11383_v36 = vpop.eup %11382  ;;  %v3736_v26 = vmul.f32 %v11381_v23, %v11379_v56  ;;  %v14445_v56 = vld [vmem:[#allocation106_spill] sm:$0xff]  ;;  %v14447_v23 = vld [vmem:[#allocation107_spill] sm:$0xff] }
 0xc4e   :  { %v3735_v4 = vmul.f32 %v11383_v36, %v12841_v40  ;;  %v11385_v48 = vpop.eup %11384  ;;  %v14441_v40 = vld [vmem:[#allocation101_spill] sm:$0xff]  ;;  %v14448_v36 = vld [vmem:[#allocation108_spill] sm:$0xff] }
 0xc50   :  { %v13035_v8 = vadd.f32 %v3736_v26, %v3735_v4  ;;  %v14449_v26 = vld [vmem:[#allocation109_spill] sm:$0xff]  ;;  %v14451_v4 = vld [vmem:[#allocation111_spill] sm:$0xff] }
 0xc52   :  { %11386 = vtanh.f32 %v13035_v8 }
 0xc5c   :  { %v11387_v61 = vpop.eup %11386 }
 0xc5d   :  { %v3739_v63 = vmul.f32 %v11387_v61, %v11385_v48  ;;  %v14452_v48 = vld [vmem:[#allocation112_spill] sm:$0xff]  ;;  %v14453_v61 = vld [vmem:[#allocation113_spill] sm:$0xff] }
 0xc5f   :  { %4545 = vrot.lane.b32.xlu1 %v3739_v63, %s11822_s20  ;;  %8419 = vmatmul.mubr.msk.f32.vlgmr.msra.gmra.mrb[28].mxu0 %vm314_vm1, %v3739_v63 }
 0xc60   :  { %9059 = vmatmul.mubr.msk.f32.vlgmr.msra.gmra.mrb[40].mxu1 %vm314_vm1, %v3739_v63  ;;  %10192 = vmatpush1.bf16.msra.mxu0 %v14366_v16  ;;  %v14454_v63 = vld [vmem:[#allocation114_spill] sm:$0xff] }
 0xc61   :  { %10207 = vmatpush3.bf16.msra.mxu1 %v14439_v30  ;;  %10194 = vmatprep.subr.bf16.mxu0 %v14440_v18 }
 0xc62   :  { %10208 = vmatprep.subr.bf16.mxu1 %v14203_v17  ;;  %3948 = vmatprep.mubr.f32.mxu0 %v14193_v1 }
 0xc63   :  { %9077 = vmatprep.mubr.msk.f32.mxu1 %vm11824_vm0, %v14193_v1 }
 0xc64   :  { %10196 = vmatpush1.bf16.msra.mxu0 %v14441_v40 }
 0xc65   :  { %10210 = vmatpush3.bf16.msra.mxu1 %v14442_v51  ;;  %10198 = vmatprep.subr.bf16.mxu0 %v14443_v25 }
 0xc66   :  { %10211 = vmatprep.subr.bf16.mxu1 %v14203_v17 }
 0xc68   :  { %10200 = vmatpush1.bf16.msra.mxu0 %v14444_v2 }
 0xc69   :  { %10213 = vmatpush3.bf16.msra.mxu1 %v14445_v56  ;;  %10202 = vmatprep.subr.bf16.mxu0 %v14446_v50  ;;  %v14461_v50 = vld [vmem:[#allocation121_spill] sm:$0xff]  ;;  %v14462_v56 = vld [vmem:[#allocation122_spill] sm:$0xff] }
 0xc6a   :  { %10214 = vmatprep.subr.bf16.mxu1 %v14203_v17 }
 0xc6c   :  { %10204 = vmatpush1.bf16.msra.mxu0 %v14447_v23  ;;  %v14460_v23 = vld [vmem:[#allocation120_spill] sm:$0xff] }
 0xc6d   :  { %10216 = vmatpush3.bf16.msra.mxu1 %v14448_v36  ;;  %10218 = vmatprep.subr.bf16.mxu0 %v14449_v26  ;;  %v14455_v26 = vld [vmem:[#allocation115_spill] sm:$0xff] }
 0xc6e   :  { %10233 = vmatprep.subr.bf16.mxu1 %v14203_v17  ;;  %v14459_v36 = vld [vmem:[#allocation119_spill] sm:$0xff] }
 0xc6f   :  { %8421 = vmatmul.mubr.msk.f32.vlgmr.msra.gmra.mrb[28].mxu0 %vm314_vm1, %v12899_v60 }
 0xc70   :  { %9078 = vmatmul.mubr.msk.f32.vlgmr.msra.gmra.mrb[42].mxu1 %vm314_vm1, %v12899_v60  ;;  %10220 = vmatpush1.bf16.msra.mxu0 %v14450_v35  ;;  %v14456_v35 = vld [vmem:[#allocation116_spill] sm:$0xff] }
 0xc71   :  { %10235 = vmatpush3.bf16.msra.mxu1 %v14451_v4  ;;  %10222 = vmatprep.subr.bf16.mxu0 %v14452_v48  ;;  %v14457_v4 = vld [vmem:[#allocation117_spill] sm:$0xff]  ;;  %v14458_v48 = vld [vmem:[#allocation118_spill] sm:$0xff] }
 0xc72   :  { %10236 = vmatprep.subr.bf16.mxu1 %v14203_v17  ;;  %4114 = vmatprep.mubr.f32.mxu0 %v14193_v1 }
 0xc73   :  { %9096 = vmatprep.mubr.msk.f32.mxu1 %vm11824_vm0, %v14193_v1 }
 0xc74   :  { %10224 = vmatpush1.bf16.msra.mxu0 %v14453_v61 }
 0xc75   :  { %10238 = vmatpush3.bf16.msra.mxu1 %v14454_v63  ;;  %10226 = vmatprep.subr.bf16.mxu0 %v14455_v26 }
 0xc76   :  { %10239 = vmatprep.subr.bf16.mxu1 %v14203_v17 }
 0xc78   :  { %10228 = vmatpush1.bf16.msra.mxu0 %v14456_v35 }
 0xc79   :  { %10241 = vmatpush3.bf16.msra.mxu1 %v14457_v4  ;;  %10230 = vmatprep.subr.bf16.mxu0 %v14458_v48 }
 0xc7a   :  { %10242 = vmatprep.subr.bf16.mxu1 %v14203_v17 }
 0xc7c   :  { %10232 = vmatpush1.bf16.msra.mxu0 %v14459_v36 }
 0xc7d   :  { %10244 = vmatpush3.bf16.msra.mxu1 %v14460_v23  ;;  %10246 = vmatprep.subr.bf16.mxu0 %v14461_v50 }
 0xc7e   :  { %10261 = vmatprep.subr.bf16.mxu1 %v14203_v17 }
 0xd33   :  { %v3880_v63 = vpop.f32.mrb[40].mxu1 }
 0xd34   :  { %v9060_v26 = vpop.f32.mrb[41].mxu1  ;;  %v3881_v16 = vadd.f32 %v3880_v63, %v14314_v22  ;;  %v14473_v63 = vld [vmem:[#allocation42_spill] sm:$0xff] }
 0xd42   :  { %v3950_v61 = vpop.f32.mrb[28].mxu0 }
 0xd43   :  { %v11129_v2 = vadd.f32 %v3950_v61, %v14462_v56  ;;  %v4021_v35 = vpop.f32.mrb[42].mxu1  ;;  %v3952_v25 = vpop.f32.mrb[29].mxu0 }
 0xd44   :  { %v9079_v4 = vpop.f32.mrb[43].mxu1  ;;  %v11130_v48 = vadd.f32 %v3952_v25, %v14313_v9  ;;  %v4039_v30 = vadd.f32 %v12894_v62, %v4021_v35  ;;  %v14464_v62 = vld [vmem:[#allocation33_spill] sm:$0xff] }
 0xd45   :  { %v8423_v51 = vmul.f32 -1.442695, %v11129_v2  ;;  %v14472_v35 = vld [vmem:[#allocation41_spill] sm:$0xff] }
 0xd46   :  { %v8424_v40 = vmul.f32 -1.442695, %v11130_v48 }
 0xd47   :  { %11388 = vpow2.f32 %v8423_v51 }
 0xd48   :  { %11390 = vpow2.f32 %v8424_v40 }
 0xd51   :  { %v11389_v36 = vpop.eup %11388 }
 0xd52   :  { %v4029_v23 = vadd.f32 1.0, %v11389_v36  ;;  %v11391_v50 = vpop.eup %11390  ;;  %v14471_v36 = vld [vmem:[#allocation40_spill] sm:$0xff] }
 0xd53   :  { %v4036_v18 = vadd.f32 1.0, %v11391_v50  ;;  %v14469_v50 = vld [vmem:[#allocation38_spill] sm:$0xff] }
 0xd54   :  { %11392 = vrcp.f32 %v4029_v23  ;;  %v14470_v23 = vld [vmem:[#allocation39_spill] sm:$0xff] }
 0xd55   :  { %11394 = vrcp.f32 %v4036_v18  ;;  %v14467_v18 = vld [vmem:[#allocation36_spill] sm:$0xff] }
 0xd5e   :  { %v11393_v26 = vpop.eup %11392 }
 0xd5f   :  { %v4040_v61 = vmul.f32 %v11393_v26, %v4039_v30  ;;  %v11395_v2 = vpop.eup %11394  ;;  %v14466_v30 = vld [vmem:[#allocation35_spill] sm:$0xff] }
 0xd60   :  { %v4043_v4 = vsub.f32 1.0, %v11395_v2  ;;  %v4045_v40 = vmul.f32 %v11395_v2, %v12899_v60  ;;  %v14465_v60 = vld [vmem:[#allocation34_spill] sm:$0xff]  ;;  %v14474_v26 = vld [vmem:[#allocation43_spill] sm:$0xff]  ;;  %v14476_v2 = vld [vmem:[#allocation45_spill] sm:$0xff] }
 0xd61   :  { %v4041_v56 = vadd.f32 %v4040_v61, %v3881_v16  ;;  %v14463_v16 = vld [vmem:[#allocation32_spill] sm:$0xff] }
 0xd62   :  { %v14475_v61 = vld [vmem:[#allocation44_spill] sm:$0xff] }
 0xd63   :  { %11396 = vtanh.f32 %v4041_v56  ;;  %v14468_v56 = vld [vmem:[#allocation37_spill] sm:$0xff] }
 0xd6d   :  { %v11397_v25 = vpop.eup %11396 }
 0xd6e   :  { %v4044_v51 = vmul.f32 %v11397_v25, %v4043_v4  ;;  %v14478_v4 = vld [vmem:[#allocation47_spill] sm:$0xff]  ;;  %v14479_v25 = vld [vmem:[#allocation48_spill] sm:$0xff] }
 0xd70   :  { %v13088_v48 = vadd.f32 %v4045_v40, %v4044_v51  ;;  %v14480_v51 = vld [vmem:[#allocation49_spill] sm:$0xff]  ;;  %v14481_v40 = vld [vmem:[#allocation50_spill] sm:$0xff] }
 0xd72   :  { %8425 = vmatmul.mubr.msk.f32.vlgmr.msra.gmra.mrb[30].mxu0 %vm314_vm1, %v13088_v48  ;;  %9097 = vmatmul.mubr.msk.f32.vlgmr.msra.gmra.mrb[44].mxu1 %vm314_vm1, %v13088_v48 }
 0xd73   :  { %10248 = vmatpush1.bf16.msra.mxu0 %v12490_v52  ;;  %10263 = vmatpush3.bf16.msra.mxu1 %v12492_v49 }
 0xd74   :  { %10250 = vmatprep.subr.bf16.mxu0 %v12496_v44  ;;  %10264 = vmatprep.subr.bf16.mxu1 %v14203_v17 }
 0xd75   :  { %4258 = vmatprep.mubr.f32.mxu0 %v14193_v1  ;;  %9115 = vmatprep.mubr.msk.f32.mxu1 %vm11824_vm0, %v14193_v1 }
 0xd77   :  { %10252 = vmatpush1.bf16.msra.mxu0 %v12504_v45  ;;  %10266 = vmatpush3.bf16.msra.mxu1 %v12506_v27 }
 0xd78   :  { %10254 = vmatprep.subr.bf16.mxu0 %v12510_v39  ;;  %10267 = vmatprep.subr.bf16.mxu1 %v14203_v17 }
 0xd7b   :  { %10256 = vmatpush1.bf16.msra.mxu0 %v12517_v0  ;;  %10269 = vmatpush3.bf16.msra.mxu1 %v12519_v47 }
 0xd7c   :  { %10258 = vmatprep.subr.bf16.mxu0 %v12523_v12  ;;  %10270 = vmatprep.subr.bf16.mxu1 %v14203_v17 }
 0xd7f   :  { %10260 = vmatpush1.bf16.msra.mxu0 %v12527_v14  ;;  %10272 = vmatpush3.bf16.msra.mxu1 %v12529_v59 }
 0xd80   :  { %10274 = vmatprep.subr.bf16.mxu0 %v12020_v6  ;;  %10290 = vmatprep.subr.bf16.mxu1 %v12022_v10 }
 0xd82   :  { %8427 = vmatmul.mubr.msk.f32.vlgmr.msra.gmra.mrb[30].mxu0 %vm314_vm1, %v13002_v46  ;;  %9116 = vmatmul.mubr.msk.f32.vlgmr.msra.gmra.mrb[46].mxu1 %vm314_vm1, %v13002_v46 }
 0xd83   :  { %10276 = vmatpush1.bf16.msra.mxu0 %v12024_v11  ;;  %10292 = vmatpush1.bf16.msra.mxu1 %v12027_v15 }
 0xd84   :  { %10278 = vmatprep.subr.bf16.mxu0 %v12031_v19  ;;  %10294 = vmatprep.subr.bf16.mxu1 %v12033_v20 }
 0xd85   :  { %4435 = vmatprep.mubr.f32.mxu0 %v14193_v1  ;;  %4506 = vmatprep.mubr.f32.mxu1 %v14193_v1 }
 0xd87   :  { %10280 = vmatpush1.bf16.msra.mxu0 %v12036_v24  ;;  %10296 = vmatpush1.bf16.msra.mxu1 %v12040_v28 }
 0xd88   :  { %10282 = vmatprep.subr.bf16.mxu0 %v12042_v29  ;;  %10298 = vmatprep.subr.bf16.mxu1 %v12044_v33 }
 0xd8b   :  { %10284 = vmatpush1.bf16.msra.mxu0 %v12047_v37  ;;  %10300 = vmatpush1.bf16.msra.mxu1 %v12051_v41 }
 0xd8c   :  { %10286 = vmatprep.subr.bf16.mxu0 %v14463_v16  ;;  %10302 = vmatprep.subr.bf16.mxu1 %v14464_v62 }
 0xd8f   :  { %10288 = vmatpush1.bf16.msra.mxu0 %v14465_v60  ;;  %10304 = vmatpush1.bf16.msra.mxu1 %v14466_v30  ;;  %v14502_v30 = vld [vmem:[#allocation70_spill] sm:$0xff] }
 0xd90   :  { %10306 = vmatprep.subr.bf16.mxu0 %v14467_v18  ;;  %10338 = vmatprep.subr.bf16.mxu1 %v14468_v56 }
 0xd92   :  { %8432 = vmatmul.mubr.msk.f32.vlgmr.msra.gmra.mrb[32].mxu0 %vm314_vm1, %v13008_v55  ;;  %8433 = vmatmul.mubr.msk.f32.vlgmr.msra.gmra.mrb[48].mxu1 %vm314_vm1, %v13008_v55  ;;  %v14477_v55 = vld [vmem:[#allocation46_spill] sm:$0xff] }
 0xd93   :  { %10308 = vmatpush1.bf16.msra.mxu0 %v14469_v50  ;;  %10340 = vmatpush1.bf16.msra.mxu1 %v14470_v23  ;;  %v14500_v23 = vld [vmem:[#allocation68_spill] sm:$0xff] }
 0xd94   :  { %10310 = vmatprep.subr.bf16.mxu0 %v14471_v36  ;;  %10342 = vmatprep.subr.bf16.mxu1 %v14472_v35  ;;  %v14482_v35 = vld [vmem:[#allocation51_spill] sm:$0xff]  ;;  %v14483_v36 = vld [vmem:[#allocation52_spill] sm:$0xff] }
 0xd95   :  { %4612 = vmatprep.mubr.f32.mxu0 %v14193_v1  ;;  %4683 = vmatprep.mubr.f32.mxu1 %v14193_v1 }
 0xd97   :  { %10312 = vmatpush1.bf16.msra.mxu0 %v14473_v63  ;;  %10344 = vmatpush1.bf16.msra.mxu1 %v14474_v26  ;;  %v14484_v63 = vld [vmem:[#allocation53_spill] sm:$0xff]  ;;  %v14485_v26 = vld [vmem:[#allocation54_spill] sm:$0xff] }
 0xd98   :  { %10314 = vmatprep.subr.bf16.mxu0 %v14475_v61  ;;  %10346 = vmatprep.subr.bf16.mxu1 %v14476_v2  ;;  %v14486_v61 = vld [vmem:[#allocation55_spill] sm:$0xff]  ;;  %v14487_v2 = vld [vmem:[#allocation56_spill] sm:$0xff] }
 0xd9b   :  { %10316 = vmatpush1.bf16.msra.mxu0 %v14477_v55  ;;  %10348 = vmatpush1.bf16.msra.mxu1 %v14478_v4  ;;  %v14488_v55 = vld [vmem:[#allocation57_spill] sm:$0xff]  ;;  %v14489_v4 = vld [vmem:[#allocation58_spill] sm:$0xff] }
 0xd9c   :  { %10318 = vmatprep.subr.bf16.mxu0 %v14479_v25  ;;  %10350 = vmatprep.subr.bf16.mxu1 %v14480_v51  ;;  %v14490_v25 = vld [vmem:[#allocation59_spill] sm:$0xff]  ;;  %v14491_v51 = vld [vmem:[#allocation60_spill] sm:$0xff] }
 0xd9f   :  { %10320 = vmatpush1.bf16.msra.mxu0 %v14481_v40  ;;  %10352 = vmatpush1.bf16.msra.mxu1 %v14482_v35  ;;  %v14492_v40 = vld [vmem:[#allocation61_spill] sm:$0xff]  ;;  %v14493_v35 = vld [vmem:[#allocation62_spill] sm:$0xff] }
 0xda0   :  { %10322 = vmatprep.subr.bf16.mxu0 %v14483_v36  ;;  %10354 = vmatprep.subr.bf16.mxu1 %v14484_v63  ;;  %v14494_v36 = vld [vmem:[#allocation63_spill] sm:$0xff]  ;;  %v14495_v63 = vld [vmem:[#allocation64_spill] sm:$0xff] }
 0xda3   :  { %10324 = vmatpush1.bf16.msra.mxu0 %v14485_v26  ;;  %10356 = vmatpush1.bf16.msra.mxu1 %v14486_v61  ;;  %v14496_v26 = vld [vmem:[#allocation65_spill] sm:$0xff]  ;;  %v14497_v61 = vld [vmem:[#allocation66_spill] sm:$0xff] }
 0xda4   :  { %10326 = vmatprep.subr.bf16.mxu0 %v14487_v2  ;;  %10358 = vmatprep.subr.bf16.mxu1 %v14488_v55  ;;  %v14498_v2 = vld [vmem:[#allocation67_spill] sm:$0xff]  ;;  %v14499_v55 = vld [vmem:[#allocation80_spill] sm:$0xff] }
 0xda7   :  { %10328 = vmatpush1.bf16.msra.mxu0 %v14489_v4  ;;  %10360 = vmatpush1.bf16.msra.mxu1 %v14490_v25 }
 0xda8   :  { %10330 = vmatprep.subr.bf16.mxu0 %v14491_v51  ;;  %10362 = vmatprep.subr.bf16.mxu1 %v14492_v40 }
 0xdab   :  { %10332 = vmatpush1.bf16.msra.mxu0 %v14493_v35  ;;  %10364 = vmatpush1.bf16.msra.mxu1 %v14494_v36 }
 0xdac   :  { %10334 = vmatprep.subr.bf16.mxu0 %v14495_v63  ;;  %10366 = vmatprep.subr.bf16.mxu1 %v14496_v26  ;;  %v14501_v63 = vld [vmem:[#allocation69_spill] sm:$0xff] }
 0xdaf   :  { %10336 = vmatpush1.bf16.msra.mxu0 %v14497_v61  ;;  %10368 = vmatpush1.bf16.msra.mxu1 %v14498_v2  ;;  %v4362_v61 = vpop.permute.xlu0 %4361 }
 0xdb0   :  { %10370 = vmatprep.subr.bf16.mxu0 %v14499_v55  ;;  %10385 = vmatprep.subr.bf16.mxu1 %v14203_v17  ;;  %v4364_v55 = vmul.f32 %v4362_v61, %v14502_v30 }
 0xe45   :  { %v4187_v25 = vpop.f32.mrb[44].mxu1 }
 0xe46   :  { %v9098_v51 = vpop.f32.mrb[45].mxu1 }
 0xe47   :  { %v14503_v51 = vld [vmem:[#allocation71_spill] sm:$0xff] }
 0xe48   :  { %v4365_v41 = vmul.f32 %v4362_v61, %v14503_v51  ;;  %v4366_v51 = vmul.f32 %v4362_v61, %v14346_v7 }
 0xe55   :  { %v4260_v4 = vpop.f32.mrb[30].mxu0  ;;  %v4331_v40 = vpop.f32.mrb[46].mxu1 }
 0xe56   :  { %v11131_v35 = vadd.f32 %v4260_v4, %v14500_v23  ;;  %v4262_v50 = vpop.f32.mrb[31].mxu0  ;;  %v9117_v36 = vpop.f32.mrb[47].mxu1 }
 0xe57   :  { %v11132_v18 = vadd.f32 %v4262_v50, %v14501_v63 }
 0xe58   :  { %v8429_v56 = vmul.f32 -1.442695, %v11131_v35 }
 0xe59   :  { %v8430_v26 = vmul.f32 -1.442695, %v11132_v18  ;;  %v4367_v18 = vmul.f32 %v4362_v61, %v14425_v31 }
 0xe5a   :  { %11398 = vpow2.f32 %v8429_v56 }
 0xe5b   :  { %11400 = vpow2.f32 %v8430_v26 }
 0xe64   :  { %v11399_v2 = vpop.eup %11398 }
 0xe65   :  { %v4339_v60 = vadd.f32 1.0, %v11399_v2  ;;  %v4437_v62 = vpop.f32.mrb[32].mxu0  ;;  %v4508_v16 = vpop.f32.mrb[48].mxu1 }
 0xe66   :  { %v4513_v37 = vadd.f32 %v4437_v62, %v4364_v55  ;;  %v4439_v33 = vpop.f32.mrb[33].mxu0  ;;  %v4510_v4 = vpop.f32.mrb[49].mxu1 }
 0xe67   :  { %11402 = vrcp.f32 %v4339_v60  ;;  %v4514_v36 = vadd.f32 %v4439_v33, %v4365_v41  ;;  %v11401_v26 = vpop.eup %11400  ;;  %v4516_v30 = vadd.f32 %v4510_v4, %v4367_v18  ;;  %v4349_v60 = vadd.f32 %v12996_v42, %v4331_v40 }
 0xe68   :  { %v4517_v35 = vadd.f32 %v4513_v37, %v14262_v34  ;;  %v4346_v2 = vadd.f32 1.0, %v11401_v26  ;;  %v4515_v33 = vadd.f32 %v4508_v16, %v4366_v51  ;;  %v4188_v37 = vadd.f32 %v4187_v25, %v12618_v54 }
 0xe69   :  { %v4518_v56 = vadd.f32 %v4514_v36, %v14344_v5  ;;  %v4520_v62 = vadd.f32 %v4516_v30, %v14266_v43 }
 0xe6a   :  { %v8434_v50 = vmul.f32 -1.442695, %v4517_v35 }
 0xe6b   :  { %v8435_v63 = vmul.f32 -1.442695, %v4518_v56  ;;  %v8436_v36 = vmul.f32 -1.442695, %v4520_v62  ;;  %v4519_v56 = vadd.f32 %v4515_v33, %v14347_v58 }
 0xe6c   :  { %11404 = vpow2.f32 %v8434_v50 }
 0xe6d   :  { %11406 = vpow2.f32 %v8435_v63 }
 0xe6e   :  { %11408 = vrcp.f32 %v4346_v2 }
 0xe71   :  { %v11403_v41 = vpop.eup %11402 }
 0xe72   :  { %v4350_v55 = vmul.f32 %v11403_v41, %v4349_v60 }
 0xe74   :  { %v4351_v35 = vadd.f32 %v4350_v55, %v4188_v37 }
 0xe76   :  { %v11405_v4 = vpop.eup %11404  ;;  %11410 = vtanh.f32 %v4351_v35 }
 0xe77   :  { %v11407_v63 = vpop.eup %11406  ;;  %v4524_v18 = vadd.f32 1.0, %v11405_v4  ;;  %11412 = vpow2.f32 %v8436_v36  ;;  %v14505_v4 = vld [vmem:[#allocation85_spill] sm:$0xff] }
 0xe78   :  { %11414 = vtanh.f32 %v4519_v56  ;;  %v4530_v61 = vadd.f32 1.0, %v11407_v63  ;;  %v11409_v42 = vpop.eup %11408  ;;  %v4546_v56 = vpop.permute.xlu1 %4545  ;;  %v14506_v63 = vld [vmem:[#allocation86_spill] sm:$0xff] }
 0xe79   :  { %11416 = vrcp.f32 %v4524_v18  ;;  %v4353_v16 = vsub.f32 1.0, %v11409_v42  ;;  %v4355_v51 = vmul.f32 %v11409_v42, %v13002_v46  ;;  %v14507_v18 = vld [vmem:[#allocation87_spill] sm:$0xff]  ;;  %v14509_v42 = vld [vmem:[#allocation89_spill] sm:$0xff] }
 0xe7a   :  { %11418 = vrcp.f32 %v4530_v61  ;;  %v14508_v61 = vld [vmem:[#allocation88_spill] sm:$0xff] }
 0xe80   :  { %v11411_v30 = vpop.eup %11410 }
 0xe81   :  { %v11413_v40 = vpop.eup %11412  ;;  %v4354_v25 = vmul.f32 %v11411_v30, %v4353_v16  ;;  %v14510_v16 = vld [vmem:[#allocation90_spill] sm:$0xff]  ;;  %v14511_v30 = vld [vmem:[#allocation91_spill] sm:$0xff] }
 0xe82   :  { %v11415_v50 = vpop.eup %11414  ;;  %v4537_v33 = vadd.f32 1.0, %v11413_v40  ;;  %v14512_v40 = vld [vmem:[#allocation92_spill] sm:$0xff] }
 0xe83   :  { %v11417_v26 = vpop.eup %11416  ;;  %v13186_v2 = vadd.f32 %v4355_v51, %v4354_v25 }
 0xe84   :  { %v11419_v62 = vpop.eup %11418  ;;  %v4541_v60 = vmul.f32 %v11417_v26, %v11415_v50  ;;  %11420 = vrcp.f32 %v4537_v33  ;;  %v14513_v50 = vld [vmem:[#allocation93_spill] sm:$0xff] }
 0xe85   :  { %v4540_v41 = vmul.f32 %v11419_v62, %v13005_v38  ;;  %v14504_v38 = vld [vmem:[#allocation84_spill] sm:$0xff] }
 0xe87   :  { %v13189_v37 = vadd.f32 %v4541_v60, %v4540_v41 }
 0xe89   :  { %11422 = vtanh.f32 %v13189_v37 }
 0xe8e   :  { %v11421_v55 = vpop.eup %11420 }
 0xe93   :  { %v11423_v36 = vpop.eup %11422 }
 0xe94   :  { %v13192_v35 = vmul.f32 %v11423_v36, %v11421_v55 }
 0xe96   :  { %v4547_v46 = vadd.f32 %v4546_v56, %v13192_v35 }
 0xe98   :  { %4613 = vmatmul.mubr.f32.vlgmr.msra.gmra.mrb[34].mxu0 %v4547_v46  ;;  %4684 = vmatmul.mubr.f32.vlgmr.msra.gmra.mrb[50].mxu1 %v4547_v46 }
 0xe99   :  { %10372 = vmatpush1.bf16.msra.mxu0 %v14349_v13  ;;  %10387 = vmatpush3.bf16.msra.mxu1 %v14426_v21 }
 0xe9a   :  { %10374 = vmatprep.subr.bf16.mxu0 %v14427_v53  ;;  %10388 = vmatprep.subr.bf16.mxu1 %v14203_v17 }
 0xe9b   :  { %4781 = vmatprep.mubr.f32.mxu0 %v14193_v1  ;;  %9134 = vmatprep.mubr.msk.f32.mxu1 %vm11824_vm0, %v14193_v1 }
 0xe9d   :  { %10376 = vmatpush1.bf16.msra.mxu0 %v14504_v38  ;;  %10390 = vmatpush3.bf16.msra.mxu1 %v14505_v4 }
 0xe9e   :  { %10378 = vmatprep.subr.bf16.mxu0 %v14506_v63  ;;  %10391 = vmatprep.subr.bf16.mxu1 %v14203_v17 }
 0xea1   :  { %10380 = vmatpush1.bf16.msra.mxu0 %v14507_v18  ;;  %10393 = vmatpush3.bf16.msra.mxu1 %v14508_v61 }
 0xea2   :  { %10382 = vmatprep.subr.bf16.mxu0 %v14509_v42  ;;  %10394 = vmatprep.subr.bf16.mxu1 %v14203_v17 }
 0xea5   :  { %10384 = vmatpush1.bf16.msra.mxu0 %v14510_v16  ;;  %10396 = vmatpush3.bf16.msra.mxu1 %v14511_v30 }
 0xea6   :  { %10398 = vmatprep.subr.bf16.mxu0 %v14512_v40  ;;  %10413 = vmatprep.subr.bf16.mxu1 %v14203_v17 }
 0xf6b   :  { %v4614_v25 = vpop.f32.mrb[34].mxu0  ;;  %v4685_v51 = vpop.f32.mrb[50].mxu1 }
 0xf6c   :  { %v4615_v26 = vadd.f32 %v4614_v25, %v14513_v50  ;;  %v4616_v62 = vpop.f32.mrb[35].mxu0  ;;  %v4687_v60 = vpop.f32.mrb[51].mxu1  ;;  %v4686_v46 = vadd.f32 %v4685_v51, %v14364_v57 }
 0xf6d   :  { %v4617_v33 = vadd.f32 %v4616_v62, %v14438_v3  ;;  %v4688_v36 = vadd.f32 %v4687_v60, %v14363_v32 }
 0xf6e   :  { %v8437_v41 = vmul.f32 -1.442695, %v4615_v26 }
 0xf6f   :  { %v8438_v55 = vmul.f32 -1.442695, %v4617_v33  ;;  %v8439_v56 = vmul.f32 -1.442695, %v4688_v36 }
 0xf70   :  { %11424 = vpow2.f32 %v8437_v41 }
 0xf71   :  { %11426 = vpow2.f32 %v8438_v55 }
 0xf72   :  { %11428 = vpow2.f32 %v8439_v56  ;;  %v14519_v56 = vld [vmem:[#allocation102_spill] sm:$0xff] }
 0xf73   :  { %11430 = vtanh.f32 %v4686_v46  ;;  %v14520_v46 = vld [vmem:[#allocation104_spill] sm:$0xff] }
 0xf7a   :  { %v11425_v40 = vpop.eup %11424 }
 0xf7b   :  { %v11427_v30 = vpop.eup %11426  ;;  %v4693_v16 = vadd.f32 1.0, %v11425_v40 }
 0xf7c   :  { %v4699_v42 = vadd.f32 1.0, %v11427_v30  ;;  %v11429_v25 = vpop.eup %11428  ;;  %v14516_v30 = vld [vmem:[#allocation99_spill] sm:$0xff] }
 0xf7d   :  { %11432 = vrcp.f32 %v4693_v16  ;;  %v11431_v50 = vpop.eup %11430  ;;  %v4706_v41 = vadd.f32 1.0, %v11429_v25  ;;  %v14515_v16 = vld [vmem:[#allocation100_spill] sm:$0xff]  ;;  %v14521_v25 = vld [vmem:[#allocation106_spill] sm:$0xff] }
 0xf7e   :  { %11434 = vrcp.f32 %v4699_v42  ;;  %v14514_v42 = vld [vmem:[#allocation98_spill] sm:$0xff] }
 0xf7f   :  { %11436 = vrcp.f32 %v4706_v41  ;;  %v14525_v41 = vld [vmem:[#allocation109_spill] sm:$0xff] }
 0xf87   :  { %v11433_v62 = vpop.eup %11432 }
 0xf88   :  { %v11435_v26 = vpop.eup %11434  ;;  %v4710_v33 = vmul.f32 %v11433_v62, %v11431_v50  ;;  %v14518_v50 = vld [vmem:[#allocation103_spill] sm:$0xff]  ;;  %v14522_v62 = vld [vmem:[#allocation105_spill] sm:$0xff] }
 0xf89   :  { %v4709_v55 = vmul.f32 %v11435_v26, %v13035_v8  ;;  %v11437_v51 = vpop.eup %11436  ;;  %v14517_v8 = vld [vmem:[#allocation101_spill] sm:$0xff]  ;;  %v14523_v26 = vld [vmem:[#allocation107_spill] sm:$0xff] }
 0xf8b   :  { %v13219_v60 = vadd.f32 %v4710_v33, %v4709_v55  ;;  %v14524_v33 = vld [vmem:[#allocation108_spill] sm:$0xff]  ;;  %v14526_v55 = vld [vmem:[#allocation110_spill] sm:$0xff] }
 0xf8d   :  { %11438 = vtanh.f32 %v13219_v60 }
 0xf97   :  { %v11439_v40 = vpop.eup %11438 }
 0xf98   :  { %v4713_v36 = vmul.f32 %v11439_v40, %v11437_v51  ;;  %v14527_v51 = vld [vmem:[#allocation111_spill] sm:$0xff]  ;;  %v14528_v40 = vld [vmem:[#allocation112_spill] sm:$0xff] }
 0xf9a   :  { %5519 = vrot.lane.b32.xlu1 %v4713_v36, %s11822_s20  ;;  %8440 = vmatmul.mubr.msk.f32.vlgmr.msra.gmra.mrb[36].mxu0 %vm314_vm1, %v4713_v36 }
 0xf9b   :  { %9135 = vmatmul.mubr.msk.f32.vlgmr.msra.gmra.mrb[52].mxu1 %vm314_vm1, %v4713_v36  ;;  %10400 = vmatpush1.bf16.msra.mxu0 %v14514_v42  ;;  %v14529_v36 = vld [vmem:[#allocation113_spill] sm:$0xff] }
 0xf9c   :  { %10415 = vmatpush3.bf16.msra.mxu1 %v14515_v16  ;;  %10402 = vmatprep.subr.bf16.mxu0 %v14516_v30 }
 0xf9d   :  { %10416 = vmatprep.subr.bf16.mxu1 %v14203_v17  ;;  %4922 = vmatprep.mubr.f32.mxu0 %v14193_v1 }
 0xf9e   :  { %9153 = vmatprep.mubr.msk.f32.mxu1 %vm11824_vm0, %v14193_v1 }
 0xf9f   :  { %10404 = vmatpush1.bf16.msra.mxu0 %v14517_v8 }
 0xfa0   :  { %10418 = vmatpush3.bf16.msra.mxu1 %v14518_v50  ;;  %10406 = vmatprep.subr.bf16.mxu0 %v14519_v56 }
 0xfa1   :  { %10419 = vmatprep.subr.bf16.mxu1 %v14203_v17 }
 0xfa3   :  { %10408 = vmatpush1.bf16.msra.mxu0 %v14520_v46  ;;  %v14538_v46 = vld [vmem:[#allocation122_spill] sm:$0xff] }
 0xfa4   :  { %10421 = vmatpush3.bf16.msra.mxu1 %v14521_v25  ;;  %10410 = vmatprep.subr.bf16.mxu0 %v14522_v62  ;;  %v14536_v62 = vld [vmem:[#allocation120_spill] sm:$0xff]  ;;  %v14537_v25 = vld [vmem:[#allocation121_spill] sm:$0xff] }
 0xfa5   :  { %10422 = vmatprep.subr.bf16.mxu1 %v14203_v17 }
 0xfa7   :  { %10412 = vmatpush1.bf16.msra.mxu0 %v14523_v26  ;;  %v14535_v26 = vld [vmem:[#allocation119_spill] sm:$0xff] }
 0xfa8   :  { %10424 = vmatpush3.bf16.msra.mxu1 %v14524_v33  ;;  %10426 = vmatprep.subr.bf16.mxu0 %v14525_v41  ;;  %v14530_v41 = vld [vmem:[#allocation114_spill] sm:$0xff]  ;;  %v14531_v33 = vld [vmem:[#allocation115_spill] sm:$0xff] }
 0xfa9   :  { %10441 = vmatprep.subr.bf16.mxu1 %v14203_v17 }
 0xfaa   :  { %8442 = vmatmul.mubr.msk.f32.vlgmr.msra.gmra.mrb[36].mxu0 %vm314_vm1, %v13088_v48 }
 0xfab   :  { %9154 = vmatmul.mubr.msk.f32.vlgmr.msra.gmra.mrb[54].mxu1 %vm314_vm1, %v13088_v48  ;;  %10428 = vmatpush1.bf16.msra.mxu0 %v14526_v55  ;;  %v14532_v55 = vld [vmem:[#allocation116_spill] sm:$0xff] }
 0xfac   :  { %10443 = vmatpush3.bf16.msra.mxu1 %v14527_v51  ;;  %10430 = vmatprep.subr.bf16.mxu0 %v14528_v40  ;;  %v14533_v51 = vld [vmem:[#allocation117_spill] sm:$0xff]  ;;  %v14534_v40 = vld [vmem:[#allocation118_spill] sm:$0xff] }
 0xfad   :  { %10444 = vmatprep.subr.bf16.mxu1 %v14203_v17  ;;  %5088 = vmatprep.mubr.f32.mxu0 %v14193_v1 }
 0xfae   :  { %9172 = vmatprep.mubr.msk.f32.mxu1 %vm11824_vm0, %v14193_v1 }
 0xfaf   :  { %10432 = vmatpush1.bf16.msra.mxu0 %v14529_v36 }
 0xfb0   :  { %10446 = vmatpush3.bf16.msra.mxu1 %v14530_v41  ;;  %10434 = vmatprep.subr.bf16.mxu0 %v14531_v33 }
 0xfb1   :  { %10447 = vmatprep.subr.bf16.mxu1 %v14203_v17 }
 0xfb3   :  { %10436 = vmatpush1.bf16.msra.mxu0 %v14532_v55 }
 0xfb4   :  { %10449 = vmatpush3.bf16.msra.mxu1 %v14533_v51  ;;  %10438 = vmatprep.subr.bf16.mxu0 %v14534_v40 }
 0xfb5   :  { %10450 = vmatprep.subr.bf16.mxu1 %v14203_v17 }
 0xfb7   :  { %10440 = vmatpush1.bf16.msra.mxu0 %v14535_v26 }
 0xfb8   :  { %10452 = vmatpush3.bf16.msra.mxu1 %v14536_v62  ;;  %10454 = vmatprep.subr.bf16.mxu0 %v14537_v25 }
 0xfb9   :  { %10469 = vmatprep.subr.bf16.mxu1 %v14203_v17 }
0x106e   :  { %v4854_v41 = vpop.f32.mrb[52].mxu1 }
0x106f   :  { %v9136_v33 = vpop.f32.mrb[53].mxu1 }
0x1070   :  { %v13272_v33 = vld [vmem:[%s13905_s9] ss:$0 sm:$0xff] }
0x107d   :  { %v4924_v36 = vpop.f32.mrb[36].mxu0 }
0x107e   :  { %v11133_v56 = vadd.f32 %v4924_v36, %v14538_v46  ;;  %v4995_v55 = vpop.f32.mrb[54].mxu1  ;;  %v4926_v50 = vpop.f32.mrb[37].mxu0 }
0x107f   :  { %v9155_v51 = vpop.f32.mrb[55].mxu1  ;;  %v11134_v40 = vadd.f32 %v4926_v50, %v14313_v9  ;;  %v5013_v36 = vadd.f32 %v13272_v33, %v4995_v55  ;;  %v14543_v55 = vld [vmem:[#allocation33_spill] sm:$0xff] }
0x1080   :  { %v8444_v8 = vmul.f32 -1.442695, %v11133_v56  ;;  %v4855_v56 = vadd.f32 %v4854_v41, %v14314_v22  ;;  %v14542_v41 = vld [vmem:[#allocation32_spill] sm:$0xff] }
0x1081   :  { %v8445_v30 = vmul.f32 -1.442695, %v11134_v40 }
0x1082   :  { %11440 = vpow2.f32 %v8444_v8 }
0x1083   :  { %11442 = vpow2.f32 %v8445_v30 }
0x108c   :  { %v11441_v26 = vpop.eup %11440 }
0x108d   :  { %v5003_v62 = vadd.f32 1.0, %v11441_v26  ;;  %v11443_v25 = vpop.eup %11442 }
0x108e   :  { %v5010_v16 = vadd.f32 1.0, %v11443_v25 }
0x108f   :  { %11444 = vrcp.f32 %v5003_v62 }
0x1090   :  { %11446 = vrcp.f32 %v5010_v16  ;;  %v14540_v16 = vld [vmem:[#allocation30_spill] sm:$0xff] }
0x1099   :  { %v11445_v46 = vpop.eup %11444 }
0x109a   :  { %v5014_v51 = vmul.f32 %v11445_v46, %v5013_v36  ;;  %v11447_v30 = vpop.eup %11446  ;;  %v14541_v46 = vld [vmem:[#allocation31_spill] sm:$0xff]  ;;  %v14544_v36 = vld [vmem:[#allocation34_spill] sm:$0xff] }
0x109b   :  { %v5017_v50 = vsub.f32 1.0, %v11447_v30  ;;  %v5019_v25 = vmul.f32 %v11447_v30, %v13088_v48  ;;  %v14539_v48 = vld [vmem:[#allocation29_spill] sm:$0xff]  ;;  %v14548_v30 = vld [vmem:[#allocation38_spill] sm:$0xff] }
0x109c   :  { %v5015_v8 = vadd.f32 %v5014_v51, %v4855_v56  ;;  %v14545_v56 = vld [vmem:[#allocation35_spill] sm:$0xff]  ;;  %v14546_v51 = vld [vmem:[#allocation36_spill] sm:$0xff] }
0x109e   :  { %11448 = vtanh.f32 %v5015_v8  ;;  %v14547_v8 = vld [vmem:[#allocation37_spill] sm:$0xff] }
0x10a8   :  { %v11449_v26 = vpop.eup %11448 }
0x10a9   :  { %v5018_v62 = vmul.f32 %v11449_v26, %v5017_v50  ;;  %v14549_v50 = vld [vmem:[#allocation39_spill] sm:$0xff]  ;;  %v14550_v26 = vld [vmem:[#allocation40_spill] sm:$0xff] }
0x10ab   :  { %v13277_v40 = vadd.f32 %v5019_v25, %v5018_v62  ;;  %v14551_v62 = vld [vmem:[#allocation41_spill] sm:$0xff]  ;;  %v14552_v25 = vld [vmem:[#allocation42_spill] sm:$0xff] }
0x10ad   :  { %8446 = vmatmul.mubr.msk.f32.vlgmr.msra.gmra.mrb[38].mxu0 %vm314_vm1, %v13277_v40  ;;  %9173 = vmatmul.mubr.msk.f32.vlgmr.msra.gmra.mrb[56].mxu1 %vm314_vm1, %v13277_v40 }
0x10ae   :  { %10456 = vmatpush1.bf16.msra.mxu0 %v12490_v52  ;;  %10471 = vmatpush3.bf16.msra.mxu1 %v12492_v49 }
0x10af   :  { %10458 = vmatprep.subr.bf16.mxu0 %v12496_v44  ;;  %10472 = vmatprep.subr.bf16.mxu1 %v14203_v17 }
0x10b0   :  { %5232 = vmatprep.mubr.f32.mxu0 %v14193_v1  ;;  %9191 = vmatprep.mubr.msk.f32.mxu1 %vm11824_vm0, %v14193_v1 }
0x10b2   :  { %10460 = vmatpush1.bf16.msra.mxu0 %v12504_v45  ;;  %10474 = vmatpush3.bf16.msra.mxu1 %v12506_v27 }
0x10b3   :  { %10462 = vmatprep.subr.bf16.mxu0 %v12510_v39  ;;  %10475 = vmatprep.subr.bf16.mxu1 %v14203_v17 }
0x10b6   :  { %10464 = vmatpush1.bf16.msra.mxu0 %v12517_v0  ;;  %10477 = vmatpush3.bf16.msra.mxu1 %v12519_v47 }
0x10b7   :  { %10466 = vmatprep.subr.bf16.mxu0 %v12523_v12  ;;  %10478 = vmatprep.subr.bf16.mxu1 %v14203_v17 }
0x10ba   :  { %10468 = vmatpush1.bf16.msra.mxu0 %v12527_v14  ;;  %10480 = vmatpush3.bf16.msra.mxu1 %v12529_v59 }
0x10bb   :  { %10482 = vmatprep.subr.bf16.mxu0 %v12020_v6  ;;  %10498 = vmatprep.subr.bf16.mxu1 %v12022_v10 }
0x10bd   :  { %8448 = vmatmul.mubr.msk.f32.vlgmr.msra.gmra.mrb[38].mxu0 %vm314_vm1, %v13186_v2  ;;  %9192 = vmatmul.mubr.msk.f32.vlgmr.msra.gmra.mrb[58].mxu1 %vm314_vm1, %v13186_v2 }
0x10be   :  { %10484 = vmatpush1.bf16.msra.mxu0 %v12024_v11  ;;  %10500 = vmatpush1.bf16.msra.mxu1 %v12027_v15 }
0x10bf   :  { %10486 = vmatprep.subr.bf16.mxu0 %v12031_v19  ;;  %10502 = vmatprep.subr.bf16.mxu1 %v12033_v20 }
0x10c0   :  { %5409 = vmatprep.mubr.f32.mxu0 %v14193_v1  ;;  %5480 = vmatprep.mubr.f32.mxu1 %v14193_v1 }
0x10c2   :  { %10488 = vmatpush1.bf16.msra.mxu0 %v12036_v24  ;;  %10504 = vmatpush1.bf16.msra.mxu1 %v12040_v28 }
0x10c3   :  { %10490 = vmatprep.subr.bf16.mxu0 %v12042_v29  ;;  %10506 = vmatprep.subr.bf16.mxu1 %v14539_v48  ;;  %v14580_v48 = vld [vmem:[#allocation70_spill] sm:$0xff] }
0x10c6   :  { %10492 = vmatpush1.bf16.msra.mxu0 %v14540_v16  ;;  %10508 = vmatpush1.bf16.msra.mxu1 %v14541_v46 }
0x10c7   :  { %10494 = vmatprep.subr.bf16.mxu0 %v14542_v41  ;;  %10510 = vmatprep.subr.bf16.mxu1 %v14543_v55  ;;  %v14562_v55 = vld [vmem:[#allocation52_spill] sm:$0xff] }
0x10ca   :  { %10496 = vmatpush1.bf16.msra.mxu0 %v14544_v36  ;;  %10512 = vmatpush1.bf16.msra.mxu1 %v14545_v56  ;;  %v14555_v56 = vld [vmem:[#allocation45_spill] sm:$0xff]  ;;  %v14561_v36 = vld [vmem:[#allocation51_spill] sm:$0xff] }
0x10cb   :  { %10514 = vmatprep.subr.bf16.mxu0 %v14546_v51  ;;  %10546 = vmatprep.subr.bf16.mxu1 %v14547_v8  ;;  %v14553_v8 = vld [vmem:[#allocation43_spill] sm:$0xff]  ;;  %v14554_v51 = vld [vmem:[#allocation44_spill] sm:$0xff] }
0x10cd   :  { %8453 = vmatmul.mubr.msk.f32.vlgmr.msra.gmra.mrb[40].mxu0 %vm314_vm1, %v13192_v35  ;;  %8454 = vmatmul.mubr.msk.f32.vlgmr.msra.gmra.mrb[60].mxu1 %vm314_vm1, %v13192_v35  ;;  %v14556_v35 = vld [vmem:[#allocation46_spill] sm:$0xff] }
0x10ce   :  { %10516 = vmatpush1.bf16.msra.mxu0 %v14548_v30  ;;  %10548 = vmatpush1.bf16.msra.mxu1 %v14549_v50  ;;  %v14557_v30 = vld [vmem:[#allocation47_spill] sm:$0xff]  ;;  %v14558_v50 = vld [vmem:[#allocation48_spill] sm:$0xff] }
0x10cf   :  { %10518 = vmatprep.subr.bf16.mxu0 %v14550_v26  ;;  %10550 = vmatprep.subr.bf16.mxu1 %v14551_v62  ;;  %v14559_v26 = vld [vmem:[#allocation49_spill] sm:$0xff]  ;;  %v14560_v62 = vld [vmem:[#allocation50_spill] sm:$0xff] }
0x10d0   :  { %5586 = vmatprep.mubr.f32.mxu0 %v14193_v1  ;;  %5657 = vmatprep.mubr.f32.mxu1 %v14193_v1 }
0x10d2   :  { %10520 = vmatpush1.bf16.msra.mxu0 %v14552_v25  ;;  %10552 = vmatpush1.bf16.msra.mxu1 %v14553_v8  ;;  %v14563_v25 = vld [vmem:[#allocation53_spill] sm:$0xff]  ;;  %v14564_v8 = vld [vmem:[#allocation54_spill] sm:$0xff] }
0x10d3   :  { %10522 = vmatprep.subr.bf16.mxu0 %v14554_v51  ;;  %10554 = vmatprep.subr.bf16.mxu1 %v14555_v56  ;;  %v14565_v51 = vld [vmem:[#allocation55_spill] sm:$0xff]  ;;  %v14566_v56 = vld [vmem:[#allocation56_spill] sm:$0xff] }
0x10d6   :  { %10524 = vmatpush1.bf16.msra.mxu0 %v14556_v35  ;;  %10556 = vmatpush1.bf16.msra.mxu1 %v14557_v30  ;;  %v14567_v35 = vld [vmem:[#allocation57_spill] sm:$0xff]  ;;  %v14568_v30 = vld [vmem:[#allocation58_spill] sm:$0xff] }
0x10d7   :  { %10526 = vmatprep.subr.bf16.mxu0 %v14558_v50  ;;  %10558 = vmatprep.subr.bf16.mxu1 %v14559_v26  ;;  %v14569_v50 = vld [vmem:[#allocation59_spill] sm:$0xff]  ;;  %v14570_v26 = vld [vmem:[#allocation60_spill] sm:$0xff] }
0x10da   :  { %10528 = vmatpush1.bf16.msra.mxu0 %v14560_v62  ;;  %10560 = vmatpush1.bf16.msra.mxu1 %v14561_v36  ;;  %v14571_v62 = vld [vmem:[#allocation61_spill] sm:$0xff]  ;;  %v14572_v36 = vld [vmem:[#allocation62_spill] sm:$0xff] }
0x10db   :  { %10530 = vmatprep.subr.bf16.mxu0 %v14562_v55  ;;  %10562 = vmatprep.subr.bf16.mxu1 %v14563_v25  ;;  %v14573_v55 = vld [vmem:[#allocation63_spill] sm:$0xff]  ;;  %v14574_v25 = vld [vmem:[#allocation64_spill] sm:$0xff] }
0x10de   :  { %10532 = vmatpush1.bf16.msra.mxu0 %v14564_v8  ;;  %10564 = vmatpush1.bf16.msra.mxu1 %v14565_v51  ;;  %v14575_v8 = vld [vmem:[#allocation65_spill] sm:$0xff]  ;;  %v14576_v51 = vld [vmem:[#allocation66_spill] sm:$0xff] }
0x10df   :  { %10534 = vmatprep.subr.bf16.mxu0 %v14566_v56  ;;  %10566 = vmatprep.subr.bf16.mxu1 %v14567_v35  ;;  %v14577_v56 = vld [vmem:[#allocation67_spill] sm:$0xff]  ;;  %v14578_v35 = vld [vmem:[#allocation80_spill] sm:$0xff] }
0x10e2   :  { %10536 = vmatpush1.bf16.msra.mxu0 %v14568_v30  ;;  %10568 = vmatpush1.bf16.msra.mxu1 %v14569_v50 }
0x10e3   :  { %10538 = vmatprep.subr.bf16.mxu0 %v14570_v26  ;;  %10570 = vmatprep.subr.bf16.mxu1 %v14571_v62 }
0x10e6   :  { %10540 = vmatpush1.bf16.msra.mxu0 %v14572_v36  ;;  %10572 = vmatpush1.bf16.msra.mxu1 %v14573_v55 }
0x10e7   :  { %10542 = vmatprep.subr.bf16.mxu0 %v14574_v25  ;;  %10574 = vmatprep.subr.bf16.mxu1 %v14575_v8  ;;  %v14579_v25 = vld [vmem:[#allocation69_spill] sm:$0xff] }
0x10ea   :  { %10544 = vmatpush1.bf16.msra.mxu0 %v14576_v51  ;;  %10576 = vmatpush1.bf16.msra.mxu1 %v14577_v56  ;;  %v5336_v51 = vpop.permute.xlu0 %5335 }
0x10eb   :  { %10578 = vmatprep.subr.bf16.mxu0 %v14578_v35  ;;  %10593 = vmatprep.subr.bf16.mxu1 %v14203_v17  ;;  %v5338_v35 = vmul.f32 %v5336_v51, %v14580_v48 }
0x1180   :  { %v5161_v50 = vpop.f32.mrb[56].mxu1 }
0x1181   :  { %v9174_v26 = vpop.f32.mrb[57].mxu1 }
0x1182   :  { %v14581_v26 = vld [vmem:[#allocation71_spill] sm:$0xff] }
0x1183   :  { %v5339_v20 = vmul.f32 %v5336_v51, %v14581_v26  ;;  %v5340_v26 = vmul.f32 %v5336_v51, %v14346_v7 }
0x1190   :  { %v5234_v30 = vpop.f32.mrb[38].mxu0  ;;  %v5305_v62 = vpop.f32.mrb[58].mxu1 }
0x1191   :  { %v11135_v36 = vadd.f32 %v5234_v30, %v14500_v23  ;;  %v5236_v41 = vpop.f32.mrb[39].mxu0  ;;  %v9193_v55 = vpop.f32.mrb[59].mxu1 }
0x1192   :  { %v11136_v16 = vadd.f32 %v5236_v41, %v14579_v25 }
0x1193   :  { %v8450_v46 = vmul.f32 -1.442695, %v11135_v36 }
0x1194   :  { %v8451_v8 = vmul.f32 -1.442695, %v11136_v16  ;;  %v5341_v16 = vmul.f32 %v5336_v51, %v14425_v31 }
0x1195   :  { %11450 = vpow2.f32 %v8450_v46 }
0x1196   :  { %11452 = vpow2.f32 %v8451_v8 }
0x119f   :  { %v11451_v56 = vpop.eup %11450 }
0x11a0   :  { %v5313_v29 = vadd.f32 1.0, %v11451_v56  ;;  %v5411_v28 = vpop.f32.mrb[40].mxu0  ;;  %v5482_v24 = vpop.f32.mrb[60].mxu1 }
0x11a1   :  { %v5487_v19 = vadd.f32 %v5411_v28, %v5338_v35  ;;  %v5413_v15 = vpop.f32.mrb[41].mxu0  ;;  %v5484_v30 = vpop.f32.mrb[61].mxu1  ;;  %v5162_v35 = vadd.f32 %v5161_v50, %v12618_v54 }
0x11a2   :  { %11454 = vrcp.f32 %v5313_v29  ;;  %v5488_v55 = vadd.f32 %v5413_v15, %v5339_v20  ;;  %v11453_v8 = vpop.eup %11452  ;;  %v5490_v48 = vadd.f32 %v5484_v30, %v5341_v16  ;;  %v13374_v15 = vld [vmem:[%s13909_s13] ss:$0 sm:$0xff]  ;;  %v5489_v20 = vadd.f32 %v5482_v24, %v5340_v26 }
0x11a3   :  { %v5491_v36 = vadd.f32 %v5487_v19, %v14262_v34  ;;  %v5320_v56 = vadd.f32 1.0, %v11453_v8  ;;  %v5323_v19 = vadd.f32 %v13374_v15, %v5305_v62 }
0x11a4   :  { %v5492_v46 = vadd.f32 %v5488_v55, %v14344_v5  ;;  %v5494_v28 = vadd.f32 %v5490_v48, %v14266_v43 }
0x11a5   :  { %v8455_v41 = vmul.f32 -1.442695, %v5491_v36  ;;  %v5493_v36 = vadd.f32 %v5489_v20, %v14347_v58 }
0x11a6   :  { %v8456_v25 = vmul.f32 -1.442695, %v5492_v46  ;;  %v8457_v30 = vmul.f32 -1.442695, %v5494_v28 }
0x11a7   :  { %11456 = vpow2.f32 %v8455_v41 }
0x11a8   :  { %11458 = vpow2.f32 %v8456_v25 }
0x11a9   :  { %11460 = vrcp.f32 %v5320_v56 }
0x11ac   :  { %v11455_v29 = vpop.eup %11454 }
0x11ad   :  { %v5324_v55 = vmul.f32 %v11455_v29, %v5323_v19 }
0x11af   :  { %v5325_v25 = vadd.f32 %v5324_v55, %v5162_v35 }
0x11b1   :  { %v11457_v51 = vpop.eup %11456  ;;  %11462 = vtanh.f32 %v5325_v25 }
0x11b2   :  { %v11459_v48 = vpop.eup %11458  ;;  %v5498_v46 = vadd.f32 1.0, %v11457_v51  ;;  %11464 = vpow2.f32 %v8457_v30 }
0x11b3   :  { %11466 = vtanh.f32 %v5493_v36  ;;  %v5504_v16 = vadd.f32 1.0, %v11459_v48  ;;  %v11461_v62 = vpop.eup %11460  ;;  %v5520_v48 = vpop.permute.xlu1 %5519 }
0x11b4   :  { %11468 = vrcp.f32 %v5498_v46  ;;  %v5327_v24 = vsub.f32 1.0, %v11461_v62  ;;  %v5329_v8 = vmul.f32 %v11461_v62, %v13186_v2  ;;  %v14583_v46 = vld [vmem:[#allocation90_spill] sm:$0xff]  ;;  %v14585_v62 = vld [vmem:[#allocation92_spill] sm:$0xff] }
0x11b5   :  { %11470 = vrcp.f32 %v5504_v16  ;;  %v14584_v16 = vld [vmem:[#allocation91_spill] sm:$0xff] }
0x11bb   :  { %v11463_v26 = vpop.eup %11462 }
0x11bc   :  { %v11465_v41 = vpop.eup %11464  ;;  %v5328_v50 = vmul.f32 %v11463_v26, %v5327_v24 }
0x11bd   :  { %v11467_v56 = vpop.eup %11466  ;;  %v5511_v35 = vadd.f32 1.0, %v11465_v41  ;;  %v14586_v41 = vld [vmem:[#allocation93_spill] sm:$0xff] }
0x11be   :  { %v11469_v28 = vpop.eup %11468  ;;  %v13380_v19 = vadd.f32 %v5329_v8, %v5328_v50 }
0x11bf   :  { %v11471_v20 = vpop.eup %11470  ;;  %v5515_v29 = vmul.f32 %v11469_v28, %v11467_v56  ;;  %11472 = vrcp.f32 %v5511_v35 }
0x11c0   :  { %v5514_v55 = vmul.f32 %v11471_v20, %v13189_v37  ;;  %v14582_v37 = vld [vmem:[#allocation89_spill] sm:$0xff] }
0x11c2   :  { %v13383_v30 = vadd.f32 %v5515_v29, %v5514_v55 }
0x11c4   :  { %11474 = vtanh.f32 %v13383_v30 }
0x11c9   :  { %v11473_v25 = vpop.eup %11472 }
0x11ce   :  { %v11475_v36 = vpop.eup %11474 }
0x11cf   :  { %v13386_v51 = vmul.f32 %v11475_v36, %v11473_v25 }
0x11d1   :  { %v5521_v2 = vadd.f32 %v5520_v48, %v13386_v51 }
0x11d3   :  { %5587 = vmatmul.mubr.f32.vlgmr.msra.gmra.mrb[42].mxu0 %v5521_v2  ;;  %5658 = vmatmul.mubr.f32.vlgmr.msra.gmra.mrb[62].mxu1 %v5521_v2 }
0x11d4   :  { %10580 = vmatpush1.bf16.msra.mxu0 %v14349_v13  ;;  %10595 = vmatpush3.bf16.msra.mxu1 %v14426_v21 }
0x11d5   :  { %10582 = vmatprep.subr.bf16.mxu0 %v14427_v53  ;;  %10596 = vmatprep.subr.bf16.mxu1 %v14203_v17 }
0x11d6   :  { %5755 = vmatprep.mubr.f32.mxu0 %v14193_v1  ;;  %9210 = vmatprep.mubr.msk.f32.mxu1 %vm11824_vm0, %v14193_v1 }
0x11d8   :  { %10584 = vmatpush1.bf16.msra.mxu0 %v14504_v38  ;;  %10598 = vmatpush3.bf16.msra.mxu1 %v14505_v4 }
0x11d9   :  { %10586 = vmatprep.subr.bf16.mxu0 %v14506_v63  ;;  %10599 = vmatprep.subr.bf16.mxu1 %v14203_v17 }
0x11dc   :  { %10588 = vmatpush1.bf16.msra.mxu0 %v14507_v18  ;;  %10601 = vmatpush3.bf16.msra.mxu1 %v14508_v61 }
0x11dd   :  { %10590 = vmatprep.subr.bf16.mxu0 %v14582_v37  ;;  %10602 = vmatprep.subr.bf16.mxu1 %v14203_v17 }
0x11e0   :  { %10592 = vmatpush1.bf16.msra.mxu0 %v14583_v46  ;;  %10604 = vmatpush3.bf16.msra.mxu1 %v14584_v16 }
0x11e1   :  { %10606 = vmatprep.subr.bf16.mxu0 %v14585_v62  ;;  %10621 = vmatprep.subr.bf16.mxu1 %v14203_v17 }
0x12a6   :  { %v5588_v24 = vpop.f32.mrb[42].mxu0  ;;  %v5659_v26 = vpop.f32.mrb[62].mxu1 }
0x12a7   :  { %v5589_v50 = vadd.f32 %v5588_v24, %v14586_v41  ;;  %v5590_v8 = vpop.f32.mrb[43].mxu0  ;;  %v5661_v56 = vpop.f32.mrb[63].mxu1  ;;  %v5660_v25 = vadd.f32 %v5659_v26, %v14364_v57 }
0x12a8   :  { %v5591_v28 = vadd.f32 %v5590_v8, %v14438_v3  ;;  %v5662_v35 = vadd.f32 %v5661_v56, %v14363_v32 }
0x12a9   :  { %v8458_v20 = vmul.f32 -1.442695, %v5589_v50 }
0x12aa   :  { %v8459_v29 = vmul.f32 -1.442695, %v5591_v28  ;;  %v8460_v55 = vmul.f32 -1.442695, %v5662_v35 }
0x12ab   :  { %11476 = vpow2.f32 %v8458_v20 }
0x12ac   :  { %11478 = vpow2.f32 %v8459_v29 }
0x12ad   :  { %11480 = vpow2.f32 %v8460_v55 }
0x12ae   :  { %11482 = vtanh.f32 %v5660_v25  ;;  %v14590_v25 = vld [vmem:[#allocation103_spill] sm:$0xff] }
0x12b5   :  { %v11477_v36 = vpop.eup %11476 }
0x12b6   :  { %v11479_v48 = vpop.eup %11478  ;;  %v5667_v2 = vadd.f32 1.0, %v11477_v36  ;;  %v14591_v36 = vld [vmem:[#allocation102_spill] sm:$0xff] }
0x12b7   :  { %v5673_v62 = vadd.f32 1.0, %v11479_v48  ;;  %v11481_v24 = vpop.eup %11480  ;;  %v14592_v48 = vld [vmem:[#allocation104_spill] sm:$0xff] }
0x12b8   :  { %11484 = vrcp.f32 %v5667_v2  ;;  %v11483_v41 = vpop.eup %11482  ;;  %v5680_v20 = vadd.f32 1.0, %v11481_v24  ;;  %v14593_v2 = vld [vmem:[#allocation106_spill] sm:$0xff]  ;;  %v14594_v24 = vld [vmem:[#allocation105_spill] sm:$0xff] }
0x12b9   :  { %11486 = vrcp.f32 %v5673_v62  ;;  %v14587_v62 = vld [vmem:[#allocation100_spill] sm:$0xff] }
0x12ba   :  { %11488 = vrcp.f32 %v5680_v20  ;;  %v14598_v20 = vld [vmem:[#allocation110_spill] sm:$0xff] }
0x12c2   :  { %v11485_v8 = vpop.eup %11484 }
0x12c3   :  { %v11487_v50 = vpop.eup %11486  ;;  %v5684_v28 = vmul.f32 %v11485_v8, %v11483_v41  ;;  %v14588_v41 = vld [vmem:[#allocation99_spill] sm:$0xff] }
0x12c4   :  { %v5683_v29 = vmul.f32 %v11487_v50, %v13219_v60  ;;  %v11489_v26 = vpop.eup %11488  ;;  %v14589_v60 = vld [vmem:[#allocation101_spill] sm:$0xff]  ;;  %v14595_v8 = vld [vmem:[#allocation107_spill] sm:$0xff]  ;;  %v14596_v50 = vld [vmem:[#allocation108_spill] sm:$0xff] }
0x12c6   :  { %v13413_v56 = vadd.f32 %v5684_v28, %v5683_v29  ;;  %v14597_v28 = vld [vmem:[#allocation109_spill] sm:$0xff]  ;;  %v14599_v29 = vld [vmem:[#allocation111_spill] sm:$0xff] }
0x12c8   :  { %11490 = vtanh.f32 %v13413_v56 }
0x12d2   :  { %v11491_v35 = vpop.eup %11490 }
0x12d3   :  { %v5687_v55 = vmul.f32 %v11491_v35, %v11489_v26  ;;  %v14600_v26 = vld [vmem:[#allocation112_spill] sm:$0xff]  ;;  %v14601_v35 = vld [vmem:[#allocation113_spill] sm:$0xff] }
0x12d5   :  { %6493 = vrot.lane.b32.xlu1 %v5687_v55, %s11822_s20  ;;  %8461 = vmatmul.mubr.msk.f32.vlgmr.msra.gmra.mrb[44].mxu0 %vm314_vm1, %v5687_v55 }
0x12d6   :  { %9211 = vmatmul.mubr.msk.f32.vlgmr.msra.gmra.mrb[64].mxu1 %vm314_vm1, %v5687_v55  ;;  %10608 = vmatpush1.bf16.msra.mxu0 %v14514_v42  ;;  %v14602_v55 = vld [vmem:[#allocation114_spill] sm:$0xff] }
0x12d7   :  { %10623 = vmatpush3.bf16.msra.mxu1 %v14587_v62  ;;  %10610 = vmatprep.subr.bf16.mxu0 %v14588_v41 }
0x12d8   :  { %10624 = vmatprep.subr.bf16.mxu1 %v14203_v17  ;;  %5896 = vmatprep.mubr.f32.mxu0 %v14193_v1 }
0x12d9   :  { %9229 = vmatprep.mubr.msk.f32.mxu1 %vm11824_vm0, %v14193_v1 }
0x12da   :  { %10612 = vmatpush1.bf16.msra.mxu0 %v14589_v60 }
0x12db   :  { %10626 = vmatpush3.bf16.msra.mxu1 %v14590_v25  ;;  %10614 = vmatprep.subr.bf16.mxu0 %v14591_v36 }
0x12dc   :  { %10627 = vmatprep.subr.bf16.mxu1 %v14203_v17 }
0x12de   :  { %10616 = vmatpush1.bf16.msra.mxu0 %v14592_v48 }
0x12df   :  { %10629 = vmatpush3.bf16.msra.mxu1 %v14593_v2  ;;  %10618 = vmatprep.subr.bf16.mxu0 %v14594_v24  ;;  %v14609_v24 = vld [vmem:[#allocation121_spill] sm:$0xff]  ;;  %v14610_v2 = vld [vmem:[#allocation122_spill] sm:$0xff] }
0x12e0   :  { %10630 = vmatprep.subr.bf16.mxu1 %v14203_v17 }
0x12e2   :  { %10620 = vmatpush1.bf16.msra.mxu0 %v14595_v8  ;;  %v14608_v8 = vld [vmem:[#allocation120_spill] sm:$0xff] }
0x12e3   :  { %10632 = vmatpush3.bf16.msra.mxu1 %v14596_v50  ;;  %10634 = vmatprep.subr.bf16.mxu0 %v14597_v28  ;;  %v14603_v28 = vld [vmem:[#allocation115_spill] sm:$0xff] }
0x12e4   :  { %10649 = vmatprep.subr.bf16.mxu1 %v14203_v17  ;;  %v14607_v50 = vld [vmem:[#allocation119_spill] sm:$0xff] }
0x12e5   :  { %8463 = vmatmul.mubr.msk.f32.vlgmr.msra.gmra.mrb[44].mxu0 %vm314_vm1, %v13277_v40 }
0x12e6   :  { %9230 = vmatmul.mubr.msk.f32.vlgmr.msra.gmra.mrb[66].mxu1 %vm314_vm1, %v13277_v40  ;;  %10636 = vmatpush1.bf16.msra.mxu0 %v14598_v20  ;;  %v14604_v20 = vld [vmem:[#allocation116_spill] sm:$0xff] }
0x12e7   :  { %10651 = vmatpush3.bf16.msra.mxu1 %v14599_v29  ;;  %10638 = vmatprep.subr.bf16.mxu0 %v14600_v26  ;;  %v14605_v29 = vld [vmem:[#allocation117_spill] sm:$0xff]  ;;  %v14606_v26 = vld [vmem:[#allocation118_spill] sm:$0xff] }
0x12e8   :  { %10652 = vmatprep.subr.bf16.mxu1 %v14203_v17  ;;  %6062 = vmatprep.mubr.f32.mxu0 %v14193_v1 }
0x12e9   :  { %9248 = vmatprep.mubr.msk.f32.mxu1 %vm11824_vm0, %v14193_v1 }
0x12ea   :  { %10640 = vmatpush1.bf16.msra.mxu0 %v14601_v35 }
0x12eb   :  { %10654 = vmatpush3.bf16.msra.mxu1 %v14602_v55  ;;  %10642 = vmatprep.subr.bf16.mxu0 %v14603_v28 }
0x12ec   :  { %10655 = vmatprep.subr.bf16.mxu1 %v14203_v17 }
0x12ee   :  { %10644 = vmatpush1.bf16.msra.mxu0 %v14604_v20 }
0x12ef   :  { %10657 = vmatpush3.bf16.msra.mxu1 %v14605_v29  ;;  %10646 = vmatprep.subr.bf16.mxu0 %v14606_v26 }
0x12f0   :  { %10658 = vmatprep.subr.bf16.mxu1 %v14203_v17 }
0x12f2   :  { %10648 = vmatpush1.bf16.msra.mxu0 %v14607_v50 }
0x12f3   :  { %10660 = vmatpush3.bf16.msra.mxu1 %v14608_v8  ;;  %10662 = vmatprep.subr.bf16.mxu0 %v14609_v24 }
0x12f4   :  { %10677 = vmatprep.subr.bf16.mxu1 %v14203_v17 }
0x13a9   :  { %v5828_v55 = vpop.f32.mrb[64].mxu1 }
0x13aa   :  { %v9212_v28 = vpop.f32.mrb[65].mxu1  ;;  %v5829_v42 = vadd.f32 %v5828_v55, %v14314_v22  ;;  %v14621_v55 = vld [vmem:[#allocation33_spill] sm:$0xff] }
0x13b8   :  { %v5898_v35 = vpop.f32.mrb[44].mxu0 }
0x13b9   :  { %v11137_v48 = vadd.f32 %v5898_v35, %v14610_v2  ;;  %v5969_v20 = vpop.f32.mrb[66].mxu1  ;;  %v5900_v36 = vpop.f32.mrb[45].mxu0 }
0x13ba   :  { %v9231_v29 = vpop.f32.mrb[67].mxu1  ;;  %v11138_v26 = vadd.f32 %v5900_v36, %v14313_v9  ;;  %v5987_v62 = vadd.f32 %v13272_v33, %v5969_v20  ;;  %v14612_v33 = vld [vmem:[#allocation24_spill] sm:$0xff] }
0x13bb   :  { %v8465_v25 = vmul.f32 -1.442695, %v11137_v48  ;;  %v14620_v20 = vld [vmem:[#allocation32_spill] sm:$0xff] }
0x13bc   :  { %v8466_v60 = vmul.f32 -1.442695, %v11138_v26 }
0x13bd   :  { %11492 = vpow2.f32 %v8465_v25 }
0x13be   :  { %11494 = vpow2.f32 %v8466_v60 }
0x13c7   :  { %v11493_v50 = vpop.eup %11492 }
0x13c8   :  { %v5977_v8 = vadd.f32 1.0, %v11493_v50  ;;  %v11495_v24 = vpop.eup %11494  ;;  %v14619_v50 = vld [vmem:[#allocation31_spill] sm:$0xff] }
0x13c9   :  { %v5984_v41 = vadd.f32 1.0, %v11495_v24  ;;  %v14617_v24 = vld [vmem:[#allocation29_spill] sm:$0xff] }
0x13ca   :  { %11496 = vrcp.f32 %v5977_v8  ;;  %v14618_v8 = vld [vmem:[#allocation30_spill] sm:$0xff] }
0x13cb   :  { %11498 = vrcp.f32 %v5984_v41  ;;  %v14615_v41 = vld [vmem:[#allocation27_spill] sm:$0xff] }
0x13d4   :  { %v11497_v28 = vpop.eup %11496 }
0x13d5   :  { %v5988_v35 = vmul.f32 %v11497_v28, %v5987_v62  ;;  %v11499_v48 = vpop.eup %11498  ;;  %v14614_v62 = vld [vmem:[#allocation26_spill] sm:$0xff] }
0x13d6   :  { %v5991_v29 = vsub.f32 1.0, %v11499_v48  ;;  %v5993_v60 = vmul.f32 %v11499_v48, %v13277_v40  ;;  %v14613_v40 = vld [vmem:[#allocation25_spill] sm:$0xff]  ;;  %v14622_v28 = vld [vmem:[#allocation34_spill] sm:$0xff]  ;;  %v14624_v48 = vld [vmem:[#allocation36_spill] sm:$0xff] }
0x13d7   :  { %v5989_v2 = vadd.f32 %v5988_v35, %v5829_v42  ;;  %v14611_v42 = vld [vmem:[#allocation23_spill] sm:$0xff] }
0x13d8   :  { %v14623_v35 = vld [vmem:[#allocation35_spill] sm:$0xff] }
0x13d9   :  { %11500 = vtanh.f32 %v5989_v2  ;;  %v14616_v2 = vld [vmem:[#allocation28_spill] sm:$0xff] }
0x13e3   :  { %v11501_v36 = vpop.eup %11500 }
0x13e4   :  { %v5992_v25 = vmul.f32 %v11501_v36, %v5991_v29  ;;  %v14625_v29 = vld [vmem:[#allocation37_spill] sm:$0xff]  ;;  %v14626_v36 = vld [vmem:[#allocation38_spill] sm:$0xff] }
0x13e6   :  { %v13466_v26 = vadd.f32 %v5993_v60, %v5992_v25  ;;  %v14627_v25 = vld [vmem:[#allocation39_spill] sm:$0xff]  ;;  %v14628_v60 = vld [vmem:[#allocation40_spill] sm:$0xff] }
0x13e8   :  { %8467 = vmatmul.mubr.msk.f32.vlgmr.msra.gmra.mrb[46].mxu0 %vm314_vm1, %v13466_v26  ;;  %9249 = vmatmul.mubr.msk.f32.vlgmr.msra.gmra.mrb[68].mxu1 %vm314_vm1, %v13466_v26 }
0x13e9   :  { %10664 = vmatpush1.bf16.msra.mxu0 %v12490_v52  ;;  %10679 = vmatpush3.bf16.msra.mxu1 %v12492_v49 }
0x13ea   :  { %10666 = vmatprep.subr.bf16.mxu0 %v12496_v44  ;;  %10680 = vmatprep.subr.bf16.mxu1 %v14203_v17 }
0x13eb   :  { %6206 = vmatprep.mubr.f32.mxu0 %v14193_v1  ;;  %9267 = vmatprep.mubr.msk.f32.mxu1 %vm11824_vm0, %v14193_v1 }
0x13ed   :  { %10668 = vmatpush1.bf16.msra.mxu0 %v12504_v45  ;;  %10682 = vmatpush3.bf16.msra.mxu1 %v12506_v27 }
0x13ee   :  { %10670 = vmatprep.subr.bf16.mxu0 %v12510_v39  ;;  %10683 = vmatprep.subr.bf16.mxu1 %v14203_v17 }
0x13f1   :  { %10672 = vmatpush1.bf16.msra.mxu0 %v12517_v0  ;;  %10685 = vmatpush3.bf16.msra.mxu1 %v12519_v47 }
0x13f2   :  { %10674 = vmatprep.subr.bf16.mxu0 %v12523_v12  ;;  %10686 = vmatprep.subr.bf16.mxu1 %v14203_v17 }
0x13f5   :  { %10676 = vmatpush1.bf16.msra.mxu0 %v12527_v14  ;;  %10688 = vmatpush3.bf16.msra.mxu1 %v12529_v59 }
0x13f6   :  { %10690 = vmatprep.subr.bf16.mxu0 %v12020_v6  ;;  %10706 = vmatprep.subr.bf16.mxu1 %v12022_v10 }
0x13f8   :  { %8469 = vmatmul.mubr.msk.f32.vlgmr.msra.gmra.mrb[46].mxu0 %vm314_vm1, %v13380_v19  ;;  %9268 = vmatmul.mubr.msk.f32.vlgmr.msra.gmra.mrb[70].mxu1 %vm314_vm1, %v13380_v19 }
0x13f9   :  { %10692 = vmatpush1.bf16.msra.mxu0 %v12024_v11  ;;  %10708 = vmatpush1.bf16.msra.mxu1 %v14611_v42 }
0x13fa   :  { %10694 = vmatprep.subr.bf16.mxu0 %v14612_v33  ;;  %10710 = vmatprep.subr.bf16.mxu1 %v14613_v40 }
0x13fb   :  { %6383 = vmatprep.mubr.f32.mxu0 %v14193_v1  ;;  %6454 = vmatprep.mubr.f32.mxu1 %v14193_v1 }
0x13fd   :  { %10696 = vmatpush1.bf16.msra.mxu0 %v14614_v62  ;;  %10712 = vmatpush1.bf16.msra.mxu1 %v14615_v41  ;;  %v14658_v41 = vld [vmem:[#allocation70_spill] sm:$0xff] }
0x13fe   :  { %10698 = vmatprep.subr.bf16.mxu0 %v14616_v2  ;;  %10714 = vmatprep.subr.bf16.mxu1 %v14617_v24 }
0x1401   :  { %10700 = vmatpush1.bf16.msra.mxu0 %v14618_v8  ;;  %10716 = vmatpush1.bf16.msra.mxu1 %v14619_v50  ;;  %v14640_v50 = vld [vmem:[#allocation52_spill] sm:$0xff] }
0x1402   :  { %10702 = vmatprep.subr.bf16.mxu0 %v14620_v20  ;;  %10718 = vmatprep.subr.bf16.mxu1 %v14621_v55  ;;  %v14629_v55 = vld [vmem:[#allocation41_spill] sm:$0xff]  ;;  %v14639_v20 = vld [vmem:[#allocation51_spill] sm:$0xff] }
0x1405   :  { %10704 = vmatpush1.bf16.msra.mxu0 %v14622_v28  ;;  %10720 = vmatpush1.bf16.msra.mxu1 %v14623_v35  ;;  %v14632_v35 = vld [vmem:[#allocation44_spill] sm:$0xff]  ;;  %v14633_v28 = vld [vmem:[#allocation45_spill] sm:$0xff] }
0x1406   :  { %10722 = vmatprep.subr.bf16.mxu0 %v14624_v48  ;;  %10754 = vmatprep.subr.bf16.mxu1 %v14625_v29  ;;  %v14630_v48 = vld [vmem:[#allocation42_spill] sm:$0xff]  ;;  %v14631_v29 = vld [vmem:[#allocation43_spill] sm:$0xff] }
0x1408   :  { %8474 = vmatmul.mubr.msk.f32.vlgmr.msra.gmra.mrb[48].mxu0 %vm314_vm1, %v13386_v51  ;;  %8475 = vmatmul.mubr.msk.f32.vlgmr.msra.gmra.mrb[72].mxu1 %vm314_vm1, %v13386_v51  ;;  %v14634_v51 = vld [vmem:[#allocation46_spill] sm:$0xff] }
0x1409   :  { %10724 = vmatpush1.bf16.msra.mxu0 %v14626_v36  ;;  %10756 = vmatpush1.bf16.msra.mxu1 %v14627_v25  ;;  %v14635_v36 = vld [vmem:[#allocation47_spill] sm:$0xff]  ;;  %v14636_v25 = vld [vmem:[#allocation48_spill] sm:$0xff] }
0x140a   :  { %10726 = vmatprep.subr.bf16.mxu0 %v14628_v60  ;;  %10758 = vmatprep.subr.bf16.mxu1 %v14629_v55  ;;  %v14637_v60 = vld [vmem:[#allocation49_spill] sm:$0xff]  ;;  %v14638_v55 = vld [vmem:[#allocation50_spill] sm:$0xff] }
0x140b   :  { %6560 = vmatprep.mubr.f32.mxu0 %v14193_v1  ;;  %6631 = vmatprep.mubr.f32.mxu1 %v14193_v1 }
0x140d   :  { %10728 = vmatpush1.bf16.msra.mxu0 %v14630_v48  ;;  %10760 = vmatpush1.bf16.msra.mxu1 %v14631_v29  ;;  %v14641_v48 = vld [vmem:[#allocation53_spill] sm:$0xff]  ;;  %v14642_v29 = vld [vmem:[#allocation54_spill] sm:$0xff] }
0x140e   :  { %10730 = vmatprep.subr.bf16.mxu0 %v14632_v35  ;;  %10762 = vmatprep.subr.bf16.mxu1 %v14633_v28  ;;  %v14643_v35 = vld [vmem:[#allocation55_spill] sm:$0xff]  ;;  %v14644_v28 = vld [vmem:[#allocation56_spill] sm:$0xff] }
0x1411   :  { %10732 = vmatpush1.bf16.msra.mxu0 %v14634_v51  ;;  %10764 = vmatpush1.bf16.msra.mxu1 %v14635_v36  ;;  %v14645_v51 = vld [vmem:[#allocation57_spill] sm:$0xff]  ;;  %v14646_v36 = vld [vmem:[#allocation58_spill] sm:$0xff] }
0x1412   :  { %10734 = vmatprep.subr.bf16.mxu0 %v14636_v25  ;;  %10766 = vmatprep.subr.bf16.mxu1 %v14637_v60  ;;  %v14647_v25 = vld [vmem:[#allocation59_spill] sm:$0xff]  ;;  %v14648_v60 = vld [vmem:[#allocation60_spill] sm:$0xff] }
0x1415   :  { %10736 = vmatpush1.bf16.msra.mxu0 %v14638_v55  ;;  %10768 = vmatpush1.bf16.msra.mxu1 %v14639_v20  ;;  %v14649_v55 = vld [vmem:[#allocation61_spill] sm:$0xff]  ;;  %v14650_v20 = vld [vmem:[#allocation62_spill] sm:$0xff] }
0x1416   :  { %10738 = vmatprep.subr.bf16.mxu0 %v14640_v50  ;;  %10770 = vmatprep.subr.bf16.mxu1 %v14641_v48  ;;  %v14651_v50 = vld [vmem:[#allocation63_spill] sm:$0xff]  ;;  %v14652_v48 = vld [vmem:[#allocation64_spill] sm:$0xff] }
0x1419   :  { %10740 = vmatpush1.bf16.msra.mxu0 %v14642_v29  ;;  %10772 = vmatpush1.bf16.msra.mxu1 %v14643_v35  ;;  %v14653_v29 = vld [vmem:[#allocation65_spill] sm:$0xff]  ;;  %v14654_v35 = vld [vmem:[#allocation66_spill] sm:$0xff] }
0x141a   :  { %10742 = vmatprep.subr.bf16.mxu0 %v14644_v28  ;;  %10774 = vmatprep.subr.bf16.mxu1 %v14645_v51  ;;  %v14655_v28 = vld [vmem:[#allocation67_spill] sm:$0xff]  ;;  %v14656_v51 = vld [vmem:[#allocation80_spill] sm:$0xff] }
0x141d   :  { %10744 = vmatpush1.bf16.msra.mxu0 %v14646_v36  ;;  %10776 = vmatpush1.bf16.msra.mxu1 %v14647_v25 }
0x141e   :  { %10746 = vmatprep.subr.bf16.mxu0 %v14648_v60  ;;  %10778 = vmatprep.subr.bf16.mxu1 %v14649_v55 }
0x1421   :  { %10748 = vmatpush1.bf16.msra.mxu0 %v14650_v20  ;;  %10780 = vmatpush1.bf16.msra.mxu1 %v14651_v50 }
0x1422   :  { %10750 = vmatprep.subr.bf16.mxu0 %v14652_v48  ;;  %10782 = vmatprep.subr.bf16.mxu1 %v14653_v29  ;;  %v14657_v48 = vld [vmem:[#allocation69_spill] sm:$0xff] }
0x1425   :  { %10752 = vmatpush1.bf16.msra.mxu0 %v14654_v35  ;;  %10784 = vmatpush1.bf16.msra.mxu1 %v14655_v28  ;;  %v6310_v35 = vpop.permute.xlu0 %6309 }
0x1426   :  { %10786 = vmatprep.subr.bf16.mxu0 %v14656_v51  ;;  %10801 = vmatprep.subr.bf16.mxu1 %v14203_v17  ;;  %v6312_v51 = vmul.f32 %v6310_v35, %v14658_v41 }
0x14bb   :  { %v6135_v25 = vpop.f32.mrb[68].mxu1 }
0x14bc   :  { %v9250_v60 = vpop.f32.mrb[69].mxu1 }
0x14bd   :  { %v14659_v60 = vld [vmem:[#allocation71_spill] sm:$0xff] }
0x14be   :  { %v6313_v42 = vmul.f32 %v6310_v35, %v14659_v60  ;;  %v6314_v60 = vmul.f32 %v6310_v35, %v14346_v7 }
0x14cb   :  { %v6208_v36 = vpop.f32.mrb[46].mxu0  ;;  %v6279_v55 = vpop.f32.mrb[70].mxu1 }
0x14cc   :  { %v11139_v20 = vadd.f32 %v6208_v36, %v14500_v23  ;;  %v6210_v8 = vpop.f32.mrb[47].mxu0  ;;  %v9269_v50 = vpop.f32.mrb[71].mxu1 }
0x14cd   :  { %v11140_v2 = vadd.f32 %v6210_v8, %v14657_v48 }
0x14ce   :  { %v8471_v24 = vmul.f32 -1.442695, %v11139_v20 }
0x14cf   :  { %v8472_v29 = vmul.f32 -1.442695, %v11140_v2  ;;  %v6315_v2 = vmul.f32 %v6310_v35, %v14425_v31 }
0x14d0   :  { %11502 = vpow2.f32 %v8471_v24 }
0x14d1   :  { %11504 = vpow2.f32 %v8472_v29 }
0x14da   :  { %v11503_v28 = vpop.eup %11502 }
0x14db   :  { %v6287_v62 = vadd.f32 1.0, %v11503_v28  ;;  %v6385_v40 = vpop.f32.mrb[48].mxu0  ;;  %v6456_v33 = vpop.f32.mrb[72].mxu1 }
0x14dc   :  { %v6461_v11 = vadd.f32 %v6385_v40, %v6312_v51  ;;  %v6387_v10 = vpop.f32.mrb[49].mxu0  ;;  %v6458_v36 = vpop.f32.mrb[73].mxu1 }
0x14dd   :  { %11506 = vrcp.f32 %v6287_v62  ;;  %v6462_v50 = vadd.f32 %v6387_v10, %v6313_v42  ;;  %v11505_v29 = vpop.eup %11504  ;;  %v6464_v41 = vadd.f32 %v6458_v36, %v6315_v2  ;;  %v6297_v62 = vadd.f32 %v13374_v15, %v6279_v55 }
0x14de   :  { %v6465_v20 = vadd.f32 %v6461_v11, %v14262_v34  ;;  %v6294_v28 = vadd.f32 1.0, %v11505_v29  ;;  %v6463_v10 = vadd.f32 %v6456_v33, %v6314_v60  ;;  %v6136_v11 = vadd.f32 %v6135_v25, %v12618_v54 }
0x14df   :  { %v6466_v24 = vadd.f32 %v6462_v50, %v14344_v5  ;;  %v6468_v40 = vadd.f32 %v6464_v41, %v14266_v43 }
0x14e0   :  { %v8476_v8 = vmul.f32 -1.442695, %v6465_v20 }
0x14e1   :  { %v8477_v48 = vmul.f32 -1.442695, %v6466_v24  ;;  %v8478_v50 = vmul.f32 -1.442695, %v6468_v40  ;;  %v6467_v24 = vadd.f32 %v6463_v10, %v14347_v58 }
0x14e2   :  { %11508 = vpow2.f32 %v8476_v8 }
0x14e3   :  { %11510 = vpow2.f32 %v8477_v48 }
0x14e4   :  { %11512 = vrcp.f32 %v6294_v28 }
0x14e7   :  { %v11507_v42 = vpop.eup %11506 }
0x14e8   :  { %v6298_v51 = vmul.f32 %v11507_v42, %v6297_v62 }
0x14ea   :  { %v6299_v20 = vadd.f32 %v6298_v51, %v6136_v11 }
0x14ec   :  { %v11509_v36 = vpop.eup %11508  ;;  %11514 = vtanh.f32 %v6299_v20 }
0x14ed   :  { %v11511_v48 = vpop.eup %11510  ;;  %v6472_v2 = vadd.f32 1.0, %v11509_v36  ;;  %11516 = vpow2.f32 %v8478_v50 }
0x14ee   :  { %11518 = vtanh.f32 %v6467_v24  ;;  %v6478_v35 = vadd.f32 1.0, %v11511_v48  ;;  %v11513_v15 = vpop.eup %11512  ;;  %v6494_v24 = vpop.permute.xlu1 %6493 }
0x14ef   :  { %11520 = vrcp.f32 %v6472_v2  ;;  %v6301_v33 = vsub.f32 1.0, %v11513_v15  ;;  %v6303_v60 = vmul.f32 %v11513_v15, %v13380_v19  ;;  %v14661_v2 = vld [vmem:[#allocation93_spill] sm:$0xff] }
0x14f0   :  { %11522 = vrcp.f32 %v6478_v35 }
0x14f6   :  { %v11515_v41 = vpop.eup %11514 }
0x14f7   :  { %v11517_v55 = vpop.eup %11516  ;;  %v6302_v25 = vmul.f32 %v11515_v41, %v6301_v33 }
0x14f8   :  { %v11519_v8 = vpop.eup %11518  ;;  %v6485_v10 = vadd.f32 1.0, %v11517_v55 }
0x14f9   :  { %v11521_v29 = vpop.eup %11520  ;;  %v13564_v28 = vadd.f32 %v6303_v60, %v6302_v25 }
0x14fa   :  { %v11523_v40 = vpop.eup %11522  ;;  %v6489_v62 = vmul.f32 %v11521_v29, %v11519_v8  ;;  %11524 = vrcp.f32 %v6485_v10 }
0x14fb   :  { %v6488_v42 = vmul.f32 %v11523_v40, %v13383_v30  ;;  %v14660_v30 = vld [vmem:[#allocation92_spill] sm:$0xff] }
0x14fd   :  { %v13567_v11 = vadd.f32 %v6489_v62, %v6488_v42 }
0x14ff   :  { %11526 = vtanh.f32 %v13567_v11 }
0x1504   :  { %v11525_v51 = vpop.eup %11524 }
0x1509   :  { %v11527_v50 = vpop.eup %11526 }
0x150a   :  { %v13570_v20 = vmul.f32 %v11527_v50, %v11525_v51 }
0x150c   :  { %v6495_v19 = vadd.f32 %v6494_v24, %v13570_v20 }
0x150e   :  { %6561 = vmatmul.mubr.f32.vlgmr.msra.gmra.mrb[50].mxu0 %v6495_v19  ;;  %6632 = vmatmul.mubr.f32.vlgmr.msra.gmra.mrb[74].mxu1 %v6495_v19 }
0x150f   :  { %10788 = vmatpush1.bf16.msra.mxu0 %v14349_v13  ;;  %10803 = vmatpush3.bf16.msra.mxu1 %v14426_v21 }
0x1510   :  { %10790 = vmatprep.subr.bf16.mxu0 %v14427_v53  ;;  %10804 = vmatprep.subr.bf16.mxu1 %v14203_v17 }
0x1511   :  { %6729 = vmatprep.mubr.f32.mxu0 %v14193_v1  ;;  %9286 = vmatprep.mubr.msk.f32.mxu1 %vm11824_vm0, %v14193_v1 }
0x1513   :  { %10792 = vmatpush1.bf16.msra.mxu0 %v14504_v38  ;;  %10806 = vmatpush3.bf16.msra.mxu1 %v14505_v4 }
0x1514   :  { %10794 = vmatprep.subr.bf16.mxu0 %v14506_v63  ;;  %10807 = vmatprep.subr.bf16.mxu1 %v14203_v17 }
0x1517   :  { %10796 = vmatpush1.bf16.msra.mxu0 %v14507_v18  ;;  %10809 = vmatpush3.bf16.msra.mxu1 %v14508_v61 }
0x1518   :  { %10798 = vmatprep.subr.bf16.mxu0 %v14582_v37  ;;  %10810 = vmatprep.subr.bf16.mxu1 %v14203_v17 }
0x151b   :  { %10800 = vmatpush1.bf16.msra.mxu0 %v14583_v46  ;;  %10812 = vmatpush3.bf16.msra.mxu1 %v14584_v16 }
0x151c   :  { %10814 = vmatprep.subr.bf16.mxu0 %v14660_v30  ;;  %10829 = vmatprep.subr.bf16.mxu1 %v14203_v17 }
0x15e1   :  { %v6562_v36 = vpop.f32.mrb[50].mxu0  ;;  %v6633_v48 = vpop.f32.mrb[74].mxu1 }
0x15e2   :  { %v6563_v35 = vadd.f32 %v6562_v36, %v14661_v2  ;;  %v6564_v15 = vpop.f32.mrb[51].mxu0  ;;  %v6635_v33 = vpop.f32.mrb[75].mxu1  ;;  %v6634_v29 = vadd.f32 %v6633_v48, %v14364_v57 }
0x15e3   :  { %v6565_v41 = vadd.f32 %v6564_v15, %v14438_v3  ;;  %v6636_v60 = vadd.f32 %v6635_v33, %v14363_v32 }
0x15e4   :  { %v8479_v55 = vmul.f32 -1.442695, %v6563_v35 }
0x15e5   :  { %v8480_v25 = vmul.f32 -1.442695, %v6565_v41  ;;  %v8481_v8 = vmul.f32 -1.442695, %v6636_v60  ;;  %v14663_v60 = vld [vmem:[#allocation100_spill] sm:$0xff] }
0x15e6   :  { %11528 = vpow2.f32 %v8479_v55 }
0x15e7   :  { %11530 = vpow2.f32 %v8480_v25  ;;  %v14662_v25 = vld [vmem:[#allocation98_spill] sm:$0xff] }
0x15e8   :  { %11532 = vpow2.f32 %v8481_v8  ;;  %v14664_v8 = vld [vmem:[#allocation99_spill] sm:$0xff] }
0x15e9   :  { %11534 = vtanh.f32 %v6634_v29  ;;  %v14666_v29 = vld [vmem:[#allocation103_spill] sm:$0xff] }
0x15f0   :  { %v11529_v40 = vpop.eup %11528 }
0x15f1   :  { %v11531_v62 = vpop.eup %11530  ;;  %v6641_v10 = vadd.f32 1.0, %v11529_v40  ;;  %v14667_v40 = vld [vmem:[#allocation102_spill] sm:$0xff] }
0x15f2   :  { %v6647_v42 = vadd.f32 1.0, %v11531_v62  ;;  %v11533_v51 = vpop.eup %11532  ;;  %v14668_v62 = vld [vmem:[#allocation104_spill] sm:$0xff] }
0x15f3   :  { %11536 = vrcp.f32 %v6641_v10  ;;  %v11535_v50 = vpop.eup %11534  ;;  %v6654_v35 = vadd.f32 1.0, %v11533_v51  ;;  %v14669_v10 = vld [vmem:[#allocation106_spill] sm:$0xff]  ;;  %v14671_v51 = vld [vmem:[#allocation107_spill] sm:$0xff] }
0x15f4   :  { %11538 = vrcp.f32 %v6647_v42  ;;  %v14670_v42 = vld [vmem:[#allocation105_spill] sm:$0xff] }
0x15f5   :  { %11540 = vrcp.f32 %v6654_v35  ;;  %v14676_v35 = vld [vmem:[#allocation112_spill] sm:$0xff] }
0x15fd   :  { %v11537_v24 = vpop.eup %11536 }
0x15fe   :  { %v11539_v19 = vpop.eup %11538  ;;  %v6658_v36 = vmul.f32 %v11537_v24, %v11535_v50  ;;  %v14672_v50 = vld [vmem:[#allocation108_spill] sm:$0xff]  ;;  %v14673_v24 = vld [vmem:[#allocation109_spill] sm:$0xff] }
0x15ff   :  { %v6657_v15 = vmul.f32 %v11539_v19, %v13413_v56  ;;  %v11541_v48 = vpop.eup %11540  ;;  %v14665_v56 = vld [vmem:[#allocation101_spill] sm:$0xff]  ;;  %v14674_v19 = vld [vmem:[#allocation110_spill] sm:$0xff] }
0x1601   :  { %v13597_v33 = vadd.f32 %v6658_v36, %v6657_v15  ;;  %v14675_v36 = vld [vmem:[#allocation111_spill] sm:$0xff]  ;;  %v14677_v15 = vld [vmem:[#allocation113_spill] sm:$0xff] }
0x1603   :  { %11542 = vtanh.f32 %v13597_v33 }
0x160d   :  { %v11543_v41 = vpop.eup %11542 }
0x160e   :  { %v6661_v55 = vmul.f32 %v11543_v41, %v11541_v48  ;;  %v14678_v48 = vld [vmem:[#allocation114_spill] sm:$0xff]  ;;  %v14679_v41 = vld [vmem:[#allocation115_spill] sm:$0xff] }
0x1610   :  { %7467 = vrot.lane.b32.xlu1 %v6661_v55, %s11822_s20  ;;  %8482 = vmatmul.mubr.msk.f32.vlgmr.msra.gmra.mrb[52].mxu0 %vm314_vm1, %v6661_v55 }
0x1611   :  { %9287 = vmatmul.mubr.msk.f32.vlgmr.msra.gmra.mrb[76].mxu1 %vm314_vm1, %v6661_v55  ;;  %10816 = vmatpush1.bf16.msra.mxu0 %v14662_v25  ;;  %v14680_v55 = vld [vmem:[#allocation116_spill] sm:$0xff] }
0x1612   :  { %10831 = vmatpush3.bf16.msra.mxu1 %v14663_v60  ;;  %10818 = vmatprep.subr.bf16.mxu0 %v14664_v8 }
0x1613   :  { %10832 = vmatprep.subr.bf16.mxu1 %v14203_v17  ;;  %6870 = vmatprep.mubr.f32.mxu0 %v14193_v1 }
0x1614   :  { %9305 = vmatprep.mubr.msk.f32.mxu1 %vm11824_vm0, %v14193_v1 }
0x1615   :  { %10820 = vmatpush1.bf16.msra.mxu0 %v14665_v56 }
0x1616   :  { %10834 = vmatpush3.bf16.msra.mxu1 %v14666_v29  ;;  %10822 = vmatprep.subr.bf16.mxu0 %v14667_v40 }
0x1617   :  { %10835 = vmatprep.subr.bf16.mxu1 %v14203_v17 }
0x1619   :  { %10824 = vmatpush1.bf16.msra.mxu0 %v14668_v62 }
0x161a   :  { %10837 = vmatpush3.bf16.msra.mxu1 %v14669_v10  ;;  %10826 = vmatprep.subr.bf16.mxu0 %v14670_v42 }
0x161b   :  { %10838 = vmatprep.subr.bf16.mxu1 %v14203_v17 }
0x161d   :  { %10828 = vmatpush1.bf16.msra.mxu0 %v14671_v51  ;;  %v14686_v51 = vld [vmem:[#allocation122_spill] sm:$0xff] }
0x161e   :  { %10840 = vmatpush3.bf16.msra.mxu1 %v14672_v50  ;;  %10842 = vmatprep.subr.bf16.mxu0 %v14673_v24  ;;  %v14684_v24 = vld [vmem:[#allocation120_spill] sm:$0xff]  ;;  %v14685_v50 = vld [vmem:[#allocation121_spill] sm:$0xff] }
0x161f   :  { %10857 = vmatprep.subr.bf16.mxu1 %v14203_v17 }
0x1620   :  { %8484 = vmatmul.mubr.msk.f32.vlgmr.msra.gmra.mrb[52].mxu0 %vm314_vm1, %v13466_v26 }
0x1621   :  { %9306 = vmatmul.mubr.msk.f32.vlgmr.msra.gmra.mrb[78].mxu1 %vm314_vm1, %v13466_v26  ;;  %10844 = vmatpush1.bf16.msra.mxu0 %v14674_v19  ;;  %v14683_v19 = vld [vmem:[#allocation119_spill] sm:$0xff] }
0x1622   :  { %10859 = vmatpush3.bf16.msra.mxu1 %v14675_v36  ;;  %10846 = vmatprep.subr.bf16.mxu0 %v14676_v35  ;;  %v14681_v36 = vld [vmem:[#allocation117_spill] sm:$0xff]  ;;  %v14682_v35 = vld [vmem:[#allocation118_spill] sm:$0xff] }
0x1623   :  { %10860 = vmatprep.subr.bf16.mxu1 %v14203_v17  ;;  %7036 = vmatprep.mubr.f32.mxu0 %v14193_v1 }
0x1624   :  { %9324 = vmatprep.mubr.msk.f32.mxu1 %vm11824_vm0, %v14193_v1 }
0x1625   :  { %10848 = vmatpush1.bf16.msra.mxu0 %v14677_v15 }
0x1626   :  { %10862 = vmatpush3.bf16.msra.mxu1 %v14678_v48  ;;  %10850 = vmatprep.subr.bf16.mxu0 %v14679_v41 }
0x1627   :  { %10863 = vmatprep.subr.bf16.mxu1 %v14203_v17 }
0x1629   :  { %10852 = vmatpush1.bf16.msra.mxu0 %v14680_v55 }
0x162a   :  { %10865 = vmatpush3.bf16.msra.mxu1 %v14681_v36  ;;  %10854 = vmatprep.subr.bf16.mxu0 %v14682_v35 }
0x162b   :  { %10866 = vmatprep.subr.bf16.mxu1 %v14203_v17 }
0x162d   :  { %10856 = vmatpush1.bf16.msra.mxu0 %v14683_v19 }
0x162e   :  { %10868 = vmatpush3.bf16.msra.mxu1 %v14684_v24  ;;  %10870 = vmatprep.subr.bf16.mxu0 %v14685_v50 }
0x162f   :  { %10885 = vmatprep.subr.bf16.mxu1 %v14203_v17 }
0x16e4   :  { %v6802_v48 = vpop.f32.mrb[76].mxu1 }
0x16e5   :  { %v9288_v41 = vpop.f32.mrb[77].mxu1 }
0x16e6   :  { %v13650_v41 = vld [vmem:[%s13905_s9] ss:$0 sm:$0xff] }
0x16f3   :  { %v6872_v15 = vpop.f32.mrb[52].mxu0 }
0x16f4   :  { %v11141_v42 = vadd.f32 %v6872_v15, %v14686_v51  ;;  %v6943_v55 = vpop.f32.mrb[78].mxu1  ;;  %v6874_v10 = vpop.f32.mrb[53].mxu0 }
0x16f5   :  { %v9307_v36 = vpop.f32.mrb[79].mxu1  ;;  %v11142_v35 = vadd.f32 %v6874_v10, %v14313_v9  ;;  %v6961_v15 = vadd.f32 %v13650_v41, %v6943_v55  ;;  %v14691_v55 = vld [vmem:[#allocation25_spill] sm:$0xff] }
0x16f6   :  { %v8486_v62 = vmul.f32 -1.442695, %v11141_v42  ;;  %v6803_v42 = vadd.f32 %v6802_v48, %v14314_v22  ;;  %v14690_v48 = vld [vmem:[#allocation24_spill] sm:$0xff] }
0x16f7   :  { %v8487_v40 = vmul.f32 -1.442695, %v11142_v35 }
0x16f8   :  { %11544 = vpow2.f32 %v8486_v62 }
0x16f9   :  { %11546 = vpow2.f32 %v8487_v40 }
0x1702   :  { %v11545_v19 = vpop.eup %11544 }
0x1703   :  { %v6951_v24 = vadd.f32 1.0, %v11545_v19  ;;  %v11547_v50 = vpop.eup %11546 }
0x1704   :  { %v6958_v29 = vadd.f32 1.0, %v11547_v50 }
0x1705   :  { %11548 = vrcp.f32 %v6951_v24 }
0x1706   :  { %11550 = vrcp.f32 %v6958_v29  ;;  %v14688_v29 = vld [vmem:[#allocation22_spill] sm:$0xff] }
0x170f   :  { %v11549_v51 = vpop.eup %11548 }
0x1710   :  { %v6962_v36 = vmul.f32 %v11549_v51, %v6961_v15  ;;  %v11551_v40 = vpop.eup %11550  ;;  %v14689_v51 = vld [vmem:[#allocation23_spill] sm:$0xff] }
0x1711   :  { %v6965_v10 = vsub.f32 1.0, %v11551_v40  ;;  %v6967_v50 = vmul.f32 %v11551_v40, %v13466_v26  ;;  %v14687_v26 = vld [vmem:[#allocation21_spill] sm:$0xff]  ;;  %v14693_v15 = vld [vmem:[#allocation27_spill] sm:$0xff] }
0x1712   :  { %v6963_v62 = vadd.f32 %v6962_v36, %v6803_v42  ;;  %v14694_v42 = vld [vmem:[#allocation28_spill] sm:$0xff]  ;;  %v14695_v36 = vld [vmem:[#allocation29_spill] sm:$0xff]  ;;  %v14697_v40 = vld [vmem:[#allocation31_spill] sm:$0xff] }
0x1714   :  { %11552 = vtanh.f32 %v6963_v62  ;;  %v14696_v62 = vld [vmem:[#allocation30_spill] sm:$0xff] }
0x171e   :  { %v11553_v19 = vpop.eup %11552 }
0x171f   :  { %v6966_v24 = vmul.f32 %v11553_v19, %v6965_v10  ;;  %v14698_v10 = vld [vmem:[#allocation32_spill] sm:$0xff]  ;;  %v14699_v19 = vld [vmem:[#allocation33_spill] sm:$0xff] }
0x1721   :  { %v13655_v35 = vadd.f32 %v6967_v50, %v6966_v24  ;;  %v14700_v24 = vld [vmem:[#allocation34_spill] sm:$0xff]  ;;  %v14701_v50 = vld [vmem:[#allocation35_spill] sm:$0xff] }
0x1723   :  { %8488 = vmatmul.mubr.msk.f32.vlgmr.msra.gmra.mrb[54].mxu0 %vm314_vm1, %v13655_v35  ;;  %9325 = vmatmul.mubr.msk.f32.vlgmr.msra.gmra.mrb[80].mxu1 %vm314_vm1, %v13655_v35 }
0x1724   :  { %10872 = vmatpush1.bf16.msra.mxu0 %v12490_v52  ;;  %10887 = vmatpush3.bf16.msra.mxu1 %v12492_v49 }
0x1725   :  { %10874 = vmatprep.subr.bf16.mxu0 %v12496_v44  ;;  %10888 = vmatprep.subr.bf16.mxu1 %v14203_v17 }
0x1726   :  { %7180 = vmatprep.mubr.f32.mxu0 %v14193_v1  ;;  %9343 = vmatprep.mubr.msk.f32.mxu1 %vm11824_vm0, %v14193_v1 }
0x1728   :  { %10876 = vmatpush1.bf16.msra.mxu0 %v12504_v45  ;;  %10890 = vmatpush3.bf16.msra.mxu1 %v12506_v27 }
0x1729   :  { %10878 = vmatprep.subr.bf16.mxu0 %v12510_v39  ;;  %10891 = vmatprep.subr.bf16.mxu1 %v14203_v17 }
0x172c   :  { %10880 = vmatpush1.bf16.msra.mxu0 %v12517_v0  ;;  %10893 = vmatpush3.bf16.msra.mxu1 %v12519_v47 }
0x172d   :  { %10882 = vmatprep.subr.bf16.mxu0 %v12523_v12  ;;  %10894 = vmatprep.subr.bf16.mxu1 %v14203_v17 }
0x1730   :  { %10884 = vmatpush1.bf16.msra.mxu0 %v12527_v14  ;;  %10896 = vmatpush3.bf16.msra.mxu1 %v12529_v59 }
0x1731   :  { %10898 = vmatprep.subr.bf16.mxu0 %v12020_v6  ;;  %10914 = vmatprep.subr.bf16.mxu1 %v14687_v26  ;;  %v14692_v6 = vld [vmem:[#allocation26_spill] sm:$0xff]  ;;  %v14702_v26 = vld [vmem:[#allocation36_spill] sm:$0xff] }
0x1733   :  { %8490 = vmatmul.mubr.msk.f32.vlgmr.msra.gmra.mrb[54].mxu0 %vm314_vm1, %v13564_v28  ;;  %9344 = vmatmul.mubr.msk.f32.vlgmr.msra.gmra.mrb[82].mxu1 %vm314_vm1, %v13564_v28 }
0x1734   :  { %10900 = vmatpush1.bf16.msra.mxu0 %v14688_v29  ;;  %10916 = vmatpush1.bf16.msra.mxu1 %v14689_v51  ;;  %v14703_v29 = vld [vmem:[#allocation37_spill] sm:$0xff]  ;;  %v14704_v51 = vld [vmem:[#allocation38_spill] sm:$0xff] }
0x1735   :  { %10902 = vmatprep.subr.bf16.mxu0 %v14690_v48  ;;  %10918 = vmatprep.subr.bf16.mxu1 %v14691_v55  ;;  %v14705_v48 = vld [vmem:[#allocation39_spill] sm:$0xff]  ;;  %v14706_v55 = vld [vmem:[#allocation40_spill] sm:$0xff] }
0x1736   :  { %7357 = vmatprep.mubr.f32.mxu0 %v14193_v1  ;;  %7428 = vmatprep.mubr.f32.mxu1 %v14193_v1 }
0x1738   :  { %10904 = vmatpush1.bf16.msra.mxu0 %v14692_v6  ;;  %10920 = vmatpush1.bf16.msra.mxu1 %v14693_v15  ;;  %v14707_v6 = vld [vmem:[#allocation41_spill] sm:$0xff]  ;;  %v14708_v15 = vld [vmem:[#allocation42_spill] sm:$0xff] }
0x1739   :  { %10906 = vmatprep.subr.bf16.mxu0 %v14694_v42  ;;  %10922 = vmatprep.subr.bf16.mxu1 %v14695_v36  ;;  %v14709_v42 = vld [vmem:[#allocation43_spill] sm:$0xff]  ;;  %v14710_v36 = vld [vmem:[#allocation44_spill] sm:$0xff] }
0x173c   :  { %10908 = vmatpush1.bf16.msra.mxu0 %v14696_v62  ;;  %10924 = vmatpush1.bf16.msra.mxu1 %v14697_v40  ;;  %v14711_v62 = vld [vmem:[#allocation45_spill] sm:$0xff]  ;;  %v14713_v40 = vld [vmem:[#allocation47_spill] sm:$0xff] }
0x173d   :  { %10910 = vmatprep.subr.bf16.mxu0 %v14698_v10  ;;  %10926 = vmatprep.subr.bf16.mxu1 %v14699_v19  ;;  %v14714_v10 = vld [vmem:[#allocation48_spill] sm:$0xff]  ;;  %v14715_v19 = vld [vmem:[#allocation49_spill] sm:$0xff] }
0x1740   :  { %10912 = vmatpush1.bf16.msra.mxu0 %v14700_v24  ;;  %10928 = vmatpush1.bf16.msra.mxu1 %v14701_v50  ;;  %v14716_v24 = vld [vmem:[#allocation50_spill] sm:$0xff]  ;;  %v14717_v50 = vld [vmem:[#allocation51_spill] sm:$0xff] }
0x1741   :  { %10930 = vmatprep.subr.bf16.mxu0 %v14702_v26  ;;  %10962 = vmatprep.subr.bf16.mxu1 %v14703_v29  ;;  %v14718_v26 = vld [vmem:[#allocation52_spill] sm:$0xff]  ;;  %v14719_v29 = vld [vmem:[#allocation53_spill] sm:$0xff] }
0x1743   :  { %8495 = vmatmul.mubr.msk.f32.vlgmr.msra.gmra.mrb[56].mxu0 %vm314_vm1, %v13570_v20  ;;  %8496 = vmatmul.mubr.msk.f32.vlgmr.msra.gmra.mrb[84].mxu1 %vm314_vm1, %v13570_v20  ;;  %v14712_v20 = vld [vmem:[#allocation46_spill] sm:$0xff] }
0x1744   :  { %10932 = vmatpush1.bf16.msra.mxu0 %v14704_v51  ;;  %10964 = vmatpush1.bf16.msra.mxu1 %v14705_v48  ;;  %v14720_v51 = vld [vmem:[#allocation54_spill] sm:$0xff]  ;;  %v14721_v48 = vld [vmem:[#allocation55_spill] sm:$0xff] }
0x1745   :  { %10934 = vmatprep.subr.bf16.mxu0 %v14706_v55  ;;  %10966 = vmatprep.subr.bf16.mxu1 %v14707_v6  ;;  %v14722_v55 = vld [vmem:[#allocation56_spill] sm:$0xff]  ;;  %v14723_v6 = vld [vmem:[#allocation57_spill] sm:$0xff] }
0x1746   :  { %7534 = vmatprep.mubr.f32.mxu0 %v14193_v1  ;;  %7605 = vmatprep.mubr.f32.mxu1 %v14193_v1 }
0x1748   :  { %10936 = vmatpush1.bf16.msra.mxu0 %v14708_v15  ;;  %10968 = vmatpush1.bf16.msra.mxu1 %v14709_v42  ;;  %v14724_v15 = vld [vmem:[#allocation58_spill] sm:$0xff]  ;;  %v14725_v42 = vld [vmem:[#allocation59_spill] sm:$0xff] }
0x1749   :  { %10938 = vmatprep.subr.bf16.mxu0 %v14710_v36  ;;  %10970 = vmatprep.subr.bf16.mxu1 %v14711_v62  ;;  %v14726_v36 = vld [vmem:[#allocation60_spill] sm:$0xff]  ;;  %v14727_v62 = vld [vmem:[#allocation61_spill] sm:$0xff] }
0x174c   :  { %10940 = vmatpush1.bf16.msra.mxu0 %v14712_v20  ;;  %10972 = vmatpush1.bf16.msra.mxu1 %v14713_v40  ;;  %v14728_v20 = vld [vmem:[#allocation62_spill] sm:$0xff]  ;;  %v14729_v40 = vld [vmem:[#allocation63_spill] sm:$0xff] }
0x174d   :  { %10942 = vmatprep.subr.bf16.mxu0 %v14714_v10  ;;  %10974 = vmatprep.subr.bf16.mxu1 %v14715_v19  ;;  %v14730_v10 = vld [vmem:[#allocation64_spill] sm:$0xff]  ;;  %v14731_v19 = vld [vmem:[#allocation65_spill] sm:$0xff] }
0x1750   :  { %10944 = vmatpush1.bf16.msra.mxu0 %v14716_v24  ;;  %10976 = vmatpush1.bf16.msra.mxu1 %v14717_v50  ;;  %v14732_v24 = vld [vmem:[#allocation66_spill] sm:$0xff]  ;;  %v14733_v50 = vld [vmem:[#allocation67_spill] sm:$0xff] }
0x1751   :  { %10946 = vmatprep.subr.bf16.mxu0 %v14718_v26  ;;  %10978 = vmatprep.subr.bf16.mxu1 %v14719_v29  ;;  %v14734_v26 = vld [vmem:[#allocation80_spill] sm:$0xff] }
0x1754   :  { %10948 = vmatpush1.bf16.msra.mxu0 %v14720_v51  ;;  %10980 = vmatpush1.bf16.msra.mxu1 %v14721_v48 }
0x1755   :  { %10950 = vmatprep.subr.bf16.mxu0 %v14722_v55  ;;  %10982 = vmatprep.subr.bf16.mxu1 %v14723_v6 }
0x1758   :  { %10952 = vmatpush1.bf16.msra.mxu0 %v14724_v15  ;;  %10984 = vmatpush1.bf16.msra.mxu1 %v14725_v42 }
0x1759   :  { %10954 = vmatprep.subr.bf16.mxu0 %v14726_v36  ;;  %10986 = vmatprep.subr.bf16.mxu1 %v14727_v62  ;;  %v14735_v62 = vld [vmem:[#allocation69_spill] sm:$0xff] }
0x175c   :  { %10956 = vmatpush1.bf16.msra.mxu0 %v14728_v20  ;;  %10988 = vmatpush1.bf16.msra.mxu1 %v14729_v40 }
0x175d   :  { %10958 = vmatprep.subr.bf16.mxu0 %v14730_v10  ;;  %10990 = vmatprep.subr.bf16.mxu1 %v14731_v19  ;;  %v7284_v10 = vpop.permute.xlu0 %7283 }
0x1760   :  { %10960 = vmatpush1.bf16.msra.mxu0 %v14732_v24  ;;  %10992 = vmatpush1.bf16.msra.mxu1 %v14733_v50  ;;  %v14736_v24 = vld [vmem:[#allocation70_spill] sm:$0xff] }
0x1761   :  { %10994 = vmatprep.subr.bf16.mxu0 %v14734_v26  ;;  %11009 = vmatprep.subr.bf16.mxu1 %v14203_v17  ;;  %v7286_v50 = vmul.f32 %v7284_v10, %v14736_v24 }
0x17f6   :  { %v7109_v29 = vpop.f32.mrb[80].mxu1 }
0x17f7   :  { %v9326_v51 = vpop.f32.mrb[81].mxu1 }
0x17f8   :  { %v14737_v51 = vld [vmem:[#allocation71_spill] sm:$0xff] }
0x17f9   :  { %v7287_v12 = vmul.f32 %v7284_v10, %v14737_v51  ;;  %v7288_v51 = vmul.f32 %v7284_v10, %v14346_v7 }
0x1806   :  { %v7182_v48 = vpop.f32.mrb[54].mxu0  ;;  %v7253_v55 = vpop.f32.mrb[82].mxu1 }
0x1807   :  { %v11143_v6 = vadd.f32 %v7182_v48, %v14500_v23  ;;  %v7184_v15 = vpop.f32.mrb[55].mxu0  ;;  %v9345_v42 = vpop.f32.mrb[83].mxu1 }
0x1808   :  { %v11144_v20 = vadd.f32 %v7184_v15, %v14735_v62 }
0x1809   :  { %v8492_v36 = vmul.f32 -1.442695, %v11143_v6 }
0x180a   :  { %v8493_v40 = vmul.f32 -1.442695, %v11144_v20 }
0x180b   :  { %11554 = vpow2.f32 %v8492_v36  ;;  %v7289_v36 = vmul.f32 %v7284_v10, %v14425_v31 }
0x180c   :  { %11556 = vpow2.f32 %v8493_v40 }
0x1815   :  { %v11555_v19 = vpop.eup %11554 }
0x1816   :  { %v7261_v26 = vadd.f32 1.0, %v11555_v19  ;;  %v7359_v59 = vpop.f32.mrb[56].mxu0  ;;  %v7430_v14 = vpop.f32.mrb[84].mxu1 }
0x1817   :  { %v7435_v47 = vadd.f32 %v7359_v59, %v7286_v50  ;;  %v7361_v0 = vpop.f32.mrb[57].mxu0  ;;  %v7432_v48 = vpop.f32.mrb[85].mxu1 }
0x1818   :  { %11558 = vrcp.f32 %v7261_v26  ;;  %v7436_v42 = vadd.f32 %v7361_v0, %v7287_v12  ;;  %v11557_v40 = vpop.eup %11556  ;;  %v7438_v24 = vadd.f32 %v7432_v48, %v7289_v36  ;;  %v13752_v0 = vld [vmem:[%s13909_s13] ss:$0 sm:$0xff]  ;;  %v7437_v12 = vadd.f32 %v7430_v14, %v7288_v51 }
0x1819   :  { %v7439_v6 = vadd.f32 %v7435_v47, %v14262_v34  ;;  %v7268_v19 = vadd.f32 1.0, %v11557_v40  ;;  %v7271_v47 = vadd.f32 %v13752_v0, %v7253_v55 }
0x181a   :  { %v7440_v15 = vadd.f32 %v7436_v42, %v14344_v5  ;;  %v7442_v59 = vadd.f32 %v7438_v24, %v14266_v43  ;;  %v7110_v5 = vadd.f32 %v7109_v29, %v12618_v54  ;;  %v7441_v26 = vadd.f32 %v7437_v12, %v14347_v58 }
0x181b   :  { %v8497_v20 = vmul.f32 -1.442695, %v7439_v6 }
0x181c   :  { %v8498_v62 = vmul.f32 -1.442695, %v7440_v15  ;;  %v8499_v50 = vmul.f32 -1.442695, %v7442_v59 }
0x181d   :  { %11560 = vpow2.f32 %v8497_v20 }
0x181e   :  { %11562 = vpow2.f32 %v8498_v62 }
0x181f   :  { %11564 = vrcp.f32 %v7268_v19 }
0x1822   :  { %v11559_v34 = vpop.eup %11558 }
0x1823   :  { %v7272_v31 = vmul.f32 %v11559_v34, %v7271_v47 }
0x1825   :  { %v7273_v62 = vadd.f32 %v7272_v31, %v7110_v5  ;;  %v7468_v5 = vpop.permute.xlu1 %7467 }
0x1827   :  { %v11561_v7 = vpop.eup %11560  ;;  %11566 = vtanh.f32 %v7273_v62 }
0x1828   :  { %v11563_v43 = vpop.eup %11562  ;;  %v7446_v10 = vadd.f32 1.0, %v11561_v7  ;;  %11568 = vpow2.f32 %v8499_v50 }
0x1829   :  { %11570 = vtanh.f32 %v7441_v26  ;;  %v7452_v48 = vadd.f32 1.0, %v11563_v43  ;;  %v11565_v55 = vpop.eup %11564 }
0x182a   :  { %11572 = vrcp.f32 %v7446_v10  ;;  %v7275_v14 = vsub.f32 1.0, %v11565_v55  ;;  %v7277_v15 = vmul.f32 %v11565_v55, %v13564_v28 }
0x182b   :  { %11574 = vrcp.f32 %v7452_v48 }
0x1831   :  { %v11567_v42 = vpop.eup %11566 }
0x1832   :  { %v11569_v6 = vpop.eup %11568  ;;  %v7276_v29 = vmul.f32 %v11567_v42, %v7275_v14  ;;  %v14739_v14 = vld [vmem:[#allocation102_spill] sm:$0xff]  ;;  %v14743_v42 = vld [vmem:[#allocation107_spill] sm:$0xff] }
0x1833   :  { %v11571_v36 = vpop.eup %11570  ;;  %v7459_v19 = vadd.f32 1.0, %v11569_v6  ;;  %v14744_v6 = vld [vmem:[#allocation108_spill] sm:$0xff] }
0x1834   :  { %v11573_v20 = vpop.eup %11572  ;;  %v13758_v40 = vadd.f32 %v7277_v15, %v7276_v29  ;;  %v14745_v29 = vld [vmem:[#allocation109_spill] sm:$0xff]  ;;  %v14747_v15 = vld [vmem:[#allocation111_spill] sm:$0xff] }
0x1835   :  { %v11575_v58 = vpop.eup %11574  ;;  %v7463_v24 = vmul.f32 %v11573_v20, %v11571_v36  ;;  %11576 = vrcp.f32 %v7459_v19  ;;  %v14748_v36 = vld [vmem:[#allocation112_spill] sm:$0xff]  ;;  %v14749_v20 = vld [vmem:[#allocation113_spill] sm:$0xff] }
0x1836   :  { %v7462_v51 = vmul.f32 %v11575_v58, %v13567_v11  ;;  %v14750_v58 = vld [vmem:[#allocation114_spill] sm:$0xff]  ;;  %v14752_v19 = vld [vmem:[#allocation116_spill] sm:$0xff] }
0x1838   :  { %v7464_v59 = vadd.f32 %v7463_v24, %v7462_v51  ;;  %v14751_v24 = vld [vmem:[#allocation115_spill] sm:$0xff]  ;;  %v14753_v51 = vld [vmem:[#allocation117_spill] sm:$0xff] }
0x183a   :  { %11578 = vtanh.f32 %v7464_v59  ;;  %v14754_v59 = vld [vmem:[#allocation118_spill] sm:$0xff] }
0x183f   :  { %v11577_v47 = vpop.eup %11576 }
0x1844   :  { %v11579_v12 = vpop.eup %11578 }
0x1845   :  { %v7466_v34 = vmul.f32 %v11579_v12, %v11577_v47  ;;  %v14755_v47 = vld [vmem:[#allocation119_spill] sm:$0xff]  ;;  %v14756_v12 = vld [vmem:[#allocation120_spill] sm:$0xff] }
0x1847   :  { %v7469_v31 = vadd.f32 %v7468_v5, %v7466_v34  ;;  %v14757_v34 = vld [vmem:[#allocation121_spill] sm:$0xff] }
0x1849   :  { %7535 = vmatmul.mubr.f32.vlgmr.msra.gmra.mrb[58].mxu0 %v7469_v31  ;;  %7606 = vmatmul.mubr.f32.vlgmr.msra.gmra.mrb[86].mxu1 %v7469_v31 }
0x184a   :  { %10996 = vmatpush1.bf16.msra.mxu0 %v14349_v13  ;;  %11011 = vmatpush3.bf16.msra.mxu1 %v14426_v21 }
0x184b   :  { %10998 = vmatprep.subr.bf16.mxu0 %v14427_v53  ;;  %11012 = vmatprep.subr.bf16.mxu1 %v14203_v17 }
0x184c   :  { %7703 = vmatprep.mubr.f32.mxu0 %v14193_v1  ;;  %9362 = vmatprep.mubr.msk.f32.mxu1 %vm11824_vm0, %v14193_v1 }
0x184e   :  { %11000 = vmatpush1.bf16.msra.mxu0 %v14504_v38  ;;  %11014 = vmatpush3.bf16.msra.mxu1 %v14505_v4 }
0x184f   :  { %11002 = vmatprep.subr.bf16.mxu0 %v14506_v63  ;;  %11015 = vmatprep.subr.bf16.mxu1 %v14203_v17 }
0x1852   :  { %11004 = vmatpush1.bf16.msra.mxu0 %v14507_v18  ;;  %11017 = vmatpush3.bf16.msra.mxu1 %v14508_v61 }
0x1853   :  { %11006 = vmatprep.subr.bf16.mxu0 %v14582_v37  ;;  %11018 = vmatprep.subr.bf16.mxu1 %v14203_v17 }
0x1856   :  { %11008 = vmatpush1.bf16.msra.mxu0 %v14583_v46  ;;  %11020 = vmatpush3.bf16.msra.mxu1 %v14584_v16 }
0x1857   :  { %11022 = vmatprep.subr.bf16.mxu0 %v14660_v30  ;;  %11037 = vmatprep.subr.bf16.mxu1 %v14203_v17 }
0x191c   :  { %v7536_v13 = vpop.f32.mrb[58].mxu0  ;;  %v7607_v21 = vpop.f32.mrb[86].mxu1 }
0x191d   :  { %v7537_v53 = vadd.f32 %v7536_v13, %v14661_v2  ;;  %v7538_v38 = vpop.f32.mrb[59].mxu0  ;;  %v7609_v4 = vpop.f32.mrb[87].mxu1  ;;  %v7608_v16 = vadd.f32 %v7607_v21, %v14364_v57 }
0x191e   :  { %v7539_v63 = vadd.f32 %v7538_v38, %v14438_v3  ;;  %v7610_v37 = vadd.f32 %v7609_v4, %v14363_v32 }
0x191f   :  { %v8500_v18 = vmul.f32 -1.442695, %v7537_v53  ;;  %v14758_v53 = vld [vmem:[#allocation122_spill] sm:$0xff] }
0x1920   :  { %v8501_v61 = vmul.f32 -1.442695, %v7539_v63  ;;  %v8502_v46 = vmul.f32 -1.442695, %v7610_v37 }
0x1921   :  { %11580 = vpow2.f32 %v8500_v18 }
0x1922   :  { %11582 = vpow2.f32 %v8501_v61 }
0x1923   :  { %11584 = vpow2.f32 %v8502_v46 }
0x1924   :  { %11586 = vtanh.f32 %v7608_v16 }
0x192b   :  { %v11581_v28 = vpop.eup %11580 }
0x192c   :  { %v11583_v11 = vpop.eup %11582  ;;  %v7615_v30 = vadd.f32 1.0, %v11581_v28 }
0x192d   :  { %v7621_v50 = vadd.f32 1.0, %v11583_v11  ;;  %v11585_v2 = vpop.eup %11584 }
0x192e   :  { %11588 = vrcp.f32 %v7615_v30  ;;  %v11587_v62 = vpop.eup %11586  ;;  %v7628_v43 = vadd.f32 1.0, %v11585_v2 }
0x192f   :  { %11590 = vrcp.f32 %v7621_v50 }
0x1930   :  { %11592 = vrcp.f32 %v7628_v43 }
0x1938   :  { %v11589_v3 = vpop.eup %11588 }
0x1939   :  { %v11591_v26 = vpop.eup %11590  ;;  %v7632_v7 = vmul.f32 %v11589_v3, %v11587_v62 }
0x193a   :  { %v7631_v10 = vmul.f32 %v11591_v26, %v13597_v33  ;;  %v11593_v57 = vpop.eup %11592  ;;  %v14738_v33 = vld [vmem:[#allocation103_spill] sm:$0xff] }
0x193c   :  { %v7633_v32 = vadd.f32 %v7632_v7, %v7631_v10 }
0x193e   :  { %11594 = vtanh.f32 %v7633_v32 }
0x1948   :  { %v11595_v48 = vpop.eup %11594 }
0x1949   :  { %v7635_v55 = vmul.f32 %v11595_v48, %v11593_v57  ;;  %v8256_v57 = vld [vmem:[%s13910_s14 + $0x18] sm:$0xff]  ;;  %v8257_v48 = vld [vmem:[%s13910_s14 + $0x20] sm:$0xff] }
0x194b   :  { %8503 = vmatmul.mubr.msk.f32.vlgmr.msra.gmra.mrb[60].mxu0 %vm314_vm1, %v7635_v55  ;;  %9363 = vmatmul.mubr.msk.f32.vlgmr.msra.gmra.mrb[88].mxu1 %vm314_vm1, %v7635_v55  ;;  %v8258_v55 = vld [vmem:[%s13910_s14 + $0x28] sm:$0xff] }
0x194c   :  { %11024 = vmatpush1.bf16.msra.mxu0 %v14662_v25  ;;  %11039 = vmatpush3.bf16.msra.mxu1 %v14663_v60  ;;  %v14740_v25 = vld [vmem:[#allocation104_spill] sm:$0xff]  ;;  %v14741_v60 = vld [vmem:[#allocation106_spill] sm:$0xff] }
0x194d   :  { %11026 = vmatprep.subr.bf16.mxu0 %v14664_v8  ;;  %11040 = vmatprep.subr.bf16.mxu1 %v14203_v17  ;;  %v14742_v8 = vld [vmem:[#allocation105_spill] sm:$0xff] }
0x194e   :  { %7844 = vmatprep.mubr.f32.mxu0 %v14193_v1  ;;  %9381 = vmatprep.mubr.msk.f32.mxu1 %vm11824_vm0, %v14193_v1 }
0x1950   :  { %11028 = vmatpush1.bf16.msra.mxu0 %v14665_v56  ;;  %11042 = vmatpush3.bf16.msra.mxu1 %v14738_v33  ;;  %v14746_v56 = vld [vmem:[#allocation110_spill] sm:$0xff]  ;;  %v11112_v33 = vpack.c.bf16 %v8258_v55, %v8257_v48 }
0x1951   :  { %11030 = vmatprep.subr.bf16.mxu0 %v14739_v14  ;;  %11043 = vmatprep.subr.bf16.mxu1 %v14203_v17  ;;  %v8259_v14 = vld [vmem:[%s13910_s14 + $0x30] sm:$0xff] }
0x1954   :  { %11032 = vmatpush1.bf16.msra.mxu0 %v14740_v25  ;;  %11045 = vmatpush3.bf16.msra.mxu1 %v14741_v60  ;;  %v8260_v25 = vld [vmem:[%s13910_s14 + $0x38] sm:$0xff] }
0x1955   :  { %11034 = vmatprep.subr.bf16.mxu0 %v14742_v8  ;;  %11046 = vmatprep.subr.bf16.mxu1 %v14203_v17  ;;  %v11115_v60 = vpack.c.bf16 %v8260_v25, %v8259_v14 }
0x1958   :  { %11036 = vmatpush1.bf16.msra.mxu0 %v14743_v42  ;;  %11048 = vmatpush3.bf16.msra.mxu1 %v14744_v6 }
0x1959   :  { %11050 = vmatprep.subr.bf16.mxu0 %v14745_v29  ;;  %11065 = vmatprep.subr.bf16.mxu1 %v14203_v17 }
0x195b   :  { %8505 = vmatmul.mubr.msk.f32.vlgmr.msra.gmra.mrb[60].mxu0 %vm314_vm1, %v13655_v35  ;;  %9382 = vmatmul.mubr.msk.f32.vlgmr.msra.gmra.mrb[90].mxu1 %vm314_vm1, %v13655_v35 }
0x195c   :  { %11052 = vmatpush1.bf16.msra.mxu0 %v14746_v56  ;;  %11067 = vmatpush3.bf16.msra.mxu1 %v14747_v15 }
0x195d   :  { %11054 = vmatprep.subr.bf16.mxu0 %v14748_v36  ;;  %11068 = vmatprep.subr.bf16.mxu1 %v14203_v17 }
0x195e   :  { %8010 = vmatprep.mubr.f32.mxu0 %v14193_v1  ;;  %9400 = vmatprep.mubr.msk.f32.mxu1 %vm11824_vm0, %v14193_v1 }
0x1960   :  { %11056 = vmatpush1.bf16.msra.mxu0 %v14749_v20  ;;  %11070 = vmatpush3.bf16.msra.mxu1 %v14750_v58  ;;  %v14764_v58 = vld [vmem:[#allocation69_spill] sm:$0xff] }
0x1961   :  { %11058 = vmatprep.subr.bf16.mxu0 %v14751_v24  ;;  %11071 = vmatprep.subr.bf16.mxu1 %v14203_v17 }
0x1964   :  { %11060 = vmatpush1.bf16.msra.mxu0 %v14752_v19  ;;  %11073 = vmatpush3.bf16.msra.mxu1 %v14753_v51 }
0x1965   :  { %11062 = vmatprep.subr.bf16.mxu0 %v14754_v59  ;;  %11074 = vmatprep.subr.bf16.mxu1 %v14203_v17 }
0x1968   :  { %11064 = vmatpush1.bf16.msra.mxu0 %v14755_v47  ;;  %11076 = vmatpush3.bf16.msra.mxu1 %v14756_v12 }
0x1969   :  { %11078 = vmatprep.subr.bf16.mxu0 %v14757_v34  ;;  %11093 = vmatprep.subr.bf16.mxu1 %v14203_v17 }
0x1a1e   :  { %v7776_v5 = vpop.f32.mrb[88].mxu1 }
0x1a1f   :  { %v9364_v31 = vpop.f32.mrb[89].mxu1  ;;  %v7777_v2 = vadd.f32 %v7776_v5, %v14314_v22  ;;  %v14762_v22 = vld [vmem:[#allocation128_spill] sm:$0xff] }
0x1a2e   :  { %v7846_v13 = vpop.f32.mrb[60].mxu0  ;;  %v7917_v21 = vpop.f32.mrb[90].mxu1 }
0x1a2f   :  { %v11145_v38 = vadd.f32 %v7846_v13, %v14758_v53  ;;  %v7848_v4 = vpop.f32.mrb[61].mxu0  ;;  %v9383_v63 = vpop.f32.mrb[91].mxu1  ;;  %v7935_v30 = vadd.f32 %v13650_v41, %v7917_v21  ;;  %v14763_v41 = vld [vmem:[#allocation129_spill] sm:$0xff] }
0x1a30   :  { %v11146_v61 = vadd.f32 %v7848_v4, %v14313_v9 }
0x1a31   :  { %v8507_v18 = vmul.f32 -1.442695, %v11145_v38 }
0x1a32   :  { %v8508_v37 = vmul.f32 -1.442695, %v11146_v61 }
0x1a33   :  { %11596 = vpow2.f32 %v8507_v18  ;;  %v8515_v18 = vld [vmem:[#allocation2] ss:$0 sm:$0xff] }
0x1a34   :  { %11598 = vpow2.f32 %v8508_v37 }
0x1a3d   :  { %v11597_v46 = vpop.eup %11596 }
0x1a3e   :  { %v7925_v16 = vadd.f32 1.0, %v11597_v46  ;;  %v11599_v28 = vpop.eup %11598 }
0x1a3f   :  { %v7932_v11 = vadd.f32 1.0, %v11599_v28 }
0x1a40   :  { %11600 = vrcp.f32 %v7925_v16 }
0x1a41   :  { %11602 = vrcp.f32 %v7932_v11 }
0x1a4a   :  { %v11601_v50 = vpop.eup %11600 }
0x1a4b   :  { %v7936_v62 = vmul.f32 %v11601_v50, %v7935_v30  ;;  %v11603_v26 = vpop.eup %11602 }
0x1a4c   :  { %v7939_v7 = vsub.f32 1.0, %v11603_v26  ;;  %v7941_v10 = vmul.f32 %v11603_v26, %v13655_v35  ;;  %v8255_v35 = vld [vmem:[%s13910_s14 + $0x10] sm:$0xff] }
0x1a4d   :  { %v7937_v3 = vadd.f32 %v7936_v62, %v7777_v2 }
0x1a4f   :  { %11604 = vtanh.f32 %v7937_v3 }
0x1a59   :  { %v11605_v9 = vpop.eup %11604 }
0x1a5a   :  { %v7940_v43 = vmul.f32 %v11605_v9, %v7939_v7 }
0x1a5c   :  { %v7942_v32 = vadd.f32 %v7941_v10, %v7940_v43 }
0x1a5e   :  { %8509 = vmatmul.mubr.msk.f32.vlgmr.msra.gmra.mrb[62].mxu0 %vm314_vm1, %v7942_v32  ;;  %9401 = vmatmul.mubr.msk.f32.vlgmr.msra.gmra.mrb[92].mxu1 %vm314_vm1, %v7942_v32 }
0x1a5f   :  { %11080 = vmatpush1.bf16.msra.mxu0 %v12490_v52  ;;  %11095 = vmatpush3.bf16.msra.mxu1 %v12492_v49  ;;  %v14759_v52 = vld [vmem:[#allocation125_spill] sm:$0xff]  ;;  %v14760_v49 = vld [vmem:[#allocation126_spill] sm:$0xff] }
0x1a60   :  { %11082 = vmatprep.subr.bf16.mxu0 %v12496_v44  ;;  %11096 = vmatprep.subr.bf16.mxu1 %v14203_v17  ;;  %v14761_v44 = vld [vmem:[#allocation127_spill] sm:$0xff] }
0x1a61   :  { %8154 = vmatprep.mubr.f32.mxu0 %v14193_v1  ;;  %9419 = vmatprep.mubr.msk.f32.mxu1 %vm11824_vm0, %v14193_v1 }
0x1a63   :  { %11084 = vmatpush1.bf16.msra.mxu0 %v12504_v45  ;;  %11098 = vmatpush3.bf16.msra.mxu1 %v12506_v27  ;;  %v8253_v45 = vld [vmem:[%s13910_s14] sm:$0xff]  ;;  %v8254_v27 = vld [vmem:[%s13910_s14 + $0x8] sm:$0xff] }
0x1a64   :  { %11086 = vmatprep.subr.bf16.mxu0 %v12510_v39  ;;  %11099 = vmatprep.subr.bf16.mxu1 %v14203_v17  ;;  %v11106_v39 = vpack.c.bf16 %v8254_v27, %v8253_v45 }
0x1a67   :  { %11088 = vmatpush1.bf16.msra.mxu0 %v14759_v52  ;;  %11101 = vmatpush3.bf16.msra.mxu1 %v14760_v49 }
0x1a68   :  { %11090 = vmatprep.subr.bf16.mxu0 %v14761_v44  ;;  %11102 = vmatprep.subr.bf16.mxu1 %v14203_v17 }
0x1a6b   :  { %11092 = vmatpush1.bf16.msra.mxu0 %v14762_v22  ;;  %11104 = vmatpush3.bf16.msra.mxu1 %v14763_v41 }
0x1a6c   :  { %11105 = vmatprep.subr.bf16.mxu0 %v14203_v17 }
0x1a6e   :  { %8511 = vmatmul.mubr.msk.f32.vlgmr.msra.gmra.mrb[62].mxu0 %vm314_vm1, %v13758_v40  ;;  %9420 = vmatmul.mubr.msk.f32.vlgmr.msra.gmra.mrb[94].mxu1 %vm314_vm1, %v13758_v40 }
0x1a6f   :  { %9438 = vmatprep.mubr.msk.f32.mxu0 %vm11824_vm0, %v14193_v1  ;;  %11107 = vmatpush3.bf16.msra.mxu0 %v11106_v39  ;;  %v11109_v1 = vpack.c.bf16 %v8256_v57, %v8255_v35 }
0x1a70   :  { %11108 = vmatprep.subr.bf16.mxu0 %v14203_v17 }
0x1a73   :  { %11110 = vmatpush3.bf16.msra.mxu0 %v11109_v1 }
0x1a74   :  { %11111 = vmatprep.subr.bf16.mxu0 %v14203_v17 }
0x1a77   :  { %11113 = vmatpush3.bf16.msra.mxu0 %v11112_v33 }
0x1a78   :  { %11114 = vmatprep.subr.bf16.mxu0 %v14203_v17 }
0x1a7b   :  { %11116 = vmatpush3.bf16.msra.mxu0 %v11115_v60 }
0x1b31   :  { %v8083_v8 = vpop.f32.mrb[92].mxu1 }
0x1b32   :  { %v9402_v42 = vpop.f32.mrb[93].mxu1  ;;  %v8084_v5 = vadd.f32 %v8083_v8, %v12618_v54 }
0x1b41   :  { %v8156_v6 = vpop.f32.mrb[62].mxu0  ;;  %v8227_v29 = vpop.f32.mrb[94].mxu1 }
0x1b42   :  { %v11147_v56 = vadd.f32 %v8156_v6, %v14500_v23  ;;  %v8158_v15 = vpop.f32.mrb[63].mxu0  ;;  %v9421_v36 = vpop.f32.mrb[95].mxu1  ;;  %v8245_v12 = vadd.f32 %v13752_v0, %v8227_v29 }
0x1b43   :  { %v11148_v24 = vadd.f32 %v8158_v15, %v14764_v58 }
0x1b44   :  { %v8513_v20 = vmul.f32 -1.442695, %v11147_v56 }
0x1b45   :  { %v8514_v19 = vmul.f32 -1.442695, %v11148_v24 }
0x1b46   :  { %11606 = vpow2.f32 %v8513_v20 }
0x1b47   :  { %11608 = vpow2.f32 %v8514_v19 }
0x1b50   :  { %v11607_v51 = vpop.eup %11606 }
0x1b51   :  { %v8235_v59 = vadd.f32 1.0, %v11607_v51  ;;  %v11609_v47 = vpop.eup %11608 }
0x1b52   :  { %v8242_v17 = vadd.f32 1.0, %v11609_v47 }
0x1b53   :  { %11610 = vrcp.f32 %v8235_v59 }
0x1b54   :  { %11612 = vrcp.f32 %v8242_v17 }
0x1b5d   :  { %v11611_v34 = vpop.eup %11610 }
0x1b5e   :  { %v8246_v31 = vmul.f32 %v11611_v34, %v8245_v12  ;;  %v11613_v13 = vpop.eup %11612 }
0x1b5f   :  { %v8249_v21 = vsub.f32 1.0, %v11613_v13  ;;  %v8251_v4 = vmul.f32 %v11613_v13, %v13758_v40 }
0x1b60   :  { %v8247_v23 = vadd.f32 %v8246_v31, %v8084_v5 }
0x1b62   :  { %11614 = vtanh.f32 %v8247_v23 }
0x1b6c   :  { %v11615_v53 = vpop.eup %11614 }
0x1b6d   :  { %v8250_v38 = vmul.f32 %v11615_v53, %v8249_v21 }
0x1b6f   :  { %v8252_v63 = vadd.f32 %v8251_v4, %v8250_v38 }
0x1b71   :  { %9439 = vmatmul.mubr.msk.f32.vlgmr.msra.gmra.mrb[64].mxu0 %vm314_vm1, %v8252_v63 }
0x1c44   :  { %v8337_v61 = vpop.f32.mrb[64].mxu0 }
0x1c45   :  { %v8338_v0 = vadd.f32 %v8515_v18, %v8337_v61  ;;  %v9440_v37 = vpop.f32.mrb[65].mxu0 }
0x1c47   :  { %8342 = vst.msk [vmem:[%s13912_s16] sm:$0xff] %vm8341_vm2, %v8338_v0 }
0x1c48   :  { %8347 = vsyncpa [#allocation4], 1 }
0x1c49   :  { %8348 = vsyncpa [#allocation6], 1 }
0x1c4a   :  { %8349 = vsyncpa [#allocation9], 1 }
0x1c4b   :  { %8350 = vsyncpa [#allocation12], 1 }
0x1c4c   :  { %8351 = vsyncpa [#allocation15], 1 }

</bundles_post_ra>
